<compile_context>
chip_gen: v7x
topology: tpu7x:2x2x1
jax: 0.10.0
libtpu: 0.0.40
codegen_flags: <defaults>
</compile_context>

<pallas_src>
import numpy as np

import jax
import jax.numpy as jnp
from jax import lax
from jax.experimental import pallas as pl
from jax.experimental.pallas import tpu as pltpu

BN_EPS = 1e-5
N_BATCH = 2
FC_OUT = 2

# Per layer: (Ci, Hi, Wi, Co, kh, kw, pkh, pkw); every pool uses stride (2, 2).
LAYERS = (
    (2, 12, 96, 6, 3, 5, 2, 2),
    (6, 5, 46, 24, 3, 5, 1, 3),
    (24, 2, 20, 4, 1, 5, 1, 3),
)


def _dims(cfg):
    Ci, Hi, Wi, Co, kh, kw, pkh, pkw = cfg
    NW = N_BATCH * Wi
    Li = Hi * NW
    Ho, Wo = Hi - kh + 1, Wi - kw + 1
    Lc = Li - ((kh - 1) * NW + (kw - 1))      # conv-output slab width (lanes)
    Hp, Wp = (Ho - pkh) // 2 + 1, (Wo - pkw) // 2 + 1
    Lm = Lc - ((pkh - 1) * NW + (pkw - 1))    # window-max slab width (lanes)
    Ln = Hp * N_BATCH * Wp                    # next layer's flattened width
    return NW, Li, Ho, Wo, Lc, Hp, Wp, Lm, Ln


def _col_scratch_shape():
    rows = max(kh * kw * Ci for (Ci, _, _, _, kh, kw, _, _) in LAYERS)
    cols = max(_dims(cfg)[4] for cfg in LAYERS)
    return (-(-rows // 8) * 8, -(-cols // 128) * 128)


def ecg2d_kernel(*refs):
    f32 = jnp.float32
    x_ref = refs[0]
    layer_refs = [refs[1 + 6 * i: 7 + 6 * i] for i in range(len(LAYERS))]
    base = 1 + 6 * len(LAYERS)
    wfc_ref, bfc_ref = refs[base], refs[base + 1]
    o_ref, col_ref = refs[base + 2], refs[base + 3]

    a = x_ref[...]                                    # (Ci, Li), lane = h*(N*W)+n*W+w
    for cfg, (w_r, b_r, g_r, be_r, msk_r, sel_r) in zip(LAYERS, layer_refs):
        Ci, Hi, Wi, Co, kh, kw, pkh, pkw = cfg
        NW, Li, Ho, Wo, Lc, Hp, Wp, Lm, Ln = _dims(cfg)

        # -- im2col: kh*kw lane-shifted copies stacked on the contraction axis --
        t = 0
        for dh in range(kh):
            for dw in range(kw):
                off = dh * NW + dw
                col_ref[t * Ci:(t + 1) * Ci, 0:Lc] = a[:, off:off + Lc]
                t += 1
        K = kh * kw * Ci

        # -- convolution: a single MXU matmul per layer --
        y = jnp.dot(w_r[...], col_ref[0:K, 0:Lc],
                    preferred_element_type=f32) + b_r[...]            # (Co, Lc)

        # -- BatchNorm (training batch stats over valid columns) + ReLU, fused --
        msk = msk_r[...]                                               # (1, Lc) 0/1
        inv_cnt = 1.0 / float(N_BATCH * Ho * Wo)
        mean = jnp.sum(y * msk, axis=1, keepdims=True) * inv_cnt       # (Co, 1)
        d = (y - mean) * msk
        var = jnp.sum(d * d, axis=1, keepdims=True) * inv_cnt
        scale = g_r[...] * lax.rsqrt(var + BN_EPS)
        shift = be_r[...] - mean * scale
        act = jnp.maximum(y * scale + shift, 0.0)                      # (Co, Lc)

        # -- MaxPool (stride (2,2)): shifted maxes + one 0/1 gather matmul --
        wmax = act[:, 0:Lm]
        for dph in range(pkh):
            for dpw in range(pkw):
                if dph == 0 and dpw == 0:
                    continue
                off = dph * NW + dpw
                wmax = jnp.maximum(wmax, act[:, off:off + Lm])
        a = jnp.dot(wmax, sel_r[...], preferred_element_type=f32)      # (Co, Ln)

    # -- FC head: flatten channel-major onto lanes, one matmul, one dense store --
    C_last, L_last = a.shape
    for c in range(C_last):
        col_ref[0:1, c * L_last:(c + 1) * L_last] = a[c:c + 1, :]
    feat = col_ref[0:1, 0:C_last * L_last]                             # (1, C*L)
    out = jnp.dot(feat, wfc_ref[...], preferred_element_type=f32) + bfc_ref[...]
    o_ref[...] = jnp.maximum(out, 0.0)                                 # (1, N*2)


def _prep_conv_w(w):
    # (Co, Ci, kh, kw) -> (Co, kh*kw*Ci); contraction order (dh, dw, ci) to match im2col.
    Co, Ci, kh, kw = w.shape
    return jnp.transpose(w, (0, 2, 3, 1)).reshape(Co, kh * kw * Ci)


def _build_static_tables():
    """Precompute per-layer valid-column masks and 0/1 pool-gather matrices (shape-only)."""
    masks, sels = [], []
    for cfg in LAYERS:
        Ci, Hi, Wi, Co, kh, kw, pkh, pkw = cfg
        NW, Li, Ho, Wo, Lc, Hp, Wp, Lm, Ln = _dims(cfg)
        l = np.arange(Lc)
        h = l // NW
        w = (l % NW) % Wi
        masks.append(((h < Ho) & (w < Wo)).astype(np.float32)[None, :])
        S = np.zeros((Lm, Ln), np.float32)
        hp = np.arange(Hp)[:, None, None]
        nn = np.arange(N_BATCH)[None, :, None]
        wp = np.arange(Wp)[None, None, :]
        src = (2 * hp) * NW + nn * Wi + 2 * wp
        dst = hp * (N_BATCH * Wp) + nn * Wp + wp
        S[src.ravel(), dst.ravel()] = 1.0
        sels.append(S)
    return masks, sels


def ecg2dnet_forward(x_nchw, params):
    (w1, b1, g1, be1, w2, b2, g2, be2, w3, b3, g3, be3, wfc, bfc) = params
    N, C, H, W = x_nchw.shape
    assert (N, C, H, W) == (N_BATCH, LAYERS[0][0], LAYERS[0][1], LAYERS[0][2])

    # Glue: layout / parameter shuffling in plain JAX + numpy (static tables).
    x_flat = jnp.transpose(x_nchw, (1, 2, 0, 3)).reshape(C, H * N * W)
    masks, sels = _build_static_tables()

    # Expanded FC weight so the channel-major flattened (1, C*Hp*N*Wp) feature vector
    # hits it in a single matmul producing (1, N*FC_OUT).
    Co3 = LAYERS[-1][3]
    _, _, _, _, _, Hp3, Wp3, _, Ln3 = _dims(LAYERS[-1])
    G = wfc.reshape(FC_OUT, Co3, Hp3, Wp3)
    wfc_big = jnp.einsum('ochw,nm->chnwmo', G, jnp.eye(N_BATCH, dtype=wfc.dtype))
    wfc_big = wfc_big.reshape(Co3 * Ln3, N_BATCH * FC_OUT)
    bfc_big = jnp.tile(bfc, N_BATCH).reshape(1, N_BATCH * FC_OUT)

    args = [x_flat]
    for (w, b, g, be), mk, S in zip(
            [(w1, b1, g1, be1), (w2, b2, g2, be2), (w3, b3, g3, be3)], masks, sels):
        args += [_prep_conv_w(w), b.reshape(-1, 1), g.reshape(-1, 1),
                 be.reshape(-1, 1), jnp.asarray(mk), jnp.asarray(S)]
    args += [wfc_big, bfc_big]

    out_flat = pl.pallas_call(
        ecg2d_kernel,
        out_shape=jax.ShapeDtypeStruct((1, N_BATCH * FC_OUT), jnp.float32),
        in_specs=[pl.BlockSpec(memory_space=pltpu.MemorySpace.VMEM)] * len(args),
        out_specs=pl.BlockSpec(memory_space=pltpu.MemorySpace.VMEM),
        scratch_shapes=[pltpu.VMEM(_col_scratch_shape(), jnp.float32)],
    )(*args)
    return out_flat.reshape(N_BATCH, FC_OUT)


def ecg2dnet_reference(x, params):
    """Pure-JAX reference (matches the PyTorch forward in training mode)."""
    (w1, b1, g1, be1, w2, b2, g2, be2, w3, b3, g3, be3, wfc, bfc) = params

    def conv(x, w, b):
        y = lax.conv_general_dilated(x, w, (1, 1), 'VALID',
                                     dimension_numbers=('NCHW', 'OIHW', 'NCHW'))
        return y + b[None, :, None, None]

    def bn_relu(x, g, be):
        m = jnp.mean(x, axis=(0, 2, 3), keepdims=True)
        v = jnp.mean((x - m) ** 2, axis=(0, 2, 3), keepdims=True)
        y = (x - m) * lax.rsqrt(v + BN_EPS) * g[None, :, None, None] + be[None, :, None, None]
        return jax.nn.relu(y)

    def pool(x, kh, kw):
        return lax.reduce_window(x, -jnp.inf, lax.max,
                                 (1, 1, kh, kw), (1, 1, 2, 2), 'VALID')

    x = pool(bn_relu(conv(x, w1, b1), g1, be1), 2, 2)
    x = pool(bn_relu(conv(x, w2, b2), g2, be2), 1, 3)
    x = pool(bn_relu(conv(x, w3, b3), g3, be3), 1, 3)
    x = x.reshape(x.shape[0], -1)
    return jax.nn.relu(x @ wfc.T + bfc)


if __name__ == "__main__":
    key = jax.random.PRNGKey(0)
    ks = jax.random.split(key, 12)
    f32 = jnp.float32

    # Input chosen so the flatten yields exactly 4*1*7 = 28 features (as fc1 expects).
    x = jax.random.normal(ks[0], (2, 2, 12, 96), dtype=f32)

    params = (
        0.2 * jax.random.normal(ks[1], (6, 2, 3, 5), f32),    # conv1.weight
        0.1 * jax.random.normal(ks[2], (6,), f32),             # conv1.bias
        1.0 + 0.1 * jax.random.normal(ks[3], (6,), f32),       # bn1.weight
        0.1 * jax.random.normal(ks[4], (6,), f32),             # bn1.bias
        0.1 * jax.random.normal(ks[5], (24, 6, 3, 5), f32),    # conv2.weight
        0.1 * jax.random.normal(ks[6], (24,), f32),            # conv2.bias
        1.0 + 0.1 * jax.random.normal(ks[7], (24,), f32),      # bn2.weight
        0.1 * jax.random.normal(ks[8], (24,), f32),            # bn2.bias
        0.1 * jax.random.normal(ks[9], (4, 24, 1, 5), f32),    # conv3.weight
        0.1 * jax.random.normal(ks[10], (4,), f32),            # conv3.bias
        jnp.ones((4,), f32),                                    # bn3.weight
        jnp.zeros((4,), f32),                                   # bn3.bias
        0.1 * jax.random.normal(ks[11], (2, 28), f32),          # fc1.weight
        jnp.zeros((2,), f32) + 0.05,                            # fc1.bias
    )

    out = jax.block_until_ready(ecg2dnet_forward(x, params))
    ref = jax.block_until_ready(ecg2dnet_reference(x, params))

    assert out.shape == (2, 2), out.shape
    if not jnp.allclose(out, ref, rtol=1e-3, atol=1e-3):
        raise AssertionError(f"mismatch: max abs diff {jnp.max(jnp.abs(out - ref))}")
    print("KERNEL_OK")
</pallas_src>

<mosaic_0001>
module attributes {stable_mosaic.version = 11 : i64} {
  func.func @ecg2d_kernel(%arg0: memref<2x2304xf32, #tpu.memory_space<vmem>>, %arg1: memref<6x30xf32, #tpu.memory_space<vmem>>, %arg2: memref<6x1xf32, #tpu.memory_space<vmem>>, %arg3: memref<6x1xf32, #tpu.memory_space<vmem>>, %arg4: memref<6x1xf32, #tpu.memory_space<vmem>>, %arg5: memref<1x1916xf32, #tpu.memory_space<vmem>>, %arg6: memref<1723x460xf32, #tpu.memory_space<vmem>>, %arg7: memref<24x90xf32, #tpu.memory_space<vmem>>, %arg8: memref<24x1xf32, #tpu.memory_space<vmem>>, %arg9: memref<24x1xf32, #tpu.memory_space<vmem>>, %arg10: memref<24x1xf32, #tpu.memory_space<vmem>>, %arg11: memref<1x272xf32, #tpu.memory_space<vmem>>, %arg12: memref<270x80xf32, #tpu.memory_space<vmem>>, %arg13: memref<4x120xf32, #tpu.memory_space<vmem>>, %arg14: memref<4x1xf32, #tpu.memory_space<vmem>>, %arg15: memref<4x1xf32, #tpu.memory_space<vmem>>, %arg16: memref<4x1xf32, #tpu.memory_space<vmem>>, %arg17: memref<1x76xf32, #tpu.memory_space<vmem>>, %arg18: memref<74x14xf32, #tpu.memory_space<vmem>>, %arg19: memref<56x4xf32, #tpu.memory_space<vmem>>, %arg20: memref<1x4xf32, #tpu.memory_space<vmem>>, %arg21: memref<1x4xf32, #tpu.memory_space<vmem>>, %arg22: memref<120x1920xf32, #tpu.memory_space<vmem>>) attributes {dimension_semantics = [], scalar_prefetch = 0 : i64, scratch_operands = 1 : i64, tpu.core_type = #tpu.core_type<tc>} {
    %c0 = arith.constant 0 : index
    %c0_0 = arith.constant 0 : index
    %0 = vector.load %arg0[%c0, %c0_0] : memref<2x2304xf32, #tpu.memory_space<vmem>>, vector<2x2304xf32>
    %1 = vector.extract_strided_slice %0 {offsets = [0, 0], sizes = [2, 1916], strides = [1, 1]} : vector<2x2304xf32> to vector<2x1916xf32>
    %c0_1 = arith.constant 0 : index
    %c0_2 = arith.constant 0 : index
    %2 = vector.load %arg22[%c0_1, %c0_2] : memref<120x1920xf32, #tpu.memory_space<vmem>>, vector<2x1916xf32>
    tpu.vector_store %arg22[%c0_1, %c0_2], %1 {strides = array<i32>} : memref<120x1920xf32, #tpu.memory_space<vmem>>, vector<2x1916xf32>,
    %3 = vector.extract_strided_slice %0 {offsets = [0, 1], sizes = [2, 1916], strides = [1, 1]} : vector<2x2304xf32> to vector<2x1916xf32>
    %c2 = arith.constant 2 : index
    %c0_3 = arith.constant 0 : index
    %4 = vector.load %arg22[%c2, %c0_3] : memref<120x1920xf32, #tpu.memory_space<vmem>>, vector<2x1916xf32>
    tpu.vector_store %arg22[%c2, %c0_3], %3 {strides = array<i32>} : memref<120x1920xf32, #tpu.memory_space<vmem>>, vector<2x1916xf32>,
    %5 = vector.extract_strided_slice %0 {offsets = [0, 2], sizes = [2, 1916], strides = [1, 1]} : vector<2x2304xf32> to vector<2x1916xf32>
    %c4 = arith.constant 4 : index
    %c0_4 = arith.constant 0 : index
    %6 = vector.load %arg22[%c4, %c0_4] : memref<120x1920xf32, #tpu.memory_space<vmem>>, vector<2x1916xf32>
    tpu.vector_store %arg22[%c4, %c0_4], %5 {strides = array<i32>} : memref<120x1920xf32, #tpu.memory_space<vmem>>, vector<2x1916xf32>,
    %7 = vector.extract_strided_slice %0 {offsets = [0, 3], sizes = [2, 1916], strides = [1, 1]} : vector<2x2304xf32> to vector<2x1916xf32>
    %c6 = arith.constant 6 : index
    %c0_5 = arith.constant 0 : index
    %8 = vector.load %arg22[%c6, %c0_5] : memref<120x1920xf32, #tpu.memory_space<vmem>>, vector<2x1916xf32>
    tpu.vector_store %arg22[%c6, %c0_5], %7 {strides = array<i32>} : memref<120x1920xf32, #tpu.memory_space<vmem>>, vector<2x1916xf32>,
    %9 = vector.extract_strided_slice %0 {offsets = [0, 4], sizes = [2, 1916], strides = [1, 1]} : vector<2x2304xf32> to vector<2x1916xf32>
    %c8 = arith.constant 8 : index
    %c0_6 = arith.constant 0 : index
    %10 = vector.load %arg22[%c8, %c0_6] : memref<120x1920xf32, #tpu.memory_space<vmem>>, vector<2x1916xf32>
    tpu.vector_store %arg22[%c8, %c0_6], %9 {strides = array<i32>} : memref<120x1920xf32, #tpu.memory_space<vmem>>, vector<2x1916xf32>,
    %11 = vector.extract_strided_slice %0 {offsets = [0, 192], sizes = [2, 1916], strides = [1, 1]} : vector<2x2304xf32> to vector<2x1916xf32>
    %c10 = arith.constant 10 : index
    %c0_7 = arith.constant 0 : index
    %12 = vector.load %arg22[%c10, %c0_7] : memref<120x1920xf32, #tpu.memory_space<vmem>>, vector<2x1916xf32>
    tpu.vector_store %arg22[%c10, %c0_7], %11 {strides = array<i32>} : memref<120x1920xf32, #tpu.memory_space<vmem>>, vector<2x1916xf32>,
    %13 = vector.extract_strided_slice %0 {offsets = [0, 193], sizes = [2, 1916], strides = [1, 1]} : vector<2x2304xf32> to vector<2x1916xf32>
    %c12 = arith.constant 12 : index
    %c0_8 = arith.constant 0 : index
    %14 = vector.load %arg22[%c12, %c0_8] : memref<120x1920xf32, #tpu.memory_space<vmem>>, vector<2x1916xf32>
    tpu.vector_store %arg22[%c12, %c0_8], %13 {strides = array<i32>} : memref<120x1920xf32, #tpu.memory_space<vmem>>, vector<2x1916xf32>,
    %15 = vector.extract_strided_slice %0 {offsets = [0, 194], sizes = [2, 1916], strides = [1, 1]} : vector<2x2304xf32> to vector<2x1916xf32>
    %c14 = arith.constant 14 : index
    %c0_9 = arith.constant 0 : index
    %16 = vector.load %arg22[%c14, %c0_9] : memref<120x1920xf32, #tpu.memory_space<vmem>>, vector<2x1916xf32>
    tpu.vector_store %arg22[%c14, %c0_9], %15 {strides = array<i32>} : memref<120x1920xf32, #tpu.memory_space<vmem>>, vector<2x1916xf32>,
    %17 = vector.extract_strided_slice %0 {offsets = [0, 195], sizes = [2, 1916], strides = [1, 1]} : vector<2x2304xf32> to vector<2x1916xf32>
    %c16 = arith.constant 16 : index
    %c0_10 = arith.constant 0 : index
    %18 = vector.load %arg22[%c16, %c0_10] : memref<120x1920xf32, #tpu.memory_space<vmem>>, vector<2x1916xf32>
    tpu.vector_store %arg22[%c16, %c0_10], %17 {strides = array<i32>} : memref<120x1920xf32, #tpu.memory_space<vmem>>, vector<2x1916xf32>,
    %19 = vector.extract_strided_slice %0 {offsets = [0, 196], sizes = [2, 1916], strides = [1, 1]} : vector<2x2304xf32> to vector<2x1916xf32>
    %c18 = arith.constant 18 : index
    %c0_11 = arith.constant 0 : index
    %20 = vector.load %arg22[%c18, %c0_11] : memref<120x1920xf32, #tpu.memory_space<vmem>>, vector<2x1916xf32>
    tpu.vector_store %arg22[%c18, %c0_11], %19 {strides = array<i32>} : memref<120x1920xf32, #tpu.memory_space<vmem>>, vector<2x1916xf32>,
    %21 = vector.extract_strided_slice %0 {offsets = [0, 384], sizes = [2, 1916], strides = [1, 1]} : vector<2x2304xf32> to vector<2x1916xf32>
    %c20 = arith.constant 20 : index
    %c0_12 = arith.constant 0 : index
    %22 = vector.load %arg22[%c20, %c0_12] : memref<120x1920xf32, #tpu.memory_space<vmem>>, vector<2x1916xf32>
    tpu.vector_store %arg22[%c20, %c0_12], %21 {strides = array<i32>} : memref<120x1920xf32, #tpu.memory_space<vmem>>, vector<2x1916xf32>,
    %23 = vector.extract_strided_slice %0 {offsets = [0, 385], sizes = [2, 1916], strides = [1, 1]} : vector<2x2304xf32> to vector<2x1916xf32>
    %c22 = arith.constant 22 : index
    %c0_13 = arith.constant 0 : index
    %24 = vector.load %arg22[%c22, %c0_13] : memref<120x1920xf32, #tpu.memory_space<vmem>>, vector<2x1916xf32>
    tpu.vector_store %arg22[%c22, %c0_13], %23 {strides = array<i32>} : memref<120x1920xf32, #tpu.memory_space<vmem>>, vector<2x1916xf32>,
    %25 = vector.extract_strided_slice %0 {offsets = [0, 386], sizes = [2, 1916], strides = [1, 1]} : vector<2x2304xf32> to vector<2x1916xf32>
    %c24 = arith.constant 24 : index
    %c0_14 = arith.constant 0 : index
    %26 = vector.load %arg22[%c24, %c0_14] : memref<120x1920xf32, #tpu.memory_space<vmem>>, vector<2x1916xf32>
    tpu.vector_store %arg22[%c24, %c0_14], %25 {strides = array<i32>} : memref<120x1920xf32, #tpu.memory_space<vmem>>, vector<2x1916xf32>,
    %27 = vector.extract_strided_slice %0 {offsets = [0, 387], sizes = [2, 1916], strides = [1, 1]} : vector<2x2304xf32> to vector<2x1916xf32>
    %c26 = arith.constant 26 : index
    %c0_15 = arith.constant 0 : index
    %28 = vector.load %arg22[%c26, %c0_15] : memref<120x1920xf32, #tpu.memory_space<vmem>>, vector<2x1916xf32>
    tpu.vector_store %arg22[%c26, %c0_15], %27 {strides = array<i32>} : memref<120x1920xf32, #tpu.memory_space<vmem>>, vector<2x1916xf32>,
    %29 = vector.extract_strided_slice %0 {offsets = [0, 388], sizes = [2, 1916], strides = [1, 1]} : vector<2x2304xf32> to vector<2x1916xf32>
    %c28 = arith.constant 28 : index
    %c0_16 = arith.constant 0 : index
    %30 = vector.load %arg22[%c28, %c0_16] : memref<120x1920xf32, #tpu.memory_space<vmem>>, vector<2x1916xf32>
    tpu.vector_store %arg22[%c28, %c0_16], %29 {strides = array<i32>} : memref<120x1920xf32, #tpu.memory_space<vmem>>, vector<2x1916xf32>,
    %c0_17 = arith.constant 0 : index
    %c0_18 = arith.constant 0 : index
    %31 = vector.load %arg1[%c0_17, %c0_18] : memref<6x30xf32, #tpu.memory_space<vmem>>, vector<6x30xf32>
    %c0_19 = arith.constant 0 : index
    %c0_20 = arith.constant 0 : index
    %32 = vector.load %arg22[%c0_19, %c0_20] : memref<120x1920xf32, #tpu.memory_space<vmem>>, vector<30x1916xf32>
    %cst = arith.constant dense<0.000000e+00> : vector<6x1916xf32>
    %33 = tpu.matmul %31, %32, %cst {dimension_numbers = #tpu.dot_dimension_numbers<[1], [0], [0], [1], [0, 0, 1, 1], [], []>} : vector<6x30xf32>, vector<30x1916xf32>, vector<6x1916xf32> -> vector<6x1916xf32>
    %c0_21 = arith.constant 0 : index
    %c0_22 = arith.constant 0 : index
    %34 = vector.load %arg2[%c0_21, %c0_22] : memref<6x1xf32, #tpu.memory_space<vmem>>, vector<6x1xf32>
    %35 = vector.broadcast %34 : vector<6x1xf32> to vector<6x1916xf32>
    %36 = arith.addf %33, %35 : vector<6x1916xf32>
    %c0_23 = arith.constant 0 : index
    %c0_24 = arith.constant 0 : index
    %37 = vector.load %arg5[%c0_23, %c0_24] : memref<1x1916xf32, #tpu.memory_space<vmem>>, vector<1x1916xf32>
    %38 = vector.broadcast %37 : vector<1x1916xf32> to vector<6x1916xf32>
    %39 = arith.mulf %36, %38 : vector<6x1916xf32>
    %cst_25 = arith.constant dense<0.000000e+00> : vector<6xf32>
    %40 = vector.multi_reduction <add>, %39, %cst_25 [1] : vector<6x1916xf32> to vector<6xf32>
    %41 = vector.shape_cast %40 : vector<6xf32> to vector<6x1xf32>
    %cst_26 = arith.constant 5.43478236E-4 : f32
    %42 = vector.broadcast %cst_26 : f32 to vector<6x1xf32>
    %43 = arith.mulf %41, %42 : vector<6x1xf32>
    %44 = vector.broadcast %43 : vector<6x1xf32> to vector<6x1916xf32>
    %45 = arith.subf %36, %44 : vector<6x1916xf32>
    %46 = vector.broadcast %37 : vector<1x1916xf32> to vector<6x1916xf32>
    %47 = arith.mulf %45, %46 : vector<6x1916xf32>
    %48 = arith.mulf %47, %47 : vector<6x1916xf32>
    %cst_27 = arith.constant dense<0.000000e+00> : vector<6xf32>
    %49 = vector.multi_reduction <add>, %48, %cst_27 [1] : vector<6x1916xf32> to vector<6xf32>
    %50 = vector.shape_cast %49 : vector<6xf32> to vector<6x1xf32>
    %cst_28 = arith.constant 5.43478236E-4 : f32
    %51 = vector.broadcast %cst_28 : f32 to vector<6x1xf32>
    %52 = arith.mulf %50, %51 : vector<6x1xf32>
    %c0_29 = arith.constant 0 : index
    %c0_30 = arith.constant 0 : index
    %53 = vector.load %arg3[%c0_29, %c0_30] : memref<6x1xf32, #tpu.memory_space<vmem>>, vector<6x1xf32>
    %cst_31 = arith.constant 9.99999974E-6 : f32
    %54 = vector.broadcast %cst_31 : f32 to vector<6x1xf32>
    %55 = arith.addf %52, %54 : vector<6x1xf32>
    %56 = math.rsqrt %55 : vector<6x1xf32>
    %57 = arith.mulf %53, %56 : vector<6x1xf32>
    %c0_32 = arith.constant 0 : index
    %c0_33 = arith.constant 0 : index
    %58 = vector.load %arg4[%c0_32, %c0_33] : memref<6x1xf32, #tpu.memory_space<vmem>>, vector<6x1xf32>
    %59 = arith.mulf %43, %57 : vector<6x1xf32>
    %60 = arith.subf %58, %59 : vector<6x1xf32>
    %61 = vector.broadcast %57 : vector<6x1xf32> to vector<6x1916xf32>
    %62 = arith.mulf %36, %61 : vector<6x1916xf32>
    %63 = vector.broadcast %60 : vector<6x1xf32> to vector<6x1916xf32>
    %64 = arith.addf %62, %63 : vector<6x1916xf32>
    %cst_34 = arith.constant 0.000000e+00 : f32
    %65 = vector.broadcast %cst_34 : f32 to vector<6x1916xf32>
    %66 = arith.maximumf %64, %65 : vector<6x1916xf32>
    %67 = vector.extract_strided_slice %66 {offsets = [0, 0], sizes = [6, 1723], strides = [1, 1]} : vector<6x1916xf32> to vector<6x1723xf32>
    %68 = vector.extract_strided_slice %66 {offsets = [0, 1], sizes = [6, 1723], strides = [1, 1]} : vector<6x1916xf32> to vector<6x1723xf32>
    %69 = arith.maximumf %67, %68 : vector<6x1723xf32>
    %70 = vector.extract_strided_slice %66 {offsets = [0, 192], sizes = [6, 1723], strides = [1, 1]} : vector<6x1916xf32> to vector<6x1723xf32>
    %71 = arith.maximumf %69, %70 : vector<6x1723xf32>
    %72 = vector.extract_strided_slice %66 {offsets = [0, 193], sizes = [6, 1723], strides = [1, 1]} : vector<6x1916xf32> to vector<6x1723xf32>
    %73 = arith.maximumf %71, %72 : vector<6x1723xf32>
    %c0_35 = arith.constant 0 : index
    %c0_36 = arith.constant 0 : index
    %74 = vector.load %arg6[%c0_35, %c0_36] : memref<1723x460xf32, #tpu.memory_space<vmem>>, vector<1723x460xf32>
    %cst_37 = arith.constant dense<0.000000e+00> : vector<6x460xf32>
    %75 = tpu.matmul %73, %74, %cst_37 {dimension_numbers = #tpu.dot_dimension_numbers<[1], [0], [0], [1], [0, 0, 1, 1], [], []>} : vector<6x1723xf32>, vector<1723x460xf32>, vector<6x460xf32> -> vector<6x460xf32>
    %76 = vector.extract_strided_slice %75 {offsets = [0, 0], sizes = [6, 272], strides = [1, 1]} : vector<6x460xf32> to vector<6x272xf32>
    %c0_38 = arith.constant 0 : index
    %c0_39 = arith.constant 0 : index
    %77 = vector.load %arg22[%c0_38, %c0_39] : memref<120x1920xf32, #tpu.memory_space<vmem>>, vector<6x272xf32>
    tpu.vector_store %arg22[%c0_38, %c0_39], %76 {strides = array<i32>} : memref<120x1920xf32, #tpu.memory_space<vmem>>, vector<6x272xf32>,
    %78 = vector.extract_strided_slice %75 {offsets = [0, 1], sizes = [6, 272], strides = [1, 1]} : vector<6x460xf32> to vector<6x272xf32>
    %c6_40 = arith.constant 6 : index
    %c0_41 = arith.constant 0 : index
    %79 = vector.load %arg22[%c6_40, %c0_41] : memref<120x1920xf32, #tpu.memory_space<vmem>>, vector<6x272xf32>
    tpu.vector_store %arg22[%c6_40, %c0_41], %78 {strides = array<i32>} : memref<120x1920xf32, #tpu.memory_space<vmem>>, vector<6x272xf32>,
    %80 = vector.extract_strided_slice %75 {offsets = [0, 2], sizes = [6, 272], strides = [1, 1]} : vector<6x460xf32> to vector<6x272xf32>
    %c12_42 = arith.constant 12 : index
    %c0_43 = arith.constant 0 : index
    %81 = vector.load %arg22[%c12_42, %c0_43] : memref<120x1920xf32, #tpu.memory_space<vmem>>, vector<6x272xf32>
    tpu.vector_store %arg22[%c12_42, %c0_43], %80 {strides = array<i32>} : memref<120x1920xf32, #tpu.memory_space<vmem>>, vector<6x272xf32>,
    %82 = vector.extract_strided_slice %75 {offsets = [0, 3], sizes = [6, 272], strides = [1, 1]} : vector<6x460xf32> to vector<6x272xf32>
    %c18_44 = arith.constant 18 : index
    %c0_45 = arith.constant 0 : index
    %83 = vector.load %arg22[%c18_44, %c0_45] : memref<120x1920xf32, #tpu.memory_space<vmem>>, vector<6x272xf32>
    tpu.vector_store %arg22[%c18_44, %c0_45], %82 {strides = array<i32>} : memref<120x1920xf32, #tpu.memory_space<vmem>>, vector<6x272xf32>,
    %84 = vector.extract_strided_slice %75 {offsets = [0, 4], sizes = [6, 272], strides = [1, 1]} : vector<6x460xf32> to vector<6x272xf32>
    %c24_46 = arith.constant 24 : index
    %c0_47 = arith.constant 0 : index
    %85 = vector.load %arg22[%c24_46, %c0_47] : memref<120x1920xf32, #tpu.memory_space<vmem>>, vector<6x272xf32>
    tpu.vector_store %arg22[%c24_46, %c0_47], %84 {strides = array<i32>} : memref<120x1920xf32, #tpu.memory_space<vmem>>, vector<6x272xf32>,
    %86 = vector.extract_strided_slice %75 {offsets = [0, 92], sizes = [6, 272], strides = [1, 1]} : vector<6x460xf32> to vector<6x272xf32>
    %c30 = arith.constant 30 : index
    %c0_48 = arith.constant 0 : index
    %87 = vector.load %arg22[%c30, %c0_48] : memref<120x1920xf32, #tpu.memory_space<vmem>>, vector<6x272xf32>
    tpu.vector_store %arg22[%c30, %c0_48], %86 {strides = array<i32>} : memref<120x1920xf32, #tpu.memory_space<vmem>>, vector<6x272xf32>,
    %88 = vector.extract_strided_slice %75 {offsets = [0, 93], sizes = [6, 272], strides = [1, 1]} : vector<6x460xf32> to vector<6x272xf32>
    %c36 = arith.constant 36 : index
    %c0_49 = arith.constant 0 : index
    %89 = vector.load %arg22[%c36, %c0_49] : memref<120x1920xf32, #tpu.memory_space<vmem>>, vector<6x272xf32>
    tpu.vector_store %arg22[%c36, %c0_49], %88 {strides = array<i32>} : memref<120x1920xf32, #tpu.memory_space<vmem>>, vector<6x272xf32>,
    %90 = vector.extract_strided_slice %75 {offsets = [0, 94], sizes = [6, 272], strides = [1, 1]} : vector<6x460xf32> to vector<6x272xf32>
    %c42 = arith.constant 42 : index
    %c0_50 = arith.constant 0 : index
    %91 = vector.load %arg22[%c42, %c0_50] : memref<120x1920xf32, #tpu.memory_space<vmem>>, vector<6x272xf32>
    tpu.vector_store %arg22[%c42, %c0_50], %90 {strides = array<i32>} : memref<120x1920xf32, #tpu.memory_space<vmem>>, vector<6x272xf32>,
    %92 = vector.extract_strided_slice %75 {offsets = [0, 95], sizes = [6, 272], strides = [1, 1]} : vector<6x460xf32> to vector<6x272xf32>
    %c48 = arith.constant 48 : index
    %c0_51 = arith.constant 0 : index
    %93 = vector.load %arg22[%c48, %c0_51] : memref<120x1920xf32, #tpu.memory_space<vmem>>, vector<6x272xf32>
    tpu.vector_store %arg22[%c48, %c0_51], %92 {strides = array<i32>} : memref<120x1920xf32, #tpu.memory_space<vmem>>, vector<6x272xf32>,
    %94 = vector.extract_strided_slice %75 {offsets = [0, 96], sizes = [6, 272], strides = [1, 1]} : vector<6x460xf32> to vector<6x272xf32>
    %c54 = arith.constant 54 : index
    %c0_52 = arith.constant 0 : index
    %95 = vector.load %arg22[%c54, %c0_52] : memref<120x1920xf32, #tpu.memory_space<vmem>>, vector<6x272xf32>
    tpu.vector_store %arg22[%c54, %c0_52], %94 {strides = array<i32>} : memref<120x1920xf32, #tpu.memory_space<vmem>>, vector<6x272xf32>,
    %96 = vector.extract_strided_slice %75 {offsets = [0, 184], sizes = [6, 272], strides = [1, 1]} : vector<6x460xf32> to vector<6x272xf32>
    %c60 = arith.constant 60 : index
    %c0_53 = arith.constant 0 : index
    %97 = vector.load %arg22[%c60, %c0_53] : memref<120x1920xf32, #tpu.memory_space<vmem>>, vector<6x272xf32>
    tpu.vector_store %arg22[%c60, %c0_53], %96 {strides = array<i32>} : memref<120x1920xf32, #tpu.memory_space<vmem>>, vector<6x272xf32>,
    %98 = vector.extract_strided_slice %75 {offsets = [0, 185], sizes = [6, 272], strides = [1, 1]} : vector<6x460xf32> to vector<6x272xf32>
    %c66 = arith.constant 66 : index
    %c0_54 = arith.constant 0 : index
    %99 = vector.load %arg22[%c66, %c0_54] : memref<120x1920xf32, #tpu.memory_space<vmem>>, vector<6x272xf32>
    tpu.vector_store %arg22[%c66, %c0_54], %98 {strides = array<i32>} : memref<120x1920xf32, #tpu.memory_space<vmem>>, vector<6x272xf32>,
    %100 = vector.extract_strided_slice %75 {offsets = [0, 186], sizes = [6, 272], strides = [1, 1]} : vector<6x460xf32> to vector<6x272xf32>
    %c72 = arith.constant 72 : index
    %c0_55 = arith.constant 0 : index
    %101 = vector.load %arg22[%c72, %c0_55] : memref<120x1920xf32, #tpu.memory_space<vmem>>, vector<6x272xf32>
    tpu.vector_store %arg22[%c72, %c0_55], %100 {strides = array<i32>} : memref<120x1920xf32, #tpu.memory_space<vmem>>, vector<6x272xf32>,
    %102 = vector.extract_strided_slice %75 {offsets = [0, 187], sizes = [6, 272], strides = [1, 1]} : vector<6x460xf32> to vector<6x272xf32>
    %c78 = arith.constant 78 : index
    %c0_56 = arith.constant 0 : index
    %103 = vector.load %arg22[%c78, %c0_56] : memref<120x1920xf32, #tpu.memory_space<vmem>>, vector<6x272xf32>
    tpu.vector_store %arg22[%c78, %c0_56], %102 {strides = array<i32>} : memref<120x1920xf32, #tpu.memory_space<vmem>>, vector<6x272xf32>,
    %104 = vector.extract_strided_slice %75 {offsets = [0, 188], sizes = [6, 272], strides = [1, 1]} : vector<6x460xf32> to vector<6x272xf32>
    %c84 = arith.constant 84 : index
    %c0_57 = arith.constant 0 : index
    %105 = vector.load %arg22[%c84, %c0_57] : memref<120x1920xf32, #tpu.memory_space<vmem>>, vector<6x272xf32>
    tpu.vector_store %arg22[%c84, %c0_57], %104 {strides = array<i32>} : memref<120x1920xf32, #tpu.memory_space<vmem>>, vector<6x272xf32>,
    %c0_58 = arith.constant 0 : index
    %c0_59 = arith.constant 0 : index
    %106 = vector.load %arg7[%c0_58, %c0_59] : memref<24x90xf32, #tpu.memory_space<vmem>>, vector<24x90xf32>
    %c0_60 = arith.constant 0 : index
    %c0_61 = arith.constant 0 : index
    %107 = vector.load %arg22[%c0_60, %c0_61] : memref<120x1920xf32, #tpu.memory_space<vmem>>, vector<90x272xf32>
    %cst_62 = arith.constant dense<0.000000e+00> : vector<24x272xf32>
    %108 = tpu.matmul %106, %107, %cst_62 {dimension_numbers = #tpu.dot_dimension_numbers<[1], [0], [0], [1], [0, 0, 1, 1], [], []>} : vector<24x90xf32>, vector<90x272xf32>, vector<24x272xf32> -> vector<24x272xf32>
    %c0_63 = arith.constant 0 : index
    %c0_64 = arith.constant 0 : index
    %109 = vector.load %arg8[%c0_63, %c0_64] : memref<24x1xf32, #tpu.memory_space<vmem>>, vector<24x1xf32>
    %110 = vector.broadcast %109 : vector<24x1xf32> to vector<24x272xf32>
    %111 = arith.addf %108, %110 : vector<24x272xf32>
    %c0_65 = arith.constant 0 : index
    %c0_66 = arith.constant 0 : index
    %112 = vector.load %arg11[%c0_65, %c0_66] : memref<1x272xf32, #tpu.memory_space<vmem>>, vector<1x272xf32>
    %113 = vector.broadcast %112 : vector<1x272xf32> to vector<24x272xf32>
    %114 = arith.mulf %111, %113 : vector<24x272xf32>
    %cst_67 = arith.constant dense<0.000000e+00> : vector<24xf32>
    %115 = vector.multi_reduction <add>, %114, %cst_67 [1] : vector<24x272xf32> to vector<24xf32>
    %116 = vector.shape_cast %115 : vector<24xf32> to vector<24x1xf32>
    %cst_68 = arith.constant 0.0039682542 : f32
    %117 = vector.broadcast %cst_68 : f32 to vector<24x1xf32>
    %118 = arith.mulf %116, %117 : vector<24x1xf32>
    %119 = vector.broadcast %118 : vector<24x1xf32> to vector<24x272xf32>
    %120 = arith.subf %111, %119 : vector<24x272xf32>
    %121 = vector.broadcast %112 : vector<1x272xf32> to vector<24x272xf32>
    %122 = arith.mulf %120, %121 : vector<24x272xf32>
    %123 = arith.mulf %122, %122 : vector<24x272xf32>
    %cst_69 = arith.constant dense<0.000000e+00> : vector<24xf32>
    %124 = vector.multi_reduction <add>, %123, %cst_69 [1] : vector<24x272xf32> to vector<24xf32>
    %125 = vector.shape_cast %124 : vector<24xf32> to vector<24x1xf32>
    %cst_70 = arith.constant 0.0039682542 : f32
    %126 = vector.broadcast %cst_70 : f32 to vector<24x1xf32>
    %127 = arith.mulf %125, %126 : vector<24x1xf32>
    %c0_71 = arith.constant 0 : index
    %c0_72 = arith.constant 0 : index
    %128 = vector.load %arg9[%c0_71, %c0_72] : memref<24x1xf32, #tpu.memory_space<vmem>>, vector<24x1xf32>
    %cst_73 = arith.constant 9.99999974E-6 : f32
    %129 = vector.broadcast %cst_73 : f32 to vector<24x1xf32>
    %130 = arith.addf %127, %129 : vector<24x1xf32>
    %131 = math.rsqrt %130 : vector<24x1xf32>
    %132 = arith.mulf %128, %131 : vector<24x1xf32>
    %c0_74 = arith.constant 0 : index
    %c0_75 = arith.constant 0 : index
    %133 = vector.load %arg10[%c0_74, %c0_75] : memref<24x1xf32, #tpu.memory_space<vmem>>, vector<24x1xf32>
    %134 = arith.mulf %118, %132 : vector<24x1xf32>
    %135 = arith.subf %133, %134 : vector<24x1xf32>
    %136 = vector.broadcast %132 : vector<24x1xf32> to vector<24x272xf32>
    %137 = arith.mulf %111, %136 : vector<24x272xf32>
    %138 = vector.broadcast %135 : vector<24x1xf32> to vector<24x272xf32>
    %139 = arith.addf %137, %138 : vector<24x272xf32>
    %cst_76 = arith.constant 0.000000e+00 : f32
    %140 = vector.broadcast %cst_76 : f32 to vector<24x272xf32>
    %141 = arith.maximumf %139, %140 : vector<24x272xf32>
    %142 = vector.extract_strided_slice %141 {offsets = [0, 0], sizes = [24, 270], strides = [1, 1]} : vector<24x272xf32> to vector<24x270xf32>
    %143 = vector.extract_strided_slice %141 {offsets = [0, 1], sizes = [24, 270], strides = [1, 1]} : vector<24x272xf32> to vector<24x270xf32>
    %144 = arith.maximumf %142, %143 : vector<24x270xf32>
    %145 = vector.extract_strided_slice %141 {offsets = [0, 2], sizes = [24, 270], strides = [1, 1]} : vector<24x272xf32> to vector<24x270xf32>
    %146 = arith.maximumf %144, %145 : vector<24x270xf32>
    %c0_77 = arith.constant 0 : index
    %c0_78 = arith.constant 0 : index
    %147 = vector.load %arg12[%c0_77, %c0_78] : memref<270x80xf32, #tpu.memory_space<vmem>>, vector<270x80xf32>
    %cst_79 = arith.constant dense<0.000000e+00> : vector<24x80xf32>
    %148 = tpu.matmul %146, %147, %cst_79 {dimension_numbers = #tpu.dot_dimension_numbers<[1], [0], [0], [1], [0, 0, 1, 1], [], []>} : vector<24x270xf32>, vector<270x80xf32>, vector<24x80xf32> -> vector<24x80xf32>
    %149 = vector.extract_strided_slice %148 {offsets = [0, 0], sizes = [24, 76], strides = [1, 1]} : vector<24x80xf32> to vector<24x76xf32>
    %c0_80 = arith.constant 0 : index
    %c0_81 = arith.constant 0 : index
    %150 = vector.load %arg22[%c0_80, %c0_81] : memref<120x1920xf32, #tpu.memory_space<vmem>>, vector<24x76xf32>
    tpu.vector_store %arg22[%c0_80, %c0_81], %149 {strides = array<i32>} : memref<120x1920xf32, #tpu.memory_space<vmem>>, vector<24x76xf32>,
    %151 = vector.extract_strided_slice %148 {offsets = [0, 1], sizes = [24, 76], strides = [1, 1]} : vector<24x80xf32> to vector<24x76xf32>
    %c24_82 = arith.constant 24 : index
    %c0_83 = arith.constant 0 : index
    %152 = vector.load %arg22[%c24_82, %c0_83] : memref<120x1920xf32, #tpu.memory_space<vmem>>, vector<24x76xf32>
    tpu.vector_store %arg22[%c24_82, %c0_83], %151 {strides = array<i32>} : memref<120x1920xf32, #tpu.memory_space<vmem>>, vector<24x76xf32>,
    %153 = vector.extract_strided_slice %148 {offsets = [0, 2], sizes = [24, 76], strides = [1, 1]} : vector<24x80xf32> to vector<24x76xf32>
    %c48_84 = arith.constant 48 : index
    %c0_85 = arith.constant 0 : index
    %154 = vector.load %arg22[%c48_84, %c0_85] : memref<120x1920xf32, #tpu.memory_space<vmem>>, vector<24x76xf32>
    tpu.vector_store %arg22[%c48_84, %c0_85], %153 {strides = array<i32>} : memref<120x1920xf32, #tpu.memory_space<vmem>>, vector<24x76xf32>,
    %155 = vector.extract_strided_slice %148 {offsets = [0, 3], sizes = [24, 76], strides = [1, 1]} : vector<24x80xf32> to vector<24x76xf32>
    %c72_86 = arith.constant 72 : index
    %c0_87 = arith.constant 0 : index
    %156 = vector.load %arg22[%c72_86, %c0_87] : memref<120x1920xf32, #tpu.memory_space<vmem>>, vector<24x76xf32>
    tpu.vector_store %arg22[%c72_86, %c0_87], %155 {strides = array<i32>} : memref<120x1920xf32, #tpu.memory_space<vmem>>, vector<24x76xf32>,
    %157 = vector.extract_strided_slice %148 {offsets = [0, 4], sizes = [24, 76], strides = [1, 1]} : vector<24x80xf32> to vector<24x76xf32>
    %c96 = arith.constant 96 : index
    %c0_88 = arith.constant 0 : index
    %158 = vector.load %arg22[%c96, %c0_88] : memref<120x1920xf32, #tpu.memory_space<vmem>>, vector<24x76xf32>
    tpu.vector_store %arg22[%c96, %c0_88], %157 {strides = array<i32>} : memref<120x1920xf32, #tpu.memory_space<vmem>>, vector<24x76xf32>,
    %c0_89 = arith.constant 0 : index
    %c0_90 = arith.constant 0 : index
    %159 = vector.load %arg13[%c0_89, %c0_90] : memref<4x120xf32, #tpu.memory_space<vmem>>, vector<4x120xf32>
    %c0_91 = arith.constant 0 : index
    %c0_92 = arith.constant 0 : index
    %160 = vector.load %arg22[%c0_91, %c0_92] : memref<120x1920xf32, #tpu.memory_space<vmem>>, vector<120x76xf32>
    %cst_93 = arith.constant dense<0.000000e+00> : vector<4x76xf32>
    %161 = tpu.matmul %159, %160, %cst_93 {dimension_numbers = #tpu.dot_dimension_numbers<[1], [0], [0], [1], [0, 0, 1, 1], [], []>} : vector<4x120xf32>, vector<120x76xf32>, vector<4x76xf32> -> vector<4x76xf32>
    %c0_94 = arith.constant 0 : index
    %c0_95 = arith.constant 0 : index
    %162 = vector.load %arg14[%c0_94, %c0_95] : memref<4x1xf32, #tpu.memory_space<vmem>>, vector<4x1xf32>
    %163 = vector.broadcast %162 : vector<4x1xf32> to vector<4x76xf32>
    %164 = arith.addf %161, %163 : vector<4x76xf32>
    %c0_96 = arith.constant 0 : index
    %c0_97 = arith.constant 0 : index
    %165 = vector.load %arg17[%c0_96, %c0_97] : memref<1x76xf32, #tpu.memory_space<vmem>>, vector<1x76xf32>
    %166 = vector.broadcast %165 : vector<1x76xf32> to vector<4x76xf32>
    %167 = arith.mulf %164, %166 : vector<4x76xf32>
    %cst_98 = arith.constant dense<0.000000e+00> : vector<4xf32>
    %168 = vector.multi_reduction <add>, %167, %cst_98 [1] : vector<4x76xf32> to vector<4xf32>
    %169 = vector.shape_cast %168 : vector<4xf32> to vector<4x1xf32>
    %cst_99 = arith.constant 1.562500e-02 : f32
    %170 = vector.broadcast %cst_99 : f32 to vector<4x1xf32>
    %171 = arith.mulf %169, %170 : vector<4x1xf32>
    %172 = vector.broadcast %171 : vector<4x1xf32> to vector<4x76xf32>
    %173 = arith.subf %164, %172 : vector<4x76xf32>
    %174 = vector.broadcast %165 : vector<1x76xf32> to vector<4x76xf32>
    %175 = arith.mulf %173, %174 : vector<4x76xf32>
    %176 = arith.mulf %175, %175 : vector<4x76xf32>
    %cst_100 = arith.constant dense<0.000000e+00> : vector<4xf32>
    %177 = vector.multi_reduction <add>, %176, %cst_100 [1] : vector<4x76xf32> to vector<4xf32>
    %178 = vector.shape_cast %177 : vector<4xf32> to vector<4x1xf32>
    %cst_101 = arith.constant 1.562500e-02 : f32
    %179 = vector.broadcast %cst_101 : f32 to vector<4x1xf32>
    %180 = arith.mulf %178, %179 : vector<4x1xf32>
    %c0_102 = arith.constant 0 : index
    %c0_103 = arith.constant 0 : index
    %181 = vector.load %arg15[%c0_102, %c0_103] : memref<4x1xf32, #tpu.memory_space<vmem>>, vector<4x1xf32>
    %cst_104 = arith.constant 9.99999974E-6 : f32
    %182 = vector.broadcast %cst_104 : f32 to vector<4x1xf32>
    %183 = arith.addf %180, %182 : vector<4x1xf32>
    %184 = math.rsqrt %183 : vector<4x1xf32>
    %185 = arith.mulf %181, %184 : vector<4x1xf32>
    %c0_105 = arith.constant 0 : index
    %c0_106 = arith.constant 0 : index
    %186 = vector.load %arg16[%c0_105, %c0_106] : memref<4x1xf32, #tpu.memory_space<vmem>>, vector<4x1xf32>
    %187 = arith.mulf %171, %185 : vector<4x1xf32>
    %188 = arith.subf %186, %187 : vector<4x1xf32>
    %189 = vector.broadcast %185 : vector<4x1xf32> to vector<4x76xf32>
    %190 = arith.mulf %164, %189 : vector<4x76xf32>
    %191 = vector.broadcast %188 : vector<4x1xf32> to vector<4x76xf32>
    %192 = arith.addf %190, %191 : vector<4x76xf32>
    %cst_107 = arith.constant 0.000000e+00 : f32
    %193 = vector.broadcast %cst_107 : f32 to vector<4x76xf32>
    %194 = arith.maximumf %192, %193 : vector<4x76xf32>
    %195 = vector.extract_strided_slice %194 {offsets = [0, 0], sizes = [4, 74], strides = [1, 1]} : vector<4x76xf32> to vector<4x74xf32>
    %196 = vector.extract_strided_slice %194 {offsets = [0, 1], sizes = [4, 74], strides = [1, 1]} : vector<4x76xf32> to vector<4x74xf32>
    %197 = arith.maximumf %195, %196 : vector<4x74xf32>
    %198 = vector.extract_strided_slice %194 {offsets = [0, 2], sizes = [4, 74], strides = [1, 1]} : vector<4x76xf32> to vector<4x74xf32>
    %199 = arith.maximumf %197, %198 : vector<4x74xf32>
    %c0_108 = arith.constant 0 : index
    %c0_109 = arith.constant 0 : index
    %200 = vector.load %arg18[%c0_108, %c0_109] : memref<74x14xf32, #tpu.memory_space<vmem>>, vector<74x14xf32>
    %cst_110 = arith.constant dense<0.000000e+00> : vector<4x14xf32>
    %201 = tpu.matmul %199, %200, %cst_110 {dimension_numbers = #tpu.dot_dimension_numbers<[1], [0], [0], [1], [0, 0, 1, 1], [], []>} : vector<4x74xf32>, vector<74x14xf32>, vector<4x14xf32> -> vector<4x14xf32>
    %202 = vector.extract_strided_slice %201 {offsets = [0, 0], sizes = [1, 14], strides = [1, 1]} : vector<4x14xf32> to vector<1x14xf32>
    %c0_111 = arith.constant 0 : index
    %c0_112 = arith.constant 0 : index
    %203 = vector.load %arg22[%c0_111, %c0_112] : memref<120x1920xf32, #tpu.memory_space<vmem>>, vector<1x14xf32>
    tpu.vector_store %arg22[%c0_111, %c0_112], %202 {strides = array<i32>} : memref<120x1920xf32, #tpu.memory_space<vmem>>, vector<1x14xf32>,
    %204 = vector.extract_strided_slice %201 {offsets = [1, 0], sizes = [1, 14], strides = [1, 1]} : vector<4x14xf32> to vector<1x14xf32>
    %c0_113 = arith.constant 0 : index
    %c14_114 = arith.constant 14 : index
    %205 = vector.load %arg22[%c0_113, %c14_114] : memref<120x1920xf32, #tpu.memory_space<vmem>>, vector<1x14xf32>
    tpu.vector_store %arg22[%c0_113, %c14_114], %204 {strides = array<i32>} : memref<120x1920xf32, #tpu.memory_space<vmem>>, vector<1x14xf32>,
    %206 = vector.extract_strided_slice %201 {offsets = [2, 0], sizes = [1, 14], strides = [1, 1]} : vector<4x14xf32> to vector<1x14xf32>
    %c0_115 = arith.constant 0 : index
    %c28_116 = arith.constant 28 : index
    %207 = vector.load %arg22[%c0_115, %c28_116] : memref<120x1920xf32, #tpu.memory_space<vmem>>, vector<1x14xf32>
    tpu.vector_store %arg22[%c0_115, %c28_116], %206 {strides = array<i32>} : memref<120x1920xf32, #tpu.memory_space<vmem>>, vector<1x14xf32>,
    %208 = vector.extract_strided_slice %201 {offsets = [3, 0], sizes = [1, 14], strides = [1, 1]} : vector<4x14xf32> to vector<1x14xf32>
    %c0_117 = arith.constant 0 : index
    %c42_118 = arith.constant 42 : index
    %209 = vector.load %arg22[%c0_117, %c42_118] : memref<120x1920xf32, #tpu.memory_space<vmem>>, vector<1x14xf32>
    tpu.vector_store %arg22[%c0_117, %c42_118], %208 {strides = array<i32>} : memref<120x1920xf32, #tpu.memory_space<vmem>>, vector<1x14xf32>,
    %c0_119 = arith.constant 0 : index
    %c0_120 = arith.constant 0 : index
    %210 = vector.load %arg22[%c0_119, %c0_120] : memref<120x1920xf32, #tpu.memory_space<vmem>>, vector<1x56xf32>
    %c0_121 = arith.constant 0 : index
    %c0_122 = arith.constant 0 : index
    %211 = vector.load %arg19[%c0_121, %c0_122] : memref<56x4xf32, #tpu.memory_space<vmem>>, vector<56x4xf32>
    %cst_123 = arith.constant dense<0.000000e+00> : vector<1x4xf32>
    %212 = tpu.matmul %210, %211, %cst_123 {dimension_numbers = #tpu.dot_dimension_numbers<[1], [0], [0], [1], [0, 0, 1, 1], [], []>} : vector<1x56xf32>, vector<56x4xf32>, vector<1x4xf32> -> vector<1x4xf32>
    %c0_124 = arith.constant 0 : index
    %c0_125 = arith.constant 0 : index
    %213 = vector.load %arg20[%c0_124, %c0_125] : memref<1x4xf32, #tpu.memory_space<vmem>>, vector<1x4xf32>
    %214 = arith.addf %212, %213 : vector<1x4xf32>
    %cst_126 = arith.constant 0.000000e+00 : f32
    %215 = vector.broadcast %cst_126 : f32 to vector<1x4xf32>
    %216 = arith.maximumf %214, %215 : vector<1x4xf32>
    %c0_127 = arith.constant 0 : index
    %c0_128 = arith.constant 0 : index
    %217 = vector.load %arg21[%c0_127, %c0_128] : memref<1x4xf32, #tpu.memory_space<vmem>>, vector<1x4xf32>
    tpu.vector_store %arg21[%c0_127, %c0_128], %216 {strides = array<i32>} : memref<1x4xf32, #tpu.memory_space<vmem>>, vector<1x4xf32>,
    return
  }
}

</mosaic_0001>

<bundles_post_ra>
// kernel: tpu_custom_call.1
= control target key start
LH: loop header
LB: loop body
LE: loop exit
PB: predicated region body
PF: predicated region fallthrough
CT: control target
= control target key end

     0   :  { %s12191_s0 = inlined_call_operand.vmem [shape: f32[2,2304], index: 0, kind: input, shape index: {}]   ;;  %s12192_s1 = inlined_call_operand.vmem [shape: f32[6,30], index: 1, kind: input, shape index: {}]   ;;  %s12193_s2 = inlined_call_operand.vmem [shape: f32[6,1], index: 2, kind: input, shape index: {}]   ;;  %s12194_s3 = inlined_call_operand.vmem [shape: f32[6,1], index: 3, kind: input, shape index: {}]   ;;  %s12195_s4 = inlined_call_operand.vmem [shape: f32[6,1], index: 4, kind: input, shape index: {}]   ;;  %s12196_s5 = inlined_call_operand.vmem [shape: f32[1,1916], index: 5, kind: input, shape index: {}]   ;;  %s12197_s6 = inlined_call_operand.vmem [shape: f32[1723,460], index: 6, kind: input, shape index: {}]   ;;  %s12198_s7 = inlined_call_operand.vmem [shape: f32[24,90], index: 7, kind: input, shape index: {}]   ;;  %s12199_s8 = inlined_call_operand.vmem [shape: f32[24,1], index: 8, kind: input, shape index: {}]   ;;  %s12200_s9 = inlined_call_operand.vmem [shape: f32[24,1], index: 9, kind: input, shape index: {}]   ;;  %s12201_s10 = inlined_call_operand.vmem [shape: f32[24,1], index: 10, kind: input, shape index: {}]   ;;  %s12202_s11 = inlined_call_operand.vmem [shape: f32[1,272], index: 11, kind: input, shape index: {}]   ;;  %s12203_s12 = inlined_call_operand.vmem [shape: f32[270,80], index: 12, kind: input, shape index: {}]   ;;  %s12204_s13 = inlined_call_operand.vmem [shape: f32[4,120], index: 13, kind: input, shape index: {}]   ;;  %s12205_s14 = inlined_call_operand.vmem [shape: f32[4,1], index: 14, kind: input, shape index: {}]   ;;  %s12206_s15 = inlined_call_operand.vmem [shape: f32[4,1], index: 15, kind: input, shape index: {}]   ;;  %s12207_s16 = inlined_call_operand.vmem [shape: f32[4,1], index: 16, kind: input, shape index: {}]   ;;  %s12208_s17 = inlined_call_operand.vmem [shape: f32[1,76], index: 17, kind: input, shape index: {}]   ;;  %s12209_s18 = inlined_call_operand.vmem [shape: f32[74,14], index: 18, kind: input, shape index: {}]   ;;  %s12210_s19 = inlined_call_operand.vmem [shape: f32[56,4], index: 19, kind: input, shape index: {}]   ;;  %s12211_s20 = inlined_call_operand.vmem [shape: f32[1,4], index: 20, kind: input, shape index: {}]   ;;  %s12212_s21 = inlined_call_operand.hbm [shape: f32[1,4], index: 21, kind: output, shape index: {}]  }
   0x1   :  { %12239 = sst [smem:[#allocation6_spill]] %s12191_s0 }
   0x2   :  { %12240 = sst [smem:[#allocation7_spill]] %s12192_s1 }
   0x3   :  { %12241 = sst [smem:[#allocation8_spill]] %s12193_s2 }
   0x4   :  { %12242 = sst [smem:[#allocation9_spill]] %s12194_s3 }
   0x5   :  { %12243 = sst [smem:[#allocation10_spill]] %s12195_s4 }
   0x6   :  { %12244 = sst [smem:[#allocation11_spill]] %s12196_s5 }
   0x7   :  { %s12245_s26 = sld [smem:[#allocation6_spill]]  ;;  %v82_v1 = vlaneseq  ;;  %v7202_v3 = vmov 1983009808  }
   0x8   :  { %v80_v4 = vunpack.c.l.s4 %v7202_v3 }
   0xd   :  { %v69_v0 = vld [vmem:[%s12245_s26] sm:$0xff]  ;;  %v7347_v2 = vld [vmem:[%s12245_s26 + $0x8] sm:$0xff] }
   0xe   :  { %5627 = vst.sshfl [vmem:[#allocation2] sm:$0x3 pattern:$0x76325410] %v69_v0  ;;  %v78_v5 = vcombine.high %v69_v0, %v69_v0 }
   0xf   :  { %5629 = vst.sshfl [vmem:[#allocation2 + $0x20] sm:$0x3 pattern:$0x76325410] %v7347_v2 }
  0x10   :  { %5635 = vst.sshfl [vmem:[#allocation2 + $0x100] sm:$0xc pattern:$0x76325410] %v7347_v2 }
  0x11   :  { %26 = vsyncpa [#allocation4], 0  ;;  %v7351_v6 = vshrl.u32 %v82_v1, 7  ;;  %v95_v7 = vcombine.high %v7347_v2, %v7347_v2  ;;  %v81_v8 = vunpack.c.0.s8 %v80_v4  ;;  %v176_v10 = vcombine.low %v69_v0, %v69_v0  ;;  %s12219_s28 = smov 126   ;;  %s7204_s29 = smov 127   ;;  %v7420_v25 = vld [vmem:[%s12245_s26 + $0x10] sm:$0xff] }
  0x12   :  { %5628 = vst.sshfl [vmem:[#allocation2 + $0x10] sm:$0x3 pattern:$0x76325410] %v78_v5  ;;  %s12221_s0 = smov 125   ;;  %s12223_s5 = smov 124   ;;  %v185_v29 = vcombine.low %v7347_v2, %v7347_v2  ;;  %v112_v33 = vcombine.high %v7420_v25, %v7420_v25  ;;  %v194_v60 = vcombine.low %v7420_v25, %v7420_v25 }
  0x13   :  { %5634 = vst.sshfl [vmem:[#allocation2 + $0xf0] sm:$0xc pattern:$0x76325410] %v78_v5  ;;  %v7356_v9 = vsub.s32 %v81_v8, %v7351_v6  ;;  %s7207_s22 = smov 64   ;;  %s7208_s23 = smov 63  }
  0x14   :  { %5630 = vst.sshfl [vmem:[#allocation2 + $0x30] sm:$0x3 pattern:$0x76325410] %v95_v7  ;;  %s7209_s1 = smov 62   ;;  %s7210_s24 = smov 61  }
  0x15   :  { %5636 = vst.sshfl [vmem:[#allocation2 + $0x110] sm:$0xc pattern:$0x76325410] %v95_v7  ;;  %v7359_v11 = vrot.slane %v69_v0, %v7356_v9  ;;  %v7362_v12 = vrot.slane %v78_v5, %v7356_v9  ;;  %v7366_v13 = vrot.slane %v7347_v2, %v7356_v9  ;;  %v7369_v14 = vrot.slane %v95_v7, %v7356_v9  ;;  %s7211_s2 = smov 60   ;;  %v7546_v38 = vld [vmem:[%s12245_s26 + $0x18] sm:$0xff] }
  0x16   :  { %v183_v15 = vrot.slane %v176_v10, %v7356_v9  ;;  %v7428_v26 = vrot.slane %v7420_v25, %v7356_v9  ;;  %5631 = vst.sshfl [vmem:[#allocation2 + $0x40] sm:$0x3 pattern:$0x76325410] %v7420_v25  ;;  %v7462_v30 = vrot.slane %v185_v29, %v7356_v9  ;;  %v7489_v34 = vrot.slane %v112_v33, %v7356_v9  ;;  %s12248_s25 = sld [smem:[#allocation7_spill]]  ;;  %s12250_s30 = sld [smem:[#allocation11_spill]] }
  0x17   :  { %298 = vrot.lane.b32.xlu1 %v7359_v11, %s12219_s28  ;;  %216 = vrot.lane.b32.xlu0 %v7359_v11, %s7204_s29  ;;  %v289_v16 = vcombine.low %v7362_v12, %v7362_v12  ;;  %v7380_v17 = vcombine.high %v7359_v11, %v7359_v11  ;;  %v7384_v18 = vcombine.low %v7366_v13, %v7366_v13  ;;  %vm326_vm0 = vcmask 1031168   ;;  %s7220_s27 = smov 35   ;;  %s12281_s3 = smov 126  }
  0x18   :  { %v7388_v19 = vcombine.high %v7362_v12, %v7362_v12  ;;  %v7392_v20 = vcombine.high %v7366_v13, %v7366_v13  ;;  %v7396_v21 = vcombine.low %v7369_v14, %v7369_v14  ;;  %v7402_v22 = vcombine.high %v183_v15, %v183_v15  ;;  %5637 = vst.sshfl [vmem:[#allocation2 + $0x120] sm:$0xc pattern:$0x76325410] %v7420_v25  ;;  %s7226_s4 = smov 68  }
  0x19   :  { %161 = vst [vmem:[#allocation2 + $0x8] sm:$0x3] %v7380_v17  ;;  %945 = vst [vmem:[#allocation2 + $0xf8] sm:$0x30] %v7384_v18  ;;  %v288_v23 = vcombine.low %v7359_v11, %v7359_v11  ;;  %v7411_v24 = vcombine.high %v7369_v14, %v7369_v14  ;;  %v7434_v27 = vcombine.low %v7428_v26, %v7428_v26  ;;  %vm12218_vm1 = vcmask 1039360  }
  0x1a   :  { %163 = vst [vmem:[#allocation2 + $0x18] sm:$0x3] %v7388_v19  ;;  %165 = vst [vmem:[#allocation2 + $0x28] sm:$0x3] %v7392_v20  ;;  %v372_v28 = vcombine.low %v183_v15, %v183_v15  ;;  %v373_v31 = vcombine.low %v7462_v30, %v7462_v30  ;;  %v7476_v32 = vcombine.high %v7428_v26, %v7428_v26  ;;  %vm406_vm2 = vcmask 1022976  }
  0x1b   :  { %378 = vrot.lane.b32.xlu0 %v183_v15, %s12221_s0  ;;  %300 = vrot.lane.b32.xlu1 %v289_v16, %s12219_s28  ;;  %947 = vst [vmem:[#allocation2 + $0x108] sm:$0x30] %v7396_v21  ;;  %167 = vst [vmem:[#allocation2 + $0x38] sm:$0x3] %v7411_v24  ;;  %v7493_v35 = vcombine.low %v7489_v34, %v7489_v34  ;;  %v7501_v36 = vcombine.high %v7462_v30, %v7462_v30  ;;  %v12225_v46 = vmov 0.0   ;;  %vm482_vm3 = vcmask 1014784  }
  0x1c   :  { %949 = vst [vmem:[#allocation2 + $0x118] sm:$0x30] %v7434_v27  ;;  %169 = vst [vmem:[#allocation2 + $0x48] sm:$0x3] %v7476_v32  ;;  %v7536_v37 = vcombine.high %v7489_v34, %v7489_v34  ;;  %v7554_v39 = vrot.slane %v7546_v38, %v7356_v9  ;;  %1390 = vmatprep.mubr.f32.mxu0 %v12225_v46  ;;  %1461 = vmatprep.mubr.f32.mxu1 %v12225_v46  ;;  %vm575_vm4 = vcmask 523264   ;;  %vm654_vm5 = vcmask 515072  }
  0x1d   :  { %5632 = vst.sshfl [vmem:[#allocation2 + $0x50] sm:$0x3 pattern:$0x76325410] %v112_v33  ;;  %951 = vst [vmem:[#allocation2 + $0x128] sm:$0x30] %v7493_v35  ;;  %v7643_v1 = vrot.slane %v194_v60, %v7356_v9  ;;  %v129_v4 = vcombine.high %v7546_v38, %v7546_v38 }
  0x1e   :  { %5638 = vst.sshfl [vmem:[#allocation2 + $0x130] sm:$0xc pattern:$0x76325410] %v112_v33  ;;  %171 = vst [vmem:[#allocation2 + $0x58] sm:$0x3] %v7536_v37  ;;  %v7560_v40 = vcombine.low %v7554_v39, %v7554_v39  ;;  %v7634_v63 = vcombine.high %v7554_v39, %v7554_v39 }
  0x1f   :  { %214 = vrot.lane.b32.xlu0 %v7402_v22, %s7204_s29  ;;  %380 = vrot.lane.b32.xlu1 %v288_v23, %s12221_s0  ;;  %5633 = vst.sshfl [vmem:[#allocation2 + $0x60] sm:$0x3 pattern:$0x76325410] %v7546_v38  ;;  %vm733_vm6 = vcmask 506880   ;;  %v7656_v8 = vcombine.low %v7643_v1, %v7643_v1  ;;  %v7659_v10 = vrot.slane %v129_v4, %v7356_v9  ;;  %vm812_vm7 = vcmask 498688  }
  0x20   :  { %5639 = vst.sshfl [vmem:[#allocation2 + $0x140] sm:$0xc pattern:$0x76325410] %v7546_v38  ;;  %953 = vst [vmem:[#allocation2 + $0x138] sm:$0x30] %v7560_v40 }
  0x21   :  { %173 = vst [vmem:[#allocation2 + $0x68] sm:$0x3] %v7634_v63  ;;  %5640 = vst.sshfl [vmem:[#allocation2 + $0x150] sm:$0xc pattern:$0x76325410] %v129_v4 }
  0x22   :  { %vm890_vm8 = vcmask 490496   ;;  %vm1280_vm9 = vcmask 1045504   ;;  %vm12216_vm10 = vmmov 1   ;;  %vm1276_vm12 = vcmask 244736  }
  0x23   :  { %454 = vrot.lane.b32.xlu0 %v7380_v17, %s12223_s5  ;;  %456 = vrot.lane.b32.xlu1 %v7362_v12, %s12223_s5  ;;  %vm7831_vm11 = vmpackc.low %vm1280_vm9, %vm12216_vm10  ;;  %vm370_vm13 = vcmask 1012740   ;;  %vm174_vm14 = vcmask 1008640   ;;  %vm286_vm15 = vcmask 1010690   ;;  %vm450_vm10 = vcmask 1014790  }
  0x24   :  { %175 = vst.msk [vmem:[#allocation2 + $0x70] sm:$0x3] %vm174_vm14, %v7659_v10 }
  0x27   :  { %545 = vrot.lane.b32.xlu0 %v7359_v11, %s7207_s22  ;;  %547 = vrot.lane.b32.xlu1 %v7380_v17, %s7207_s22 }
  0x2b   :  { %624 = vrot.lane.b32.xlu0 %v289_v16, %s7208_s23  ;;  %626 = vrot.lane.b32.xlu1 %v7362_v12, %s7208_s23 }
  0x2f   :  { %703 = vrot.lane.b32.xlu0 %v288_v23, %s7209_s1  ;;  %705 = vrot.lane.b32.xlu1 %v7359_v11, %s7209_s1 }
  0x33   :  { %212 = vrot.lane.b32.xlu0 %v183_v15, %s7204_s29  ;;  %296 = vrot.lane.b32.xlu1 %v288_v23, %s12219_s28 }
  0x37   :  { %376 = vrot.lane.b32.xlu0 %v372_v28, %s12221_s0  ;;  %452 = vrot.lane.b32.xlu1 %v7359_v11, %s12223_s5 }
  0x3b   :  { %543 = vrot.lane.b32.xlu0 %v7402_v22, %s7207_s22  ;;  %622 = vrot.lane.b32.xlu1 %v7359_v11, %s7208_s23 }
  0x3f   :  { %701 = vrot.lane.b32.xlu0 %v183_v15, %s7209_s1  ;;  %218 = vrot.lane.b32.xlu1 %v7380_v17, %s7204_s29  ;;  %v7663_v15 = vcombine.low %v7659_v10, %v7659_v10 }
  0x41   :  { %955 = vst [vmem:[#allocation2 + $0x148] sm:$0x30] %v7663_v15 }
  0x43   :  { %220 = vrot.lane.b32.xlu0 %v7462_v30, %s7204_s29  ;;  %302 = vrot.lane.b32.xlu1 %v7362_v12, %s12219_s28 }
  0x47   :  { %304 = vrot.lane.b32.xlu0 %v7384_v18, %s12219_s28  ;;  %306 = vrot.lane.b32.xlu1 %v7366_v13, %s12219_s28 }
  0x4b   :  { %382 = vrot.lane.b32.xlu0 %v7359_v11, %s12221_s0  ;;  %384 = vrot.lane.b32.xlu1 %v373_v31, %s12221_s0 }
  0x4f   :  { %386 = vrot.lane.b32.xlu0 %v7462_v30, %s12221_s0  ;;  %458 = vrot.lane.b32.xlu1 %v7388_v19, %s12223_s5 }
  0x53   :  { %460 = vrot.lane.b32.xlu0 %v7366_v13, %s12223_s5  ;;  %549 = vrot.lane.b32.xlu1 %v7462_v30, %s7207_s22 }
  0x57   :  { %551 = vrot.lane.b32.xlu0 %v7501_v36, %s7207_s22  ;;  %628 = vrot.lane.b32.xlu1 %v7384_v18, %s7208_s23 }
  0x5b   :  { %630 = vrot.lane.b32.xlu0 %v7366_v13, %s7208_s23  ;;  %707 = vrot.lane.b32.xlu1 %v373_v31, %s7209_s1 }
  0x5f   :  { %709 = vrot.lane.b32.xlu0 %v7462_v30, %s7209_s1  ;;  %782 = vrot.lane.b32.xlu1 %v7362_v12, %s7210_s24 }
  0x63   :  { %784 = vrot.lane.b32.xlu0 %v7388_v19, %s7210_s24  ;;  %860 = vrot.lane.b32.xlu1 %v7359_v11, %s7211_s2 }
  0x67   :  { %862 = vrot.lane.b32.xlu0 %v7380_v17, %s7211_s2  ;;  %959 = vrot.lane.b32.xlu1 %v373_v31, %s7204_s29 }
  0x6b   :  { %1022 = vrot.lane.b32.xlu0 %v7392_v20, %s12219_s28  ;;  %1087 = vrot.lane.b32.xlu1 %v7501_v36, %s12221_s0 }
  0x6f   :  { %1149 = vrot.lane.b32.xlu0 %v7384_v18, %s12223_s5  ;;  %780 = vrot.lane.b32.xlu1 %v7380_v17, %s7210_s24 }
  0x73   :  { %858 = vrot.lane.b32.xlu0 %v7402_v22, %s7211_s2  ;;  %1020 = vrot.lane.b32.xlu1 %v7388_v19, %s12219_s28 }
  0x77   :  { %1085 = vrot.lane.b32.xlu0 %v7380_v17, %s12221_s0  ;;  %222 = vrot.lane.b32.xlu1 %v7501_v36, %s7204_s29 }
  0x7b   :  { %224 = vrot.lane.b32.xlu0 %v7366_v13, %s7204_s29  ;;  %308 = vrot.lane.b32.xlu1 %v7396_v21, %s12219_s28 }
  0x7f   :  { %310 = vrot.lane.b32.xlu0 %v7369_v14, %s12219_s28  ;;  %388 = vrot.lane.b32.xlu1 %v7384_v18, %s12221_s0 }
  0x83   :  { %390 = vrot.lane.b32.xlu0 %v7366_v13, %s12221_s0  ;;  %462 = vrot.lane.b32.xlu1 %v7392_v20, %s12223_s5 }
  0x87   :  { %464 = vrot.lane.b32.xlu0 %v7369_v14, %s12223_s5  ;;  %553 = vrot.lane.b32.xlu1 %v7366_v13, %s7207_s22 }
  0x89   :  { %v299_v41 = vpop.permute.xlu1 %298  ;;  %v7575_v42 = vpop.permute.xlu0 %216 }
  0x8b   :  { %555 = vrot.lane.b32.xlu0 %v7392_v20, %s7207_s22  ;;  %632 = vrot.lane.b32.xlu1 %v7396_v21, %s7208_s23 }
  0x8d   :  { %v7581_v43 = vpop.permute.xlu0 %378  ;;  %v7583_v44 = vpop.permute.xlu1 %300 }
  0x8e   :  { %v328_v45 = vsel %vm326_vm0, %v299_v41, %v7583_v44 }
  0x8f   :  { %357 = vst [vmem:[#allocation2 + $0x8] sm:$0x30] %v328_v45  ;;  %634 = vrot.lane.b32.xlu0 %v7369_v14, %s7208_s23  ;;  %711 = vrot.lane.b32.xlu1 %v7384_v18, %s7209_s1 }
  0x91   :  { %v215_v47 = vpop.permute.xlu0 %214  ;;  %v7593_v48 = vpop.permute.xlu1 %380 }
  0x92   :  { %v244_v49 = vsel %vm12218_vm1, %v215_v47, %v7575_v42  ;;  %v408_v50 = vsel %vm406_vm2, %v7581_v43, %v7593_v48 }
  0x93   :  { %273 = vst [vmem:[#allocation2 + $0x8] sm:$0xc] %v244_v49  ;;  %437 = vst [vmem:[#allocation2 + $0x8] sm:$0xc0] %v408_v50  ;;  %713 = vrot.lane.b32.xlu0 %v7366_v13, %s7209_s1  ;;  %786 = vrot.lane.b32.xlu1 %v7366_v13, %s7210_s24 }
  0x95   :  { %v455_v51 = vpop.permute.xlu0 %454  ;;  %v7604_v52 = vpop.permute.xlu1 %456 }
  0x96   :  { %v484_v53 = vsel %vm482_vm3, %v455_v51, %v7604_v52 }
  0x97   :  { %513 = vst [vmem:[#allocation2 + $0x80] sm:$0x3] %v484_v53  ;;  %788 = vrot.lane.b32.xlu0 %v7392_v20, %s7210_s24  ;;  %864 = vrot.lane.b32.xlu1 %v7462_v30, %s7211_s2 }
  0x99   :  { %v546_v54 = vpop.permute.xlu0 %545  ;;  %v7612_v55 = vpop.permute.xlu1 %547 }
  0x9a   :  { %v577_v56 = vsel %vm575_vm4, %v546_v54, %v7612_v55 }
  0x9b   :  { %607 = vst [vmem:[#allocation2 + $0x80] sm:$0xc] %v577_v56  ;;  %866 = vrot.lane.b32.xlu0 %v7501_v36, %s7211_s2  ;;  %961 = vrot.lane.b32.xlu1 %v7384_v18, %s7204_s29  ;;  %v1211_v18 = vld [vmem:[#allocation2 + $0x8] sm:$0xff]  ;;  %v7688_v36 = vcombine.high %v7643_v1, %v7643_v1 }
  0x9d   :  { %v625_v57 = vpop.permute.xlu0 %624  ;;  %v7620_v58 = vpop.permute.xlu1 %626 }
  0x9e   :  { %v656_v59 = vsel %vm654_vm5, %v625_v57, %v7620_v58 }
  0x9f   :  { %686 = vst [vmem:[#allocation2 + $0x80] sm:$0x30] %v656_v59  ;;  %1024 = vrot.lane.b32.xlu0 %v7411_v24, %s12219_s28  ;;  %1089 = vrot.lane.b32.xlu1 %v7392_v20, %s12221_s0 }
  0xa1   :  { %v704_v61 = vpop.permute.xlu0 %703  ;;  %v7630_v62 = vpop.permute.xlu1 %705 }
  0xa2   :  { %v735_v0 = vsel %vm733_vm6, %v704_v61, %v7630_v62 }
  0xa3   :  { %765 = vst [vmem:[#allocation2 + $0x80] sm:$0xc0] %v735_v0  ;;  %1151 = vrot.lane.b32.xlu0 %v7396_v21, %s12223_s5  ;;  %226 = vrot.lane.b32.xlu1 %v7392_v20, %s7204_s29 }
  0xa5   :  { %v213_v2 = vpop.permute.xlu0 %212  ;;  %v297_v3 = vpop.permute.xlu1 %296 }
  0xa6   :  { %v243_v5 = vsel %vm12218_vm1, %v213_v2, %v215_v47  ;;  %v327_v7 = vsel %vm326_vm0, %v297_v3, %v299_v41 }
  0xa7   :  { %272 = vst [vmem:[#allocation2] sm:$0xc] %v243_v5  ;;  %356 = vst [vmem:[#allocation2] sm:$0x30] %v327_v7  ;;  %228 = vrot.lane.b32.xlu0 %v7643_v1, %s7204_s29  ;;  %312 = vrot.lane.b32.xlu1 %v7434_v27, %s12219_s28 }
  0xa9   :  { %v377_v11 = vpop.permute.xlu0 %376  ;;  %v453_v12 = vpop.permute.xlu1 %452 }
  0xaa   :  { %v407_v16 = vsel %vm406_vm2, %v377_v11, %v7581_v43  ;;  %v483_v17 = vsel %vm482_vm3, %v453_v12, %v455_v51  ;;  %v1226_v19 = vld [vmem:[#allocation2 + $0x80] sm:$0xff] }
  0xab   :  { %436 = vst [vmem:[#allocation2] sm:$0xc0] %v407_v16  ;;  %512 = vst [vmem:[#allocation2 + $0x78] sm:$0x3] %v483_v17  ;;  %314 = vrot.lane.b32.xlu0 %v7428_v26, %s12219_s28  ;;  %392 = vrot.lane.b32.xlu1 %v7656_v8, %s12221_s0  ;;  %v5919_v21 = vpack.c.bf16 %v1226_v19, %v1211_v18 }
  0xad   :  { %v544_v22 = vpop.permute.xlu0 %543  ;;  %5920 = vmatprep.subr.bf16.mxu0 %v5919_v21  ;;  %v623_v23 = vpop.permute.xlu1 %622 }
  0xae   :  { %v576_v25 = vsel %vm575_vm4, %v544_v22, %v546_v54  ;;  %v655_v28 = vsel %vm654_vm5, %v623_v23, %v625_v57 }
  0xaf   :  { %606 = vst [vmem:[#allocation2 + $0x78] sm:$0xc] %v576_v25  ;;  %685 = vst [vmem:[#allocation2 + $0x78] sm:$0x30] %v655_v28  ;;  %394 = vrot.lane.b32.xlu0 %v7643_v1, %s12221_s0  ;;  %466 = vrot.lane.b32.xlu1 %v7411_v24, %s12223_s5 }
  0xb1   :  { %v702_v29 = vpop.permute.xlu0 %701  ;;  %v219_v30 = vpop.permute.xlu1 %218 }
  0xb2   :  { %v734_v31 = vsel %vm733_vm6, %v702_v29, %v704_v61  ;;  %v245_v33 = vsel %vm12218_vm1, %v7575_v42, %v219_v30  ;;  %v1210_v54 = vld [vmem:[#allocation2] sm:$0xff] }
  0xb3   :  { %764 = vst [vmem:[#allocation2 + $0x78] sm:$0xc0] %v734_v31  ;;  %274 = vst [vmem:[#allocation2 + $0x10] sm:$0xc] %v245_v33  ;;  %468 = vrot.lane.b32.xlu0 %v7428_v26, %s12223_s5  ;;  %557 = vrot.lane.b32.xlu1 %v7643_v1, %s7207_s22 }
  0xb5   :  { %v7690_v41 = vpop.permute.xlu0 %220  ;;  %v303_v43 = vpop.permute.xlu1 %302 }
  0xb6   :  { %v246_v45 = vsel %vm12218_vm1, %v219_v30, %v7690_v41  ;;  %v329_v47 = vsel %vm326_vm0, %v7583_v44, %v303_v43 }
  0xb7   :  { %275 = vst [vmem:[#allocation2 + $0x18] sm:$0xc] %v246_v45  ;;  %358 = vst [vmem:[#allocation2 + $0x10] sm:$0x30] %v329_v47  ;;  %559 = vrot.lane.b32.xlu0 %v7688_v36, %s7207_s22  ;;  %636 = vrot.lane.b32.xlu1 %v7434_v27, %s7208_s23 }
  0xb9   :  { %v305_v49 = vpop.permute.xlu0 %304  ;;  %v7700_v50 = vpop.permute.xlu1 %306 }
  0xba   :  { %v330_v51 = vsel %vm326_vm0, %v303_v43, %v305_v49  ;;  %v331_v53 = vsel %vm326_vm0, %v305_v49, %v7700_v50  ;;  %v1225_v56 = vld [vmem:[#allocation2 + $0x78] sm:$0xff] }
  0xbb   :  { %359 = vst [vmem:[#allocation2 + $0x18] sm:$0x30] %v330_v51  ;;  %360 = vst [vmem:[#allocation2 + $0x20] sm:$0x30] %v331_v53  ;;  %638 = vrot.lane.b32.xlu0 %v7428_v26, %s7208_s23  ;;  %715 = vrot.lane.b32.xlu1 %v7656_v8, %s7209_s1  ;;  %v5921_v44 = vpack.c.bf16 %v1225_v56, %v1210_v54 }
  0xbd   :  { %v383_v57 = vpop.permute.xlu0 %382  ;;  %5922 = vmatpush1.bf16.msra.mxu0 %v5921_v44  ;;  %v385_v59 = vpop.permute.xlu1 %384 }
  0xbe   :  { %v409_v60 = vsel %vm406_vm2, %v7593_v48, %v383_v57  ;;  %v410_v61 = vsel %vm406_vm2, %v383_v57, %v385_v59 }
  0xbf   :  { %438 = vst [vmem:[#allocation2 + $0x10] sm:$0xc0] %v409_v60  ;;  %439 = vst [vmem:[#allocation2 + $0x18] sm:$0xc0] %v410_v61  ;;  %717 = vrot.lane.b32.xlu0 %v7643_v1, %s7209_s1  ;;  %790 = vrot.lane.b32.xlu1 %v7369_v14, %s7210_s24  ;;  %v7803_v60 = vld [vmem:[%s12245_s26 + $0x20] sm:$0xf] }
  0xc0   :  { %s12252_s26 = sld [smem:[#allocation10_spill]] }
  0xc1   :  { %v7716_v0 = vpop.permute.xlu0 %386  ;;  %v459_v2 = vpop.permute.xlu1 %458 }
  0xc2   :  { %v411_v3 = vsel %vm406_vm2, %v385_v59, %v7716_v0  ;;  %v485_v4 = vsel %vm482_vm3, %v7604_v52, %v459_v2 }
  0xc3   :  { %440 = vst [vmem:[#allocation2 + $0x20] sm:$0xc0] %v411_v3  ;;  %514 = vst [vmem:[#allocation2 + $0x88] sm:$0x3] %v485_v4  ;;  %792 = vrot.lane.b32.xlu0 %v7411_v24, %s7210_s24  ;;  %868 = vrot.lane.b32.xlu1 %v7366_v13, %s7211_s2 }
  0xc5   :  { %v7726_v48 = vpop.permute.xlu0 %460  ;;  %v550_v14 = vpop.permute.xlu1 %549 }
  0xc6   :  { %v486_v5 = vsel %vm482_vm3, %v459_v2, %v7726_v48  ;;  %v578_v7 = vsel %vm575_vm4, %v7612_v55, %v550_v14  ;;  %v1213_v31 = vld [vmem:[#allocation2 + $0x18] sm:$0xff]  ;;  %v1212_v45 = vld [vmem:[#allocation2 + $0x10] sm:$0xff] }
  0xc7   :  { %515 = vst [vmem:[#allocation2 + $0x90] sm:$0x3] %v486_v5  ;;  %608 = vst [vmem:[#allocation2 + $0x88] sm:$0xc] %v578_v7  ;;  %870 = vrot.lane.b32.xlu0 %v7392_v20, %s7211_s2  ;;  %963 = vrot.lane.b32.xlu1 %v7656_v8, %s7204_s29 }
  0xc9   :  { %v7736_v24 = vpop.permute.xlu0 %551  ;;  %v629_v13 = vpop.permute.xlu1 %628 }
  0xca   :  { %v579_v11 = vsel %vm575_vm4, %v550_v14, %v7736_v24  ;;  %v657_v12 = vsel %vm654_vm5, %v7620_v58, %v629_v13 }
  0xcb   :  { %609 = vst [vmem:[#allocation2 + $0x90] sm:$0xc] %v579_v11  ;;  %687 = vst [vmem:[#allocation2 + $0x88] sm:$0x30] %v657_v12  ;;  %1026 = vrot.lane.b32.xlu0 %v7476_v32, %s12219_s28  ;;  %1091 = vrot.lane.b32.xlu1 %v7688_v36, %s12221_s0 }
  0xcd   :  { %v7746_v20 = vpop.permute.xlu0 %630  ;;  %v708_v55 = vpop.permute.xlu1 %707 }
  0xce   :  { %v658_v8 = vsel %vm654_vm5, %v629_v13, %v7746_v20  ;;  %v736_v16 = vsel %vm733_vm6, %v7630_v62, %v708_v55 }
  0xcf   :  { %688 = vst [vmem:[#allocation2 + $0x90] sm:$0x30] %v658_v8  ;;  %766 = vst [vmem:[#allocation2 + $0x88] sm:$0xc0] %v736_v16  ;;  %1153 = vrot.lane.b32.xlu0 %v7434_v27, %s12223_s5  ;;  %230 = vrot.lane.b32.xlu1 %v7688_v36, %s7204_s29 }
  0xd1   :  { %v7756_v58 = vpop.permute.xlu0 %709  ;;  %v783_v17 = vpop.permute.xlu1 %782 }
  0xd2   :  { %v737_v18 = vsel %vm733_vm6, %v708_v55, %v7756_v58 }
  0xd3   :  { %767 = vst [vmem:[#allocation2 + $0x90] sm:$0xc0] %v737_v18  ;;  %232 = vrot.lane.b32.xlu0 %v7428_v26, %s7204_s29  ;;  %316 = vrot.lane.b32.xlu1 %v7493_v35, %s12219_s28 }
  0xd5   :  { %v7764_v62 = vpop.permute.xlu0 %784  ;;  %v861_v19 = vpop.permute.xlu1 %860 }
  0xd6   :  { %v814_v21 = vsel %vm812_vm7, %v783_v17, %v7764_v62  ;;  %v1227_v25 = vld [vmem:[#allocation2 + $0x88] sm:$0xff] }
  0xd7   :  { %844 = vst [vmem:[#allocation2 + $0xf8] sm:$0x3] %v814_v21  ;;  %318 = vrot.lane.b32.xlu0 %v7489_v34, %s12219_s28  ;;  %396 = vrot.lane.b32.xlu1 %v7434_v27, %s12221_s0  ;;  %v5931_v47 = vpack.c.bf16 %v1227_v25, %v1212_v45 }
  0xd9   :  { %v7772_v22 = vpop.permute.xlu0 %862  ;;  %v960_v23 = vpop.permute.xlu1 %959 }
  0xda   :  { %v892_v28 = vsel %vm890_vm8, %v861_v19, %v7772_v22  ;;  %v975_v29 = vsel %vm12218_vm1, %v7575_v42, %v960_v23  ;;  %v976_v30 = vsel %vm12218_vm1, %v960_v23, %v7690_v41  ;;  %v1228_v33 = vld [vmem:[#allocation2 + $0x90] sm:$0xff] }
  0xdb   :  { %922 = vst [vmem:[#allocation2 + $0xf8] sm:$0xc] %v892_v28  ;;  %1004 = vst [vmem:[#allocation2 + $0xf0] sm:$0xc0] %v975_v29  ;;  %398 = vrot.lane.b32.xlu0 %v7428_v26, %s12221_s0  ;;  %470 = vrot.lane.b32.xlu1 %v7476_v32, %s12223_s5  ;;  %v5929_v43 = vpack.c.bf16 %v1228_v33, %v1213_v31 }
  0xdc   :  { %1005 = vst [vmem:[#allocation2 + $0xf8] sm:$0xc0] %v976_v30 }
  0xdd   :  { %v1023_v49 = vpop.permute.xlu0 %1022  ;;  %v7784_v51 = vpop.permute.xlu1 %1087  ;;  %5930 = vmatprep.subr.bf16.mxu1 %v5929_v43 }
  0xde   :  { %v1041_v42 = vsel %vm326_vm0, %v7700_v50, %v1023_v49  ;;  %v1106_v53 = vsel %vm406_vm2, %v7716_v0, %v7784_v51  ;;  %5932 = vmatpush1.bf16.msra.mxu1 %v5931_v47  ;;  %v203_v47 = vcombine.low %v7546_v38, %v7546_v38 }
  0xdf   :  { %1070 = vst [vmem:[#allocation2 + $0x170] sm:$0x3] %v1041_v42  ;;  %1135 = vst [vmem:[#allocation2 + $0x170] sm:$0xc] %v1106_v53  ;;  %472 = vrot.lane.b32.xlu0 %v7489_v34, %s12223_s5  ;;  %561 = vrot.lane.b32.xlu1 %v7428_v26, %s7207_s22 }
  0xe0   :  { %v7899_v38 = vrot.slane %v203_v47, %v7356_v9 }
  0xe1   :  { %v1150_v54 = vpop.permute.xlu0 %1149  ;;  %v781_v56 = vpop.permute.xlu1 %780 }
  0xe2   :  { %v1165_v44 = vsel %vm482_vm3, %v7604_v52, %v1150_v54  ;;  %v1166_v57 = vsel %vm482_vm3, %v1150_v54, %v7726_v48  ;;  %v813_v59 = vsel %vm812_vm7, %v781_v56, %v783_v17  ;;  %v7811_v52 = vrot.slane %v7803_v60, %v7356_v9 }
  0xe3   :  { %1194 = vst [vmem:[#allocation2 + $0x168] sm:$0x30] %v1165_v44  ;;  %1195 = vst [vmem:[#allocation2 + $0x170] sm:$0x30] %v1166_v57  ;;  %563 = vrot.lane.b32.xlu0 %v7476_v32, %s7207_s22  ;;  %640 = vrot.lane.b32.xlu1 %v7493_v35, %s7208_s23  ;;  %v1241_v12 = vld [vmem:[#allocation2 + $0xf8] sm:$0xff] }
  0xe4   :  { %843 = vst [vmem:[#allocation2 + $0xf0] sm:$0x3] %v813_v59  ;;  %v7815_v3 = vcombine.low %v7811_v52, %v7811_v52  ;;  %958 = vst.msk [vmem:[#allocation2 + $0x160] sm:$0x30] %vm370_vm13, %v7811_v52 }
  0xe5   :  { %v859_v61 = vpop.permute.xlu0 %858  ;;  %v1021_v2 = vpop.permute.xlu1 %1020 }
  0xe6   :  { %v891_v4 = vsel %vm890_vm8, %v859_v61, %v861_v19  ;;  %v1040_v14 = vsel %vm326_vm0, %v1021_v2, %v7700_v50  ;;  %957 = vst [vmem:[#allocation2 + $0x158] sm:$0x30] %v7815_v3 }
  0xe7   :  { %921 = vst [vmem:[#allocation2 + $0xf0] sm:$0xc] %v891_v4  ;;  %1069 = vst [vmem:[#allocation2 + $0x168] sm:$0x3] %v1040_v14  ;;  %642 = vrot.lane.b32.xlu0 %v7489_v34, %s7208_s23  ;;  %719 = vrot.lane.b32.xlu1 %v7434_v27, %s7209_s1 }
  0xe9   :  { %v1086_v5 = vpop.permute.xlu0 %1085  ;;  %v223_v7 = vpop.permute.xlu1 %222 }
  0xea   :  { %v1105_v13 = vsel %vm406_vm2, %v1086_v5, %v7716_v0  ;;  %v247_v11 = vsel %vm12218_vm1, %v7690_v41, %v223_v7  ;;  %v1256_v55 = vld [vmem:[#allocation2 + $0x170] sm:$0x3f] }
  0xeb   :  { %1134 = vst [vmem:[#allocation2 + $0x168] sm:$0xc] %v1105_v13  ;;  %276 = vst [vmem:[#allocation2 + $0x20] sm:$0xc] %v247_v11  ;;  %721 = vrot.lane.b32.xlu0 %v7428_v26, %s7209_s1  ;;  %794 = vrot.lane.b32.xlu1 %v7428_v26, %s7210_s24  ;;  %v5923_v16 = vpack.c.bf16 %v1256_v55, %v1241_v12 }
  0xed   :  { %v7839_v17 = vpop.permute.xlu0 %224  ;;  %5925 = vmatprep.subr.msk.bf16.mxu0 %vm7831_vm11, %v5923_v16  ;;  %v309_v18 = vpop.permute.xlu1 %308 }
  0xee   :  { %v248_v19 = vsel %vm12218_vm1, %v223_v7, %v7839_v17  ;;  %v332_v21 = vsel %vm326_vm0, %v7700_v50, %v309_v18  ;;  %v1240_v30 = vld [vmem:[#allocation2 + $0xf0] sm:$0xff] }
  0xef   :  { %277 = vst [vmem:[#allocation2 + $0x28] sm:$0xc] %v248_v19  ;;  %361 = vst [vmem:[#allocation2 + $0x28] sm:$0x30] %v332_v21  ;;  %796 = vrot.lane.b32.xlu0 %v7476_v32, %s7210_s24  ;;  %872 = vrot.lane.b32.xlu1 %v7643_v1, %s7211_s2 }
  0xf1   :  { %v7851_v23 = vpop.permute.xlu0 %310  ;;  %v389_v25 = vpop.permute.xlu1 %388 }
  0xf2   :  { %v333_v28 = vsel %vm326_vm0, %v309_v18, %v7851_v23  ;;  %v1042_v29 = vsel %vm326_vm0, %v1023_v49, %v7851_v23  ;;  %v412_v50 = vsel %vm406_vm2, %v7716_v0, %v389_v25  ;;  %v1255_v31 = vld [vmem:[#allocation2 + $0x168] sm:$0x3f]  ;;  %v7870_v0 = vld [vmem:[%s12248_s25] sm:$0x3f] }
  0xf3   :  { %362 = vst [vmem:[#allocation2 + $0x30] sm:$0x30] %v333_v28  ;;  %1071 = vst [vmem:[#allocation2 + $0x178] sm:$0x3] %v1042_v29  ;;  %874 = vrot.lane.b32.xlu0 %v7688_v36, %s7211_s2  ;;  %965 = vrot.lane.b32.xlu1 %v7434_v27, %s7204_s29  ;;  %v5926_v1 = vpack.c.bf16 %v1255_v31, %v1240_v30  ;;  %v1214_v29 = vld [vmem:[#allocation2 + $0x20] sm:$0xff] }
  0xf4   :  { %441 = vst [vmem:[#allocation2 + $0x28] sm:$0xc0] %v412_v50 }
  0xf5   :  { %v7863_v33 = vpop.permute.xlu0 %390  ;;  %5928 = vmatpush1.bf16.msk.msra.mxu0 %vm7831_vm11, %v5926_v1  ;;  %v463_v43 = vpop.permute.xlu1 %462 }
  0xf6   :  { %v413_v45 = vsel %vm406_vm2, %v389_v25, %v7863_v33  ;;  %v1107_v27 = vsel %vm406_vm2, %v7784_v51, %v7863_v33  ;;  %v487_v36 = vsel %vm482_vm3, %v7726_v48, %v463_v43 }
  0xf7   :  { %442 = vst [vmem:[#allocation2 + $0x30] sm:$0xc0] %v413_v45  ;;  %1136 = vst [vmem:[#allocation2 + $0x178] sm:$0xc] %v1107_v27  ;;  %1028 = vrot.lane.b32.xlu0 %v7536_v37, %s12219_s28  ;;  %1093 = vrot.lane.b32.xlu1 %v7476_v32, %s12221_s0 }
  0xf8   :  { %516 = vst [vmem:[#allocation2 + $0x98] sm:$0x3] %v487_v36  ;;  %5643 = vmatmul.mubr.msk.f32.vlgmr.msra.gmra.mrb[0].mxu0 %vm1276_vm12, %v7870_v0 }
  0xf9   :  { %v7887_v49 = vpop.permute.xlu0 %464  ;;  %v554_v51 = vpop.permute.xlu1 %553  ;;  %1532 = vmatprep.mubr.f32.mxu0 %v12225_v46 }
  0xfa   :  { %v488_v42 = vsel %vm482_vm3, %v463_v43, %v7887_v49  ;;  %v580_v53 = vsel %vm575_vm4, %v7736_v24, %v554_v51 }
  0xfb   :  { %517 = vst [vmem:[#allocation2 + $0xa0] sm:$0x3] %v488_v42  ;;  %610 = vst [vmem:[#allocation2 + $0x98] sm:$0xc] %v580_v53  ;;  %1155 = vrot.lane.b32.xlu0 %v7493_v35, %s12223_s5  ;;  %234 = vrot.lane.b32.xlu1 %v7476_v32, %s7204_s29  ;;  %v7913_v35 = vcombine.low %v7899_v38, %v7899_v38  ;;  %v1215_v21 = vld [vmem:[#allocation2 + $0x28] sm:$0xff] }
  0xfd   :  { %v7901_v54 = vpop.permute.xlu0 %555  ;;  %v633_v56 = vpop.permute.xlu1 %632 }
  0xfe   :  { %v581_v44 = vsel %vm575_vm4, %v554_v51, %v7901_v54  ;;  %v659_v24 = vsel %vm654_vm5, %v7746_v20, %v633_v56 }
  0xff   :  { %611 = vst [vmem:[#allocation2 + $0xa0] sm:$0xc] %v581_v44  ;;  %689 = vst [vmem:[#allocation2 + $0x98] sm:$0x30] %v659_v24  ;;  %236 = vrot.lane.b32.xlu0 %v7899_v38, %s7204_s29  ;;  %320 = vrot.lane.b32.xlu1 %v7560_v40, %s12219_s28 }
 0x101   :  { %v7915_v57 = vpop.permute.xlu0 %634  ;;  %v712_v59 = vpop.permute.xlu1 %711 }
 0x102   :  { %v660_v61 = vsel %vm654_vm5, %v633_v56, %v7915_v57  ;;  %v738_v20 = vsel %vm733_vm6, %v7756_v58, %v712_v59 }
 0x103   :  { %690 = vst [vmem:[#allocation2 + $0xa0] sm:$0x30] %v660_v61  ;;  %768 = vst [vmem:[#allocation2 + $0x98] sm:$0xc0] %v738_v20  ;;  %322 = vrot.lane.b32.xlu0 %v7554_v39, %s12219_s28  ;;  %400 = vrot.lane.b32.xlu1 %v7913_v35, %s12221_s0 }
 0x105   :  { %v7925_v2 = vpop.permute.xlu0 %713  ;;  %v787_v4 = vpop.permute.xlu1 %786 }
 0x106   :  { %v739_v14 = vsel %vm733_vm6, %v712_v59, %v7925_v2  ;;  %v815_v5 = vsel %vm812_vm7, %v7764_v62, %v787_v4  ;;  %v7947_v62 = vcombine.high %v7899_v38, %v7899_v38 }
 0x107   :  { %769 = vst [vmem:[#allocation2 + $0xa0] sm:$0xc0] %v739_v14  ;;  %845 = vst [vmem:[#allocation2 + $0x100] sm:$0x3] %v815_v5  ;;  %402 = vrot.lane.b32.xlu0 %v7899_v38, %s12221_s0  ;;  %474 = vrot.lane.b32.xlu1 %v7536_v37, %s12223_s5 }
 0x109   :  { %v7935_v58 = vpop.permute.xlu0 %788  ;;  %v865_v7 = vpop.permute.xlu1 %864 }
 0x10a   :  { %v816_v13 = vsel %vm812_vm7, %v787_v4, %v7935_v58  ;;  %v893_v11 = vsel %vm890_vm8, %v7772_v22, %v865_v7  ;;  %v1229_v16 = vld [vmem:[#allocation2 + $0x98] sm:$0xff] }
 0x10b   :  { %846 = vst [vmem:[#allocation2 + $0x108] sm:$0x3] %v816_v13  ;;  %923 = vst [vmem:[#allocation2 + $0x100] sm:$0xc] %v893_v11  ;;  %476 = vrot.lane.b32.xlu0 %v7554_v39, %s12223_s5  ;;  %565 = vrot.lane.b32.xlu1 %v7899_v38, %s7207_s22  ;;  %v5941_v50 = vpack.c.bf16 %v1229_v16, %v1214_v29 }
 0x10d   :  { %v7949_v12 = vpop.permute.xlu0 %866  ;;  %v962_v55 = vpop.permute.xlu1 %961 }
 0x10e   :  { %v894_v18 = vsel %vm890_vm8, %v865_v7, %v7949_v12  ;;  %v977_v22 = vsel %vm12218_vm1, %v7690_v41, %v962_v55  ;;  %v978_v19 = vsel %vm12218_vm1, %v962_v55, %v7839_v17  ;;  %v1230_v25 = vld [vmem:[#allocation2 + $0xa0] sm:$0xff] }
 0x10f   :  { %924 = vst [vmem:[#allocation2 + $0x108] sm:$0xc] %v894_v18  ;;  %1006 = vst [vmem:[#allocation2 + $0x100] sm:$0xc0] %v977_v22  ;;  %567 = vrot.lane.b32.xlu0 %v7947_v62, %s7207_s22  ;;  %644 = vrot.lane.b32.xlu1 %v7560_v40, %s7208_s23  ;;  %v5939_v28 = vpack.c.bf16 %v1230_v25, %v1215_v21 }
 0x110   :  { %1007 = vst [vmem:[#allocation2 + $0x108] sm:$0xc0] %v978_v19 }
 0x111   :  { %v1025_v30 = vpop.permute.xlu0 %1024  ;;  %5940 = vmatprep.subr.bf16.mxu0 %v5939_v28  ;;  %v1090_v41 = vpop.permute.xlu1 %1089 }
 0x112   :  { %v1043_v31 = vsel %vm326_vm0, %v7851_v23, %v1025_v30  ;;  %v1108_v1 = vsel %vm406_vm2, %v7863_v33, %v1090_v41  ;;  %5942 = vmatpush1.bf16.msra.mxu0 %v5941_v50 }
 0x113   :  { %1072 = vst [vmem:[#allocation2 + $0x180] sm:$0x3] %v1043_v31  ;;  %1137 = vst [vmem:[#allocation2 + $0x180] sm:$0xc] %v1108_v1  ;;  %646 = vrot.lane.b32.xlu0 %v7554_v39, %s7208_s23  ;;  %723 = vrot.lane.b32.xlu1 %v7913_v35, %s7209_s1 }
 0x115   :  { %v1152_v43 = vpop.permute.xlu0 %1151  ;;  %v227_v45 = vpop.permute.xlu1 %226 }
 0x116   :  { %v1167_v27 = vsel %vm482_vm3, %v7726_v48, %v1152_v43  ;;  %v1168_v36 = vsel %vm482_vm3, %v1152_v43, %v7887_v49  ;;  %v249_v47 = vsel %vm12218_vm1, %v7839_v17, %v227_v45  ;;  %v1242_v20 = vld [vmem:[#allocation2 + $0x100] sm:$0xff] }
 0x117   :  { %1196 = vst [vmem:[#allocation2 + $0x178] sm:$0x30] %v1167_v27  ;;  %1197 = vst [vmem:[#allocation2 + $0x180] sm:$0x30] %v1168_v36  ;;  %725 = vrot.lane.b32.xlu0 %v7899_v38, %s7209_s1  ;;  %798 = vrot.lane.b32.xlu1 %v7489_v34, %s7210_s24  ;;  %v1243_v44 = vld [vmem:[#allocation2 + $0x108] sm:$0xff] }
 0x118   :  { %278 = vst [vmem:[#allocation2 + $0x30] sm:$0xc] %v249_v47 }
 0x119   :  { %v7979_v51 = vpop.permute.xlu0 %228  ;;  %v313_v42 = vpop.permute.xlu1 %312 }
 0x11a   :  { %v250_v48 = vsel %vm12218_vm1, %v227_v45, %v7979_v51  ;;  %v334_v53 = vsel %vm326_vm0, %v7851_v23, %v313_v42 }
 0x11b   :  { %279 = vst [vmem:[#allocation2 + $0x38] sm:$0xc] %v250_v48  ;;  %363 = vst [vmem:[#allocation2 + $0x38] sm:$0x30] %v334_v53  ;;  %800 = vrot.lane.b32.xlu0 %v7536_v37, %s7210_s24  ;;  %876 = vrot.lane.b32.xlu1 %v7428_v26, %s7211_s2 }
 0x11d   :  { %v7989_v56 = vpop.permute.xlu0 %314  ;;  %v393_v34 = vpop.permute.xlu1 %392 }
 0x11e   :  { %v335_v24 = vsel %vm326_vm0, %v313_v42, %v7989_v56  ;;  %v1044_v59 = vsel %vm326_vm0, %v1025_v30, %v7989_v56  ;;  %v414_v23 = vsel %vm406_vm2, %v7863_v33, %v393_v34  ;;  %v1258_v61 = vld [vmem:[#allocation2 + $0x180] sm:$0x3f]  ;;  %v1257_v37 = vld [vmem:[#allocation2 + $0x178] sm:$0x3f] }
 0x11f   :  { %364 = vst [vmem:[#allocation2 + $0x40] sm:$0x30] %v335_v24  ;;  %1073 = vst [vmem:[#allocation2 + $0x188] sm:$0x3] %v1044_v59  ;;  %878 = vrot.lane.b32.xlu0 %v7476_v32, %s7211_s2  ;;  %967 = vrot.lane.b32.xlu1 %v7913_v35, %s7204_s29  ;;  %v5933_v26 = vpack.c.bf16 %v1258_v61, %v1243_v44  ;;  %v5936_v4 = vpack.c.bf16 %v1257_v37, %v1242_v20  ;;  %v1216_v53 = vld [vmem:[#allocation2 + $0x30] sm:$0xff] }
 0x120   :  { %443 = vst [vmem:[#allocation2 + $0x38] sm:$0xc0] %v414_v23 }
 0x121   :  { %v8003_v14 = vpop.permute.xlu0 %394  ;;  %v467_v33 = vpop.permute.xlu1 %466  ;;  %5935 = vmatprep.subr.msk.bf16.mxu1 %vm7831_vm11, %v5933_v26 }
 0x122   :  { %v415_v5 = vsel %vm406_vm2, %v393_v34, %v8003_v14  ;;  %v1109_v7 = vsel %vm406_vm2, %v1090_v41, %v8003_v14  ;;  %v489_v32 = vsel %vm482_vm3, %v7887_v49, %v467_v33  ;;  %5938 = vmatpush1.bf16.msk.msra.mxu1 %vm7831_vm11, %v5936_v4 }
 0x123   :  { %444 = vst [vmem:[#allocation2 + $0x40] sm:$0xc0] %v415_v5  ;;  %1138 = vst [vmem:[#allocation2 + $0x188] sm:$0xc] %v1109_v7  ;;  %1030 = vrot.lane.b32.xlu0 %v7634_v63, %s12219_s28  ;;  %1095 = vrot.lane.b32.xlu1 %v7947_v62, %s12221_s0 }
 0x124   :  { %518 = vst [vmem:[#allocation2 + $0xa8] sm:$0x3] %v489_v32 }
 0x125   :  { %v8021_v35 = vpop.permute.xlu0 %468  ;;  %v558_v13 = vpop.permute.xlu1 %557  ;;  %5646 = vmatmul.mubr.msk.f32.vlgmr.msra.gmra.mrb[0].mxu1 %vm1276_vm12, %v7870_v0 }
 0x126   :  { %v490_v11 = vsel %vm482_vm3, %v467_v33, %v8021_v35  ;;  %v582_v55 = vsel %vm575_vm4, %v7901_v54, %v558_v13  ;;  %1603 = vmatprep.mubr.f32.mxu1 %v12225_v46 }
 0x127   :  { %519 = vst [vmem:[#allocation2 + $0xb0] sm:$0x3] %v490_v11  ;;  %612 = vst [vmem:[#allocation2 + $0xa8] sm:$0xc] %v582_v55  ;;  %1157 = vrot.lane.b32.xlu0 %v7560_v40, %s12223_s5  ;;  %238 = vrot.lane.b32.xlu1 %v7947_v62, %s7204_s29  ;;  %v1217_v47 = vld [vmem:[#allocation2 + $0x38] sm:$0xff] }
 0x129   :  { %v8034_v16 = vpop.permute.xlu0 %559  ;;  %v637_v18 = vpop.permute.xlu1 %636 }
 0x12a   :  { %v583_v22 = vsel %vm575_vm4, %v558_v13, %v8034_v16  ;;  %v661_v19 = vsel %vm654_vm5, %v7915_v57, %v637_v18 }
 0x12b   :  { %613 = vst [vmem:[#allocation2 + $0xb0] sm:$0xc] %v583_v22  ;;  %691 = vst [vmem:[#allocation2 + $0xa8] sm:$0x30] %v661_v19  ;;  %240 = vrot.lane.b32.xlu0 %v7554_v39, %s7204_s29  ;;  %324 = vrot.lane.b32.xlu1 %v7663_v15, %s12219_s28 }
 0x12d   :  { %v8044_v54 = vpop.permute.xlu0 %638  ;;  %v716_v21 = vpop.permute.xlu1 %715 }
 0x12e   :  { %v662_v25 = vsel %vm654_vm5, %v637_v18, %v8044_v54  ;;  %v740_v28 = vsel %vm733_vm6, %v7925_v2, %v716_v21 }
 0x12f   :  { %692 = vst [vmem:[#allocation2 + $0xb0] sm:$0x30] %v662_v25  ;;  %770 = vst [vmem:[#allocation2 + $0xa8] sm:$0xc0] %v740_v28  ;;  %404 = vrot.lane.b32.xlu0 %v7560_v40, %s12221_s0  ;;  %478 = vrot.lane.b32.xlu1 %v7634_v63, %s12223_s5 }
 0x131   :  { %v8054_v57 = vpop.permute.xlu0 %717  ;;  %v791_v29 = vpop.permute.xlu1 %790 }
 0x132   :  { %v741_v50 = vsel %vm733_vm6, %v716_v21, %v8054_v57  ;;  %v817_v30 = vsel %vm812_vm7, %v7935_v58, %v791_v29 }
 0x133   :  { %771 = vst [vmem:[#allocation2 + $0xb0] sm:$0xc0] %v741_v50  ;;  %847 = vst [vmem:[#allocation2 + $0x110] sm:$0x3] %v817_v30  ;;  %480 = vrot.lane.b32.xlu0 %v7659_v10, %s12223_s5  ;;  %569 = vrot.lane.b32.xlu1 %v7554_v39, %s7207_s22  ;;  %v528_v50 = vcombine.low %v7803_v60, %v7803_v60 }
 0x135   :  { %v8064_v2 = vpop.permute.xlu0 %792  ;;  %v869_v41 = vpop.permute.xlu1 %868  ;;  %v8159_v60 = vrot.slane %v528_v50, %v7356_v9 }
 0x136   :  { %v818_v31 = vsel %vm812_vm7, %v791_v29, %v8064_v2  ;;  %v895_v1 = vsel %vm890_vm8, %v7949_v12, %v869_v41  ;;  %v1231_v45 = vld [vmem:[#allocation2 + $0xa8] sm:$0xff] }
 0x137   :  { %848 = vst [vmem:[#allocation2 + $0x118] sm:$0x3] %v818_v31  ;;  %925 = vst [vmem:[#allocation2 + $0x110] sm:$0xc] %v895_v1  ;;  %571 = vrot.lane.b32.xlu0 %v7634_v63, %s7207_s22  ;;  %648 = vrot.lane.b32.xlu1 %v7663_v15, %s7208_s23  ;;  %v5951_v34 = vpack.c.bf16 %v1231_v45, %v1216_v53  ;;  %v700_v9 = vcombine.low %v8159_v60, %v8159_v60 }
 0x139   :  { %v8074_v58 = vpop.permute.xlu0 %870  ;;  %v964_v43 = vpop.permute.xlu1 %963 }
 0x13a   :  { %v896_v27 = vsel %vm890_vm8, %v869_v41, %v8074_v58  ;;  %v979_v36 = vsel %vm12218_vm1, %v7839_v17, %v964_v43  ;;  %v980_v12 = vsel %vm12218_vm1, %v964_v43, %v7979_v51  ;;  %v1232_v42 = vld [vmem:[#allocation2 + $0xb0] sm:$0xff] }
 0x13b   :  { %926 = vst [vmem:[#allocation2 + $0x118] sm:$0xc] %v896_v27  ;;  %1008 = vst [vmem:[#allocation2 + $0x110] sm:$0xc0] %v979_v36  ;;  %650 = vrot.lane.b32.xlu0 %v7659_v10, %s7208_s23  ;;  %727 = vrot.lane.b32.xlu1 %v7560_v40, %s7209_s1  ;;  %v5949_v48 = vpack.c.bf16 %v1232_v42, %v1217_v47 }
 0x13c   :  { %1009 = vst [vmem:[#allocation2 + $0x118] sm:$0xc0] %v980_v12 }
 0x13d   :  { %v1027_v44 = vpop.permute.xlu0 %1026  ;;  %v1092_v24 = vpop.permute.xlu1 %1091  ;;  %5950 = vmatprep.subr.bf16.mxu1 %v5949_v48 }
 0x13e   :  { %v1045_v17 = vsel %vm326_vm0, %v7989_v56, %v1027_v44  ;;  %v1110_v59 = vsel %vm406_vm2, %v8003_v14, %v1092_v24  ;;  %5952 = vmatpush1.bf16.msra.mxu1 %v5951_v34  ;;  %v1084_v34 = vcombine.high %v8159_v60, %v8159_v60 }
 0x13f   :  { %1074 = vst [vmem:[#allocation2 + $0x190] sm:$0x3] %v1045_v17  ;;  %1139 = vst [vmem:[#allocation2 + $0x190] sm:$0xc] %v1110_v59  ;;  %729 = vrot.lane.b32.xlu0 %v7554_v39, %s7209_s1  ;;  %802 = vrot.lane.b32.xlu1 %v7554_v39, %s7210_s24 }
 0x141   :  { %v1154_v23 = vpop.permute.xlu0 %1153  ;;  %v231_v61 = vpop.permute.xlu1 %230 }
 0x142   :  { %v1169_v20 = vsel %vm482_vm3, %v7887_v49, %v1154_v23  ;;  %v1170_v37 = vsel %vm482_vm3, %v1154_v23, %v8021_v35  ;;  %v251_v26 = vsel %vm12218_vm1, %v7979_v51, %v231_v61  ;;  %v1244_v18 = vld [vmem:[#allocation2 + $0x110] sm:$0xff] }
 0x143   :  { %1198 = vst [vmem:[#allocation2 + $0x188] sm:$0x30] %v1169_v20  ;;  %1199 = vst [vmem:[#allocation2 + $0x190] sm:$0x30] %v1170_v37  ;;  %804 = vrot.lane.b32.xlu0 %v7634_v63, %s7210_s24  ;;  %880 = vrot.lane.b32.xlu1 %v7899_v38, %s7211_s2  ;;  %v779_v38 = vcombine.high %v7659_v10, %v7659_v10  ;;  %v1245_v13 = vld [vmem:[#allocation2 + $0x118] sm:$0xff] }
 0x144   :  { %280 = vst [vmem:[#allocation2 + $0x40] sm:$0xc] %v251_v26 }
 0x145   :  { %v8104_v4 = vpop.permute.xlu0 %232  ;;  %v317_v33 = vpop.permute.xlu1 %316 }
 0x146   :  { %v252_v49 = vsel %vm12218_vm1, %v231_v61, %v8104_v4  ;;  %v336_v5 = vsel %vm326_vm0, %v7989_v56, %v317_v33 }
 0x147   :  { %281 = vst [vmem:[#allocation2 + $0x48] sm:$0xc] %v252_v49  ;;  %365 = vst [vmem:[#allocation2 + $0x48] sm:$0x30] %v336_v5  ;;  %882 = vrot.lane.b32.xlu0 %v7947_v62, %s7211_s2  ;;  %969 = vrot.lane.b32.xlu1 %v7560_v40, %s7204_s29 }
 0x149   :  { %v8116_v7 = vpop.permute.xlu0 %318  ;;  %v397_v32 = vpop.permute.xlu1 %396 }
 0x14a   :  { %v337_v11 = vsel %vm326_vm0, %v317_v33, %v8116_v7  ;;  %v1046_v56 = vsel %vm326_vm0, %v1027_v44, %v8116_v7  ;;  %v416_v55 = vsel %vm406_vm2, %v8003_v14, %v397_v32  ;;  %v1260_v62 = vld [vmem:[#allocation2 + $0x190] sm:$0x3f]  ;;  %v1259_v22 = vld [vmem:[#allocation2 + $0x188] sm:$0x3f] }
 0x14b   :  { %366 = vst [vmem:[#allocation2 + $0x50] sm:$0x30] %v337_v11  ;;  %1075 = vst [vmem:[#allocation2 + $0x198] sm:$0x3] %v1046_v56  ;;  %1032 = vrot.lane.b32.xlu0 %v7659_v10, %s12219_s28  ;;  %1034 = vrot.lane.b32.xlu1 %v779_v38, %s12219_s28  ;;  %v5943_v40 = vpack.c.bf16 %v1260_v62, %v1245_v13  ;;  %v5946_v19 = vpack.c.bf16 %v1259_v22, %v1244_v18  ;;  %v1218_v26 = vld [vmem:[#allocation2 + $0x40] sm:$0xff] }
 0x14c   :  { %445 = vst [vmem:[#allocation2 + $0x48] sm:$0xc0] %v416_v55 }
 0x14d   :  { %v8127_v21 = vpop.permute.xlu0 %398  ;;  %5945 = vmatprep.subr.msk.bf16.mxu0 %vm7831_vm11, %v5943_v40  ;;  %v471_v25 = vpop.permute.xlu1 %470 }
 0x14e   :  { %v417_v14 = vsel %vm406_vm2, %v397_v32, %v8127_v21  ;;  %v1111_v28 = vsel %vm406_vm2, %v1092_v24, %v8127_v21  ;;  %v491_v29 = vsel %vm482_vm3, %v8021_v35, %v471_v25  ;;  %5948 = vmatpush1.bf16.msk.msra.mxu0 %vm7831_vm11, %v5946_v19 }
 0x14f   :  { %446 = vst [vmem:[#allocation2 + $0x50] sm:$0xc0] %v417_v14  ;;  %1140 = vst [vmem:[#allocation2 + $0x198] sm:$0xc] %v1111_v28  ;;  %1097 = vrot.lane.b32.xlu0 %v7554_v39, %s12221_s0  ;;  %1099 = vrot.lane.b32.xlu1 %v7634_v63, %s12221_s0  ;;  %v7214_v14 = vmov 0  }
 0x150   :  { %520 = vst [vmem:[#allocation2 + $0xb8] sm:$0x3] %v491_v29  ;;  %7044 = vset.pattern.permute.xlu0 %v7214_v14  ;;  %7045 = vset.pattern.permute.xlu1 %v7214_v14 }
 0x151   :  { %v8145_v30 = vpop.permute.xlu0 %472  ;;  %v562_v41 = vpop.permute.xlu1 %561  ;;  %5649 = vmatmul.mubr.msk.f32.vlgmr.msra.gmra.mrb[2].mxu0 %vm1276_vm12, %v7870_v0 }
 0x152   :  { %v492_v31 = vsel %vm482_vm3, %v471_v25, %v8145_v30  ;;  %v584_v1 = vsel %vm575_vm4, %v8034_v16, %v562_v41  ;;  %1674 = vmatprep.mubr.f32.mxu0 %v12225_v46 }
 0x153   :  { %521 = vst [vmem:[#allocation2 + $0xc0] sm:$0x3] %v492_v31  ;;  %614 = vst [vmem:[#allocation2 + $0xb8] sm:$0xc] %v584_v1  ;;  %1159 = vrot.lane.b32.xlu0 %v7663_v15, %s12223_s5  ;;  %806 = vrot.lane.b32.xlu1 %v7659_v10, %s7210_s24  ;;  %v1219_v61 = vld [vmem:[#allocation2 + $0x48] sm:$0xff] }
 0x155   :  { %v8161_v43 = vpop.permute.xlu0 %563  ;;  %v641_v45 = vpop.permute.xlu1 %640 }
 0x156   :  { %v585_v27 = vsel %vm575_vm4, %v562_v41, %v8161_v43  ;;  %v663_v16 = vsel %vm654_vm5, %v8044_v54, %v641_v45 }
 0x157   :  { %615 = vst [vmem:[#allocation2 + $0xc0] sm:$0xc] %v585_v27  ;;  %693 = vst [vmem:[#allocation2 + $0xb8] sm:$0x30] %v663_v16  ;;  %808 = vrot.lane.b32.xlu0 %v779_v38, %s7210_s24  ;;  %884 = vrot.lane.b32.xlu1 %v7554_v39, %s7211_s2 }
 0x159   :  { %v8172_v10 = vpop.permute.xlu0 %642  ;;  %v720_v15 = vpop.permute.xlu1 %719 }
 0x15a   :  { %v664_v36 = vsel %vm654_vm5, %v641_v45, %v8172_v10  ;;  %v742_v12 = vsel %vm733_vm6, %v8054_v57, %v720_v15 }
 0x15b   :  { %694 = vst [vmem:[#allocation2 + $0xc0] sm:$0x30] %v664_v36  ;;  %772 = vst [vmem:[#allocation2 + $0xb8] sm:$0xc0] %v742_v12  ;;  %886 = vrot.lane.b32.xlu0 %v7634_v63, %s7211_s2  ;;  %971 = vrot.lane.b32.xlu1 %v700_v9, %s7204_s29  ;;  %v1019_v63 = vcombine.high %v7811_v52, %v7811_v52 }
 0x15d   :  { %v8181_v39 = vpop.permute.xlu0 %721  ;;  %v795_v54 = vpop.permute.xlu1 %794 }
 0x15e   :  { %v743_v47 = vsel %vm733_vm6, %v720_v15, %v8181_v39  ;;  %v819_v42 = vsel %vm812_vm7, %v8064_v2, %v795_v54 }
 0x15f   :  { %773 = vst [vmem:[#allocation2 + $0xc0] sm:$0xc0] %v743_v47  ;;  %849 = vst [vmem:[#allocation2 + $0x120] sm:$0x3] %v819_v42  ;;  %973 = vrot.lane.b32.xlu0 %v8159_v60, %s7204_s29  ;;  %1036 = vrot.lane.b32.xlu1 %v7811_v52, %s12219_s28 }
 0x161   :  { %v8193_v57 = vpop.permute.xlu0 %796  ;;  %v873_v48 = vpop.permute.xlu1 %872 }
 0x162   :  { %v820_v53 = vsel %vm812_vm7, %v795_v54, %v8193_v57  ;;  %v897_v2 = vsel %vm890_vm8, %v8074_v58, %v873_v48  ;;  %v1233_v17 = vld [vmem:[#allocation2 + $0xb8] sm:$0xff] }
 0x163   :  { %850 = vst [vmem:[#allocation2 + $0x128] sm:$0x3] %v820_v53  ;;  %927 = vst [vmem:[#allocation2 + $0x120] sm:$0xc] %v897_v2  ;;  %1038 = vrot.lane.b32.xlu0 %v1019_v63, %s12219_s28  ;;  %1101 = vrot.lane.b32.xlu1 %v8159_v60, %s12221_s0  ;;  %v5961_v33 = vpack.c.bf16 %v1233_v17, %v1218_v26  ;;  %s12280_s28 = smov 125  }
 0x165   :  { %v8204_v44 = vpop.permute.xlu0 %874  ;;  %v966_v24 = vpop.permute.xlu1 %965 }
 0x166   :  { %v898_v59 = vsel %vm890_vm8, %v873_v48, %v8204_v44  ;;  %v981_v58 = vsel %vm12218_vm1, %v7979_v51, %v966_v24  ;;  %v982_v23 = vsel %vm12218_vm1, %v966_v24, %v8104_v4  ;;  %v1234_v20 = vld [vmem:[#allocation2 + $0xc0] sm:$0xff] }
 0x167   :  { %928 = vst [vmem:[#allocation2 + $0x128] sm:$0xc] %v898_v59  ;;  %1010 = vst [vmem:[#allocation2 + $0x120] sm:$0xc0] %v981_v58  ;;  %1103 = vrot.lane.b32.xlu0 %v1084_v34, %s12221_s0  ;;  %1161 = vrot.lane.b32.xlu1 %v7815_v3, %s12223_s5  ;;  %v5959_v37 = vpack.c.bf16 %v1234_v20, %v1219_v61 }
 0x168   :  { %1011 = vst [vmem:[#allocation2 + $0x128] sm:$0xc0] %v982_v23 }
 0x169   :  { %v1029_v49 = vpop.permute.xlu0 %1028  ;;  %5960 = vmatprep.subr.bf16.mxu0 %v5959_v37  ;;  %v1094_v5 = vpop.permute.xlu1 %1093 }
 0x16a   :  { %v1047_v51 = vsel %vm326_vm0, %v8116_v7, %v1029_v49  ;;  %v1112_v38 = vsel %vm406_vm2, %v8127_v21, %v1094_v5  ;;  %5962 = vmatpush1.bf16.msra.mxu0 %v5961_v33 }
 0x16b   :  { %1076 = vst [vmem:[#allocation2 + $0x1a0] sm:$0x3] %v1047_v51  ;;  %1141 = vst [vmem:[#allocation2 + $0x1a0] sm:$0xc] %v1112_v38  ;;  %1163 = vrot.lane.b32.xlu0 %v7811_v52, %s12223_s5  ;;  %573 = vrot.lane.b32.xlu1 %v8159_v60, %s7207_s22  ;;  %s12279_s5 = smov 124  }
 0x16d   :  { %v1156_v32 = vpop.permute.xlu0 %1155  ;;  %v235_v13 = vpop.permute.xlu1 %234 }
 0x16e   :  { %v1171_v11 = vsel %vm482_vm3, %v8021_v35, %v1156_v32  ;;  %v1172_v56 = vsel %vm482_vm3, %v1156_v32, %v8145_v30  ;;  %v253_v55 = vsel %vm12218_vm1, %v8104_v4, %v235_v13  ;;  %v1246_v50 = vld [vmem:[#allocation2 + $0x120] sm:$0xff] }
 0x16f   :  { %1200 = vst [vmem:[#allocation2 + $0x198] sm:$0x30] %v1171_v11  ;;  %1201 = vst [vmem:[#allocation2 + $0x1a0] sm:$0x30] %v1172_v56  ;;  %652 = vrot.lane.b32.xlu0 %v7815_v3, %s7208_s23  ;;  %731 = vrot.lane.b32.xlu1 %v700_v9, %s7209_s1  ;;  %s12249_s1 = sld [smem:[#allocation8_spill]]  ;;  %v1247_v25 = vld [vmem:[#allocation2 + $0x128] sm:$0xff] }
 0x170   :  { %282 = vst [vmem:[#allocation2 + $0x50] sm:$0xc] %v253_v55 }
 0x171   :  { %v8232_v62 = vpop.permute.xlu0 %236  ;;  %v321_v18 = vpop.permute.xlu1 %320 }
 0x172   :  { %v254_v35 = vsel %vm12218_vm1, %v235_v13, %v8232_v62  ;;  %v338_v22 = vsel %vm326_vm0, %v8116_v7, %v321_v18 }
 0x173   :  { %283 = vst [vmem:[#allocation2 + $0x58] sm:$0xc] %v254_v35  ;;  %367 = vst [vmem:[#allocation2 + $0x58] sm:$0x30] %v338_v22  ;;  %810 = vrot.lane.b32.xlu0 %v7811_v52, %s7210_s24  ;;  %888 = vrot.lane.b32.xlu1 %v8159_v60, %s7211_s2  ;;  %s12251_s24 = sld [smem:[#allocation9_spill]]  ;;  %s7225_s2 = smov 69  }
 0x175   :  { %v1270_v3 = vld [vmem:[%s12249_s1] sm:$0x3f]  ;;  %v8245_v40 = vpop.permute.xlu0 %322  ;;  %v401_v19 = vpop.permute.xlu1 %400  ;;  %s7223_s1 = smov 71  }
 0x176   :  { %v339_v7 = vsel %vm326_vm0, %v321_v18, %v8245_v40  ;;  %v1048_v52 = vsel %vm326_vm0, %v1029_v49, %v8245_v40  ;;  %v418_v28 = vsel %vm406_vm2, %v8127_v21, %v401_v19  ;;  %v1262_v29 = vld [vmem:[#allocation2 + $0x1a0] sm:$0x3f]  ;;  %v1261_v41 = vld [vmem:[#allocation2 + $0x198] sm:$0x3f] }
 0x177   :  { %368 = vst [vmem:[#allocation2 + $0x60] sm:$0x30] %v339_v7  ;;  %1077 = vst [vmem:[#allocation2 + $0x1a8] sm:$0x3] %v1048_v52  ;;  %v5953_v31 = vpack.c.bf16 %v1262_v29, %v1247_v25  ;;  %v5956_v1 = vpack.c.bf16 %v1261_v41, %v1246_v50  ;;  %1273 = vperm.xlu0 %7044, %v1270_v3   ;;  %v1220_v51 = vld [vmem:[#allocation2 + $0x50] sm:$0xff] }
 0x178   :  { %447 = vst [vmem:[#allocation2 + $0x58] sm:$0xc0] %v418_v28 }
 0x179   :  { %v8253_v60 = vpop.permute.xlu0 %402  ;;  %v475_v45 = vpop.permute.xlu1 %474  ;;  %5955 = vmatprep.subr.msk.bf16.mxu1 %vm7831_vm11, %v5953_v31 }
 0x17a   :  { %v419_v27 = vsel %vm406_vm2, %v401_v19, %v8253_v60  ;;  %v1113_v21 = vsel %vm406_vm2, %v1094_v5, %v8253_v60  ;;  %v493_v16 = vsel %vm482_vm3, %v8145_v30, %v475_v45  ;;  %5958 = vmatpush1.bf16.msk.msra.mxu1 %vm7831_vm11, %v5956_v1 }
 0x17b   :  { %448 = vst [vmem:[#allocation2 + $0x60] sm:$0xc0] %v419_v27  ;;  %1142 = vst [vmem:[#allocation2 + $0x1a8] sm:$0xc] %v1113_v21 }
 0x17c   :  { %522 = vst [vmem:[#allocation2 + $0xc8] sm:$0x3] %v493_v16 }
 0x17d   :  { %v8265_v9 = vpop.permute.xlu0 %476  ;;  %v566_v15 = vpop.permute.xlu1 %565  ;;  %5652 = vmatmul.mubr.msk.f32.vlgmr.msra.gmra.mrb[2].mxu1 %vm1276_vm12, %v7870_v0 }
 0x17e   :  { %v494_v36 = vsel %vm482_vm3, %v475_v45, %v8265_v9  ;;  %v586_v12 = vsel %vm575_vm4, %v8161_v43, %v566_v15  ;;  %1745 = vmatprep.mubr.f32.mxu1 %v12225_v46 }
 0x17f   :  { %523 = vst [vmem:[#allocation2 + $0xd0] sm:$0x3] %v494_v36  ;;  %616 = vst [vmem:[#allocation2 + $0xc8] sm:$0xc] %v586_v12  ;;  %v1221_v49 = vld [vmem:[#allocation2 + $0x58] sm:$0xff] }
 0x181   :  { %v8274_v54 = vpop.permute.xlu0 %567  ;;  %v645_v47 = vpop.permute.xlu1 %644 }
 0x182   :  { %v587_v42 = vsel %vm575_vm4, %v566_v15, %v8274_v54  ;;  %v665_v63 = vsel %vm654_vm5, %v8172_v10, %v645_v47 }
 0x183   :  { %617 = vst [vmem:[#allocation2 + $0xd0] sm:$0xc] %v587_v42  ;;  %695 = vst [vmem:[#allocation2 + $0xc8] sm:$0x30] %v665_v63 }
 0x185   :  { %v8280_v48 = vpop.permute.xlu0 %646  ;;  %v724_v53 = vpop.permute.xlu1 %723 }
 0x186   :  { %v666_v43 = vsel %vm654_vm5, %v645_v47, %v8280_v48  ;;  %v744_v2 = vsel %vm733_vm6, %v8181_v39, %v724_v53 }
 0x187   :  { %696 = vst [vmem:[#allocation2 + $0xd0] sm:$0x30] %v666_v43  ;;  %774 = vst [vmem:[#allocation2 + $0xc8] sm:$0xc0] %v744_v2 }
 0x189   :  { %v8286_v34 = vpop.permute.xlu0 %725  ;;  %v799_v24 = vpop.permute.xlu1 %798 }
 0x18a   :  { %v745_v17 = vsel %vm733_vm6, %v724_v53, %v8286_v34  ;;  %v821_v10 = vsel %vm812_vm7, %v8193_v57, %v799_v24 }
 0x18b   :  { %775 = vst [vmem:[#allocation2 + $0xd0] sm:$0xc0] %v745_v17  ;;  %851 = vst [vmem:[#allocation2 + $0x130] sm:$0x3] %v821_v10 }
 0x18d   :  { %v8292_v59 = vpop.permute.xlu0 %800  ;;  %v877_v58 = vpop.permute.xlu1 %876 }
 0x18e   :  { %v822_v23 = vsel %vm812_vm7, %v799_v24, %v8292_v59  ;;  %v899_v39 = vsel %vm890_vm8, %v8204_v44, %v877_v58  ;;  %v1235_v37 = vld [vmem:[#allocation2 + $0xc8] sm:$0xff] }
 0x18f   :  { %852 = vst [vmem:[#allocation2 + $0x138] sm:$0x3] %v822_v23  ;;  %929 = vst [vmem:[#allocation2 + $0x130] sm:$0xc] %v899_v39  ;;  %v5971_v38 = vpack.c.bf16 %v1235_v37, %v1220_v51 }
 0x191   :  { %v8298_v61 = vpop.permute.xlu0 %878  ;;  %v968_v20 = vpop.permute.xlu1 %967 }
 0x192   :  { %v900_v57 = vsel %vm890_vm8, %v877_v58, %v8298_v61  ;;  %v983_v26 = vsel %vm12218_vm1, %v8104_v4, %v968_v20  ;;  %v984_v33 = vsel %vm12218_vm1, %v968_v20, %v8232_v62  ;;  %v1236_v5 = vld [vmem:[#allocation2 + $0xd0] sm:$0xff] }
 0x193   :  { %930 = vst [vmem:[#allocation2 + $0x138] sm:$0xc] %v900_v57  ;;  %1012 = vst [vmem:[#allocation2 + $0x130] sm:$0xc0] %v983_v26  ;;  %v5969_v44 = vpack.c.bf16 %v1236_v5, %v1221_v49 }
 0x194   :  { %1013 = vst [vmem:[#allocation2 + $0x138] sm:$0xc0] %v984_v33 }
 0x195   :  { %v8306_v32 = vpop.permute.xlu0 %1030  ;;  %v8308_v13 = vpop.permute.xlu1 %1095  ;;  %5970 = vmatprep.subr.bf16.mxu1 %v5969_v44 }
 0x196   :  { %v1049_v4 = vsel %vm326_vm0, %v8245_v40, %v8306_v32  ;;  %v1114_v11 = vsel %vm406_vm2, %v8253_v60, %v8308_v13  ;;  %5972 = vmatpush1.bf16.msra.mxu1 %v5971_v38 }
 0x197   :  { %1078 = vst [vmem:[#allocation2 + $0x1b0] sm:$0x3] %v1049_v4  ;;  %1143 = vst [vmem:[#allocation2 + $0x1b0] sm:$0xc] %v1114_v11 }
 0x199   :  { %v1158_v56 = vpop.permute.xlu0 %1157  ;;  %v239_v55 = vpop.permute.xlu1 %238 }
 0x19a   :  { %v1173_v18 = vsel %vm482_vm3, %v8145_v30, %v1158_v56  ;;  %v1174_v35 = vsel %vm482_vm3, %v1158_v56, %v8265_v9  ;;  %v255_v22 = vsel %vm12218_vm1, %v8232_v62, %v239_v55  ;;  %v1248_v50 = vld [vmem:[#allocation2 + $0x130] sm:$0xff] }
 0x19b   :  { %1202 = vst [vmem:[#allocation2 + $0x1a8] sm:$0x30] %v1173_v18  ;;  %1203 = vst [vmem:[#allocation2 + $0x1b0] sm:$0x30] %v1174_v35  ;;  %v1249_v52 = vld [vmem:[#allocation2 + $0x138] sm:$0xff] }
 0x19c   :  { %284 = vst [vmem:[#allocation2 + $0x60] sm:$0xc] %v255_v22 }
 0x19d   :  { %v8322_v3 = vpop.permute.xlu0 %240  ;;  %v325_v19 = vpop.permute.xlu1 %324 }
 0x19e   :  { %v256_v25 = vsel %vm12218_vm1, %v239_v55, %v8322_v3  ;;  %v340_v14 = vsel %vm326_vm0, %v8245_v40, %v325_v19  ;;  %371 = vst.msk [vmem:[#allocation2 + $0x70] sm:$0x30] %vm370_vm13, %v325_v19 }
 0x19f   :  { %287 = vst.msk [vmem:[#allocation2 + $0x70] sm:$0xc] %vm286_vm15, %v8322_v3  ;;  %285 = vst [vmem:[#allocation2 + $0x68] sm:$0xc] %v256_v25 }
 0x1a0   :  { %369 = vst [vmem:[#allocation2 + $0x68] sm:$0x30] %v340_v14 }
 0x1a1   :  { %v405_v30 = vpop.permute.xlu0 %404  ;;  %v479_v7 = vpop.permute.xlu1 %478 }
 0x1a2   :  { %v420_v28 = vsel %vm406_vm2, %v8253_v60, %v405_v30  ;;  %451 = vst.msk [vmem:[#allocation2 + $0x70] sm:$0xc0] %vm450_vm10, %v405_v30  ;;  %v495_v29 = vsel %vm482_vm3, %v8265_v9, %v479_v7  ;;  %v1264_v40 = vld [vmem:[#allocation2 + $0x1b0] sm:$0x3f]  ;;  %v1263_v41 = vld [vmem:[#allocation2 + $0x1a8] sm:$0x3f] }
 0x1a3   :  { %449 = vst [vmem:[#allocation2 + $0x68] sm:$0xc0] %v420_v28  ;;  %524 = vst [vmem:[#allocation2 + $0xd8] sm:$0x3] %v495_v29  ;;  %v5963_v31 = vpack.c.bf16 %v1264_v40, %v1249_v52  ;;  %v5966_v1 = vpack.c.bf16 %v1263_v41, %v1248_v50 }
 0x1a5   :  { %v8336_v45 = vpop.permute.xlu0 %480  ;;  %5965 = vmatprep.subr.msk.bf16.mxu0 %vm7831_vm11, %v5963_v31  ;;  %v570_v27 = vpop.permute.xlu1 %569 }
 0x1a6   :  { %v496_v60 = vsel %vm482_vm3, %v479_v7, %v8336_v45  ;;  %v588_v21 = vsel %vm575_vm4, %v8274_v54, %v570_v27  ;;  %5968 = vmatpush1.bf16.msk.msra.mxu0 %vm7831_vm11, %v5966_v1  ;;  %526 = vst.msk [vmem:[#allocation2 + $0xe8] sm:$0x3] %vm174_vm14, %v8336_v45 }
 0x1a7   :  { %525 = vst [vmem:[#allocation2 + $0xe0] sm:$0x3] %v496_v60  ;;  %618 = vst [vmem:[#allocation2 + $0xd8] sm:$0xc] %v588_v21 }
 0x1a9   :  { %v8348_v16 = vpop.permute.xlu0 %571  ;;  %v649_v15 = vpop.permute.xlu1 %648  ;;  %5655 = vmatmul.mubr.msk.f32.vlgmr.msra.gmra.mrb[4].mxu0 %vm1276_vm12, %v7870_v0 }
 0x1aa   :  { %v589_v36 = vsel %vm575_vm4, %v570_v27, %v8348_v16  ;;  %v667_v12 = vsel %vm654_vm5, %v8280_v48, %v649_v15  ;;  %1816 = vmatprep.mubr.f32.mxu0 %v12225_v46  ;;  %v1223_v37 = vld [vmem:[#allocation2 + $0x68] sm:$0xff] }
 0x1ab   :  { %619 = vst [vmem:[#allocation2 + $0xe0] sm:$0xc] %v589_v36  ;;  %697 = vst [vmem:[#allocation2 + $0xd8] sm:$0x30] %v667_v12 }
 0x1ad   :  { %v8357_v54 = vpop.permute.xlu0 %650  ;;  %v728_v47 = vpop.permute.xlu1 %727 }
 0x1ae   :  { %v668_v42 = vsel %vm654_vm5, %v649_v15, %v8357_v54  ;;  %v746_v63 = vsel %vm733_vm6, %v8286_v34, %v728_v47 }
 0x1af   :  { %698 = vst [vmem:[#allocation2 + $0xe0] sm:$0x30] %v668_v42  ;;  %776 = vst [vmem:[#allocation2 + $0xd8] sm:$0xc0] %v746_v63 }
 0x1b1   :  { %v8363_v0 = vpop.permute.xlu0 %729  ;;  %v803_v53 = vpop.permute.xlu1 %802 }
 0x1b2   :  { %v747_v48 = vsel %vm733_vm6, %v728_v47, %v8363_v0  ;;  %v823_v43 = vsel %vm812_vm7, %v8292_v59, %v803_v53  ;;  %v7177_v47 = vld [vmem:[%s12248_s25] sm:$0x3f]  ;;  %s7219_s25 = smov 36  }
 0x1b3   :  { %777 = vst [vmem:[#allocation2 + $0xe0] sm:$0xc0] %v747_v48  ;;  %853 = vst [vmem:[#allocation2 + $0x140] sm:$0x3] %v823_v43 }
 0x1b5   :  { %v805_v2 = vpop.permute.xlu0 %804  ;;  %v881_v24 = vpop.permute.xlu1 %880 }
 0x1b6   :  { %v824_v17 = vsel %vm812_vm7, %v803_v53, %v805_v2  ;;  %v901_v34 = vsel %vm890_vm8, %v8298_v61, %v881_v24  ;;  %v1237_v23 = vld [vmem:[#allocation2 + $0xd8] sm:$0xff]  ;;  %v1222_v61 = vld [vmem:[#allocation2 + $0x60] sm:$0xff] }
 0x1b7   :  { %854 = vst [vmem:[#allocation2 + $0x148] sm:$0x3] %v824_v17  ;;  %931 = vst [vmem:[#allocation2 + $0x140] sm:$0xc] %v901_v34  ;;  %v5981_v33 = vpack.c.bf16 %v1237_v23, %v1222_v61 }
 0x1b9   :  { %v883_v10 = vpop.permute.xlu0 %882  ;;  %v970_v58 = vpop.permute.xlu1 %969 }
 0x1ba   :  { %v902_v39 = vsel %vm890_vm8, %v881_v24, %v883_v10  ;;  %v985_v20 = vsel %vm12218_vm1, %v8232_v62, %v970_v58  ;;  %v986_v59 = vsel %vm12218_vm1, %v970_v58, %v8322_v3  ;;  %v1238_v57 = vld [vmem:[#allocation2 + $0xe0] sm:$0xff] }
 0x1bb   :  { %932 = vst [vmem:[#allocation2 + $0x148] sm:$0xc] %v902_v39  ;;  %1014 = vst [vmem:[#allocation2 + $0x140] sm:$0xc0] %v985_v20  ;;  %v5979_v26 = vpack.c.bf16 %v1238_v57, %v1223_v37 }
 0x1bc   :  { %1015 = vst [vmem:[#allocation2 + $0x148] sm:$0xc0] %v986_v59 }
 0x1bd   :  { %v1033_v49 = vpop.permute.xlu0 %1032  ;;  %5980 = vmatprep.subr.bf16.mxu0 %v5979_v26  ;;  %v1035_v5 = vpop.permute.xlu1 %1034 }
 0x1be   :  { %v1050_v44 = vsel %vm326_vm0, %v8306_v32, %v1033_v49  ;;  %v1051_v51 = vsel %vm326_vm0, %v1033_v49, %v1035_v5  ;;  %5982 = vmatpush1.bf16.msra.mxu0 %v5981_v33  ;;  %v1224_v49 = vld [vmem:[#allocation2 + $0x70] sm:$0xff] }
 0x1bf   :  { %1079 = vst [vmem:[#allocation2 + $0x1b8] sm:$0x3] %v1050_v44  ;;  %1080 = vst [vmem:[#allocation2 + $0x1c0] sm:$0x3] %v1051_v51 }
 0x1c1   :  { %v1098_v62 = vpop.permute.xlu0 %1097  ;;  %v1100_v38 = vpop.permute.xlu1 %1099 }
 0x1c2   :  { %v1115_v4 = vsel %vm406_vm2, %v8308_v13, %v1098_v62  ;;  %v1116_v11 = vsel %vm406_vm2, %v1098_v62, %v1100_v38  ;;  %v1250_v50 = vld [vmem:[#allocation2 + $0x140] sm:$0xff] }
 0x1c3   :  { %1144 = vst [vmem:[#allocation2 + $0x1b8] sm:$0xc] %v1115_v4  ;;  %1145 = vst [vmem:[#allocation2 + $0x1c0] sm:$0xc] %v1116_v11  ;;  %v1251_v52 = vld [vmem:[#allocation2 + $0x148] sm:$0xff] }
 0x1c5   :  { %v1160_v56 = vpop.permute.xlu0 %1159  ;;  %v807_v55 = vpop.permute.xlu1 %806 }
 0x1c6   :  { %v1175_v18 = vsel %vm482_vm3, %v8265_v9, %v1160_v56  ;;  %v1176_v32 = vsel %vm482_vm3, %v1160_v56, %v8336_v45  ;;  %v825_v35 = vsel %vm812_vm7, %v805_v2, %v807_v55 }
 0x1c7   :  { %1204 = vst [vmem:[#allocation2 + $0x1b8] sm:$0x30] %v1175_v18  ;;  %1205 = vst [vmem:[#allocation2 + $0x1c0] sm:$0x30] %v1176_v32 }
 0x1c8   :  { %855 = vst [vmem:[#allocation2 + $0x150] sm:$0x3] %v825_v35 }
 0x1c9   :  { %v8388_v22 = vpop.permute.xlu0 %808  ;;  %v885_v13 = vpop.permute.xlu1 %884 }
 0x1ca   :  { %v826_v19 = vsel %vm812_vm7, %v807_v55, %v8388_v22  ;;  %v903_v25 = vsel %vm890_vm8, %v883_v10, %v885_v13 }
 0x1cb   :  { %856 = vst [vmem:[#allocation2 + $0x158] sm:$0x3] %v826_v19  ;;  %933 = vst [vmem:[#allocation2 + $0x150] sm:$0xc] %v903_v25  ;;  %v8393_v14 = vpop.f32.mrb[0].mxu0  ;;  %v1893_v19 = vld [vmem:[%s12250_s30] sm:$0xff] }
 0x1cc   :  { %v8395_v9 = vpop.f32.mrb[1].mxu0  ;;  %v8453_v25 = vsub.s32 1, %v7351_v6 }
 0x1cd   :  { %v887_v30 = vpop.permute.xlu0 %886  ;;  %v972_v7 = vpop.permute.xlu1 %971 }
 0x1ce   :  { %v904_v28 = vsel %vm890_vm8, %v885_v13, %v887_v30  ;;  %v987_v29 = vsel %vm12218_vm1, %v8322_v3, %v972_v7  ;;  %v1266_v40 = vld [vmem:[#allocation2 + $0x1c0] sm:$0x3f]  ;;  %v1265_v41 = vld [vmem:[#allocation2 + $0x1b8] sm:$0x3f]  ;;  %v12227_v3 = vmov 0.0|0.0   ;;  %v8447_v13 = vsub.s32 0, %v7351_v6 }
 0x1cf   :  { %934 = vst [vmem:[#allocation2 + $0x158] sm:$0xc] %v904_v28  ;;  %1016 = vst [vmem:[#allocation2 + $0x150] sm:$0xc0] %v987_v29  ;;  %v5973_v31 = vpack.c.bf16 %v1266_v40, %v1251_v52  ;;  %v5976_v1 = vpack.c.bf16 %v1265_v41, %v1250_v50  ;;  %v8469_v29 = vrot.slane %v1893_v19, %v8453_v25  ;;  %v8472_v40 = vsub.s32 2, %v7351_v6 }
 0x1d0   :  { %v1911_v50 = vsub.s32 3, %v7351_v6 }
 0x1d1   :  { %v974_v27 = vpop.permute.xlu0 %973  ;;  %v1037_v60 = vpop.permute.xlu1 %1036  ;;  %5975 = vmatprep.subr.msk.bf16.mxu1 %vm7831_vm11, %v5973_v31 }
 0x1d2   :  { %v988_v21 = vsel %vm12218_vm1, %v972_v7, %v974_v27  ;;  %1018 = vst.msk [vmem:[#allocation2 + $0x160] sm:$0xc0] %vm450_vm10, %v974_v27  ;;  %v1052_v15 = vsel %vm326_vm0, %v1035_v5, %v1037_v60  ;;  %5978 = vmatpush1.bf16.msk.msra.mxu1 %vm7831_vm11, %v5976_v1  ;;  %vm7216_vm1 = vmmov 0   ;;  %v8458_v7 = vrot.slane %v1893_v19, %v8447_v13 }
 0x1d3   :  { %1017 = vst [vmem:[#allocation2 + $0x158] sm:$0xc0] %v988_v21  ;;  %1081 = vst [vmem:[#allocation2 + $0x1c8] sm:$0x3] %v1052_v15  ;;  %5989 = vmatprep.subr.bf16.mxu1 %v12227_v3  ;;  %v8485_v1 = vrot.slane %v1893_v19, %v1911_v50  ;;  %v1915_v27 = vsub.s32 4, %v7351_v6 }
 0x1d5   :  { %v1039_v36 = vpop.permute.xlu0 %1038  ;;  %v1102_v12 = vpop.permute.xlu1 %1101  ;;  %5658 = vmatmul.mubr.msk.f32.vlgmr.msra.gmra.mrb[4].mxu1 %vm1276_vm12, %v7177_v47 }
 0x1d6   :  { %v1053_v42 = vsel %vm326_vm0, %v1037_v60, %v1039_v36  ;;  %1083 = vst.msk [vmem:[#allocation2 + $0x1d8] sm:$0x3] %vm174_vm14, %v1039_v36  ;;  %v1117_v63 = vsel %vm406_vm2, %v1100_v38, %v1102_v12  ;;  %5797 = vmatprep.mubr.msk.f32.mxu1 %vm7216_vm1, %v12225_v46 }
 0x1d7   :  { %1082 = vst [vmem:[#allocation2 + $0x1d0] sm:$0x3] %v1053_v42  ;;  %1146 = vst [vmem:[#allocation2 + $0x1c8] sm:$0xc] %v1117_v63 }
 0x1d9   :  { %v1104_v53 = vpop.permute.xlu0 %1103  ;;  %v1162_v48 = vpop.permute.xlu1 %1161 }
 0x1da   :  { %v1118_v43 = vsel %vm406_vm2, %v1102_v12, %v1104_v53  ;;  %1148 = vst.msk [vmem:[#allocation2 + $0x1d8] sm:$0xc] %vm286_vm15, %v1104_v53  ;;  %v1177_v2 = vsel %vm482_vm3, %v8336_v45, %v1162_v48  ;;  %v1253_v26 = vld [vmem:[#allocation2 + $0x158] sm:$0xff] }
 0x1db   :  { %1147 = vst [vmem:[#allocation2 + $0x1d0] sm:$0xc] %v1118_v43  ;;  %1206 = vst [vmem:[#allocation2 + $0x1c8] sm:$0x30] %v1177_v2  ;;  %v1923_v2 = vsub.s32 6, %v7351_v6 }
 0x1dd   :  { %v1164_v24 = vpop.permute.xlu0 %1163  ;;  %v574_v17 = vpop.permute.xlu1 %573 }
 0x1de   :  { %v1178_v34 = vsel %vm482_vm3, %v1162_v48, %v1164_v24  ;;  %1208 = vst.msk [vmem:[#allocation2 + $0x1d8] sm:$0x30] %vm370_vm13, %v1164_v24  ;;  %v590_v10 = vsel %vm575_vm4, %v8348_v16, %v574_v17  ;;  %v1919_v48 = vsub.s32 5, %v7351_v6 }
 0x1df   :  { %1207 = vst [vmem:[#allocation2 + $0x1d0] sm:$0x30] %v1178_v34  ;;  %620 = vst.msk [vmem:[#allocation2 + $0xe8] sm:$0xc] %vm286_vm15, %v590_v10 }
 0x1e0   :  { %v8511_v10 = vrot.slane %v1893_v19, %v1919_v48 }
 0x1e1   :  { %v653_v58 = vpop.permute.xlu0 %652  ;;  %v732_v23 = vpop.permute.xlu1 %731 }
 0x1e2   :  { %v669_v39 = vsel %vm654_vm5, %v8357_v54, %v653_v58  ;;  %v748_v45 = vsel %vm733_vm6, %v8363_v0, %v732_v23  ;;  %v1267_v37 = vld [vmem:[#allocation2 + $0x1c8] sm:$0x3f]  ;;  %v1252_v0 = vld [vmem:[#allocation2 + $0x150] sm:$0xff]  ;;  %v8513_v23 = vrot.slane %v1893_v19, %v1923_v2  ;;  %vm2014_vm6 = vcmask 1012736  }
 0x1e3   :  { %699 = vst.msk [vmem:[#allocation2 + $0xe8] sm:$0x30] %vm370_vm13, %v669_v39  ;;  %v5986_v33 = vpack.c.bf16 %v1267_v37, %v1252_v0 }
 0x1e4   :  { %778 = vst.msk [vmem:[#allocation2 + $0xe8] sm:$0xc0] %vm450_vm10, %v748_v45 }
 0x1e5   :  { %v811_v20 = vpop.permute.xlu0 %810  ;;  %v889_v59 = vpop.permute.xlu1 %888  ;;  %v1269_v62 = vld [vmem:[#allocation2 + $0x1d8] sm:$0x3f] }
 0x1e6   :  { %v827_v16 = vsel %vm812_vm7, %v8388_v22, %v811_v20  ;;  %v905_v57 = vsel %vm890_vm8, %v887_v30, %v889_v59  ;;  %v1268_v61 = vld [vmem:[#allocation2 + $0x1d0] sm:$0x3f]  ;;  %v1927_v59 = vsub.s32 7, %v7351_v6  ;;  %vm12253_vm7 = vcmask 1039360  }
 0x1e7   :  { %857 = vst.msk [vmem:[#allocation2 + $0x160] sm:$0x3] %vm174_vm14, %v827_v16  ;;  %v5983_v54 = vpack.c.bf16 %v1268_v61, %v1253_v26  ;;  %vm12254_vm8 = vmmov %vm12253_vm7 }
 0x1e8   :  { %935 = vst.msk [vmem:[#allocation2 + $0x160] sm:$0xc] %vm286_vm15, %v905_v57  ;;  %v8528_v0 = vrot.slane %v1893_v19, %v1927_v59  ;;  %vm12256_vm10 = vmmov %vm12253_vm7 }
 0x1e9   :  { %5985 = vmatprep.subr.msk.bf16.mxu0 %vm7831_vm11, %v5983_v54  ;;  %vm12258_vm13 = vmmov %vm12253_vm7 }
 0x1ea   :  { %5988 = vmatpush1.bf16.msk.msra.mxu0 %vm7831_vm11, %v5986_v33  ;;  %v1894_v33 = vld [vmem:[%s12250_s30 + $0x8] sm:$0x7f]  ;;  %vm12259_vm14 = vmmov %vm12253_vm7  ;;  %s7218_s30 = smov 70  }
 0x1eb   :  { %v1239_v5 = vld [vmem:[#allocation2 + $0xe8] sm:$0xff]  ;;  %vm12260_vm15 = vmmov %vm12253_vm7 }
 0x1ec   :  { %v5990_v44 = vpack.c.bf16 %v1239_v5, %v1224_v49 }
 0x1ed   :  { %5661 = vmatmul.mubr.msk.f32.vlgmr.msra.gmra.mrb[6].mxu0 %vm1276_vm12, %v7177_v47 }
 0x1ee   :  { %5991 = vmatpush3.bf16.msra.mxu1 %v5990_v44 }
 0x1ef   :  { %5992 = vmatprep.subr.bf16.mxu1 %v12227_v3  ;;  %v1254_v51 = vld [vmem:[#allocation2 + $0x160] sm:$0xff] }
 0x1f0   :  { %v5993_v38 = vpack.c.bf16 %v1269_v62, %v1254_v51  ;;  %v8540_v51 = vrot.slane %v1894_v33, %v8447_v13  ;;  %v2573_v3 = vld [vmem:[%s12197_s6 + $0x600] sm:$0xff] }
 0x1f2   :  { %5995 = vmatpush3.bf16.msk.msra.mxu1 %vm7831_vm11, %v5993_v38 }
 0x1f5   :  { %5798 = vmatmul.mubr.msk.f32.vlgmr.msra.gmra.mrb[6].mxu1 %vm1276_vm12, %v7177_v47  ;;  %v8495_v47 = vrot.slane %v1893_v19, %v1915_v27  ;;  %vm12257_vm12 = vmmov %vm12253_vm7 }
 0x1f6   :  { %v8455_v30 = vpop.permute.xlu0 %1273 }
 0x1f7   :  { %v8462_v52 = vadd.f32 %v8393_v14, %v8455_v30  ;;  %v8466_v28 = vadd.f32 %v8395_v9, %v8455_v30  ;;  %v8483_v9 = vrot.slane %v1893_v19, %v8472_v40  ;;  %v8558_v19 = vrot.slane %v1894_v33, %v8472_v40 }
 0x1f8   :  { %v1463_v4 = vpop.f32.mrb[0].mxu1 }
 0x1f9   :  { %v1465_v11 = vpop.f32.mrb[1].mxu1  ;;  %v1972_v41 = vmul.f32 %v8458_v7, %v8462_v52  ;;  %v1973_v31 = vmul.f32 %v8469_v29, %v8466_v28  ;;  %v8480_v14 = vadd.f32 %v1463_v4, %v8455_v30 }
 0x1fa   :  { %v8493_v36 = vadd.f32 %v1465_v11, %v8455_v30 }
 0x1fb   :  { %v1987_v60 = vsel %vm1280_vm9, %v1972_v41, 0.0  ;;  %v1988_v21 = vsel %vm1280_vm9, %v1973_v31, 0.0  ;;  %v1974_v15 = vmul.f32 %v8483_v9, %v8480_v14 }
 0x1fc   :  { %v1989_v12 = vadd.f32 %v1988_v21, %v1987_v60  ;;  %v1975_v63 = vmul.f32 %v8485_v1, %v8493_v36  ;;  %v8566_v21 = vrot.slane %v1894_v33, %v1911_v50 }
 0x1fd   :  { %v1990_v42 = vsel %vm1280_vm9, %v1974_v15, 0.0 }
 0x1fe   :  { %v1991_v43 = vadd.f32 %v1990_v42, %v1989_v12  ;;  %v1992_v24 = vsel %vm1280_vm9, %v1975_v63, 0.0  ;;  %v8571_v63 = vrot.slane %v1894_v33, %v1915_v27 }
 0x200   :  { %v1993_v58 = vadd.f32 %v1992_v24, %v1991_v43  ;;  %v8573_v24 = vrot.slane %v1894_v33, %v1919_v48 }
 0x224   :  { %v1534_v56 = vpop.f32.mrb[2].mxu0 }
 0x225   :  { %v1536_v55 = vpop.f32.mrb[3].mxu0  ;;  %v8501_v53 = vadd.f32 %v1534_v56, %v8455_v30  ;;  %v8549_v56 = vrot.slane %v1894_v33, %v8453_v25 }
 0x226   :  { %v8509_v34 = vadd.f32 %v1536_v55, %v8455_v30 }
 0x227   :  { %v1976_v17 = vmul.f32 %v8495_v47, %v8501_v53 }
 0x228   :  { %v1977_v45 = vmul.f32 %v8511_v10, %v8509_v34 }
 0x229   :  { %v1994_v39 = vsel %vm1280_vm9, %v1976_v17, 0.0 }
 0x22a   :  { %v1995_v16 = vadd.f32 %v1994_v39, %v1993_v58  ;;  %v1996_v26 = vsel %vm1280_vm9, %v1977_v45, 0.0 }
 0x22c   :  { %v1997_v49 = vadd.f32 %v1996_v26, %v1995_v16  ;;  %v8587_v16 = vrot.slane %v1894_v33, %v1923_v2 }
 0x250   :  { %v1605_v18 = vpop.f32.mrb[2].mxu1 }
 0x251   :  { %v1607_v32 = vpop.f32.mrb[3].mxu1  ;;  %v8519_v20 = vadd.f32 %v1605_v18, %v8455_v30 }
 0x252   :  { %v8526_v54 = vadd.f32 %v1607_v32, %v8455_v30 }
 0x253   :  { %v1978_v61 = vmul.f32 %v8513_v23, %v8519_v20 }
 0x254   :  { %v1979_v5 = vmul.f32 %v8528_v0, %v8526_v54 }
 0x255   :  { %v1998_v6 = vsel %vm1280_vm9, %v1978_v61, 0.0 }
 0x256   :  { %v1999_v62 = vadd.f32 %v1998_v6, %v1997_v49  ;;  %v2000_v38 = vsel %vm1280_vm9, %v1979_v5, 0.0 }
 0x258   :  { %v2001_v55 = vadd.f32 %v2000_v38, %v1999_v62 }
 0x27c   :  { %v1676_v35 = vpop.f32.mrb[4].mxu0 }
 0x27d   :  { %v1678_v22 = vpop.f32.mrb[5].mxu0  ;;  %v8537_v44 = vadd.f32 %v1676_v35, %v8455_v30 }
 0x27e   :  { %v8546_v11 = vadd.f32 %v1678_v22, %v8455_v30 }
 0x27f   :  { %v1980_v4 = vmul.f32 %v8540_v51, %v8537_v44 }
 0x280   :  { %v1981_v32 = vmul.f32 %v8549_v56, %v8546_v11 }
 0x281   :  { %v2002_v18 = vsel %vm1280_vm9, %v1980_v4, 0.0 }
 0x282   :  { %v2003_v41 = vadd.f32 %v2002_v18, %v2001_v55  ;;  %v2004_v31 = vsel %vm1280_vm9, %v1981_v32, 0.0 }
 0x284   :  { %v2005_v15 = vadd.f32 %v2004_v31, %v2003_v41 }
 0x2a8   :  { %v1747_v37 = vpop.f32.mrb[4].mxu1 }
 0x2a9   :  { %v1749_v57 = vpop.f32.mrb[5].mxu1  ;;  %v8555_v35 = vadd.f32 %v1747_v37, %v8455_v30 }
 0x2aa   :  { %v8564_v60 = vadd.f32 %v1749_v57, %v8455_v30 }
 0x2ab   :  { %v1982_v22 = vmul.f32 %v8558_v19, %v8555_v35 }
 0x2ac   :  { %v1983_v42 = vmul.f32 %v8566_v21, %v8564_v60 }
 0x2ad   :  { %v2006_v12 = vsel %vm1280_vm9, %v1982_v22, 0.0 }
 0x2ae   :  { %v2007_v17 = vadd.f32 %v2006_v12, %v2005_v15  ;;  %v2008_v45 = vsel %vm1280_vm9, %v1983_v42, 0.0 }
 0x2b0   :  { %v2009_v37 = vadd.f32 %v2008_v45, %v2007_v17 }
 0x2c0   :  { %v1818_v43 = vpop.f32.mrb[6].mxu0 }
 0x2c1   :  { %v8576_v58 = vadd.f32 %v1818_v43, %v8455_v30  ;;  %v1820_v39 = vpop.f32.mrb[7].mxu0 }
 0x2c2   :  { %v8580_v50 = vadd.f32 %v1820_v39, %v8455_v30 }
 0x2c3   :  { %v1984_v59 = vmul.f32 %v8571_v63, %v8576_v58 }
 0x2c4   :  { %v1985_v27 = vmul.f32 %v8573_v24, %v8580_v50 }
 0x2c5   :  { %v2010_v48 = vsel %vm1280_vm9, %v1984_v59, 0.0 }
 0x2c6   :  { %v2011_v26 = vadd.f32 %v2010_v48, %v2009_v37  ;;  %v2012_v6 = vsel %vm1280_vm9, %v1985_v27, 0.0 }
 0x2c8   :  { %v1889_v57 = vpop.f32.mrb[6].mxu1  ;;  %v2013_v62 = vadd.f32 %v2012_v6, %v2011_v26 }
 0x2c9   :  { %v8590_v61 = vadd.f32 %v1889_v57, %v8455_v30  ;;  %v5799_v49 = vpop.f32.mrb[7].mxu1 }
 0x2cb   :  { %v1986_v5 = vmul.f32 %v8587_v16, %v8590_v61 }
 0x2cd   :  { %v2015_v38 = vsel %vm2014_vm6, %v1986_v5, 0.0 }
 0x2ce   :  { %v2016_v4 = vadd.f32 %v2015_v38, %v2013_v62 }
 0x2d0   :  { %2017 = vadd.xlane.f32.xlu1 %v2016_v4 }
 0x35d   :  { %v2018_v55 = vpop.xlane.xlu1 %2017 }
 0x35e   :  { %v8596_v2 = vmul.f32 0.00054347824, %v2018_v55 }
 0x360   :  { %v2020_v33 = vsub.f32 %v8462_v52, %v8596_v2  ;;  %v2021_v30 = vsub.f32 %v8466_v28, %v8596_v2  ;;  %v2022_v18 = vsub.f32 %v8480_v14, %v8596_v2  ;;  %v2023_v32 = vsub.f32 %v8493_v36, %v8596_v2 }
 0x361   :  { %v2024_v22 = vsub.f32 %v8501_v53, %v8596_v2  ;;  %v2025_v12 = vsub.f32 %v8509_v34, %v8596_v2  ;;  %v2026_v39 = vsub.f32 %v8519_v20, %v8596_v2  ;;  %v2029_v6 = vsub.f32 %v8546_v11, %v8596_v2 }
 0x362   :  { %v2035_v41 = vmul.f32 %v2020_v33, %v8458_v7  ;;  %v2036_v31 = vmul.f32 %v2021_v30, %v8469_v29  ;;  %v2037_v15 = vmul.f32 %v2022_v18, %v8483_v9  ;;  %v2038_v42 = vmul.f32 %v2023_v32, %v8485_v1 }
 0x363   :  { %v2039_v45 = vmul.f32 %v2024_v22, %v8495_v47  ;;  %v2027_v29 = vsub.f32 %v8526_v54, %v8596_v2  ;;  %v2040_v59 = vmul.f32 %v2025_v12, %v8511_v10  ;;  %v2028_v1 = vsub.f32 %v8537_v44, %v8596_v2 }
 0x364   :  { %v2050_v43 = vmul.f32 %v2035_v41, %v2035_v41  ;;  %v2051_v17 = vmul.f32 %v2036_v31, %v2036_v31  ;;  %v2052_v7 = vmul.f32 %v2037_v15, %v2037_v15  ;;  %v2053_v27 = vmul.f32 %v2038_v42, %v2038_v42 }
 0x365   :  { %v2041_v57 = vmul.f32 %v2026_v39, %v8513_v23  ;;  %v2054_v26 = vmul.f32 %v2039_v45, %v2039_v45  ;;  %v2042_v10 = vmul.f32 %v2027_v29, %v8528_v0  ;;  %v2055_v5 = vmul.f32 %v2040_v59, %v2040_v59 }
 0x366   :  { %v2065_v9 = vsel %vm1280_vm9, %v2050_v43, 0.0  ;;  %v2066_v37 = vsel %vm1280_vm9, %v2051_v17, 0.0  ;;  %v2068_v47 = vsel %vm1280_vm9, %v2052_v7, 0.0  ;;  %v2070_v62 = vsel %vm1280_vm9, %v2053_v27, 0.0 }
 0x367   :  { %v2067_v48 = vadd.f32 %v2066_v37, %v2065_v9  ;;  %v2030_v4 = vsub.f32 %v8555_v35, %v8596_v2  ;;  %v2043_v55 = vmul.f32 %v2028_v1, %v8540_v51  ;;  %v2056_v33 = vmul.f32 %v2041_v57, %v2041_v57 }
 0x368   :  { %v2072_v23 = vsel %vm1280_vm9, %v2054_v26, 0.0  ;;  %v2031_v18 = vsub.f32 %v8564_v60, %v8596_v2  ;;  %v2044_v32 = vmul.f32 %v2029_v6, %v8549_v56  ;;  %v2057_v41 = vmul.f32 %v2042_v10, %v2042_v10 }
 0x369   :  { %v2069_v49 = vadd.f32 %v2068_v47, %v2067_v48  ;;  %v2074_v0 = vsel %vm1280_vm9, %v2055_v5, 0.0  ;;  %v2032_v22 = vsub.f32 %v8576_v58, %v8596_v2  ;;  %v2045_v15 = vmul.f32 %v2030_v4, %v8558_v19 }
 0x36a   :  { %v2058_v12 = vmul.f32 %v2043_v55, %v2043_v55  ;;  %v2076_v51 = vsel %vm1280_vm9, %v2056_v33, 0.0  ;;  %v2033_v43 = vsub.f32 %v8580_v50, %v8596_v2  ;;  %v2046_v17 = vmul.f32 %v2031_v18, %v8566_v21 }
 0x36b   :  { %v2071_v38 = vadd.f32 %v2070_v62, %v2069_v49  ;;  %v2059_v39 = vmul.f32 %v2044_v32, %v2044_v32  ;;  %v2078_v56 = vsel %vm1280_vm9, %v2057_v41, 0.0  ;;  %v2034_v7 = vsub.f32 %v8590_v61, %v8596_v2  ;;  %v2101_v41 = vld [vmem:[%s12252_s26] sm:$0x3f] }
 0x36c   :  { %v2047_v29 = vmul.f32 %v2032_v22, %v8571_v63  ;;  %v2060_v59 = vmul.f32 %v2045_v15, %v2045_v15  ;;  %v2080_v19 = vsel %vm1280_vm9, %v2058_v12, 0.0  ;;  %v2048_v9 = vmul.f32 %v2033_v43, %v8573_v24  ;;  %v2382_v22 = vld [vmem:[%s12197_s6 + $0x8] sm:$0xff]  ;;  %v2384_v12 = vld [vmem:[%s12197_s6 + $0x18] sm:$0xff]  ;;  %v2385_v43 = vld [vmem:[%s12197_s6 + $0x20] sm:$0xff] }
 0x36d   :  { %v2073_v30 = vadd.f32 %v2072_v23, %v2071_v38  ;;  %v2061_v37 = vmul.f32 %v2046_v17, %v2046_v17  ;;  %v2082_v48 = vsel %vm1280_vm9, %v2059_v39, 0.0  ;;  %v2049_v21 = vmul.f32 %v2034_v7, %v8587_v16  ;;  %v2386_v15 = vld [vmem:[%s12197_s6 + $0x28] sm:$0xff] }
 0x36e   :  { %v2062_v57 = vmul.f32 %v2047_v29, %v2047_v29  ;;  %v2084_v26 = vsel %vm1280_vm9, %v2060_v59, 0.0  ;;  %v2063_v49 = vmul.f32 %v2048_v9, %v2048_v9  ;;  %v2390_v7 = vld [vmem:[%s12197_s6 + $0x48] sm:$0xff] }
 0x36f   :  { %v2075_v31 = vadd.f32 %v2074_v0, %v2073_v30  ;;  %v2086_v6 = vsel %vm1280_vm9, %v2061_v37, 0.0  ;;  %v2064_v10 = vmul.f32 %v2049_v21, %v2049_v21  ;;  %v2097_v30 = vld [vmem:[%s12251_s24] sm:$0x3f]  ;;  %v2394_v59 = vld [vmem:[%s12197_s6 + $0x68] sm:$0xff]  ;;  %v2391_v21 = vld [vmem:[%s12197_s6 + $0x50] sm:$0xff]  ;;  %s7224_s24 = smov 72  }
 0x370   :  { %v2088_v5 = vsel %vm1280_vm9, %v2062_v57, 0.0  ;;  %v2090_v24 = vsel %vm1280_vm9, %v2063_v49, 0.0  ;;  %v6000_v9 = vpack.c.bf16 %v2394_v59, %v2390_v7  ;;  %v2402_v49 = vld [vmem:[%s12197_s6 + $0xa8] sm:$0xff]  ;;  %v2417_v7 = vld [vmem:[%s12197_s6 + $0x120] sm:$0xff]  ;;  %vm12255_vm9 = vmmov %vm12253_vm7 }
 0x371   :  { %v2077_v42 = vadd.f32 %v2076_v51, %v2075_v31  ;;  %v2092_v4 = vsel %vm2014_vm6, %v2064_v10, 0.0  ;;  %v5996_v51 = vpack.c.bf16 %v2386_v15, %v2382_v22  ;;  %v2400_v10 = vld [vmem:[%s12197_s6 + $0x98] sm:$0xff]  ;;  %v2407_v15 = vld [vmem:[%s12197_s6 + $0xd0] sm:$0xff]  ;;  %vm12261_vm6 = vmmov %vm12253_vm7 }
 0x373   :  { %v2079_v45 = vadd.f32 %v2078_v56, %v2077_v42  ;;  %v2388_v42 = vld [vmem:[%s12197_s6 + $0x38] sm:$0xff]  ;;  %v2383_v56 = vld [vmem:[%s12197_s6 + $0x10] sm:$0xff]  ;;  %5997 = vmatprep.subr.bf16.mxu0 %v5996_v51  ;;  %v2414_v51 = vld [vmem:[%s12197_s6 + $0x108] sm:$0xff] }
 0x374   :  { %v6430_v17 = vpack.c.bf16 %v2388_v42, %v2384_v12  ;;  %v2411_v12 = vld [vmem:[%s12197_s6 + $0xf0] sm:$0xff]  ;;  %v2418_v42 = vld [vmem:[%s12197_s6 + $0x128] sm:$0xff] }
 0x375   :  { %v2081_v27 = vadd.f32 %v2080_v19, %v2079_v45  ;;  %v2387_v45 = vld [vmem:[%s12197_s6 + $0x30] sm:$0xff]  ;;  %v2392_v19 = vld [vmem:[%s12197_s6 + $0x58] sm:$0xff] }
 0x376   :  { %v6432_v29 = vpack.c.bf16 %v2387_v45, %v2383_v56  ;;  %6431 = vmatprep.subr.bf16.mxu1 %v6430_v17  ;;  %v6012_v56 = vpack.c.bf16 %v2418_v42, %v2414_v51  ;;  %v2413_v45 = vld [vmem:[%s12197_s6 + $0x100] sm:$0xff] }
 0x377   :  { %v2083_v1 = vadd.f32 %v2082_v48, %v2081_v27  ;;  %v2396_v27 = vld [vmem:[%s12197_s6 + $0x78] sm:$0xff]  ;;  %v2389_v48 = vld [vmem:[%s12197_s6 + $0x40] sm:$0xff] }
 0x378   :  { %v6434_v37 = vpack.c.bf16 %v2396_v27, %v2392_v19  ;;  %6433 = vmatpush1.bf16.msra.mxu1 %v6432_v29  ;;  %v2415_v29 = vld [vmem:[%s12197_s6 + $0x110] sm:$0xff]  ;;  %v2422_v27 = vld [vmem:[%s12197_s6 + $0x148] sm:$0xff]  ;;  %v2437_v51 = vld [vmem:[%s12197_s6 + $0x1c0] sm:$0xff] }
 0x379   :  { %v2085_v47 = vadd.f32 %v2084_v26, %v2083_v1  ;;  %v2393_v1 = vld [vmem:[%s12197_s6 + $0x60] sm:$0xff]  ;;  %v2395_v26 = vld [vmem:[%s12197_s6 + $0x70] sm:$0xff] }
 0x37a   :  { %v6002_v57 = vpack.c.bf16 %v2393_v1, %v2389_v48  ;;  %6435 = vmatprep.subr.bf16.mxu1 %v6434_v37  ;;  %v2419_v19 = vld [vmem:[%s12197_s6 + $0x130] sm:$0xff]  ;;  %v2424_v37 = vld [vmem:[%s12197_s6 + $0x158] sm:$0xff]  ;;  %v6014_v1 = vpack.c.bf16 %v2417_v7, %v2413_v45  ;;  %v2441_v42 = vld [vmem:[%s12197_s6 + $0x1e0] sm:$0xff] }
 0x37b   :  { %v2087_v63 = vadd.f32 %v2086_v6, %v2085_v47  ;;  %v2398_v47 = vld [vmem:[%s12197_s6 + $0x88] sm:$0xff]  ;;  %v6436_v6 = vpack.c.bf16 %v2395_v26, %v2391_v21  ;;  %v2428_v48 = vld [vmem:[%s12197_s6 + $0x178] sm:$0xff]  ;;  %v6448_v21 = vpack.c.bf16 %v2419_v19, %v2415_v29  ;;  %v2421_v26 = vld [vmem:[%s12197_s6 + $0x140] sm:$0xff]  ;;  %v6026_v29 = vpack.c.bf16 %v2441_v42, %v2437_v51 }
 0x37c   :  { %v2448_v45 = vld [vmem:[%s12197_s6 + $0x218] sm:$0xff] }
 0x37d   :  { %v2089_v62 = vadd.f32 %v2088_v5, %v2087_v63  ;;  %v6004_v63 = vpack.c.bf16 %v2402_v49, %v2398_v47  ;;  %v2404_v5 = vld [vmem:[%s12197_s6 + $0xb8] sm:$0xff]  ;;  %6437 = vmatpush1.bf16.msra.mxu1 %v6436_v6  ;;  %v2425_v47 = vld [vmem:[%s12197_s6 + $0x160] sm:$0xff]  ;;  %v2423_v49 = vld [vmem:[%s12197_s6 + $0x150] sm:$0xff]  ;;  %v6450_v6 = vpack.c.bf16 %v2428_v48, %v2424_v37 }
 0x37e   :  { %v2452_v7 = vld [vmem:[%s12197_s6 + $0x238] sm:$0xff]  ;;  %v2447_v37 = vld [vmem:[%s12197_s6 + $0x210] sm:$0xff] }
 0x37f   :  { %v2091_v38 = vadd.f32 %v2090_v24, %v2089_v62  ;;  %v2397_v62 = vld [vmem:[%s12197_s6 + $0x80] sm:$0xff]  ;;  %v6438_v24 = vpack.c.bf16 %v2404_v5, %v2400_v10  ;;  %v2430_v10 = vld [vmem:[%s12197_s6 + $0x188] sm:$0xff]  ;;  %v6462_v48 = vpack.c.bf16 %v2452_v7, %v2448_v45  ;;  %v2472_v51 = vld [vmem:[%s12197_s6 + $0x2d8] sm:$0xff] }
 0x380   :  { %v2434_v5 = vld [vmem:[%s12197_s6 + $0x1a8] sm:$0xff]  ;;  %v2476_v42 = vld [vmem:[%s12197_s6 + $0x2f8] sm:$0xff]  ;;  %v2471_v45 = vld [vmem:[%s12197_s6 + $0x2d0] sm:$0xff] }
 0x381   :  { %v2093_v55 = vadd.f32 %v2092_v4, %v2091_v38  ;;  %v2401_v38 = vld [vmem:[%s12197_s6 + $0xa0] sm:$0xff]  ;;  %v2399_v4 = vld [vmem:[%s12197_s6 + $0x90] sm:$0xff]  ;;  %6439 = vmatprep.subr.bf16.mxu1 %v6438_v24  ;;  %v2436_v24 = vld [vmem:[%s12197_s6 + $0x1b8] sm:$0xff]  ;;  %v6474_v7 = vpack.c.bf16 %v2476_v42, %v2472_v51 }
 0x382   :  { %v2487_v42 = vld [vmem:[%s12197_s6 + $0x350] sm:$0xff] }
 0x383   :  { %2094 = vadd.xlane.f32.xlu0 %v2093_v55  ;;  %v2403_v55 = vld [vmem:[%s12197_s6 + $0xb0] sm:$0xff] }
 0x410   :  { %v2095_v16 = vpop.xlane.xlu0 %2094 }
 0x411   :  { %v2096_v33 = vmul.f32 0.00054347824, %v2095_v16  ;;  %v6006_v16 = vpack.c.bf16 %v2401_v38, %v2397_v62  ;;  %v2432_v62 = vld [vmem:[%s12197_s6 + $0x198] sm:$0xff]  ;;  %v6018_v38 = vpack.c.bf16 %v2425_v47, %v2421_v26 }
 0x412   :  { %v2456_v26 = vld [vmem:[%s12197_s6 + $0x258] sm:$0xff] }
 0x413   :  { %v2098_v23 = vadd.f32 1e-05, %v2096_v33  ;;  %v2406_v33 = vld [vmem:[%s12197_s6 + $0xc8] sm:$0xff]  ;;  %v2460_v47 = vld [vmem:[%s12197_s6 + $0x278] sm:$0xff] }
 0x415   :  { %7167 = vrsqrt.f32 %v2098_v23  ;;  %v2410_v23 = vld [vmem:[%s12197_s6 + $0xe8] sm:$0xff] }
 0x41f   :  { %v7168_v18 = vpop.eup %7167 }
 0x420   :  { %v2100_v32 = vmul.f32 %v7168_v18, %v2097_v30  ;;  %v2408_v30 = vld [vmem:[%s12197_s6 + $0xd8] sm:$0xff]  ;;  %v6440_v18 = vpack.c.bf16 %v2403_v55, %v2399_v4  ;;  %v6020_v55 = vpack.c.bf16 %v2434_v5, %v2430_v10  ;;  %v2453_v10 = vld [vmem:[%s12197_s6 + $0x240] sm:$0xff] }
 0x421   :  { %v2457_v5 = vld [vmem:[%s12197_s6 + $0x260] sm:$0xff] }
 0x422   :  { %2106 = vperm.xlu1 %7045, %v2100_v32   ;;  %v2102_v0 = vmul.f32 %v2100_v32, %v8596_v2  ;;  %v2381_v2 = vld [vmem:[%s12197_s6] sm:$0xff]  ;;  %v6008_v32 = vpack.c.bf16 %v2410_v23, %v2406_v33  ;;  %6441 = vmatpush1.bf16.msra.mxu1 %v6440_v18  ;;  %v2431_v23 = vld [vmem:[%s12197_s6 + $0x190] sm:$0xff] }
 0x423   :  { %v5998_v39 = vpack.c.bf16 %v2385_v43, %v2381_v2  ;;  %v2416_v2 = vld [vmem:[%s12197_s6 + $0x118] sm:$0xff]  ;;  %v2433_v33 = vld [vmem:[%s12197_s6 + $0x1a0] sm:$0xff]  ;;  %v2435_v18 = vld [vmem:[%s12197_s6 + $0x1b0] sm:$0xff] }
 0x424   :  { %v2103_v31 = vsub.f32 %v2101_v41, %v2102_v0  ;;  %v2412_v41 = vld [vmem:[%s12197_s6 + $0xf8] sm:$0xff]  ;;  %v2405_v0 = vld [vmem:[%s12197_s6 + $0xc0] sm:$0xff] }
 0x425   :  { %5999 = vmatpush1.bf16.msra.mxu0 %v5998_v39  ;;  %v6442_v22 = vpack.c.bf16 %v2412_v41, %v2408_v30  ;;  %v2420_v43 = vld [vmem:[%s12197_s6 + $0x138] sm:$0xff]  ;;  %v6444_v39 = vpack.c.bf16 %v2411_v12, %v2407_v15  ;;  %v6454_v30 = vpack.c.bf16 %v2436_v24, %v2432_v62  ;;  %v2442_v41 = vld [vmem:[%s12197_s6 + $0x1e8] sm:$0xff]  ;;  %v6456_v15 = vpack.c.bf16 %v2435_v18, %v2431_v23  ;;  %v2455_v62 = vld [vmem:[%s12197_s6 + $0x250] sm:$0xff] }
 0x426   :  { %2126 = vperm.xlu0 %7044, %v2103_v31   ;;  %6001 = vmatprep.subr.bf16.mxu0 %v6000_v9  ;;  %v2409_v31 = vld [vmem:[%s12197_s6 + $0xe0] sm:$0xff]  ;;  %v6446_v59 = vpack.c.bf16 %v2420_v43, %v2416_v2  ;;  %v2426_v9 = vld [vmem:[%s12197_s6 + $0x168] sm:$0xff]  ;;  %v2439_v2 = vld [vmem:[%s12197_s6 + $0x1d0] sm:$0xff]  ;;  %v6466_v24 = vpack.c.bf16 %v2460_v47, %v2456_v26  ;;  %v6034_v23 = vpack.c.bf16 %v2457_v5, %v2453_v10 }
 0x427   :  { %v6010_v17 = vpack.c.bf16 %v2409_v31, %v2405_v0  ;;  %6443 = vmatprep.subr.bf16.mxu1 %v6442_v22  ;;  %v2440_v0 = vld [vmem:[%s12197_s6 + $0x1d8] sm:$0xff]  ;;  %v2479_v47 = vld [vmem:[%s12197_s6 + $0x310] sm:$0xff]  ;;  %v2486_v5 = vld [vmem:[%s12197_s6 + $0x348] sm:$0xff] }
 0x428   :  { %6445 = vmatpush1.bf16.msra.mxu1 %v6444_v39  ;;  %v2444_v31 = vld [vmem:[%s12197_s6 + $0x1f8] sm:$0xff]  ;;  %v2446_v39 = vld [vmem:[%s12197_s6 + $0x208] sm:$0xff] }
 0x429   :  { %6003 = vmatpush1.bf16.msra.mxu0 %v6002_v57  ;;  %v6016_v57 = vpack.c.bf16 %v2426_v9, %v2422_v27  ;;  %6447 = vmatprep.subr.bf16.mxu1 %v6446_v59  ;;  %v6458_v43 = vpack.c.bf16 %v2444_v31, %v2440_v0  ;;  %v2445_v27 = vld [vmem:[%s12197_s6 + $0x200] sm:$0xff]  ;;  %v2463_v0 = vld [vmem:[%s12197_s6 + $0x290] sm:$0xff] }
 0x42a   :  { %6005 = vmatprep.subr.bf16.mxu0 %v6004_v63  ;;  %v2427_v63 = vld [vmem:[%s12197_s6 + $0x170] sm:$0xff]  ;;  %v2449_v9 = vld [vmem:[%s12197_s6 + $0x220] sm:$0xff] }
 0x42b   :  { %v6452_v4 = vpack.c.bf16 %v2427_v63, %v2423_v49  ;;  %v6030_v49 = vpack.c.bf16 %v2449_v9, %v2445_v27  ;;  %v2480_v27 = vld [vmem:[%s12197_s6 + $0x318] sm:$0xff] }
 0x42c   :  { %6449 = vmatpush1.bf16.msra.mxu1 %v6448_v21  ;;  %v2454_v21 = vld [vmem:[%s12197_s6 + $0x248] sm:$0xff]  ;;  %v2484_v9 = vld [vmem:[%s12197_s6 + $0x338] sm:$0xff] }
 0x42d   :  { %6007 = vmatpush1.bf16.msra.mxu0 %v6006_v16  ;;  %v2429_v16 = vld [vmem:[%s12197_s6 + $0x180] sm:$0xff]  ;;  %6451 = vmatprep.subr.bf16.mxu1 %v6450_v6  ;;  %v6478_v26 = vpack.c.bf16 %v2484_v9, %v2480_v27 }
 0x42e   :  { %6009 = vmatprep.subr.bf16.mxu0 %v6008_v32  ;;  %v2438_v32 = vld [vmem:[%s12197_s6 + $0x1c8] sm:$0xff]  ;;  %v6022_v22 = vpack.c.bf16 %v2433_v33, %v2429_v16  ;;  %v2464_v16 = vld [vmem:[%s12197_s6 + $0x298] sm:$0xff]  ;;  %v2493_v27 = vld [vmem:[%s12197_s6 + $0x380] sm:$0xff] }
 0x42f   :  { %v6024_v12 = vpack.c.bf16 %v2442_v41, %v2438_v32  ;;  %v2468_v33 = vld [vmem:[%s12197_s6 + $0x2b8] sm:$0xff]  ;;  %v2461_v32 = vld [vmem:[%s12197_s6 + $0x280] sm:$0xff] }
 0x430   :  { %6453 = vmatpush1.bf16.msra.mxu1 %v6452_v4  ;;  %v2462_v4 = vld [vmem:[%s12197_s6 + $0x288] sm:$0xff]  ;;  %v2465_v41 = vld [vmem:[%s12197_s6 + $0x2a0] sm:$0xff]  ;;  %v6470_v31 = vpack.c.bf16 %v2468_v33, %v2464_v16 }
 0x431   :  { %6011 = vmatpush1.bf16.msra.mxu0 %v6010_v17  ;;  %6455 = vmatprep.subr.bf16.mxu1 %v6454_v30  ;;  %v2443_v17 = vld [vmem:[%s12197_s6 + $0x1f0] sm:$0xff]  ;;  %v2497_v9 = vld [vmem:[%s12197_s6 + $0x3a0] sm:$0xff] }
 0x432   :  { %6013 = vmatprep.subr.bf16.mxu0 %v6012_v56  ;;  %v2450_v56 = vld [vmem:[%s12197_s6 + $0x228] sm:$0xff]  ;;  %v6460_v59 = vpack.c.bf16 %v2443_v17, %v2439_v2  ;;  %v6038_v2 = vpack.c.bf16 %v2465_v41, %v2461_v32 }
 0x433   :  { %v6028_v19 = vpack.c.bf16 %v2450_v56, %v2446_v39  ;;  %v2469_v39 = vld [vmem:[%s12197_s6 + $0x2c0] sm:$0xff] }
 0x434   :  { %6457 = vmatpush1.bf16.msra.mxu1 %v6456_v15  ;;  %v2470_v15 = vld [vmem:[%s12197_s6 + $0x2c8] sm:$0xff]  ;;  %v2473_v56 = vld [vmem:[%s12197_s6 + $0x2e0] sm:$0xff] }
 0x435   :  { %6015 = vmatpush1.bf16.msra.mxu0 %v6014_v1  ;;  %6459 = vmatprep.subr.bf16.mxu1 %v6458_v43  ;;  %v2451_v1 = vld [vmem:[%s12197_s6 + $0x230] sm:$0xff] }
 0x436   :  { %6017 = vmatprep.subr.bf16.mxu0 %v6016_v57  ;;  %v2458_v57 = vld [vmem:[%s12197_s6 + $0x268] sm:$0xff]  ;;  %v6464_v6 = vpack.c.bf16 %v2451_v1, %v2447_v37  ;;  %v6042_v37 = vpack.c.bf16 %v2473_v56, %v2469_v39 }
 0x437   :  { %v6032_v63 = vpack.c.bf16 %v2458_v57, %v2454_v21  ;;  %v2477_v21 = vld [vmem:[%s12197_s6 + $0x300] sm:$0xff]  ;;  %v2494_v56 = vld [vmem:[%s12197_s6 + $0x388] sm:$0xff] }
 0x438   :  { %6461 = vmatpush1.bf16.msra.mxu1 %v6460_v59  ;;  %v2478_v59 = vld [vmem:[%s12197_s6 + $0x308] sm:$0xff]  ;;  %v2481_v57 = vld [vmem:[%s12197_s6 + $0x320] sm:$0xff] }
 0x439   :  { %6019 = vmatpush1.bf16.msra.mxu0 %v6018_v38  ;;  %6463 = vmatprep.subr.bf16.mxu1 %v6462_v48  ;;  %v2459_v38 = vld [vmem:[%s12197_s6 + $0x270] sm:$0xff] }
 0x43a   :  { %6021 = vmatprep.subr.bf16.mxu0 %v6020_v55  ;;  %v2466_v55 = vld [vmem:[%s12197_s6 + $0x2a8] sm:$0xff]  ;;  %v6468_v30 = vpack.c.bf16 %v2459_v38, %v2455_v62 }
 0x43b   :  { %v6036_v18 = vpack.c.bf16 %v2466_v55, %v2462_v4  ;;  %v2490_v62 = vld [vmem:[%s12197_s6 + $0x368] sm:$0xff] }
 0x43c   :  { %6465 = vmatpush1.bf16.msra.mxu1 %v6464_v6  ;;  %v6046_v6 = vpack.c.bf16 %v2481_v57, %v2477_v21  ;;  %v6048_v16 = vpack.c.bf16 %v2490_v62, %v2486_v5 }
 0x43d   :  { %6023 = vmatpush1.bf16.msra.mxu0 %v6022_v22  ;;  %6467 = vmatprep.subr.bf16.mxu1 %v6466_v24  ;;  %v2467_v22 = vld [vmem:[%s12197_s6 + $0x2b0] sm:$0xff] }
 0x43e   :  { %6025 = vmatprep.subr.bf16.mxu0 %v6024_v12  ;;  %v2474_v12 = vld [vmem:[%s12197_s6 + $0x2e8] sm:$0xff]  ;;  %v6472_v43 = vpack.c.bf16 %v2467_v22, %v2463_v0 }
 0x43f   :  { %v6040_v17 = vpack.c.bf16 %v2474_v12, %v2470_v15  ;;  %v2488_v15 = vld [vmem:[%s12197_s6 + $0x358] sm:$0xff]  ;;  %v2485_v12 = vld [vmem:[%s12197_s6 + $0x340] sm:$0xff] }
 0x440   :  { %6469 = vmatpush1.bf16.msra.mxu1 %v6468_v30 }
 0x441   :  { %6027 = vmatpush1.bf16.msra.mxu0 %v6026_v29  ;;  %6471 = vmatprep.subr.bf16.mxu1 %v6470_v31  ;;  %v2475_v29 = vld [vmem:[%s12197_s6 + $0x2f0] sm:$0xff] }
 0x442   :  { %6029 = vmatprep.subr.bf16.mxu0 %v6028_v19  ;;  %v2482_v19 = vld [vmem:[%s12197_s6 + $0x328] sm:$0xff]  ;;  %v6476_v48 = vpack.c.bf16 %v2475_v29, %v2471_v45 }
 0x443   :  { %v6044_v1 = vpack.c.bf16 %v2482_v19, %v2478_v59  ;;  %v2498_v45 = vld [vmem:[%s12197_s6 + $0x3a8] sm:$0xff]  ;;  %v2500_v19 = vld [vmem:[%s12197_s6 + $0x3b8] sm:$0xff] }
 0x444   :  { %6473 = vmatpush1.bf16.msra.mxu1 %v6472_v43 }
 0x445   :  { %6031 = vmatpush1.bf16.msra.mxu0 %v6030_v49  ;;  %6475 = vmatprep.subr.bf16.mxu1 %v6474_v7  ;;  %v2483_v49 = vld [vmem:[%s12197_s6 + $0x330] sm:$0xff]  ;;  %v2496_v7 = vld [vmem:[%s12197_s6 + $0x398] sm:$0xff] }
 0x446   :  { %6033 = vmatprep.subr.bf16.mxu0 %v6032_v63  ;;  %v6480_v63 = vpack.c.bf16 %v2483_v49, %v2479_v47  ;;  %v6052_v47 = vpack.c.bf16 %v2498_v45, %v2494_v56  ;;  %v2495_v49 = vld [vmem:[%s12197_s6 + $0x390] sm:$0xff]  ;;  %v6486_v62 = vpack.c.bf16 %v2500_v19, %v2496_v7 }
 0x448   :  { %6477 = vmatpush1.bf16.msra.mxu1 %v6476_v48 }
 0x449   :  { %6035 = vmatpush1.bf16.msra.mxu0 %v6034_v23  ;;  %6479 = vmatprep.subr.bf16.mxu1 %v6478_v26 }
 0x44a   :  { %6037 = vmatprep.subr.bf16.mxu0 %v6036_v18 }
 0x44c   :  { %6481 = vmatpush1.bf16.msra.mxu1 %v6480_v63  ;;  %v2504_v63 = vld [vmem:[%s12197_s6 + $0x3d8] sm:$0xff] }
 0x44d   :  { %6039 = vmatpush1.bf16.msra.mxu0 %v6038_v2  ;;  %v2491_v2 = vld [vmem:[%s12197_s6 + $0x370] sm:$0xff] }
 0x44e   :  { %6041 = vmatprep.subr.bf16.mxu0 %v6040_v17  ;;  %v6484_v26 = vpack.c.bf16 %v2491_v2, %v2487_v42 }
 0x451   :  { %6043 = vmatpush1.bf16.msra.mxu0 %v6042_v37  ;;  %v2506_v37 = vld [vmem:[%s12197_s6 + $0x3e8] sm:$0xff] }
 0x452   :  { %6045 = vmatprep.subr.bf16.mxu0 %v6044_v1 }
 0x455   :  { %6047 = vmatpush1.bf16.msra.mxu0 %v6046_v6  ;;  %v2499_v6 = vld [vmem:[%s12197_s6 + $0x3b0] sm:$0xff] }
 0x456   :  { %6049 = vmatprep.subr.bf16.mxu0 %v6048_v16  ;;  %v2501_v16 = vld [vmem:[%s12197_s6 + $0x3c0] sm:$0xff] }
 0x4a1   :  { %v8977_v10 = vpop.permute.xlu1 %2106 }
 0x4a2   :  { %v2111_v24 = vmul.f32 %v8977_v10, %v8480_v14  ;;  %v2112_v38 = vmul.f32 %v8977_v10, %v8493_v36  ;;  %v2110_v4 = vmul.f32 %v8977_v10, %v8466_v28  ;;  %v2109_v18 = vmul.f32 %v8977_v10, %v8462_v52 }
 0x4a3   :  { %v2113_v28 = vmul.f32 %v8977_v10, %v8501_v53  ;;  %v2114_v22 = vmul.f32 %v8977_v10, %v8509_v34  ;;  %v2492_v53 = vld [vmem:[%s12197_s6 + $0x378] sm:$0xff]  ;;  %v2489_v34 = vld [vmem:[%s12197_s6 + $0x360] sm:$0xff]  ;;  %v2115_v29 = vmul.f32 %v8977_v10, %v8519_v20  ;;  %v2116_v59 = vmul.f32 %v8977_v10, %v8526_v54  ;;  %v2502_v54 = vld [vmem:[%s12197_s6 + $0x3c8] sm:$0xff] }
 0x4a4   :  { %v6482_v39 = vpack.c.bf16 %v2492_v53, %v2488_v15  ;;  %v6050_v20 = vpack.c.bf16 %v2489_v34, %v2485_v12  ;;  %v2117_v5 = vmul.f32 %v8977_v10, %v8537_v44  ;;  %v2510_v44 = vld [vmem:[%s12197_s6 + $0x408] sm:$0xff]  ;;  %v2503_v15 = vld [vmem:[%s12197_s6 + $0x3d0] sm:$0xff]  ;;  %v2516_v34 = vld [vmem:[%s12197_s6 + $0x438] sm:$0xff]  ;;  %v2118_v42 = vmul.f32 %v8977_v10, %v8546_v11 }
 0x4a5   :  { %v8991_v55 = vpop.permute.xlu0 %2126  ;;  %v2507_v53 = vld [vmem:[%s12197_s6 + $0x3f0] sm:$0xff]  ;;  %v2119_v11 = vmul.f32 %v8977_v10, %v8555_v35  ;;  %v2121_v35 = vmul.f32 %v8977_v10, %v8576_v58 }
 0x4a6   :  { %v2131_v33 = vadd.f32 %v8991_v55, %v2111_v24  ;;  %v2132_v23 = vadd.f32 %v8991_v55, %v2112_v38  ;;  %v2130_v30 = vadd.f32 %v8991_v55, %v2110_v4  ;;  %v9011_v31 = vadd.f32 %v8991_v55, %v2109_v18  ;;  %6483 = vmatprep.subr.bf16.mxu1 %v6482_v39  ;;  %v2508_v4 = vld [vmem:[%s12197_s6 + $0x3f8] sm:$0xff] }
 0x4a7   :  { %v2133_v52 = vadd.f32 %v8991_v55, %v2113_v28  ;;  %v2134_v51 = vadd.f32 %v8991_v55, %v2114_v22  ;;  %v2135_v48 = vadd.f32 %v8991_v55, %v2115_v29  ;;  %v2136_v1 = vadd.f32 %v8991_v55, %v2116_v59  ;;  %6051 = vmatpush1.bf16.msra.mxu0 %v6050_v20 }
 0x4a8   :  { %v8998_v14 = vmax.f32 %v2131_v33, 0.0  ;;  %v9000_v32 = vmax.f32 %v2132_v23, 0.0  ;;  %v9002_v36 = vmax.f32 %v2130_v30, 0.0  ;;  %v2144_v43 = vmax.f32 %v9011_v31, 0.0  ;;  %v2505_v33 = vld [vmem:[%s12197_s6 + $0x3e0] sm:$0xff]  ;;  %v2514_v23 = vld [vmem:[%s12197_s6 + $0x428] sm:$0xff]  ;;  %6485 = vmatpush1.bf16.msra.mxu1 %v6484_v26  ;;  %6053 = vmatprep.subr.bf16.mxu0 %v6052_v47 }
 0x4a9   :  { %v9038_v17 = vmax.f32 %v2133_v52, 0.0  ;;  %v9076_v57 = vmax.f32 %v2134_v51, 0.0  ;;  %v6054_v24 = vpack.c.bf16 %v2497_v9, %v2493_v27  ;;  %v6056_v38 = vpack.c.bf16 %v2506_v37, %v2502_v54  ;;  %6487 = vmatprep.subr.bf16.mxu1 %v6486_v62  ;;  %v2512_v51 = vld [vmem:[%s12197_s6 + $0x418] sm:$0xff]  ;;  %v2522_v31 = vld [vmem:[%s12197_s6 + $0x468] sm:$0xff] }
 0x4aa   :  { %v7051_v41 = vpack.i.bf16 %v9000_v32, %v8998_v14  ;;  %v7046_v0 = vpack.i.bf16 %v8998_v14, %v9002_v36  ;;  %v9107_v30 = vmax.f32 %v2135_v48, 0.0  ;;  %v9109_v18 = vmax.f32 %v2136_v1, 0.0 }
 0x4ab   :  { %v7061_v21 = vpack.i.bf16 %v9038_v17, %v9000_v32  ;;  %v2137_v28 = vadd.f32 %v8991_v55, %v2117_v5  ;;  %6055 = vmatpush1.bf16.msra.mxu0 %v6054_v24  ;;  %v6490_v52 = vpack.c.bf16 %v2508_v4, %v2504_v63  ;;  %v6058_v22 = vpack.c.bf16 %v2505_v33, %v2501_v16 }
 0x4ac   :  { %7052 = vrot.lane.b32.xlu0 %v7051_v41, %s7207_s22  ;;  %7047 = vrot.lane.b32.xlu1 %v7046_v0, %s7204_s29  ;;  %v7071_v0 = vpack.i.bf16 %v9076_v57, %v9038_v17  ;;  %v6060_v12 = vpack.c.bf16 %v2514_v23, %v2510_v44  ;;  %v7081_v2 = vpack.i.bf16 %v9109_v18, %v9107_v30 }
 0x4ad   :  { %6057 = vmatprep.subr.bf16.mxu0 %v6056_v38  ;;  %v6492_v39 = vpack.c.bf16 %v2507_v53, %v2503_v15  ;;  %v9133_v56 = vmax.f32 %v2137_v28, 0.0  ;;  %v2138_v45 = vadd.f32 %v8991_v55, %v2118_v42  ;;  %v6494_v7 = vpack.c.bf16 %v2516_v34, %v2512_v51  ;;  %v2509_v34 = vld [vmem:[%s12197_s6 + $0x400] sm:$0xff] }
 0x4ae   :  { %v2120_v29 = vmul.f32 %v8977_v10, %v8564_v60  ;;  %v7076_v59 = vpack.i.bf16 %v9107_v30, %v9076_v57  ;;  %v2139_v9 = vadd.f32 %v8991_v55, %v2119_v11  ;;  %v2141_v48 = vadd.f32 %v8991_v55, %v2121_v35  ;;  %v2513_v42 = vld [vmem:[%s12197_s6 + $0x420] sm:$0xff] }
 0x4af   :  { %6059 = vmatpush1.bf16.msra.mxu0 %v6058_v22  ;;  %v7091_v19 = vpack.i.bf16 %v9133_v56, %v9109_v18  ;;  %v9146_v27 = vmax.f32 %v2138_v45, 0.0  ;;  %v2122_v1 = vmul.f32 %v8977_v10, %v8580_v50  ;;  %v2123_v50 = vmul.f32 %v8977_v10, %v8590_v61  ;;  %v2515_v45 = vld [vmem:[%s12197_s6 + $0x430] sm:$0xff]  ;;  %v2517_v35 = vld [vmem:[%s12197_s6 + $0x440] sm:$0xff] }
 0x4b0   :  { %7057 = vrot.lane.b32.xlu0 %v7051_v41, %s7208_s23  ;;  %2173 = vrot.lane.b32.xlu1 %v2144_v43, %s7204_s29  ;;  %v6488_v41 = vpack.c.bf16 %v2499_v6, %v2495_v49  ;;  %v2140_v20 = vadd.f32 %v8991_v55, %v2120_v29  ;;  %v9156_v54 = vmax.f32 %v2139_v9, 0.0  ;;  %v9167_v58 = vmax.f32 %v2141_v48, 0.0  ;;  %v2519_v48 = vld [vmem:[%s12197_s6 + $0x450] sm:$0xff] }
 0x4b1   :  { %6061 = vmatprep.subr.bf16.mxu0 %v6060_v12  ;;  %v7101_v60 = vpack.i.bf16 %v9146_v27, %v9133_v56  ;;  %v2142_v26 = vadd.f32 %v8991_v55, %v2122_v1  ;;  %v2143_v5 = vadd.f32 %v8991_v55, %v2123_v50  ;;  %v2530_v50 = vld [vmem:[%s12197_s6 + $0x4a8] sm:$0xff] }
 0x4b2   :  { %6489 = vmatpush1.bf16.msra.mxu1 %v6488_v41  ;;  %v9158_v37 = vmax.f32 %v2140_v20, 0.0  ;;  %v7106_v49 = vpack.i.bf16 %v9156_v54, %v9146_v27 }
 0x4b3   :  { %6491 = vmatprep.subr.bf16.mxu1 %v6490_v52  ;;  %v9176_v6 = vmax.f32 %v2142_v26, 0.0  ;;  %v2158_v62 = vmax.f32 %v2143_v5, 0.0 }
 0x4b4   :  { %7062 = vrot.lane.b32.xlu0 %v7061_v21, %s7204_s29  ;;  %2243 = vrot.lane.b32.xlu1 %v9002_v36, %s7207_s22  ;;  %v7111_v21 = vpack.i.bf16 %v9158_v37, %v9156_v54  ;;  %v7121_v47 = vpack.i.bf16 %v9167_v58, %v9158_v37 }
 0x4b5   :  { %v7131_v63 = vpack.i.bf16 %v9176_v6, %v9167_v58 }
 0x4b6   :  { %6493 = vmatpush1.bf16.msra.mxu1 %v6492_v39  ;;  %v2511_v39 = vld [vmem:[%s12197_s6 + $0x410] sm:$0xff] }
 0x4b7   :  { %6495 = vmatprep.subr.bf16.mxu1 %v6494_v7  ;;  %v2518_v7 = vld [vmem:[%s12197_s6 + $0x448] sm:$0xff]  ;;  %v6496_v26 = vpack.c.bf16 %v2515_v45, %v2511_v39 }
 0x4b8   :  { %7072 = vrot.lane.b32.xlu0 %v7071_v0, %s7208_s23  ;;  %2312 = vrot.lane.b32.xlu1 %v9002_v36, %s7208_s23  ;;  %v6064_v5 = vpack.c.bf16 %v2522_v31, %v2518_v7  ;;  %v2538_v31 = vld [vmem:[%s12197_s6 + $0x4e8] sm:$0xff] }
 0x4bc   :  { %7082 = vrot.lane.b32.xlu0 %v7081_v2, %s7207_s22  ;;  %7067 = vrot.lane.b32.xlu1 %v7071_v0, %s7207_s22 }
 0x4c0   :  { %7092 = vrot.lane.b32.xlu0 %v7091_v19, %s7204_s29  ;;  %7077 = vrot.lane.b32.xlu1 %v7076_v59, %s7204_s29  ;;  %v2524_v59 = vld [vmem:[%s12197_s6 + $0x478] sm:$0xff] }
 0x4c4   :  { %7102 = vrot.lane.b32.xlu0 %v7101_v60, %s7208_s23  ;;  %7087 = vrot.lane.b32.xlu1 %v7081_v2, %s7208_s23 }
 0x4c8   :  { %7112 = vrot.lane.b32.xlu0 %v7111_v21, %s7207_s22  ;;  %7097 = vrot.lane.b32.xlu1 %v7101_v60, %s7207_s22  ;;  %v2521_v60 = vld [vmem:[%s12197_s6 + $0x460] sm:$0xff] }
 0x4cc   :  { %7122 = vrot.lane.b32.xlu0 %v7121_v47, %s7204_s29  ;;  %7107 = vrot.lane.b32.xlu1 %v7106_v49, %s7204_s29  ;;  %v2523_v47 = vld [vmem:[%s12197_s6 + $0x470] sm:$0xff]  ;;  %v2526_v49 = vld [vmem:[%s12197_s6 + $0x488] sm:$0xff] }
 0x4d0   :  { %7132 = vrot.lane.b32.xlu0 %v7131_v63, %s7208_s23  ;;  %7117 = vrot.lane.b32.xlu1 %v7111_v21, %s7208_s23  ;;  %v6062_v21 = vpack.c.bf16 %v2513_v42, %v2509_v34  ;;  %v2529_v34 = vld [vmem:[%s12197_s6 + $0x4a0] sm:$0xff]  ;;  %v2527_v42 = vld [vmem:[%s12197_s6 + $0x490] sm:$0xff] }
 0x4d4   :  { %2269 = vrot.lane.b32.xlu0 %v2158_v62, %s7207_s22  ;;  %7127 = vrot.lane.b32.xlu1 %v7131_v63, %s7207_s22  ;;  %s7221_s22 = smov 34  }
 0x4d8   :  { %2199 = vrot.lane.b32.xlu1 %v9176_v6, %s7204_s29 }
 0x4dc   :  { %2338 = vrot.lane.b32.xlu1 %v2158_v62, %s7208_s23  ;;  %s7222_s23 = smov 32  }
 0x51e   :  { %v9192_v61 = vpop.permute.xlu0 %7052  ;;  %v7048_v10 = vpop.permute.xlu1 %7047 }
 0x51f   :  { %v7055_v24 = vunpack.i.h.bf16 %v9192_v61  ;;  %v7054_v55 = vunpack.i.l.bf16 %v9192_v61  ;;  %v7050_v38 = vunpack.i.h.bf16 %v7048_v10  ;;  %v7049_v4 = vunpack.i.l.bf16 %v7048_v10 }
 0x521   :  { %v2202_v16 = vsel %vm12253_vm7, %v7049_v4, %v7050_v38  ;;  %v2272_v0 = vsel %vm575_vm4, %v7054_v55, %v7055_v24  ;;  %vm12262_vm7 = vmmov %vm12261_vm6 }
 0x522   :  { %v9197_v33 = vpop.permute.xlu0 %7057  ;;  %v2174_v44 = vpop.permute.xlu1 %2173  ;;  %v2229_v23 = vmax.f32 %v9002_v36, %v2202_v16  ;;  %v2532_v16 = vld [vmem:[%s12197_s6 + $0x4b8] sm:$0xff] }
 0x523   :  { %v7060_v28 = vunpack.i.h.bf16 %v9197_v33  ;;  %v7059_v41 = vunpack.i.l.bf16 %v9197_v33  ;;  %v2201_v22 = vsel %vm12254_vm8, %v2174_v44, %v7049_v4  ;;  %v2528_v4 = vld [vmem:[%s12197_s6 + $0x498] sm:$0xff]  ;;  %vm12263_vm8 = vmmov %vm12261_vm6 }
 0x524   :  { %v2299_v52 = vmax.f32 %v2229_v23, %v2272_v0  ;;  %v2228_v2 = vmax.f32 %v2144_v43, %v2201_v22  ;;  %v2520_v43 = vld [vmem:[%s12197_s6 + $0x458] sm:$0xff]  ;;  %v6500_v0 = vpack.c.bf16 %v2523_v47, %v2519_v48  ;;  %v2525_v22 = vld [vmem:[%s12197_s6 + $0x480] sm:$0xff]  ;;  %v6502_v45 = vpack.c.bf16 %v2532_v16, %v2528_v4 }
 0x525   :  { %v2341_v15 = vsel %vm654_vm5, %v7059_v41, %v7060_v28  ;;  %v6498_v62 = vpack.c.bf16 %v2524_v59, %v2520_v43  ;;  %v6070_v48 = vpack.c.bf16 %v2529_v34, %v2525_v22 }
 0x526   :  { %v9209_v53 = vpop.permute.xlu0 %7062  ;;  %v2244_v12 = vpop.permute.xlu1 %2243  ;;  %v2368_v51 = vmax.f32 %v2299_v52, %v2341_v15  ;;  %v6068_v52 = vpack.c.bf16 %v2530_v50, %v2526_v49  ;;  %v2533_v49 = vld [vmem:[%s12197_s6 + $0x4c0] sm:$0xff] }
 0x527   :  { %v2271_v36 = vsel %vm575_vm4, %v2244_v12, %v7054_v55  ;;  %v7065_v11 = vunpack.i.h.bf16 %v9209_v53  ;;  %v7064_v29 = vunpack.i.l.bf16 %v9209_v53  ;;  %v2537_v50 = vld [vmem:[%s12197_s6 + $0x4e0] sm:$0xff] }
 0x528   :  { %3326 = vmatprep.mubr.f32.mxu0 %v2368_v51  ;;  %3823 = vmatprep.mubr.f32.mxu1 %v2368_v51  ;;  %v2298_v19 = vmax.f32 %v2228_v2, %v2271_v36  ;;  %v2531_v2 = vld [vmem:[%s12197_s6 + $0x4b0] sm:$0xff] }
 0x529   :  { %v2203_v10 = vsel %vm12255_vm9, %v7050_v38, %v7064_v29  ;;  %v2204_v55 = vsel %vm12256_vm10, %v7064_v29, %v7065_v11  ;;  %v6066_v38 = vpack.c.bf16 %v2521_v60, %v2517_v35  ;;  %v2534_v29 = vld [vmem:[%s12197_s6 + $0x4c8] sm:$0xff]  ;;  %vm12267_vm9 = vmmov %vm12261_vm6 }
 0x52a   :  { %v9240_v9 = vpop.permute.xlu0 %7072  ;;  %v2313_v20 = vpop.permute.xlu1 %2312  ;;  %v2230_v39 = vmax.f32 %v8998_v14, %v2203_v10  ;;  %v2231_v7 = vmax.f32 %v9000_v32, %v2204_v55  ;;  %v2536_v32 = vld [vmem:[%s12197_s6 + $0x4d8] sm:$0xff]  ;;  %v6072_v47 = vpack.c.bf16 %v2538_v31, %v2534_v29  ;;  %vm12273_vm10 = vmmov %vm12261_vm6 }
 0x52b   :  { %v2340_v1 = vsel %vm654_vm5, %v2313_v20, %v7059_v41  ;;  %v7075_v44 = vunpack.i.h.bf16 %v9240_v9  ;;  %v7074_v15 = vunpack.i.l.bf16 %v9240_v9  ;;  %v2549_v9 = vld [vmem:[%s12197_s6 + $0x540] sm:$0xff] }
 0x52c   :  { %v2367_v63 = vmax.f32 %v2298_v19, %v2340_v1  ;;  %v2540_v19 = vld [vmem:[%s12197_s6 + $0x4f8] sm:$0xff]  ;;  %v6504_v1 = vpack.c.bf16 %v2531_v2, %v2527_v42  ;;  %v2543_v2 = vld [vmem:[%s12197_s6 + $0x510] sm:$0xff] }
 0x52e   :  { %v9272_v23 = vpop.permute.xlu0 %7082  ;;  %3327 = vmatmul.mubr.f32.vlgmr.msra.gmra.mrb[8].mxu0 %v2367_v63  ;;  %3824 = vmatmul.mubr.f32.vlgmr.msra.gmra.mrb[8].mxu1 %v2367_v63  ;;  %v7068_v41 = vpop.permute.xlu1 %7067  ;;  %v2535_v63 = vld [vmem:[%s12197_s6 + $0x4d0] sm:$0xff] }
 0x52f   :  { %v7084_v12 = vunpack.i.l.bf16 %v9272_v23  ;;  %6063 = vmatpush1.bf16.msra.mxu0 %v6062_v21  ;;  %6497 = vmatpush1.bf16.msra.mxu1 %v6496_v26  ;;  %v7070_v51 = vunpack.i.h.bf16 %v7068_v41  ;;  %v7069_v36 = vunpack.i.l.bf16 %v7068_v41  ;;  %v2343_v26 = vsel %vm654_vm5, %v7074_v15, %v7075_v44  ;;  %v2546_v41 = vld [vmem:[%s12197_s6 + $0x528] sm:$0xff] }
 0x530   :  { %6065 = vmatprep.subr.bf16.mxu0 %v6064_v5  ;;  %6499 = vmatprep.subr.bf16.mxu1 %v6498_v62  ;;  %v2539_v5 = vld [vmem:[%s12197_s6 + $0x4f0] sm:$0xff]  ;;  %v2542_v62 = vld [vmem:[%s12197_s6 + $0x508] sm:$0xff] }
 0x531   :  { %v2275_v43 = vsel %vm575_vm4, %v7070_v51, %v7084_v12  ;;  %v2273_v14 = vsel %vm575_vm4, %v7055_v24, %v7069_v36  ;;  %v2274_v59 = vsel %vm575_vm4, %v7069_v36, %v7070_v51  ;;  %v2342_v24 = vsel %vm654_vm5, %v7060_v28, %v7074_v15  ;;  %v2541_v36 = vld [vmem:[%s12197_s6 + $0x500] sm:$0xff] }
 0x532   :  { %v2300_v20 = vmax.f32 %v2230_v39, %v2273_v14  ;;  %v9309_v35 = vpop.permute.xlu0 %7092  ;;  %v9311_v60 = vpop.permute.xlu1 %7077  ;;  %v2301_v61 = vmax.f32 %v2231_v7, %v2274_v59  ;;  %v6506_v28 = vpack.c.bf16 %v2540_v19, %v2536_v32  ;;  %v6508_v51 = vpack.c.bf16 %v2539_v5, %v2535_v63  ;;  %v2547_v39 = vld [vmem:[%s12197_s6 + $0x530] sm:$0xff]  ;;  %v2554_v14 = vld [vmem:[%s12197_s6 + $0x568] sm:$0xff]  ;;  %v2556_v59 = vld [vmem:[%s12197_s6 + $0x578] sm:$0xff] }
 0x533   :  { %6067 = vmatpush1.bf16.msra.mxu0 %v6066_v38  ;;  %6501 = vmatpush1.bf16.msra.mxu1 %v6500_v0  ;;  %v7079_v21 = vunpack.i.l.bf16 %v9311_v60  ;;  %v7094_v55 = vunpack.i.l.bf16 %v9309_v35  ;;  %v7080_v4 = vunpack.i.h.bf16 %v9311_v60  ;;  %v2544_v38 = vld [vmem:[%s12197_s6 + $0x518] sm:$0xff]  ;;  %v6076_v34 = vpack.c.bf16 %v2546_v41, %v2542_v62  ;;  %v2562_v5 = vld [vmem:[%s12197_s6 + $0x5a8] sm:$0xff]  ;;  %v2631_v60 = vld [vmem:[%s12197_s6 + $0x7d0] sm:$0xff] }
 0x534   :  { %6069 = vmatprep.subr.bf16.mxu0 %v6068_v52  ;;  %6503 = vmatprep.subr.bf16.mxu1 %v6502_v45  ;;  %v2370_v33 = vmax.f32 %v2301_v61, %v2343_v26  ;;  %v9335_v10 = vmax.f32 %v2300_v20, %v2342_v24  ;;  %v2548_v0 = vld [vmem:[%s12197_s6 + $0x538] sm:$0xff]  ;;  %v2550_v45 = vld [vmem:[%s12197_s6 + $0x548] sm:$0xff]  ;;  %v7085_v20 = vunpack.i.h.bf16 %v9272_v23  ;;  %v6512_v61 = vpack.c.bf16 %v2547_v39, %v2543_v2  ;;  %v2553_v24 = vld [vmem:[%s12197_s6 + $0x560] sm:$0xff] }
 0x535   :  { %v2205_v16 = vsel %vm12257_vm12, %v7065_v11, %v7079_v21  ;;  %v6074_v11 = vpack.c.bf16 %v2537_v50, %v2533_v49  ;;  %v6510_v42 = vpack.c.bf16 %v2548_v0, %v2544_v38  ;;  %v2207_v29 = vsel %vm12258_vm13, %v7080_v4, %v7094_v55  ;;  %v2551_v26 = vld [vmem:[%s12197_s6 + $0x550] sm:$0xff]  ;;  %v2564_v62 = vld [vmem:[%s12197_s6 + $0x5b8] sm:$0xff] }
 0x536   :  { %v2232_v52 = vmax.f32 %v9038_v17, %v2205_v16  ;;  %v9354_v22 = vpop.permute.xlu0 %7102  ;;  %v9356_v15 = vpop.permute.xlu1 %7087  ;;  %3397 = vmatprep.mubr.f32.mxu0 %v2370_v33  ;;  %3894 = vmatprep.mubr.f32.mxu1 %v2370_v33  ;;  %v2545_v17 = vld [vmem:[%s12197_s6 + $0x520] sm:$0xff]  ;;  %v2234_v49 = vmax.f32 %v9107_v30, %v2207_v29  ;;  %v6080_v50 = vpack.c.bf16 %v2554_v14, %v2550_v45  ;;  %v2560_v30 = vld [vmem:[%s12197_s6 + $0x598] sm:$0xff]  ;;  %v2559_v45 = vld [vmem:[%s12197_s6 + $0x590] sm:$0xff]  ;;  %vm12276_vm12 = vmmov 1  }
 0x537   :  { %6071 = vmatpush1.bf16.msra.mxu0 %v6070_v48  ;;  %6505 = vmatpush1.bf16.msra.mxu1 %v6504_v1  ;;  %v7089_v53 = vunpack.i.l.bf16 %v9356_v15  ;;  %v6078_v1 = vpack.c.bf16 %v2545_v17, %v2541_v36  ;;  %v6082_v0 = vpack.c.bf16 %v2553_v24, %v2549_v9  ;;  %v6518_v39 = vpack.c.bf16 %v2564_v62, %v2560_v30  ;;  %v2566_v29 = vld [vmem:[%s12197_s6 + $0x5c8] sm:$0xff]  ;;  %v2568_v9 = vld [vmem:[%s12197_s6 + $0x5d8] sm:$0xff]  ;;  %v2567_v62 = vld [vmem:[%s12197_s6 + $0x5d0] sm:$0xff] }
 0x538   :  { %6073 = vmatprep.subr.bf16.mxu0 %v6072_v47  ;;  %6507 = vmatprep.subr.bf16.mxu1 %v6506_v28  ;;  %v2302_v7 = vmax.f32 %v2232_v52, %v2275_v43  ;;  %v2552_v43 = vld [vmem:[%s12197_s6 + $0x558] sm:$0xff]  ;;  %v2555_v47 = vld [vmem:[%s12197_s6 + $0x570] sm:$0xff]  ;;  %v2558_v28 = vld [vmem:[%s12197_s6 + $0x588] sm:$0xff] }
 0x539   :  { %v2344_v31 = vsel %vm654_vm5, %v7075_v44, %v7089_v53  ;;  %v6514_v33 = vpack.c.bf16 %v2556_v59, %v2552_v43  ;;  %v6516_v52 = vpack.c.bf16 %v2555_v47, %v2551_v26  ;;  %v6084_v2 = vpack.c.bf16 %v2562_v5, %v2558_v28  ;;  %v2570_v59 = vld [vmem:[%s12197_s6 + $0x5e8] sm:$0xff]  ;;  %v2569_v28 = vld [vmem:[%s12197_s6 + $0x5e0] sm:$0xff] }
 0x53a   :  { %v9393_v32 = vpop.permute.xlu0 %7112  ;;  %v9395_v19 = vpop.permute.xlu1 %7097  ;;  %v9400_v44 = vmax.f32 %v2302_v7, %v2344_v31  ;;  %v2563_v7 = vld [vmem:[%s12197_s6 + $0x5b0] sm:$0xff]  ;;  %v7105_v47 = vunpack.i.h.bf16 %v9354_v22  ;;  %v6088_v5 = vpack.c.bf16 %v2570_v59, %v2566_v29  ;;  %v2580_v29 = vld [vmem:[%s12197_s6 + $0x638] sm:$0xff] }
 0x53b   :  { %6075 = vmatpush1.bf16.msra.mxu0 %v6074_v11  ;;  %6509 = vmatpush1.bf16.msra.mxu1 %v6508_v51  ;;  %v7099_v48 = vunpack.i.l.bf16 %v9395_v19  ;;  %v7095_v11 = vunpack.i.h.bf16 %v9309_v35  ;;  %v12232_v51 = vunpack.i.l.bf16 %v9393_v32  ;;  %v7100_v36 = vunpack.i.h.bf16 %v9395_v19  ;;  %v2768_v35 = vld [vmem:[%s12197_s6 + $0xc18] sm:$0xff]  ;;  %v2767_v19 = vld [vmem:[%s12197_s6 + $0xc10] sm:$0xff] }
 0x53c   :  { %6077 = vmatprep.subr.bf16.mxu0 %v6076_v34  ;;  %6511 = vmatprep.subr.bf16.mxu1 %v6510_v42  ;;  %v2557_v34 = vld [vmem:[%s12197_s6 + $0x580] sm:$0xff] }
 0x53d   :  { %v2277_v63 = vsel %vm575_vm4, %v7085_v20, %v7099_v48  ;;  %v2561_v42 = vld [vmem:[%s12197_s6 + $0x5a0] sm:$0xff] }
 0x53e   :  { %v9431_v16 = vmax.f32 %v2234_v49, %v2277_v63  ;;  %v9433_v41 = vpop.permute.xlu0 %7122  ;;  %v9435_v38 = vpop.permute.xlu1 %7107  ;;  %v6086_v26 = vpack.c.bf16 %v2561_v42, %v2557_v34  ;;  %v2279_v49 = vsel %vm575_vm4, %v7100_v36, %v12232_v51  ;;  %v12238_v34 = vunpack.i.l.bf16 %v9354_v22 }
 0x53f   :  { %6079 = vmatpush1.bf16.msra.mxu0 %v6078_v1  ;;  %6513 = vmatpush1.bf16.msra.mxu1 %v6512_v61  ;;  %v12234_v17 = vunpack.i.l.bf16 %v9435_v38  ;;  %v12229_v31 = vunpack.i.l.bf16 %v9433_v41  ;;  %v12237_v14 = vunpack.i.h.bf16 %v9435_v38  ;;  %v2572_v1 = vld [vmem:[%s12197_s6 + $0x5f8] sm:$0xff]  ;;  %v7090_v42 = vunpack.i.h.bf16 %v9356_v15 }
 0x540   :  { %6081 = vmatprep.subr.bf16.mxu0 %v6080_v50  ;;  %6515 = vmatprep.subr.bf16.mxu1 %v6514_v33  ;;  %v6520_v33 = vpack.c.bf16 %v2563_v7, %v2559_v45  ;;  %v6522_v30 = vpack.c.bf16 %v2572_v1, %v2568_v9  ;;  %v2578_v45 = vld [vmem:[%s12197_s6 + $0x628] sm:$0xff]  ;;  %v2576_v7 = vld [vmem:[%s12197_s6 + $0x618] sm:$0xff]  ;;  %v12233_v1 = vunpack.i.h.bf16 %v9393_v32 }
 0x541   :  { %v2209_v43 = vsel %vm12259_vm14, %v7095_v11, %v12234_v17  ;;  %v2581_v17 = vld [vmem:[%s12197_s6 + $0x640] sm:$0xff]  ;;  %v2345_v23 = vsel %vm654_vm5, %v7089_v53, %v7090_v42  ;;  %vm4258_vm14 = vcmask 128000  }
 0x542   :  { %v2236_v61 = vmax.f32 %v9133_v56, %v2209_v43  ;;  %v9473_v24 = vpop.permute.xlu1 %7117  ;;  %v2565_v56 = vld [vmem:[%s12197_s6 + $0x5c0] sm:$0xff]  ;;  %v9518_v43 = vpop.permute.xlu0 %7132 }
 0x543   :  { %6083 = vmatpush1.bf16.msra.mxu0 %v6082_v0  ;;  %6517 = vmatpush1.bf16.msra.mxu1 %v6516_v52  ;;  %v12230_v50 = vunpack.i.l.bf16 %v9473_v24  ;;  %v2571_v0 = vld [vmem:[%s12197_s6 + $0x5f0] sm:$0xff]  ;;  %v2574_v52 = vld [vmem:[%s12197_s6 + $0x608] sm:$0xff]  ;;  %v2645_v53 = vld [vmem:[%s12197_s6 + $0x840] sm:$0xff] }
 0x544   :  { %v2306_v63 = vmax.f32 %v2236_v61, %v2279_v49  ;;  %6085 = vmatprep.subr.bf16.mxu0 %v6084_v2  ;;  %6519 = vmatprep.subr.bf16.mxu1 %v6518_v39  ;;  %v2211_v2 = vsel %vm12260_vm15, %v12237_v14, %v12229_v31  ;;  %v6090_v49 = vpack.c.bf16 %v2569_v28, %v2565_v56  ;;  %v2577_v31 = vld [vmem:[%s12197_s6 + $0x620] sm:$0xff]  ;;  %v2579_v56 = vld [vmem:[%s12197_s6 + $0x630] sm:$0xff]  ;;  %v2582_v28 = vld [vmem:[%s12197_s6 + $0x648] sm:$0xff]  ;;  %vm4396_vm15 = vcmask 269312  }
 0x545   :  { %v2348_v39 = vsel %vm654_vm5, %v7105_v47, %v12230_v50  ;;  %v6524_v46 = vpack.c.bf16 %v2571_v0, %v2567_v62  ;;  %v2586_v62 = vld [vmem:[%s12197_s6 + $0x668] sm:$0xff]  ;;  %v2589_v14 = vld [vmem:[%s12197_s6 + $0x680] sm:$0xff] }
 0x546   :  { %v9520_v59 = vmax.f32 %v2306_v63, %v2348_v39  ;;  %v9522_v9 = vpop.permute.xlu1 %7127  ;;  %v2575_v63 = vld [vmem:[%s12197_s6 + $0x610] sm:$0xff]  ;;  %v2238_v39 = vmax.f32 %v9156_v54, %v2211_v2  ;;  %v2346_v54 = vsel %vm654_vm5, %v7090_v42, %v12238_v34  ;;  %v2588_v2 = vld [vmem:[%s12197_s6 + $0x678] sm:$0xff]  ;;  %v2593_v34 = vld [vmem:[%s12197_s6 + $0x6a0] sm:$0xff] }
 0x547   :  { %6087 = vmatpush1.bf16.msra.mxu0 %v6086_v26  ;;  %6521 = vmatpush1.bf16.msra.mxu1 %v6520_v33  ;;  %v12231_v61 = vunpack.i.l.bf16 %v9522_v9  ;;  %v6092_v26 = vpack.c.bf16 %v2578_v45, %v2574_v52  ;;  %v6526_v33 = vpack.c.bf16 %v2580_v29, %v2576_v7  ;;  %v2584_v52 = vld [vmem:[%s12197_s6 + $0x658] sm:$0xff]  ;;  %v6094_v29 = vpack.c.bf16 %v2577_v31, %v2573_v3  ;;  %v2585_v3 = vld [vmem:[%s12197_s6 + $0x660] sm:$0xff] }
 0x548   :  { %6089 = vmatprep.subr.bf16.mxu0 %v6088_v5  ;;  %6523 = vmatprep.subr.bf16.mxu1 %v6522_v30  ;;  %v12236_v5 = vunpack.i.h.bf16 %v9433_v41  ;;  %v12235_v30 = vunpack.i.h.bf16 %v9522_v9  ;;  %v9566_v50 = vmax.f32 %v9431_v16, %v2346_v54  ;;  %v6528_v51 = vpack.c.bf16 %v2579_v56, %v2575_v63  ;;  %v2583_v16 = vld [vmem:[%s12197_s6 + $0x650] sm:$0xff]  ;;  %v2649_v42 = vld [vmem:[%s12197_s6 + $0x860] sm:$0xff] }
 0x549   :  { %v2281_v0 = vsel %vm575_vm4, %v12233_v1, %v12231_v61  ;;  %v6096_v1 = vpack.c.bf16 %v2586_v62, %v2582_v28  ;;  %v7120_v31 = vunpack.i.h.bf16 %v9473_v24  ;;  %v2587_v56 = vld [vmem:[%s12197_s6 + $0x670] sm:$0xff]  ;;  %v2590_v28 = vld [vmem:[%s12197_s6 + $0x688] sm:$0xff]  ;;  %v7135_v54 = vunpack.i.h.bf16 %v9518_v43 }
 0x54a   :  { %v2308_v45 = vmax.f32 %v2238_v39, %v2281_v0  ;;  %v9563_v7 = vpop.permute.xlu1 %2199  ;;  %v6530_v39 = vpack.c.bf16 %v2588_v2, %v2584_v52  ;;  %v2594_v62 = vld [vmem:[%s12197_s6 + $0x6a8] sm:$0xff]  ;;  %v6098_v52 = vpack.c.bf16 %v2585_v3, %v2581_v17  ;;  %v2591_v3 = vld [vmem:[%s12197_s6 + $0x690] sm:$0xff] }
 0x54b   :  { %6091 = vmatpush1.bf16.msra.mxu0 %v6090_v49  ;;  %6525 = vmatpush1.bf16.msra.mxu1 %v6524_v46  ;;  %v2213_v61 = vsel %vm12261_vm6, %v12236_v5, %v9563_v7  ;;  %v7134_v46 = vunpack.i.l.bf16 %v9518_v43  ;;  %v9583_v49 = vpop.permute.xlu0 %2269  ;;  %v6100_v5 = vpack.c.bf16 %v2594_v62, %v2590_v28  ;;  %v6102_v62 = vpack.c.bf16 %v2593_v34, %v2589_v14  ;;  %v2603_v14 = vld [vmem:[%s12197_s6 + $0x6f0] sm:$0xff]  ;;  %v2606_v34 = vld [vmem:[%s12197_s6 + $0x708] sm:$0xff]  ;;  %v3040_v43 = vld [vmem:[%s12197_s6 + $0x1498] sm:$0xff] }
 0x54c   :  { %v2240_v63 = vmax.f32 %v9167_v58, %v2213_v61  ;;  %6093 = vmatprep.subr.bf16.mxu0 %v6092_v26  ;;  %6527 = vmatprep.subr.bf16.mxu1 %v6526_v33  ;;  %v2283_v58 = vsel %vm575_vm4, %v12235_v30, %v9583_v49  ;;  %v2592_v61 = vld [vmem:[%s12197_s6 + $0x698] sm:$0xff]  ;;  %v6532_v30 = vpack.c.bf16 %v2587_v56, %v2583_v16  ;;  %v2595_v16 = vld [vmem:[%s12197_s6 + $0x6b0] sm:$0xff]  ;;  %v2602_v56 = vld [vmem:[%s12197_s6 + $0x6e8] sm:$0xff]  ;;  %vm4465_vm6 = vcmask 572416  }
 0x54d   :  { %v2596_v26 = vld [vmem:[%s12197_s6 + $0x6b8] sm:$0xff] }
 0x54e   :  { %v9606_v33 = vpop.permute.xlu1 %2338  ;;  %v2310_v0 = vmax.f32 %v2240_v63, %v2283_v58  ;;  %v2598_v63 = vld [vmem:[%s12197_s6 + $0x6c8] sm:$0xff]  ;;  %v6536_v58 = vpack.c.bf16 %v2595_v16, %v2591_v3  ;;  %v2605_v3 = vld [vmem:[%s12197_s6 + $0x700] sm:$0xff] }
 0x54f   :  { %6095 = vmatpush1.bf16.msra.mxu0 %v6094_v29  ;;  %6529 = vmatpush1.bf16.msra.mxu1 %v6528_v51  ;;  %v2352_v2 = vsel %vm654_vm5, %v7135_v54, %v9606_v33  ;;  %v2350_v51 = vsel %vm654_vm5, %v7120_v31, %v7134_v46  ;;  %v6534_v29 = vpack.c.bf16 %v2596_v26, %v2592_v61  ;;  %v2597_v61 = vld [vmem:[%s12197_s6 + $0x6c0] sm:$0xff] }
 0x550   :  { %v9623_v17 = vmax.f32 %v2310_v0, %v2352_v2  ;;  %6097 = vmatprep.subr.bf16.mxu0 %v6096_v1  ;;  %6531 = vmatprep.subr.bf16.mxu1 %v6530_v39  ;;  %v2600_v1 = vld [vmem:[%s12197_s6 + $0x6d8] sm:$0xff]  ;;  %v9643_v28 = vmax.f32 %v2308_v45, %v2350_v51  ;;  %v2601_v26 = vld [vmem:[%s12197_s6 + $0x6e0] sm:$0xff]  ;;  %v6104_v0 = vpack.c.bf16 %v2602_v56, %v2598_v63  ;;  %v2599_v45 = vld [vmem:[%s12197_s6 + $0x6d0] sm:$0xff] }
 0x551   :  { %v2604_v39 = vld [vmem:[%s12197_s6 + $0x6f8] sm:$0xff]  ;;  %v6106_v51 = vpack.c.bf16 %v2601_v26, %v2597_v61  ;;  %v2609_v16 = vld [vmem:[%s12197_s6 + $0x720] sm:$0xff] }
 0x552   :  { %v6538_v2 = vpack.c.bf16 %v2604_v39, %v2600_v1  ;;  %v2607_v1 = vld [vmem:[%s12197_s6 + $0x710] sm:$0xff]  ;;  %v2616_v61 = vld [vmem:[%s12197_s6 + $0x758] sm:$0xff] }
 0x553   :  { %6099 = vmatpush1.bf16.msra.mxu0 %v6098_v52  ;;  %6533 = vmatpush1.bf16.msra.mxu1 %v6532_v30  ;;  %v2610_v30 = vld [vmem:[%s12197_s6 + $0x728] sm:$0xff]  ;;  %v2612_v52 = vld [vmem:[%s12197_s6 + $0x738] sm:$0xff]  ;;  %v2611_v39 = vld [vmem:[%s12197_s6 + $0x730] sm:$0xff] }
 0x554   :  { %6101 = vmatprep.subr.bf16.mxu0 %v6100_v5  ;;  %6535 = vmatprep.subr.bf16.mxu1 %v6534_v29  ;;  %v2608_v5 = vld [vmem:[%s12197_s6 + $0x718] sm:$0xff]  ;;  %v6540_v29 = vpack.c.bf16 %v2603_v14, %v2599_v45  ;;  %v6108_v63 = vpack.c.bf16 %v2610_v30, %v2606_v34  ;;  %v2613_v45 = vld [vmem:[%s12197_s6 + $0x740] sm:$0xff] }
 0x555   :  { %v6542_v56 = vpack.c.bf16 %v2612_v52, %v2608_v5  ;;  %v2620_v26 = vld [vmem:[%s12197_s6 + $0x778] sm:$0xff]  ;;  %v2617_v14 = vld [vmem:[%s12197_s6 + $0x760] sm:$0xff]  ;;  %v2615_v5 = vld [vmem:[%s12197_s6 + $0x750] sm:$0xff] }
 0x556   :  { %v6546_v30 = vpack.c.bf16 %v2620_v26, %v2616_v61  ;;  %v2619_v52 = vld [vmem:[%s12197_s6 + $0x770] sm:$0xff] }
 0x557   :  { %6103 = vmatpush1.bf16.msra.mxu0 %v6102_v62  ;;  %6537 = vmatpush1.bf16.msra.mxu1 %v6536_v58  ;;  %v2614_v62 = vld [vmem:[%s12197_s6 + $0x748] sm:$0xff]  ;;  %v2623_v61 = vld [vmem:[%s12197_s6 + $0x790] sm:$0xff] }
 0x558   :  { %6105 = vmatprep.subr.bf16.mxu0 %v6104_v0  ;;  %6539 = vmatprep.subr.bf16.mxu1 %v6538_v2  ;;  %v2618_v58 = vld [vmem:[%s12197_s6 + $0x768] sm:$0xff]  ;;  %v6110_v0 = vpack.c.bf16 %v2609_v16, %v2605_v3  ;;  %v6544_v2 = vpack.c.bf16 %v2611_v39, %v2607_v1  ;;  %v2624_v3 = vld [vmem:[%s12197_s6 + $0x798] sm:$0xff]  ;;  %v2621_v1 = vld [vmem:[%s12197_s6 + $0x780] sm:$0xff] }
 0x559   :  { %v6112_v34 = vpack.c.bf16 %v2618_v58, %v2614_v62  ;;  %v2628_v16 = vld [vmem:[%s12197_s6 + $0x7b8] sm:$0xff]  ;;  %v2625_v39 = vld [vmem:[%s12197_s6 + $0x7a0] sm:$0xff]  ;;  %v2627_v26 = vld [vmem:[%s12197_s6 + $0x7b0] sm:$0xff] }
 0x55a   :  { %v6550_v58 = vpack.c.bf16 %v2628_v16, %v2624_v3  ;;  %v2642_v16 = vld [vmem:[%s12197_s6 + $0x828] sm:$0xff] }
 0x55b   :  { %6107 = vmatpush1.bf16.msra.mxu0 %v6106_v51  ;;  %6541 = vmatpush1.bf16.msra.mxu1 %v6540_v29  ;;  %v2622_v51 = vld [vmem:[%s12197_s6 + $0x788] sm:$0xff] }
 0x55c   :  { %6109 = vmatprep.subr.bf16.mxu0 %v6108_v63  ;;  %6543 = vmatprep.subr.bf16.mxu1 %v6542_v56  ;;  %v2626_v29 = vld [vmem:[%s12197_s6 + $0x7a8] sm:$0xff]  ;;  %v6114_v63 = vpack.c.bf16 %v2617_v14, %v2613_v45  ;;  %v6548_v56 = vpack.c.bf16 %v2619_v52, %v2615_v5  ;;  %v2632_v45 = vld [vmem:[%s12197_s6 + $0x7d8] sm:$0xff]  ;;  %v6552_v5 = vpack.c.bf16 %v2627_v26, %v2623_v61  ;;  %v2629_v52 = vld [vmem:[%s12197_s6 + $0x7c0] sm:$0xff] }
 0x55d   :  { %v6116_v62 = vpack.c.bf16 %v2626_v29, %v2622_v51  ;;  %v2636_v14 = vld [vmem:[%s12197_s6 + $0x7f8] sm:$0xff]  ;;  %v2633_v51 = vld [vmem:[%s12197_s6 + $0x7e0] sm:$0xff] }
 0x55e   :  { %v6554_v3 = vpack.c.bf16 %v2636_v14, %v2632_v45  ;;  %v2637_v26 = vld [vmem:[%s12197_s6 + $0x800] sm:$0xff]  ;;  %v2639_v45 = vld [vmem:[%s12197_s6 + $0x810] sm:$0xff] }
 0x55f   :  { %6111 = vmatpush1.bf16.msra.mxu0 %v6110_v0  ;;  %6545 = vmatpush1.bf16.msra.mxu1 %v6544_v2  ;;  %v2630_v0 = vld [vmem:[%s12197_s6 + $0x7c8] sm:$0xff]  ;;  %v2643_v14 = vld [vmem:[%s12197_s6 + $0x830] sm:$0xff] }
 0x560   :  { %6113 = vmatprep.subr.bf16.mxu0 %v6112_v34  ;;  %6547 = vmatprep.subr.bf16.mxu1 %v6546_v30  ;;  %v2634_v2 = vld [vmem:[%s12197_s6 + $0x7e8] sm:$0xff]  ;;  %v2206_v34 = vsel %vm12262_vm7, %v7079_v21, %v7080_v4  ;;  %v6118_v30 = vpack.c.bf16 %v2625_v39, %v2621_v1  ;;  %v2635_v21 = vld [vmem:[%s12197_s6 + $0x7f0] sm:$0xff]  ;;  %v6122_v39 = vpack.c.bf16 %v2633_v51, %v2629_v52  ;;  %vm4283_vm7 = vcmask 125952  }
 0x561   :  { %v6120_v29 = vpack.c.bf16 %v2634_v2, %v2630_v0  ;;  %v2638_v4 = vld [vmem:[%s12197_s6 + $0x808] sm:$0xff]  ;;  %v2233_v1 = vmax.f32 %v9076_v57, %v2206_v34  ;;  %v2641_v0 = vld [vmem:[%s12197_s6 + $0x820] sm:$0xff]  ;;  %v2276_v57 = vsel %vm575_vm4, %v7084_v12, %v7085_v20  ;;  %v2648_v20 = vld [vmem:[%s12197_s6 + $0x858] sm:$0xff]  ;;  %v6560_v15 = vpack.c.bf16 %v2643_v14, %v2639_v45 }
 0x562   :  { %v2646_v34 = vld [vmem:[%s12197_s6 + $0x848] sm:$0xff]  ;;  %v2647_v52 = vld [vmem:[%s12197_s6 + $0x850] sm:$0xff]  ;;  %v2668_v45 = vld [vmem:[%s12197_s6 + $0x8f8] sm:$0xff] }
 0x563   :  { %6115 = vmatpush1.bf16.msra.mxu0 %v6114_v63  ;;  %6549 = vmatpush1.bf16.msra.mxu1 %v6548_v56  ;;  %v2640_v63 = vld [vmem:[%s12197_s6 + $0x818] sm:$0xff]  ;;  %v2303_v2 = vmax.f32 %v2233_v1, %v2276_v57  ;;  %v2650_v12 = vld [vmem:[%s12197_s6 + $0x868] sm:$0xff] }
 0x564   :  { %6117 = vmatprep.subr.bf16.mxu0 %v6116_v62  ;;  %6551 = vmatprep.subr.bf16.mxu1 %v6550_v58  ;;  %v2644_v56 = vld [vmem:[%s12197_s6 + $0x838] sm:$0xff]  ;;  %v6556_v62 = vpack.c.bf16 %v2635_v21, %v2631_v60  ;;  %v6124_v58 = vpack.c.bf16 %v2642_v16, %v2638_v4  ;;  %v2651_v60 = vld [vmem:[%s12197_s6 + $0x870] sm:$0xff]  ;;  %v2654_v21 = vld [vmem:[%s12197_s6 + $0x888] sm:$0xff] }
 0x565   :  { %v6558_v61 = vpack.c.bf16 %v2644_v56, %v2640_v63  ;;  %v2372_v51 = vmax.f32 %v2303_v2, %v2345_v23  ;;  %v2658_v4 = vld [vmem:[%s12197_s6 + $0x8a8] sm:$0xff]  ;;  %v2656_v16 = vld [vmem:[%s12197_s6 + $0x898] sm:$0xff]  ;;  %v6130_v56 = vpack.c.bf16 %v2649_v42, %v2645_v53  ;;  %v6564_v1 = vpack.c.bf16 %v2651_v60, %v2647_v52 }
 0x566   :  { %v2660_v63 = vld [vmem:[%s12197_s6 + $0x8b8] sm:$0xff]  ;;  %v2666_v57 = vld [vmem:[%s12197_s6 + $0x8e8] sm:$0xff] }
 0x567   :  { %6119 = vmatpush1.bf16.msra.mxu0 %v6118_v30  ;;  %6553 = vmatpush1.bf16.msra.mxu1 %v6552_v5  ;;  %v2652_v30 = vld [vmem:[%s12197_s6 + $0x878] sm:$0xff]  ;;  %v6126_v5 = vpack.c.bf16 %v2641_v0, %v2637_v26  ;;  %v2659_v26 = vld [vmem:[%s12197_s6 + $0x8b0] sm:$0xff]  ;;  %v2662_v0 = vld [vmem:[%s12197_s6 + $0x8c8] sm:$0xff] }
 0x568   :  { %6121 = vmatprep.subr.bf16.mxu0 %v6120_v29  ;;  %6555 = vmatprep.subr.bf16.mxu1 %v6554_v3  ;;  %v6128_v29 = vpack.c.bf16 %v2650_v12, %v2646_v34  ;;  %v6562_v3 = vpack.c.bf16 %v2652_v30, %v2648_v20  ;;  %v2664_v2 = vld [vmem:[%s12197_s6 + $0x8d8] sm:$0xff]  ;;  %v6136_v23 = vpack.c.bf16 %v2666_v57, %v2662_v0  ;;  %v2661_v12 = vld [vmem:[%s12197_s6 + $0x8c0] sm:$0xff]  ;;  %v2663_v30 = vld [vmem:[%s12197_s6 + $0x8d0] sm:$0xff] }
 0x569   :  { %v2665_v20 = vld [vmem:[%s12197_s6 + $0x8e0] sm:$0xff]  ;;  %v2670_v53 = vld [vmem:[%s12197_s6 + $0x908] sm:$0xff]  ;;  %v2672_v52 = vld [vmem:[%s12197_s6 + $0x918] sm:$0xff] }
 0x56a   :  { %v2674_v42 = vld [vmem:[%s12197_s6 + $0x928] sm:$0xff]  ;;  %v2677_v0 = vld [vmem:[%s12197_s6 + $0x940] sm:$0xff] }
 0x56b   :  { %6123 = vmatpush1.bf16.msra.mxu0 %v6122_v39  ;;  %6557 = vmatpush1.bf16.msra.mxu1 %v6556_v62  ;;  %v6132_v39 = vpack.c.bf16 %v2658_v4, %v2654_v21  ;;  %v2653_v62 = vld [vmem:[%s12197_s6 + $0x880] sm:$0xff]  ;;  %v6140_v60 = vpack.c.bf16 %v2674_v42, %v2670_v53 }
 0x56c   :  { %6125 = vmatprep.subr.bf16.mxu0 %v6124_v58  ;;  %6559 = vmatprep.subr.bf16.mxu1 %v6558_v61  ;;  %v2655_v58 = vld [vmem:[%s12197_s6 + $0x890] sm:$0xff]  ;;  %v6566_v61 = vpack.c.bf16 %v2660_v63, %v2656_v16  ;;  %v2669_v21 = vld [vmem:[%s12197_s6 + $0x900] sm:$0xff] }
 0x56d   :  { %v6568_v34 = vpack.c.bf16 %v2659_v26, %v2655_v58  ;;  %v2673_v4 = vld [vmem:[%s12197_s6 + $0x920] sm:$0xff]  ;;  %v2671_v16 = vld [vmem:[%s12197_s6 + $0x910] sm:$0xff] }
 0x56e   :  { %3398 = vmatmul.mubr.f32.vlgmr.msra.gmra.mrb[8].mxu0 %v9335_v10  ;;  %3895 = vmatmul.mubr.f32.vlgmr.msra.gmra.mrb[8].mxu1 %v9335_v10  ;;  %v2657_v10 = vld [vmem:[%s12197_s6 + $0x8a0] sm:$0xff]  ;;  %v6142_v58 = vpack.c.bf16 %v2673_v4, %v2669_v21  ;;  %v2696_v21 = vld [vmem:[%s12197_s6 + $0x9d8] sm:$0xff] }
 0x56f   :  { %6127 = vmatpush1.bf16.msra.mxu0 %v6126_v5  ;;  %3468 = vmatprep.mubr.f32.mxu0 %v2372_v51  ;;  %v6134_v14 = vpack.c.bf16 %v2657_v10, %v2653_v62  ;;  %v6570_v5 = vpack.c.bf16 %v2668_v45, %v2664_v2  ;;  %v2680_v62 = vld [vmem:[%s12197_s6 + $0x958] sm:$0xff]  ;;  %v2681_v57 = vld [vmem:[%s12197_s6 + $0x960] sm:$0xff]  ;;  %v2679_v2 = vld [vmem:[%s12197_s6 + $0x950] sm:$0xff] }
 0x570   :  { %6561 = vmatpush1.bf16.msra.mxu1 %v6560_v15  ;;  %3965 = vmatprep.mubr.f32.mxu1 %v2372_v51  ;;  %v2667_v15 = vld [vmem:[%s12197_s6 + $0x8f0] sm:$0xff]  ;;  %v2676_v51 = vld [vmem:[%s12197_s6 + $0x938] sm:$0xff]  ;;  %v2685_v53 = vld [vmem:[%s12197_s6 + $0x980] sm:$0xff] }
 0x571   :  { %6129 = vmatprep.subr.bf16.mxu0 %v6128_v29  ;;  %6563 = vmatprep.subr.bf16.mxu1 %v6562_v3  ;;  %v6138_v29 = vpack.c.bf16 %v2665_v20, %v2661_v12  ;;  %v6572_v3 = vpack.c.bf16 %v2667_v15, %v2663_v30  ;;  %v6574_v63 = vpack.c.bf16 %v2676_v51, %v2672_v52  ;;  %v2684_v10 = vld [vmem:[%s12197_s6 + $0x978] sm:$0xff]  ;;  %v2689_v42 = vld [vmem:[%s12197_s6 + $0x9a0] sm:$0xff]  ;;  %v2687_v52 = vld [vmem:[%s12197_s6 + $0x990] sm:$0xff] }
 0x572   :  { %v6578_v45 = vpack.c.bf16 %v2684_v10, %v2680_v62  ;;  %v2688_v12 = vld [vmem:[%s12197_s6 + $0x998] sm:$0xff]  ;;  %v6146_v30 = vpack.c.bf16 %v2681_v57, %v2677_v0  ;;  %v2695_v62 = vld [vmem:[%s12197_s6 + $0x9d0] sm:$0xff] }
 0x573   :  { %6131 = vmatpush1.bf16.msra.mxu0 %v6130_v56  ;;  %v2675_v56 = vld [vmem:[%s12197_s6 + $0x930] sm:$0xff]  ;;  %v2692_v20 = vld [vmem:[%s12197_s6 + $0x9b8] sm:$0xff] }
 0x574   :  { %6565 = vmatpush1.bf16.msra.mxu1 %v6564_v1  ;;  %6133 = vmatprep.subr.bf16.mxu0 %v6132_v39  ;;  %v2678_v1 = vld [vmem:[%s12197_s6 + $0x948] sm:$0xff]  ;;  %v6582_v51 = vpack.c.bf16 %v2692_v20, %v2688_v12  ;;  %v2700_v4 = vld [vmem:[%s12197_s6 + $0x9f8] sm:$0xff]  ;;  %v2703_v12 = vld [vmem:[%s12197_s6 + $0xa10] sm:$0xff] }
 0x575   :  { %6567 = vmatprep.subr.bf16.mxu1 %v6566_v61  ;;  %v2682_v39 = vld [vmem:[%s12197_s6 + $0x968] sm:$0xff]  ;;  %v6576_v61 = vpack.c.bf16 %v2675_v56, %v2671_v16  ;;  %v6150_v16 = vpack.c.bf16 %v2689_v42, %v2685_v53  ;;  %v6586_v10 = vpack.c.bf16 %v2700_v4, %v2696_v21  ;;  %v2704_v0 = vld [vmem:[%s12197_s6 + $0xa18] sm:$0xff]  ;;  %v2711_v21 = vld [vmem:[%s12197_s6 + $0xa50] sm:$0xff] }
 0x576   :  { %v6144_v26 = vpack.c.bf16 %v2682_v39, %v2678_v1  ;;  %v2693_v1 = vld [vmem:[%s12197_s6 + $0x9c0] sm:$0xff]  ;;  %v2708_v57 = vld [vmem:[%s12197_s6 + $0xa38] sm:$0xff] }
 0x577   :  { %6135 = vmatpush1.bf16.msra.mxu0 %v6134_v14  ;;  %v2683_v14 = vld [vmem:[%s12197_s6 + $0x970] sm:$0xff]  ;;  %v2697_v39 = vld [vmem:[%s12197_s6 + $0x9e0] sm:$0xff]  ;;  %v6590_v20 = vpack.c.bf16 %v2708_v57, %v2704_v0  ;;  %v2712_v53 = vld [vmem:[%s12197_s6 + $0xa58] sm:$0xff] }
 0x578   :  { %6569 = vmatpush1.bf16.msra.mxu1 %v6568_v34  ;;  %6137 = vmatprep.subr.bf16.mxu0 %v6136_v23  ;;  %v2686_v34 = vld [vmem:[%s12197_s6 + $0x988] sm:$0xff]  ;;  %v2716_v42 = vld [vmem:[%s12197_s6 + $0xa78] sm:$0xff]  ;;  %v2719_v0 = vld [vmem:[%s12197_s6 + $0xa90] sm:$0xff] }
 0x579   :  { %6571 = vmatprep.subr.bf16.mxu1 %v6570_v5  ;;  %v2690_v23 = vld [vmem:[%s12197_s6 + $0x9a8] sm:$0xff]  ;;  %v6580_v5 = vpack.c.bf16 %v2683_v14, %v2679_v2  ;;  %v6154_v2 = vpack.c.bf16 %v2697_v39, %v2693_v1  ;;  %v6594_v4 = vpack.c.bf16 %v2716_v42, %v2712_v53  ;;  %v2720_v1 = vld [vmem:[%s12197_s6 + $0xa98] sm:$0xff]  ;;  %v2727_v53 = vld [vmem:[%s12197_s6 + $0xad0] sm:$0xff] }
 0x57a   :  { %v6148_v15 = vpack.c.bf16 %v2690_v23, %v2686_v34  ;;  %v2701_v34 = vld [vmem:[%s12197_s6 + $0xa00] sm:$0xff]  ;;  %v2724_v39 = vld [vmem:[%s12197_s6 + $0xab8] sm:$0xff] }
 0x57b   :  { %6139 = vmatpush1.bf16.msra.mxu0 %v6138_v29  ;;  %v2691_v29 = vld [vmem:[%s12197_s6 + $0x9b0] sm:$0xff]  ;;  %v2705_v23 = vld [vmem:[%s12197_s6 + $0xa20] sm:$0xff]  ;;  %v6598_v57 = vpack.c.bf16 %v2724_v39, %v2720_v1 }
 0x57c   :  { %6573 = vmatpush1.bf16.msra.mxu1 %v6572_v3  ;;  %6141 = vmatprep.subr.bf16.mxu0 %v6140_v60  ;;  %v2694_v3 = vld [vmem:[%s12197_s6 + $0x9c8] sm:$0xff]  ;;  %v2735_v1 = vld [vmem:[%s12197_s6 + $0xb10] sm:$0xff] }
 0x57d   :  { %6575 = vmatprep.subr.bf16.mxu1 %v6574_v63  ;;  %v2698_v60 = vld [vmem:[%s12197_s6 + $0x9e8] sm:$0xff]  ;;  %v6584_v63 = vpack.c.bf16 %v2691_v29, %v2687_v52  ;;  %v6158_v52 = vpack.c.bf16 %v2705_v23, %v2701_v34  ;;  %v2728_v34 = vld [vmem:[%s12197_s6 + $0xad8] sm:$0xff] }
 0x57e   :  { %v6152_v56 = vpack.c.bf16 %v2698_v60, %v2694_v3  ;;  %v2709_v3 = vld [vmem:[%s12197_s6 + $0xa40] sm:$0xff]  ;;  %v2732_v23 = vld [vmem:[%s12197_s6 + $0xaf8] sm:$0xff] }
 0x57f   :  { %6143 = vmatpush1.bf16.msra.mxu0 %v6142_v58  ;;  %v2699_v58 = vld [vmem:[%s12197_s6 + $0x9f0] sm:$0xff]  ;;  %v2713_v60 = vld [vmem:[%s12197_s6 + $0xa60] sm:$0xff]  ;;  %v6602_v42 = vpack.c.bf16 %v2732_v23, %v2728_v34 }
 0x580   :  { %6577 = vmatpush1.bf16.msra.mxu1 %v6576_v61  ;;  %6145 = vmatprep.subr.bf16.mxu0 %v6144_v26  ;;  %v2702_v61 = vld [vmem:[%s12197_s6 + $0xa08] sm:$0xff]  ;;  %v2743_v34 = vld [vmem:[%s12197_s6 + $0xb50] sm:$0xff] }
 0x581   :  { %6579 = vmatprep.subr.bf16.mxu1 %v6578_v45  ;;  %v2706_v26 = vld [vmem:[%s12197_s6 + $0xa28] sm:$0xff]  ;;  %v6588_v45 = vpack.c.bf16 %v2699_v58, %v2695_v62  ;;  %v6162_v62 = vpack.c.bf16 %v2713_v60, %v2709_v3  ;;  %v2736_v3 = vld [vmem:[%s12197_s6 + $0xb18] sm:$0xff] }
 0x582   :  { %v6156_v14 = vpack.c.bf16 %v2706_v26, %v2702_v61  ;;  %v2717_v61 = vld [vmem:[%s12197_s6 + $0xa80] sm:$0xff]  ;;  %v2740_v60 = vld [vmem:[%s12197_s6 + $0xb38] sm:$0xff] }
 0x583   :  { %6147 = vmatpush1.bf16.msra.mxu0 %v6146_v30  ;;  %v2707_v30 = vld [vmem:[%s12197_s6 + $0xa30] sm:$0xff]  ;;  %v2721_v26 = vld [vmem:[%s12197_s6 + $0xaa0] sm:$0xff]  ;;  %v6606_v39 = vpack.c.bf16 %v2740_v60, %v2736_v3 }
 0x584   :  { %6581 = vmatpush1.bf16.msra.mxu1 %v6580_v5  ;;  %6149 = vmatprep.subr.bf16.mxu0 %v6148_v15  ;;  %v2710_v5 = vld [vmem:[%s12197_s6 + $0xa48] sm:$0xff]  ;;  %v2751_v3 = vld [vmem:[%s12197_s6 + $0xb90] sm:$0xff] }
 0x585   :  { %6583 = vmatprep.subr.bf16.mxu1 %v6582_v51  ;;  %v2714_v15 = vld [vmem:[%s12197_s6 + $0xa68] sm:$0xff]  ;;  %v6592_v51 = vpack.c.bf16 %v2707_v30, %v2703_v12  ;;  %v6166_v12 = vpack.c.bf16 %v2721_v26, %v2717_v61  ;;  %v2744_v61 = vld [vmem:[%s12197_s6 + $0xb58] sm:$0xff] }
 0x586   :  { %v6160_v29 = vpack.c.bf16 %v2714_v15, %v2710_v5  ;;  %v2725_v5 = vld [vmem:[%s12197_s6 + $0xac0] sm:$0xff]  ;;  %v2748_v26 = vld [vmem:[%s12197_s6 + $0xb78] sm:$0xff] }
 0x587   :  { %6151 = vmatpush1.bf16.msra.mxu0 %v6150_v16  ;;  %v2715_v16 = vld [vmem:[%s12197_s6 + $0xa70] sm:$0xff]  ;;  %v2729_v15 = vld [vmem:[%s12197_s6 + $0xae0] sm:$0xff]  ;;  %v6610_v23 = vpack.c.bf16 %v2748_v26, %v2744_v61  ;;  %v2208_v26 = vsel %vm12263_vm8, %v7094_v55, %v7095_v11  ;;  %v2772_v55 = vld [vmem:[%s12197_s6 + $0xc38] sm:$0xff]  ;;  %vm4301_vm8 = vcmask 130052  }
 0x588   :  { %6585 = vmatpush1.bf16.msra.mxu1 %v6584_v63  ;;  %6153 = vmatprep.subr.bf16.mxu0 %v6152_v56  ;;  %v2718_v63 = vld [vmem:[%s12197_s6 + $0xa88] sm:$0xff]  ;;  %v2759_v61 = vld [vmem:[%s12197_s6 + $0xbd0] sm:$0xff] }
 0x589   :  { %6587 = vmatprep.subr.bf16.mxu1 %v6586_v10  ;;  %v2722_v56 = vld [vmem:[%s12197_s6 + $0xaa8] sm:$0xff]  ;;  %v6596_v10 = vpack.c.bf16 %v2715_v16, %v2711_v21  ;;  %v6170_v21 = vpack.c.bf16 %v2729_v15, %v2725_v5  ;;  %v2752_v5 = vld [vmem:[%s12197_s6 + $0xb98] sm:$0xff] }
 0x58a   :  { %v6164_v58 = vpack.c.bf16 %v2722_v56, %v2718_v63  ;;  %v2733_v63 = vld [vmem:[%s12197_s6 + $0xb00] sm:$0xff]  ;;  %v2756_v15 = vld [vmem:[%s12197_s6 + $0xbb8] sm:$0xff] }
 0x58b   :  { %6155 = vmatpush1.bf16.msra.mxu0 %v6154_v2  ;;  %v2723_v2 = vld [vmem:[%s12197_s6 + $0xab0] sm:$0xff]  ;;  %v2737_v56 = vld [vmem:[%s12197_s6 + $0xb20] sm:$0xff]  ;;  %v6614_v60 = vpack.c.bf16 %v2756_v15, %v2752_v5  ;;  %v6622_v5 = vpack.c.bf16 %v2772_v55, %v2768_v35  ;;  %v2774_v15 = vld [vmem:[%s12197_s6 + $0xc48] sm:$0xff] }
 0x58c   :  { %6589 = vmatpush1.bf16.msra.mxu1 %v6588_v45  ;;  %6157 = vmatprep.subr.bf16.mxu0 %v6156_v14  ;;  %v2726_v45 = vld [vmem:[%s12197_s6 + $0xac8] sm:$0xff]  ;;  %v2792_v55 = vld [vmem:[%s12197_s6 + $0xcd8] sm:$0xff] }
 0x58d   :  { %6591 = vmatprep.subr.bf16.mxu1 %v6590_v20  ;;  %v2730_v14 = vld [vmem:[%s12197_s6 + $0xae8] sm:$0xff]  ;;  %v6600_v20 = vpack.c.bf16 %v2723_v2, %v2719_v0  ;;  %v6174_v0 = vpack.c.bf16 %v2737_v56, %v2733_v63  ;;  %v2760_v63 = vld [vmem:[%s12197_s6 + $0xbd8] sm:$0xff] }
 0x58e   :  { %v6168_v30 = vpack.c.bf16 %v2730_v14, %v2726_v45  ;;  %v2741_v45 = vld [vmem:[%s12197_s6 + $0xb40] sm:$0xff]  ;;  %v2764_v56 = vld [vmem:[%s12197_s6 + $0xbf8] sm:$0xff]  ;;  %v2794_v35 = vld [vmem:[%s12197_s6 + $0xce8] sm:$0xff] }
 0x58f   :  { %6159 = vmatpush1.bf16.msra.mxu0 %v6158_v52  ;;  %v2731_v52 = vld [vmem:[%s12197_s6 + $0xaf0] sm:$0xff]  ;;  %v2745_v14 = vld [vmem:[%s12197_s6 + $0xb60] sm:$0xff] }
 0x590   :  { %6593 = vmatpush1.bf16.msra.mxu1 %v6592_v51  ;;  %6161 = vmatprep.subr.bf16.mxu0 %v6160_v29  ;;  %v2734_v51 = vld [vmem:[%s12197_s6 + $0xb08] sm:$0xff] }
 0x591   :  { %6595 = vmatprep.subr.bf16.mxu1 %v6594_v4  ;;  %v2738_v29 = vld [vmem:[%s12197_s6 + $0xb28] sm:$0xff]  ;;  %v6604_v4 = vpack.c.bf16 %v2731_v52, %v2727_v53  ;;  %v6178_v53 = vpack.c.bf16 %v2745_v14, %v2741_v45  ;;  %v2278_v14 = vsel %vm575_vm4, %v7099_v48, %v7100_v36  ;;  %v2771_v48 = vld [vmem:[%s12197_s6 + $0xc30] sm:$0xff] }
 0x592   :  { %v6172_v16 = vpack.c.bf16 %v2738_v29, %v2734_v51  ;;  %v2749_v51 = vld [vmem:[%s12197_s6 + $0xb80] sm:$0xff]  ;;  %v2770_v45 = vld [vmem:[%s12197_s6 + $0xc28] sm:$0xff] }
 0x593   :  { %6163 = vmatpush1.bf16.msra.mxu0 %v6162_v62  ;;  %v2739_v62 = vld [vmem:[%s12197_s6 + $0xb30] sm:$0xff]  ;;  %v2753_v29 = vld [vmem:[%s12197_s6 + $0xba0] sm:$0xff] }
 0x594   :  { %6597 = vmatpush1.bf16.msra.mxu1 %v6596_v10  ;;  %6165 = vmatprep.subr.bf16.mxu0 %v6164_v58  ;;  %v2742_v10 = vld [vmem:[%s12197_s6 + $0xb48] sm:$0xff] }
 0x595   :  { %6599 = vmatprep.subr.bf16.mxu1 %v6598_v57  ;;  %v2746_v58 = vld [vmem:[%s12197_s6 + $0xb68] sm:$0xff]  ;;  %v6608_v57 = vpack.c.bf16 %v2739_v62, %v2735_v1  ;;  %v6182_v1 = vpack.c.bf16 %v2753_v29, %v2749_v51  ;;  %v6624_v51 = vpack.c.bf16 %v2771_v48, %v2767_v19  ;;  %v2773_v29 = vld [vmem:[%s12197_s6 + $0xc40] sm:$0xff]  ;;  %v2795_v19 = vld [vmem:[%s12197_s6 + $0xcf0] sm:$0xff] }
 0x596   :  { %v6176_v2 = vpack.c.bf16 %v2746_v58, %v2742_v10  ;;  %v2757_v10 = vld [vmem:[%s12197_s6 + $0xbc0] sm:$0xff]  ;;  %v2798_v48 = vld [vmem:[%s12197_s6 + $0xd08] sm:$0xff] }
 0x597   :  { %6167 = vmatpush1.bf16.msra.mxu0 %v6166_v12  ;;  %v2747_v12 = vld [vmem:[%s12197_s6 + $0xb70] sm:$0xff]  ;;  %v2761_v58 = vld [vmem:[%s12197_s6 + $0xbe0] sm:$0xff] }
 0x598   :  { %6601 = vmatpush1.bf16.msra.mxu1 %v6600_v20  ;;  %6169 = vmatprep.subr.bf16.mxu0 %v6168_v30  ;;  %v2750_v20 = vld [vmem:[%s12197_s6 + $0xb88] sm:$0xff]  ;;  %v6186_v11 = vpack.c.bf16 %v2761_v58, %v2757_v10 }
 0x599   :  { %6603 = vmatprep.subr.bf16.mxu1 %v6602_v42  ;;  %v2754_v30 = vld [vmem:[%s12197_s6 + $0xba8] sm:$0xff]  ;;  %v6612_v42 = vpack.c.bf16 %v2747_v12, %v2743_v34  ;;  %v2765_v12 = vld [vmem:[%s12197_s6 + $0xc00] sm:$0xff] }
 0x59a   :  { %v6180_v52 = vpack.c.bf16 %v2754_v30, %v2750_v20  ;;  %v2769_v20 = vld [vmem:[%s12197_s6 + $0xc20] sm:$0xff]  ;;  %v2235_v30 = vmax.f32 %v9109_v18, %v2208_v26 }
 0x59b   :  { %6171 = vmatpush1.bf16.msra.mxu0 %v6170_v21  ;;  %v2755_v21 = vld [vmem:[%s12197_s6 + $0xbb0] sm:$0xff]  ;;  %v6190_v18 = vpack.c.bf16 %v2769_v20, %v2765_v12  ;;  %v2781_v26 = vld [vmem:[%s12197_s6 + $0xc80] sm:$0xff] }
 0x59c   :  { %6605 = vmatpush1.bf16.msra.mxu1 %v6604_v4  ;;  %6173 = vmatprep.subr.bf16.mxu0 %v6172_v16  ;;  %v2758_v4 = vld [vmem:[%s12197_s6 + $0xbc8] sm:$0xff]  ;;  %v2305_v36 = vmax.f32 %v2235_v30, %v2278_v14  ;;  %v2789_v12 = vld [vmem:[%s12197_s6 + $0xcc0] sm:$0xff]  ;;  %v2791_v30 = vld [vmem:[%s12197_s6 + $0xcd0] sm:$0xff] }
 0x59d   :  { %6607 = vmatprep.subr.bf16.mxu1 %v6606_v39  ;;  %v2762_v16 = vld [vmem:[%s12197_s6 + $0xbe8] sm:$0xff]  ;;  %v6616_v39 = vpack.c.bf16 %v2755_v21, %v2751_v3  ;;  %v2777_v3 = vld [vmem:[%s12197_s6 + $0xc60] sm:$0xff]  ;;  %v12264_v21 = vunpack.i.l.bf16 %v9354_v22  ;;  %v2784_v22 = vld [vmem:[%s12197_s6 + $0xc98] sm:$0xff] }
 0x59e   :  { %v6184_v62 = vpack.c.bf16 %v2762_v16, %v2758_v4  ;;  %v6194_v10 = vpack.c.bf16 %v2777_v3, %v2773_v29  ;;  %v2793_v20 = vld [vmem:[%s12197_s6 + $0xce0] sm:$0xff]  ;;  %v2799_v3 = vld [vmem:[%s12197_s6 + $0xd10] sm:$0xff] }
 0x59f   :  { %6175 = vmatpush1.bf16.msra.mxu0 %v6174_v0  ;;  %v6618_v0 = vpack.c.bf16 %v2764_v56, %v2760_v63  ;;  %v2347_v4 = vsel %vm654_vm5, %v12264_v21, %v7105_v47  ;;  %v2779_v63 = vld [vmem:[%s12197_s6 + $0xc70] sm:$0xff]  ;;  %v2782_v56 = vld [vmem:[%s12197_s6 + $0xc88] sm:$0xff]  ;;  %v2788_v47 = vld [vmem:[%s12197_s6 + $0xcb8] sm:$0xff] }
 0x5a0   :  { %6609 = vmatpush1.bf16.msra.mxu1 %v6608_v57  ;;  %6177 = vmatprep.subr.bf16.mxu0 %v6176_v2  ;;  %v2763_v57 = vld [vmem:[%s12197_s6 + $0xbf0] sm:$0xff]  ;;  %v2766_v2 = vld [vmem:[%s12197_s6 + $0xc08] sm:$0xff]  ;;  %v2801_v29 = vld [vmem:[%s12197_s6 + $0xd20] sm:$0xff] }
 0x5a1   :  { %6611 = vmatprep.subr.bf16.mxu1 %v6610_v23  ;;  %v6620_v34 = vpack.c.bf16 %v2763_v57, %v2759_v61  ;;  %v6188_v23 = vpack.c.bf16 %v2770_v45, %v2766_v2  ;;  %v2783_v57 = vld [vmem:[%s12197_s6 + $0xc90] sm:$0xff]  ;;  %v2790_v45 = vld [vmem:[%s12197_s6 + $0xcc8] sm:$0xff] }
 0x5a2   :  { %v2787_v2 = vld [vmem:[%s12197_s6 + $0xcb0] sm:$0xff] }
 0x5a3   :  { %6179 = vmatpush1.bf16.msra.mxu0 %v6178_v53  ;;  %v2778_v53 = vld [vmem:[%s12197_s6 + $0xc68] sm:$0xff]  ;;  %v2803_v21 = vld [vmem:[%s12197_s6 + $0xd30] sm:$0xff] }
 0x5a4   :  { %6613 = vmatpush1.bf16.msra.mxu1 %v6612_v42  ;;  %6181 = vmatprep.subr.bf16.mxu0 %v6180_v52  ;;  %v2776_v42 = vld [vmem:[%s12197_s6 + $0xc58] sm:$0xff]  ;;  %v6192_v16 = vpack.c.bf16 %v2778_v53, %v2774_v15 }
 0x5a5   :  { %6615 = vmatprep.subr.bf16.mxu1 %v6614_v60  ;;  %v2780_v52 = vld [vmem:[%s12197_s6 + $0xc78] sm:$0xff]  ;;  %v2775_v60 = vld [vmem:[%s12197_s6 + $0xc50] sm:$0xff] }
 0x5a6   :  { %v6628_v58 = vpack.c.bf16 %v2779_v63, %v2775_v60  ;;  %v2800_v15 = vld [vmem:[%s12197_s6 + $0xd18] sm:$0xff] }
 0x5a7   :  { %6183 = vmatpush1.bf16.msra.mxu0 %v6182_v1  ;;  %v2786_v1 = vld [vmem:[%s12197_s6 + $0xca8] sm:$0xff]  ;;  %v2804_v53 = vld [vmem:[%s12197_s6 + $0xd38] sm:$0xff] }
 0x5a8   :  { %6617 = vmatpush1.bf16.msra.mxu1 %v6616_v39  ;;  %6185 = vmatprep.subr.bf16.mxu0 %v6184_v62  ;;  %v2374_v39 = vmax.f32 %v2305_v36, %v2347_v4  ;;  %v6626_v62 = vpack.c.bf16 %v2780_v52, %v2776_v42  ;;  %v6196_v61 = vpack.c.bf16 %v2786_v1, %v2782_v56  ;;  %v2802_v36 = vld [vmem:[%s12197_s6 + $0xd28] sm:$0xff]  ;;  %v2808_v63 = vld [vmem:[%s12197_s6 + $0xd58] sm:$0xff] }
 0x5a9   :  { %6619 = vmatprep.subr.bf16.mxu1 %v6618_v0  ;;  %v2785_v0 = vld [vmem:[%s12197_s6 + $0xca0] sm:$0xff]  ;;  %v6636_v42 = vpack.c.bf16 %v2795_v19, %v2791_v30  ;;  %v6204_v52 = vpack.c.bf16 %v2802_v36, %v2798_v48  ;;  %v6638_v60 = vpack.c.bf16 %v2804_v53, %v2800_v15  ;;  %v2806_v4 = vld [vmem:[%s12197_s6 + $0xd48] sm:$0xff]  ;;  %v2812_v56 = vld [vmem:[%s12197_s6 + $0xd78] sm:$0xff] }
 0x5aa   :  { %v6198_v14 = vpack.c.bf16 %v2785_v0, %v2781_v26  ;;  %v2814_v26 = vld [vmem:[%s12197_s6 + $0xd88] sm:$0xff]  ;;  %v2824_v30 = vld [vmem:[%s12197_s6 + $0xdd8] sm:$0xff]  ;;  %v2821_v15 = vld [vmem:[%s12197_s6 + $0xdc0] sm:$0xff] }
 0x5ab   :  { %6187 = vmatpush1.bf16.msra.mxu0 %v6186_v11  ;;  %v2796_v11 = vld [vmem:[%s12197_s6 + $0xcf8] sm:$0xff]  ;;  %v2818_v0 = vld [vmem:[%s12197_s6 + $0xda8] sm:$0xff]  ;;  %v2825_v53 = vld [vmem:[%s12197_s6 + $0xde0] sm:$0xff] }
 0x5ac   :  { %6621 = vmatpush1.bf16.msra.mxu1 %v6620_v34  ;;  %6189 = vmatprep.subr.bf16.mxu0 %v6188_v23  ;;  %v6632_v34 = vpack.c.bf16 %v2787_v2, %v2783_v57  ;;  %v6200_v23 = vpack.c.bf16 %v2794_v35, %v2790_v45  ;;  %v2816_v57 = vld [vmem:[%s12197_s6 + $0xd98] sm:$0xff]  ;;  %v6212_v35 = vpack.c.bf16 %v2818_v0, %v2814_v26 }
 0x5ad   :  { %6623 = vmatprep.subr.bf16.mxu1 %v6622_v5  ;;  %v6634_v5 = vpack.c.bf16 %v2796_v11, %v2792_v55  ;;  %v2813_v55 = vld [vmem:[%s12197_s6 + $0xd80] sm:$0xff] }
 0x5ae   :  { %3469 = vmatmul.mubr.f32.vlgmr.msra.gmra.mrb[8].mxu0 %v9400_v44  ;;  %v2817_v11 = vld [vmem:[%s12197_s6 + $0xda0] sm:$0xff] }
 0x5af   :  { %3966 = vmatmul.mubr.f32.vlgmr.msra.gmra.mrb[8].mxu1 %v9400_v44  ;;  %6191 = vmatpush1.bf16.msra.mxu0 %v6190_v18  ;;  %v6630_v44 = vpack.c.bf16 %v2788_v47, %v2784_v22  ;;  %v6202_v18 = vpack.c.bf16 %v2793_v20, %v2789_v12  ;;  %v2805_v22 = vld [vmem:[%s12197_s6 + $0xd40] sm:$0xff]  ;;  %v2822_v12 = vld [vmem:[%s12197_s6 + $0xdc8] sm:$0xff]  ;;  %v6214_v19 = vpack.c.bf16 %v2817_v11, %v2813_v55 }
 0x5b0   :  { %3539 = vmatprep.mubr.f32.mxu0 %v2374_v39  ;;  %6625 = vmatpush1.bf16.msra.mxu1 %v6624_v51  ;;  %v2797_v51 = vld [vmem:[%s12197_s6 + $0xd00] sm:$0xff]  ;;  %v2826_v20 = vld [vmem:[%s12197_s6 + $0xde8] sm:$0xff] }
 0x5b1   :  { %4036 = vmatprep.mubr.f32.mxu1 %v2374_v39  ;;  %6193 = vmatprep.subr.bf16.mxu0 %v6192_v16  ;;  %v2810_v16 = vld [vmem:[%s12197_s6 + $0xd68] sm:$0xff]  ;;  %v6206_v1 = vpack.c.bf16 %v2801_v29, %v2797_v51  ;;  %v6640_v39 = vpack.c.bf16 %v2803_v21, %v2799_v3  ;;  %v2809_v47 = vld [vmem:[%s12197_s6 + $0xd60] sm:$0xff]  ;;  %v6216_v36 = vpack.c.bf16 %v2826_v20, %v2822_v12  ;;  %v2832_v3 = vld [vmem:[%s12197_s6 + $0xe18] sm:$0xff] }
 0x5b2   :  { %6627 = vmatprep.subr.bf16.mxu1 %v6626_v62  ;;  %v6208_v62 = vpack.c.bf16 %v2810_v16, %v2806_v4  ;;  %v6210_v2 = vpack.c.bf16 %v2809_v47, %v2805_v22  ;;  %v2830_v51 = vld [vmem:[%s12197_s6 + $0xe08] sm:$0xff]  ;;  %v6218_v21 = vpack.c.bf16 %v2825_v53, %v2821_v15 }
 0x5b3   :  { %6195 = vmatpush1.bf16.msra.mxu0 %v6194_v10  ;;  %v2807_v10 = vld [vmem:[%s12197_s6 + $0xd50] sm:$0xff]  ;;  %v2834_v29 = vld [vmem:[%s12197_s6 + $0xe28] sm:$0xff] }
 0x5b4   :  { %6629 = vmatpush1.bf16.msra.mxu1 %v6628_v58  ;;  %6197 = vmatprep.subr.bf16.mxu0 %v6196_v61  ;;  %v6642_v58 = vpack.c.bf16 %v2812_v56, %v2808_v63  ;;  %v2811_v61 = vld [vmem:[%s12197_s6 + $0xd70] sm:$0xff]  ;;  %v6220_v16 = vpack.c.bf16 %v2834_v29, %v2830_v51  ;;  %v2829_v63 = vld [vmem:[%s12197_s6 + $0xe00] sm:$0xff]  ;;  %v2838_v22 = vld [vmem:[%s12197_s6 + $0xe48] sm:$0xff] }
 0x5b5   :  { %6631 = vmatprep.subr.bf16.mxu1 %v6630_v44  ;;  %v2820_v44 = vld [vmem:[%s12197_s6 + $0xdb8] sm:$0xff]  ;;  %v6644_v45 = vpack.c.bf16 %v2811_v61, %v2807_v10  ;;  %v2833_v56 = vld [vmem:[%s12197_s6 + $0xe20] sm:$0xff]  ;;  %v2842_v47 = vld [vmem:[%s12197_s6 + $0xe68] sm:$0xff] }
 0x5b6   :  { %v2840_v10 = vld [vmem:[%s12197_s6 + $0xe58] sm:$0xff]  ;;  %v6222_v61 = vpack.c.bf16 %v2833_v56, %v2829_v63  ;;  %v6224_v0 = vpack.c.bf16 %v2842_v47, %v2838_v22  ;;  %v2846_v55 = vld [vmem:[%s12197_s6 + $0xe88] sm:$0xff] }
 0x5b7   :  { %6199 = vmatpush1.bf16.msra.mxu0 %v6198_v14  ;;  %v2815_v14 = vld [vmem:[%s12197_s6 + $0xd90] sm:$0xff]  ;;  %v2850_v11 = vld [vmem:[%s12197_s6 + $0xea8] sm:$0xff] }
 0x5b8   :  { %6633 = vmatpush1.bf16.msra.mxu1 %v6632_v34  ;;  %6201 = vmatprep.subr.bf16.mxu0 %v6200_v23  ;;  %v6646_v34 = vpack.c.bf16 %v2820_v44, %v2816_v57  ;;  %v2819_v23 = vld [vmem:[%s12197_s6 + $0xdb0] sm:$0xff]  ;;  %v2837_v57 = vld [vmem:[%s12197_s6 + $0xe40] sm:$0xff]  ;;  %v6228_v20 = vpack.c.bf16 %v2850_v11, %v2846_v55  ;;  %v2854_v15 = vld [vmem:[%s12197_s6 + $0xec8] sm:$0xff] }
 0x5b9   :  { %6635 = vmatprep.subr.bf16.mxu1 %v6634_v5  ;;  %v2828_v5 = vld [vmem:[%s12197_s6 + $0xdf8] sm:$0xff]  ;;  %v6648_v48 = vpack.c.bf16 %v2819_v23, %v2815_v14  ;;  %v2841_v44 = vld [vmem:[%s12197_s6 + $0xe60] sm:$0xff]  ;;  %v2858_v53 = vld [vmem:[%s12197_s6 + $0xee8] sm:$0xff] }
 0x5ba   :  { %v2848_v14 = vld [vmem:[%s12197_s6 + $0xe98] sm:$0xff]  ;;  %v6226_v23 = vpack.c.bf16 %v2841_v44, %v2837_v57  ;;  %v6232_v29 = vpack.c.bf16 %v2858_v53, %v2854_v15  ;;  %v2862_v63 = vld [vmem:[%s12197_s6 + $0xf08] sm:$0xff] }
 0x5bb   :  { %6203 = vmatpush1.bf16.msra.mxu0 %v6202_v18  ;;  %v2823_v18 = vld [vmem:[%s12197_s6 + $0xdd0] sm:$0xff]  ;;  %v2866_v56 = vld [vmem:[%s12197_s6 + $0xf28] sm:$0xff] }
 0x5bc   :  { %6637 = vmatpush1.bf16.msra.mxu1 %v6636_v42  ;;  %6205 = vmatprep.subr.bf16.mxu0 %v6204_v52  ;;  %v6650_v42 = vpack.c.bf16 %v2828_v5, %v2824_v30  ;;  %v2827_v52 = vld [vmem:[%s12197_s6 + $0xdf0] sm:$0xff]  ;;  %v2845_v30 = vld [vmem:[%s12197_s6 + $0xe80] sm:$0xff]  ;;  %v6236_v47 = vpack.c.bf16 %v2866_v56, %v2862_v63  ;;  %v2870_v57 = vld [vmem:[%s12197_s6 + $0xf48] sm:$0xff]  ;;  %v12266_v63 = vunpack.i.l.bf16 %v9435_v38 }
 0x5bd   :  { %6639 = vmatprep.subr.bf16.mxu1 %v6638_v60  ;;  %v2836_v60 = vld [vmem:[%s12197_s6 + $0xe38] sm:$0xff]  ;;  %v6652_v4 = vpack.c.bf16 %v2827_v52, %v2823_v18  ;;  %v2849_v5 = vld [vmem:[%s12197_s6 + $0xea0] sm:$0xff]  ;;  %v2874_v44 = vld [vmem:[%s12197_s6 + $0xf68] sm:$0xff] }
 0x5be   :  { %v2856_v18 = vld [vmem:[%s12197_s6 + $0xed8] sm:$0xff]  ;;  %v6230_v52 = vpack.c.bf16 %v2849_v5, %v2845_v30  ;;  %v6240_v11 = vpack.c.bf16 %v2874_v44, %v2870_v57  ;;  %v2878_v30 = vld [vmem:[%s12197_s6 + $0xf88] sm:$0xff] }
 0x5bf   :  { %6207 = vmatpush1.bf16.msra.mxu0 %v6206_v1  ;;  %v2831_v1 = vld [vmem:[%s12197_s6 + $0xe10] sm:$0xff]  ;;  %v2882_v5 = vld [vmem:[%s12197_s6 + $0xfa8] sm:$0xff]  ;;  %v2900_v57 = vld [vmem:[%s12197_s6 + $0x1038] sm:$0xff] }
 0x5c0   :  { %6641 = vmatpush1.bf16.msra.mxu1 %v6640_v39  ;;  %6209 = vmatprep.subr.bf16.mxu0 %v6208_v62  ;;  %v6654_v39 = vpack.c.bf16 %v2836_v60, %v2832_v3  ;;  %v2835_v62 = vld [vmem:[%s12197_s6 + $0xe30] sm:$0xff]  ;;  %v2853_v3 = vld [vmem:[%s12197_s6 + $0xec0] sm:$0xff]  ;;  %v6244_v53 = vpack.c.bf16 %v2882_v5, %v2878_v30  ;;  %v2902_v5 = vld [vmem:[%s12197_s6 + $0x1048] sm:$0xff] }
 0x5c1   :  { %6643 = vmatprep.subr.bf16.mxu1 %v6642_v58  ;;  %v2844_v58 = vld [vmem:[%s12197_s6 + $0xe78] sm:$0xff]  ;;  %v6656_v26 = vpack.c.bf16 %v2835_v62, %v2831_v1  ;;  %v2857_v60 = vld [vmem:[%s12197_s6 + $0xee0] sm:$0xff] }
 0x5c2   :  { %v2864_v1 = vld [vmem:[%s12197_s6 + $0xf18] sm:$0xff]  ;;  %v6234_v62 = vpack.c.bf16 %v2857_v60, %v2853_v3  ;;  %v2886_v3 = vld [vmem:[%s12197_s6 + $0xfc8] sm:$0xff] }
 0x5c3   :  { %6211 = vmatpush1.bf16.msra.mxu0 %v6210_v2  ;;  %v2839_v2 = vld [vmem:[%s12197_s6 + $0xe50] sm:$0xff]  ;;  %v2890_v60 = vld [vmem:[%s12197_s6 + $0xfe8] sm:$0xff] }
 0x5c4   :  { %6645 = vmatpush1.bf16.msra.mxu1 %v6644_v45  ;;  %6213 = vmatprep.subr.bf16.mxu0 %v6212_v35  ;;  %v6658_v45 = vpack.c.bf16 %v2844_v58, %v2840_v10  ;;  %v2843_v35 = vld [vmem:[%s12197_s6 + $0xe70] sm:$0xff]  ;;  %v2861_v10 = vld [vmem:[%s12197_s6 + $0xf00] sm:$0xff] }
 0x5c5   :  { %6647 = vmatprep.subr.bf16.mxu1 %v6646_v34  ;;  %v2852_v34 = vld [vmem:[%s12197_s6 + $0xeb8] sm:$0xff]  ;;  %v6660_v12 = vpack.c.bf16 %v2843_v35, %v2839_v2  ;;  %v2865_v58 = vld [vmem:[%s12197_s6 + $0xf20] sm:$0xff] }
 0x5c6   :  { %v2872_v2 = vld [vmem:[%s12197_s6 + $0xf58] sm:$0xff]  ;;  %v6238_v35 = vpack.c.bf16 %v2865_v58, %v2861_v10  ;;  %v2891_v58 = vld [vmem:[%s12197_s6 + $0xff0] sm:$0xff] }
 0x5c7   :  { %6215 = vmatpush1.bf16.msra.mxu0 %v6214_v19  ;;  %v2847_v19 = vld [vmem:[%s12197_s6 + $0xe90] sm:$0xff] }
 0x5c8   :  { %6649 = vmatpush1.bf16.msra.mxu1 %v6648_v48  ;;  %6217 = vmatprep.subr.bf16.mxu0 %v6216_v36  ;;  %v6662_v48 = vpack.c.bf16 %v2852_v34, %v2848_v14  ;;  %v2851_v36 = vld [vmem:[%s12197_s6 + $0xeb0] sm:$0xff]  ;;  %v2869_v14 = vld [vmem:[%s12197_s6 + $0xf40] sm:$0xff] }
 0x5c9   :  { %6651 = vmatprep.subr.bf16.mxu1 %v6650_v42  ;;  %v2860_v42 = vld [vmem:[%s12197_s6 + $0xef8] sm:$0xff]  ;;  %v6664_v51 = vpack.c.bf16 %v2851_v36, %v2847_v19  ;;  %v2873_v34 = vld [vmem:[%s12197_s6 + $0xf60] sm:$0xff] }
 0x5ca   :  { %v2880_v19 = vld [vmem:[%s12197_s6 + $0xf98] sm:$0xff]  ;;  %v6242_v36 = vpack.c.bf16 %v2873_v34, %v2869_v14  ;;  %v12268_v34 = vunpack.i.h.bf16 %v9393_v32 }
 0x5cb   :  { %6219 = vmatpush1.bf16.msra.mxu0 %v6218_v21  ;;  %v2855_v21 = vld [vmem:[%s12197_s6 + $0xed0] sm:$0xff] }
 0x5cc   :  { %6653 = vmatpush1.bf16.msra.mxu1 %v6652_v4  ;;  %6221 = vmatprep.subr.bf16.mxu0 %v6220_v16  ;;  %v6666_v4 = vpack.c.bf16 %v2860_v42, %v2856_v18  ;;  %v2859_v16 = vld [vmem:[%s12197_s6 + $0xef0] sm:$0xff]  ;;  %v2877_v18 = vld [vmem:[%s12197_s6 + $0xf80] sm:$0xff] }
 0x5cd   :  { %6655 = vmatprep.subr.bf16.mxu1 %v6654_v39  ;;  %v2868_v39 = vld [vmem:[%s12197_s6 + $0xf38] sm:$0xff]  ;;  %v6668_v22 = vpack.c.bf16 %v2859_v16, %v2855_v21  ;;  %v2881_v42 = vld [vmem:[%s12197_s6 + $0xfa0] sm:$0xff]  ;;  %v12265_v16 = vunpack.i.h.bf16 %v9435_v38  ;;  %v2887_v38 = vld [vmem:[%s12197_s6 + $0xfd0] sm:$0xff] }
 0x5ce   :  { %v2888_v21 = vld [vmem:[%s12197_s6 + $0xfd8] sm:$0xff] }
 0x5cf   :  { %6223 = vmatpush1.bf16.msra.mxu0 %v6222_v61  ;;  %v2863_v61 = vld [vmem:[%s12197_s6 + $0xf10] sm:$0xff]  ;;  %v2210_v56 = vsel %vm12267_vm9, %v12266_v63, %v12265_v16  ;;  %v2916_v16 = vld [vmem:[%s12197_s6 + $0x10b8] sm:$0xff]  ;;  %vm4305_vm9 = vcmask 123904  }
 0x5d0   :  { %6657 = vmatpush1.bf16.msra.mxu1 %v6656_v26  ;;  %6225 = vmatprep.subr.bf16.mxu0 %v6224_v0  ;;  %v6670_v26 = vpack.c.bf16 %v2868_v39, %v2864_v1  ;;  %v2867_v0 = vld [vmem:[%s12197_s6 + $0xf30] sm:$0xff]  ;;  %v6246_v1 = vpack.c.bf16 %v2881_v42, %v2877_v18  ;;  %v2237_v44 = vmax.f32 %v9146_v27, %v2210_v56  ;;  %v12269_v27 = vunpack.i.l.bf16 %v9393_v32  ;;  %v2901_v42 = vld [vmem:[%s12197_s6 + $0x1040] sm:$0xff] }
 0x5d1   :  { %6659 = vmatprep.subr.bf16.mxu1 %v6658_v45  ;;  %v2876_v45 = vld [vmem:[%s12197_s6 + $0xf78] sm:$0xff]  ;;  %v6672_v55 = vpack.c.bf16 %v2867_v0, %v2863_v61  ;;  %v2894_v61 = vld [vmem:[%s12197_s6 + $0x1008] sm:$0xff] }
 0x5d2   :  { %v2896_v0 = vld [vmem:[%s12197_s6 + $0x1018] sm:$0xff] }
 0x5d3   :  { %6227 = vmatpush1.bf16.msra.mxu0 %v6226_v23  ;;  %v2871_v23 = vld [vmem:[%s12197_s6 + $0xf50] sm:$0xff]  ;;  %v6686_v14 = vpack.c.bf16 %v2900_v57, %v2896_v0 }
 0x5d4   :  { %6661 = vmatpush1.bf16.msra.mxu1 %v6660_v12  ;;  %6229 = vmatprep.subr.bf16.mxu0 %v6228_v20  ;;  %v6674_v12 = vpack.c.bf16 %v2876_v45, %v2872_v2  ;;  %v2875_v20 = vld [vmem:[%s12197_s6 + $0xf70] sm:$0xff]  ;;  %v6684_v45 = vpack.c.bf16 %v2891_v58, %v2887_v38  ;;  %v2918_v38 = vld [vmem:[%s12197_s6 + $0x10c8] sm:$0xff]  ;;  %v2920_v58 = vld [vmem:[%s12197_s6 + $0x10d8] sm:$0xff] }
 0x5d5   :  { %6663 = vmatprep.subr.bf16.mxu1 %v6662_v48  ;;  %v2884_v48 = vld [vmem:[%s12197_s6 + $0xfb8] sm:$0xff]  ;;  %v6676_v15 = vpack.c.bf16 %v2875_v20, %v2871_v23  ;;  %v2280_v23 = vsel %vm575_vm4, %v12269_v27, %v12268_v34  ;;  %v2899_v20 = vld [vmem:[%s12197_s6 + $0x1030] sm:$0xff] }
 0x5d6   :  { %v2307_v30 = vmax.f32 %v2237_v44, %v2280_v23  ;;  %v2917_v44 = vld [vmem:[%s12197_s6 + $0x10c0] sm:$0xff]  ;;  %v2928_v34 = vld [vmem:[%s12197_s6 + $0x1118] sm:$0xff] }
 0x5d7   :  { %6231 = vmatpush1.bf16.msra.mxu0 %v6230_v52  ;;  %v2879_v52 = vld [vmem:[%s12197_s6 + $0xf90] sm:$0xff]  ;;  %v2932_v27 = vld [vmem:[%s12197_s6 + $0x1138] sm:$0xff] }
 0x5d8   :  { %6665 = vmatpush1.bf16.msra.mxu1 %v6664_v51  ;;  %6233 = vmatprep.subr.bf16.mxu0 %v6232_v29  ;;  %v6678_v51 = vpack.c.bf16 %v2884_v48, %v2880_v19  ;;  %v2883_v29 = vld [vmem:[%s12197_s6 + $0xfb0] sm:$0xff]  ;;  %v2906_v19 = vld [vmem:[%s12197_s6 + $0x1068] sm:$0xff]  ;;  %v12270_v48 = vunpack.i.l.bf16 %v9473_v24  ;;  %v2905_v24 = vld [vmem:[%s12197_s6 + $0x1060] sm:$0xff] }
 0x5d9   :  { %6667 = vmatprep.subr.bf16.mxu1 %v6666_v4  ;;  %v2892_v4 = vld [vmem:[%s12197_s6 + $0xff8] sm:$0xff]  ;;  %v6680_v39 = vpack.c.bf16 %v2883_v29, %v2879_v52  ;;  %v6256_v52 = vpack.c.bf16 %v2906_v19, %v2902_v5  ;;  %v2910_v29 = vld [vmem:[%s12197_s6 + $0x1088] sm:$0xff]  ;;  %v6258_v63 = vpack.c.bf16 %v2905_v24, %v2901_v42  ;;  %v2929_v5 = vld [vmem:[%s12197_s6 + $0x1120] sm:$0xff] }
 0x5da   :  { %v6682_v10 = vpack.c.bf16 %v2892_v4, %v2888_v21  ;;  %v2912_v4 = vld [vmem:[%s12197_s6 + $0x1098] sm:$0xff]  ;;  %v2927_v19 = vld [vmem:[%s12197_s6 + $0x1110] sm:$0xff] }
 0x5db   :  { %6235 = vmatpush1.bf16.msra.mxu0 %v6234_v62  ;;  %v6248_v62 = vpack.c.bf16 %v2890_v60, %v2886_v3  ;;  %v2914_v3 = vld [vmem:[%s12197_s6 + $0x10a8] sm:$0xff] }
 0x5dc   :  { %6669 = vmatpush1.bf16.msra.mxu1 %v6668_v22  ;;  %6237 = vmatprep.subr.bf16.mxu0 %v6236_v47  ;;  %v2885_v22 = vld [vmem:[%s12197_s6 + $0xfc0] sm:$0xff] }
 0x5dd   :  { %6671 = vmatprep.subr.bf16.mxu1 %v6670_v26  ;;  %v2889_v47 = vld [vmem:[%s12197_s6 + $0xfe0] sm:$0xff]  ;;  %v2898_v26 = vld [vmem:[%s12197_s6 + $0x1028] sm:$0xff] }
 0x5de   :  { %v6250_v2 = vpack.c.bf16 %v2889_v47, %v2885_v22  ;;  %v2911_v22 = vld [vmem:[%s12197_s6 + $0x1090] sm:$0xff] }
 0x5df   :  { %6239 = vmatpush1.bf16.msra.mxu0 %v6238_v35  ;;  %v6252_v35 = vpack.c.bf16 %v2898_v26, %v2894_v61  ;;  %v2915_v47 = vld [vmem:[%s12197_s6 + $0x10b0] sm:$0xff]  ;;  %v2924_v61 = vld [vmem:[%s12197_s6 + $0x10f8] sm:$0xff] }
 0x5e0   :  { %6673 = vmatpush1.bf16.msra.mxu1 %v6672_v55  ;;  %6241 = vmatprep.subr.bf16.mxu0 %v6240_v11  ;;  %v2893_v55 = vld [vmem:[%s12197_s6 + $0x1000] sm:$0xff]  ;;  %v6696_v0 = vpack.c.bf16 %v2915_v47, %v2911_v22 }
 0x5e1   :  { %6675 = vmatprep.subr.bf16.mxu1 %v6674_v12  ;;  %v2897_v11 = vld [vmem:[%s12197_s6 + $0x1020] sm:$0xff]  ;;  %v2895_v12 = vld [vmem:[%s12197_s6 + $0x1010] sm:$0xff] }
 0x5e2   :  { %v6254_v32 = vpack.c.bf16 %v2897_v11, %v2893_v55  ;;  %v6688_v18 = vpack.c.bf16 %v2899_v20, %v2895_v12  ;;  %v2923_v55 = vld [vmem:[%s12197_s6 + $0x10f0] sm:$0xff]  ;;  %v2926_v11 = vld [vmem:[%s12197_s6 + $0x1108] sm:$0xff]  ;;  %v2945_v22 = vld [vmem:[%s12197_s6 + $0x11a0] sm:$0xff] }
 0x5e3   :  { %6243 = vmatpush1.bf16.msra.mxu0 %v6242_v36  ;;  %v2349_v36 = vsel %vm654_vm5, %v12270_v48, %v7120_v31  ;;  %v2903_v31 = vld [vmem:[%s12197_s6 + $0x1050] sm:$0xff] }
 0x5e4   :  { %6677 = vmatpush1.bf16.msra.mxu1 %v6676_v15  ;;  %6245 = vmatprep.subr.bf16.mxu0 %v6244_v53  ;;  %v2904_v15 = vld [vmem:[%s12197_s6 + $0x1058] sm:$0xff]  ;;  %v2376_v60 = vmax.f32 %v2307_v30, %v2349_v36  ;;  %v2925_v30 = vld [vmem:[%s12197_s6 + $0x1100] sm:$0xff]  ;;  %v2931_v48 = vld [vmem:[%s12197_s6 + $0x1130] sm:$0xff] }
 0x5e5   :  { %6679 = vmatprep.subr.bf16.mxu1 %v6678_v51  ;;  %v2908_v53 = vld [vmem:[%s12197_s6 + $0x1078] sm:$0xff]  ;;  %v2907_v51 = vld [vmem:[%s12197_s6 + $0x1070] sm:$0xff]  ;;  %v2934_v36 = vld [vmem:[%s12197_s6 + $0x1148] sm:$0xff]  ;;  %v6270_v42 = vpack.c.bf16 %v2929_v5, %v2925_v30  ;;  %v6704_v24 = vpack.c.bf16 %v2931_v48, %v2927_v19 }
 0x5e6   :  { %v6690_v21 = vpack.c.bf16 %v2908_v53, %v2904_v15  ;;  %v6692_v56 = vpack.c.bf16 %v2907_v51, %v2903_v31  ;;  %v2938_v15 = vld [vmem:[%s12197_s6 + $0x1168] sm:$0xff]  ;;  %v2936_v53 = vld [vmem:[%s12197_s6 + $0x1158] sm:$0xff]  ;;  %v2937_v51 = vld [vmem:[%s12197_s6 + $0x1160] sm:$0xff] }
 0x5e7   :  { %6247 = vmatpush1.bf16.msra.mxu0 %v6246_v1  ;;  %v6260_v1 = vpack.c.bf16 %v2914_v3, %v2910_v29  ;;  %v6272_v31 = vpack.c.bf16 %v2938_v15, %v2934_v36  ;;  %v2935_v29 = vld [vmem:[%s12197_s6 + $0x1150] sm:$0xff]  ;;  %v2957_v5 = vld [vmem:[%s12197_s6 + $0x1200] sm:$0xff]  ;;  %v2966_v15 = vld [vmem:[%s12197_s6 + $0x1248] sm:$0xff] }
 0x5e8   :  { %6681 = vmatpush1.bf16.msra.mxu1 %v6680_v39  ;;  %6249 = vmatprep.subr.bf16.mxu0 %v6248_v62  ;;  %v2909_v39 = vld [vmem:[%s12197_s6 + $0x1080] sm:$0xff]  ;;  %v2963_v36 = vld [vmem:[%s12197_s6 + $0x1230] sm:$0xff] }
 0x5e9   :  { %6683 = vmatprep.subr.bf16.mxu1 %v6682_v10  ;;  %v2913_v62 = vld [vmem:[%s12197_s6 + $0x10a0] sm:$0xff]  ;;  %v2922_v10 = vld [vmem:[%s12197_s6 + $0x10e8] sm:$0xff] }
 0x5ea   :  { %v6262_v26 = vpack.c.bf16 %v2913_v62, %v2909_v39  ;;  %v6264_v57 = vpack.c.bf16 %v2922_v10, %v2918_v38  ;;  %v2941_v62 = vld [vmem:[%s12197_s6 + $0x1180] sm:$0xff]  ;;  %v2947_v38 = vld [vmem:[%s12197_s6 + $0x11b0] sm:$0xff]  ;;  %v2950_v10 = vld [vmem:[%s12197_s6 + $0x11c8] sm:$0xff] }
 0x5eb   :  { %6251 = vmatpush1.bf16.msra.mxu0 %v6250_v2  ;;  %v2921_v2 = vld [vmem:[%s12197_s6 + $0x10e0] sm:$0xff] }
 0x5ec   :  { %6685 = vmatpush1.bf16.msra.mxu1 %v6684_v45  ;;  %6253 = vmatprep.subr.bf16.mxu0 %v6252_v35  ;;  %v2919_v45 = vld [vmem:[%s12197_s6 + $0x10d0] sm:$0xff]  ;;  %v6698_v35 = vpack.c.bf16 %v2924_v61, %v2920_v58  ;;  %v6266_v23 = vpack.c.bf16 %v2921_v2, %v2917_v44  ;;  %v2954_v58 = vld [vmem:[%s12197_s6 + $0x11e8] sm:$0xff]  ;;  %v2952_v61 = vld [vmem:[%s12197_s6 + $0x11d8] sm:$0xff] }
 0x5ed   :  { %6687 = vmatprep.subr.bf16.mxu1 %v6686_v14  ;;  %v2930_v14 = vld [vmem:[%s12197_s6 + $0x1128] sm:$0xff]  ;;  %v6700_v12 = vpack.c.bf16 %v2923_v55, %v2919_v45  ;;  %v6280_v44 = vpack.c.bf16 %v2954_v58, %v2950_v10  ;;  %v2949_v2 = vld [vmem:[%s12197_s6 + $0x11c0] sm:$0xff]  ;;  %v2979_v10 = vld [vmem:[%s12197_s6 + $0x12b0] sm:$0xff] }
 0x5ee   :  { %3540 = vmatmul.mubr.f32.vlgmr.msra.gmra.mrb[8].mxu0 %v9566_v50  ;;  %v6268_v20 = vpack.c.bf16 %v2930_v14, %v2926_v11  ;;  %v2953_v45 = vld [vmem:[%s12197_s6 + $0x11e0] sm:$0xff]  ;;  %v2955_v11 = vld [vmem:[%s12197_s6 + $0x11f0] sm:$0xff]  ;;  %v2958_v14 = vld [vmem:[%s12197_s6 + $0x1208] sm:$0xff] }
 0x5ef   :  { %4037 = vmatmul.mubr.f32.vlgmr.msra.gmra.mrb[8].mxu1 %v9566_v50  ;;  %6255 = vmatpush1.bf16.msra.mxu0 %v6254_v32  ;;  %v6694_v50 = vpack.c.bf16 %v2916_v16, %v2912_v4  ;;  %v6702_v32 = vpack.c.bf16 %v2932_v27, %v2928_v34  ;;  %v2946_v4 = vld [vmem:[%s12197_s6 + $0x11a8] sm:$0xff]  ;;  %v2944_v16 = vld [vmem:[%s12197_s6 + $0x1198] sm:$0xff]  ;;  %v2961_v19 = vld [vmem:[%s12197_s6 + $0x1220] sm:$0xff] }
 0x5f0   :  { %3610 = vmatprep.mubr.f32.mxu0 %v2376_v60  ;;  %6689 = vmatpush1.bf16.msra.mxu1 %v6688_v18  ;;  %v2940_v18 = vld [vmem:[%s12197_s6 + $0x1178] sm:$0xff]  ;;  %v2962_v34 = vld [vmem:[%s12197_s6 + $0x1228] sm:$0xff] }
 0x5f1   :  { %4107 = vmatprep.mubr.f32.mxu1 %v2376_v60  ;;  %6257 = vmatprep.subr.bf16.mxu0 %v6256_v52  ;;  %v2933_v52 = vld [vmem:[%s12197_s6 + $0x1140] sm:$0xff]  ;;  %v6706_v3 = vpack.c.bf16 %v2940_v18, %v2936_v53  ;;  %v2939_v60 = vld [vmem:[%s12197_s6 + $0x1170] sm:$0xff]  ;;  %v2960_v27 = vld [vmem:[%s12197_s6 + $0x1218] sm:$0xff]  ;;  %v6284_v30 = vpack.c.bf16 %v2962_v34, %v2958_v14 }
 0x5f2   :  { %6691 = vmatprep.subr.bf16.mxu1 %v6690_v21  ;;  %v2942_v21 = vld [vmem:[%s12197_s6 + $0x1188] sm:$0xff]  ;;  %v2968_v18 = vld [vmem:[%s12197_s6 + $0x1258] sm:$0xff]  ;;  %v2987_v14 = vld [vmem:[%s12197_s6 + $0x12f0] sm:$0xff] }
 0x5f3   :  { %6259 = vmatpush1.bf16.msra.mxu0 %v6258_v63  ;;  %v2948_v63 = vld [vmem:[%s12197_s6 + $0x11b8] sm:$0xff]  ;;  %v6276_v39 = vpack.c.bf16 %v2946_v4, %v2942_v21  ;;  %v2970_v53 = vld [vmem:[%s12197_s6 + $0x1268] sm:$0xff]  ;;  %v2971_v21 = vld [vmem:[%s12197_s6 + $0x1270] sm:$0xff] }
 0x5f4   :  { %6693 = vmatpush1.bf16.msra.mxu1 %v6692_v56  ;;  %6261 = vmatprep.subr.bf16.mxu0 %v6260_v1  ;;  %v6274_v56 = vpack.c.bf16 %v2937_v51, %v2933_v52  ;;  %v6708_v1 = vpack.c.bf16 %v2939_v60, %v2935_v29  ;;  %v6710_v47 = vpack.c.bf16 %v2948_v63, %v2944_v16  ;;  %v2965_v51 = vld [vmem:[%s12197_s6 + $0x1240] sm:$0xff]  ;;  %v2974_v4 = vld [vmem:[%s12197_s6 + $0x1288] sm:$0xff]  ;;  %v2976_v63 = vld [vmem:[%s12197_s6 + $0x1298] sm:$0xff] }
 0x5f5   :  { %6695 = vmatprep.subr.bf16.mxu1 %v6694_v50  ;;  %v2943_v50 = vld [vmem:[%s12197_s6 + $0x1190] sm:$0xff]  ;;  %v6288_v52 = vpack.c.bf16 %v2970_v53, %v2966_v15  ;;  %v2969_v29 = vld [vmem:[%s12197_s6 + $0x1260] sm:$0xff]  ;;  %v2978_v16 = vld [vmem:[%s12197_s6 + $0x12a8] sm:$0xff] }
 0x5f6   :  { %v2982_v58 = vld [vmem:[%s12197_s6 + $0x12c8] sm:$0xff]  ;;  %v2995_v15 = vld [vmem:[%s12197_s6 + $0x1330] sm:$0xff] }
 0x5f7   :  { %6263 = vmatpush1.bf16.msra.mxu0 %v6262_v26  ;;  %v2956_v26 = vld [vmem:[%s12197_s6 + $0x11f8] sm:$0xff]  ;;  %v2990_v34 = vld [vmem:[%s12197_s6 + $0x1308] sm:$0xff] }
 0x5f8   :  { %6697 = vmatpush1.bf16.msra.mxu1 %v6696_v0  ;;  %6265 = vmatprep.subr.bf16.mxu0 %v6264_v57  ;;  %v6278_v0 = vpack.c.bf16 %v2945_v22, %v2941_v62  ;;  %v6712_v57 = vpack.c.bf16 %v2947_v38, %v2943_v50  ;;  %v6714_v55 = vpack.c.bf16 %v2956_v26, %v2952_v61  ;;  %v2973_v22 = vld [vmem:[%s12197_s6 + $0x1280] sm:$0xff]  ;;  %v2986_v61 = vld [vmem:[%s12197_s6 + $0x12e8] sm:$0xff]  ;;  %v2984_v26 = vld [vmem:[%s12197_s6 + $0x12d8] sm:$0xff] }
 0x5f9   :  { %6699 = vmatprep.subr.bf16.mxu1 %v6698_v35  ;;  %v2951_v35 = vld [vmem:[%s12197_s6 + $0x11d0] sm:$0xff]  ;;  %v6292_v62 = vpack.c.bf16 %v2978_v16, %v2974_v4  ;;  %v2977_v50 = vld [vmem:[%s12197_s6 + $0x12a0] sm:$0xff]  ;;  %v2998_v53 = vld [vmem:[%s12197_s6 + $0x1348] sm:$0xff] }
 0x5fa   :  { %v3003_v4 = vld [vmem:[%s12197_s6 + $0x1370] sm:$0xff]  ;;  %v3006_v16 = vld [vmem:[%s12197_s6 + $0x1388] sm:$0xff] }
 0x5fb   :  { %6267 = vmatpush1.bf16.msra.mxu0 %v6266_v23  ;;  %v2964_v23 = vld [vmem:[%s12197_s6 + $0x1238] sm:$0xff] }
 0x5fc   :  { %6701 = vmatpush1.bf16.msra.mxu1 %v6700_v12  ;;  %6269 = vmatprep.subr.bf16.mxu0 %v6268_v20  ;;  %v6282_v12 = vpack.c.bf16 %v2953_v45, %v2949_v2  ;;  %v6716_v20 = vpack.c.bf16 %v2955_v11, %v2951_v35  ;;  %v6718_v48 = vpack.c.bf16 %v2964_v23, %v2960_v27  ;;  %v2981_v45 = vld [vmem:[%s12197_s6 + $0x12c0] sm:$0xff]  ;;  %v2994_v27 = vld [vmem:[%s12197_s6 + $0x1328] sm:$0xff]  ;;  %v2992_v23 = vld [vmem:[%s12197_s6 + $0x1318] sm:$0xff] }
 0x5fd   :  { %6703 = vmatprep.subr.bf16.mxu1 %v6702_v32  ;;  %v2959_v32 = vld [vmem:[%s12197_s6 + $0x1210] sm:$0xff]  ;;  %v6296_v2 = vpack.c.bf16 %v2986_v61, %v2982_v58  ;;  %v2985_v35 = vld [vmem:[%s12197_s6 + $0x12e0] sm:$0xff]  ;;  %v3014_v61 = vld [vmem:[%s12197_s6 + $0x13c8] sm:$0xff] }
 0x5fe   :  { %v3011_v58 = vld [vmem:[%s12197_s6 + $0x13b0] sm:$0xff] }
 0x5ff   :  { %6271 = vmatpush1.bf16.msra.mxu0 %v6270_v42  ;;  %v2972_v42 = vld [vmem:[%s12197_s6 + $0x1278] sm:$0xff] }
 0x600   :  { %6705 = vmatpush1.bf16.msra.mxu1 %v6704_v24  ;;  %6273 = vmatprep.subr.bf16.mxu0 %v6272_v31  ;;  %v6286_v24 = vpack.c.bf16 %v2961_v19, %v2957_v5  ;;  %v6720_v31 = vpack.c.bf16 %v2963_v36, %v2959_v32  ;;  %v6722_v60 = vpack.c.bf16 %v2972_v42, %v2968_v18  ;;  %v2989_v19 = vld [vmem:[%s12197_s6 + $0x1300] sm:$0xff]  ;;  %v3002_v18 = vld [vmem:[%s12197_s6 + $0x1368] sm:$0xff]  ;;  %v3000_v42 = vld [vmem:[%s12197_s6 + $0x1358] sm:$0xff] }
 0x601   :  { %6707 = vmatprep.subr.bf16.mxu1 %v6706_v3  ;;  %v2967_v3 = vld [vmem:[%s12197_s6 + $0x1250] sm:$0xff]  ;;  %v6300_v5 = vpack.c.bf16 %v2994_v27, %v2990_v34  ;;  %v2993_v32 = vld [vmem:[%s12197_s6 + $0x1320] sm:$0xff]  ;;  %v12272_v34 = vunpack.i.l.bf16 %v9433_v41 }
 0x603   :  { %6275 = vmatpush1.bf16.msra.mxu0 %v6274_v56  ;;  %v2980_v56 = vld [vmem:[%s12197_s6 + $0x12b8] sm:$0xff] }
 0x604   :  { %6709 = vmatpush1.bf16.msra.mxu1 %v6708_v1  ;;  %6277 = vmatprep.subr.bf16.mxu0 %v6276_v39  ;;  %v6290_v1 = vpack.c.bf16 %v2969_v29, %v2965_v51  ;;  %v6724_v39 = vpack.c.bf16 %v2971_v21, %v2967_v3  ;;  %v6726_v38 = vpack.c.bf16 %v2980_v56, %v2976_v63  ;;  %v2997_v29 = vld [vmem:[%s12197_s6 + $0x1340] sm:$0xff]  ;;  %v3010_v63 = vld [vmem:[%s12197_s6 + $0x13a8] sm:$0xff]  ;;  %v3008_v56 = vld [vmem:[%s12197_s6 + $0x1398] sm:$0xff] }
 0x605   :  { %6711 = vmatprep.subr.bf16.mxu1 %v6710_v47  ;;  %v2975_v47 = vld [vmem:[%s12197_s6 + $0x1290] sm:$0xff]  ;;  %v6304_v51 = vpack.c.bf16 %v3002_v18, %v2998_v53  ;;  %v3001_v3 = vld [vmem:[%s12197_s6 + $0x1360] sm:$0xff] }
 0x607   :  { %6279 = vmatpush1.bf16.msra.mxu0 %v6278_v0  ;;  %v2988_v0 = vld [vmem:[%s12197_s6 + $0x12f8] sm:$0xff] }
 0x608   :  { %6713 = vmatpush1.bf16.msra.mxu1 %v6712_v57  ;;  %6281 = vmatprep.subr.bf16.mxu0 %v6280_v44  ;;  %v6294_v57 = vpack.c.bf16 %v2977_v50, %v2973_v22  ;;  %v6728_v44 = vpack.c.bf16 %v2979_v10, %v2975_v47  ;;  %v6730_v11 = vpack.c.bf16 %v2988_v0, %v2984_v26  ;;  %v3005_v50 = vld [vmem:[%s12197_s6 + $0x1380] sm:$0xff]  ;;  %v3018_v26 = vld [vmem:[%s12197_s6 + $0x13e8] sm:$0xff]  ;;  %v3016_v0 = vld [vmem:[%s12197_s6 + $0x13d8] sm:$0xff] }
 0x609   :  { %6715 = vmatprep.subr.bf16.mxu1 %v6714_v55  ;;  %v2983_v55 = vld [vmem:[%s12197_s6 + $0x12d0] sm:$0xff]  ;;  %v6308_v22 = vpack.c.bf16 %v3010_v63, %v3006_v16  ;;  %v3009_v47 = vld [vmem:[%s12197_s6 + $0x13a0] sm:$0xff] }
 0x60a   :  { %v3029_v16 = vld [vmem:[%s12197_s6 + $0x1440] sm:$0xff] }
 0x60b   :  { %6283 = vmatpush1.bf16.msra.mxu0 %v6282_v12  ;;  %v2996_v12 = vld [vmem:[%s12197_s6 + $0x1338] sm:$0xff]  ;;  %v3033_v63 = vld [vmem:[%s12197_s6 + $0x1460] sm:$0xff] }
 0x60c   :  { %6717 = vmatpush1.bf16.msra.mxu1 %v6716_v20  ;;  %6285 = vmatprep.subr.bf16.mxu0 %v6284_v30  ;;  %v6298_v20 = vpack.c.bf16 %v2985_v35, %v2981_v45  ;;  %v6732_v30 = vpack.c.bf16 %v2987_v14, %v2983_v55  ;;  %v6734_v36 = vpack.c.bf16 %v2996_v12, %v2992_v23  ;;  %v3013_v35 = vld [vmem:[%s12197_s6 + $0x13c0] sm:$0xff]  ;;  %v12271_v14 = vunpack.i.h.bf16 %v9433_v41  ;;  %v3019_v12 = vld [vmem:[%s12197_s6 + $0x13f0] sm:$0xff]  ;;  %v3024_v41 = vld [vmem:[%s12197_s6 + $0x1418] sm:$0xff] }
 0x60d   :  { %6719 = vmatprep.subr.bf16.mxu1 %v6718_v48  ;;  %v2991_v48 = vld [vmem:[%s12197_s6 + $0x1310] sm:$0xff]  ;;  %v6312_v45 = vpack.c.bf16 %v3018_v26, %v3014_v61  ;;  %v3017_v55 = vld [vmem:[%s12197_s6 + $0x13e0] sm:$0xff] }
 0x60e   :  { %v2212_v27 = vsel %vm12273_vm10, %v12272_v34, %v12271_v14  ;;  %v3037_v61 = vld [vmem:[%s12197_s6 + $0x1480] sm:$0xff]  ;;  %vm4323_vm10 = vcmask 130050  }
 0x60f   :  { %6287 = vmatpush1.bf16.msra.mxu0 %v6286_v24  ;;  %v3004_v24 = vld [vmem:[%s12197_s6 + $0x1378] sm:$0xff]  ;;  %v3041_v26 = vld [vmem:[%s12197_s6 + $0x14a0] sm:$0xff] }
 0x610   :  { %6721 = vmatpush1.bf16.msra.mxu1 %v6720_v31  ;;  %6289 = vmatprep.subr.bf16.mxu0 %v6288_v52  ;;  %v6302_v31 = vpack.c.bf16 %v2993_v32, %v2989_v19  ;;  %v6736_v52 = vpack.c.bf16 %v2995_v15, %v2991_v48  ;;  %v6738_v21 = vpack.c.bf16 %v3004_v24, %v3000_v42  ;;  %v12274_v19 = vunpack.i.h.bf16 %v9522_v9  ;;  %v3021_v42 = vld [vmem:[%s12197_s6 + $0x1400] sm:$0xff] }
 0x611   :  { %6723 = vmatprep.subr.bf16.mxu1 %v6722_v60  ;;  %v2999_v60 = vld [vmem:[%s12197_s6 + $0x1350] sm:$0xff]  ;;  %v12275_v32 = vunpack.i.l.bf16 %v9522_v9  ;;  %v2239_v15 = vmax.f32 %v9158_v37, %v2212_v27  ;;  %v3025_v24 = vld [vmem:[%s12197_s6 + $0x1420] sm:$0xff] }
 0x612   :  { %v3027_v37 = vld [vmem:[%s12197_s6 + $0x1430] sm:$0xff]  ;;  %v3045_v34 = vld [vmem:[%s12197_s6 + $0x14c0] sm:$0xff] }
 0x613   :  { %6291 = vmatpush1.bf16.msra.mxu0 %v6290_v1  ;;  %v3012_v1 = vld [vmem:[%s12197_s6 + $0x13b8] sm:$0xff]  ;;  %v2282_v48 = vsel %vm575_vm4, %v12275_v32, %v12274_v19  ;;  %v3049_v27 = vld [vmem:[%s12197_s6 + $0x14e0] sm:$0xff]  ;;  %vm3245_vm4 = vcmask 482304  }
 0x614   :  { %6725 = vmatpush1.bf16.msra.mxu1 %v6724_v39  ;;  %6293 = vmatprep.subr.bf16.mxu0 %v6292_v62  ;;  %v6306_v39 = vpack.c.bf16 %v3001_v3, %v2997_v29  ;;  %v6740_v62 = vpack.c.bf16 %v3003_v4, %v2999_v60  ;;  %v6742_v10 = vpack.c.bf16 %v3012_v1, %v3008_v56  ;;  %v3034_v29 = vld [vmem:[%s12197_s6 + $0x1468] sm:$0xff]  ;;  %v3032_v60 = vld [vmem:[%s12197_s6 + $0x1458] sm:$0xff]  ;;  %v3031_v56 = vld [vmem:[%s12197_s6 + $0x1450] sm:$0xff] }
 0x615   :  { %6727 = vmatprep.subr.bf16.mxu1 %v6726_v38  ;;  %v3007_v38 = vld [vmem:[%s12197_s6 + $0x1390] sm:$0xff]  ;;  %v6318_v3 = vpack.c.bf16 %v3025_v24, %v3021_v42  ;;  %v2351_v1 = vsel %vm654_vm5, %v7134_v46, %v7135_v54  ;;  %v3044_v46 = vld [vmem:[%s12197_s6 + $0x14b8] sm:$0xff]  ;;  %v6322_v54 = vpack.c.bf16 %v3033_v63, %v3029_v16  ;;  %v6330_v32 = vpack.c.bf16 %v3049_v27, %v3045_v34  ;;  %v3090_v34 = vld [vmem:[%s12197_s6 + $0x1628] sm:$0xff] }
 0x616   :  { %v3060_v19 = vld [vmem:[%s12197_s6 + $0x1538] sm:$0xff]  ;;  %v3059_v24 = vld [vmem:[%s12197_s6 + $0x1530] sm:$0xff]  ;;  %vm3249_vm5 = vcmask 1042432  }
 0x617   :  { %6295 = vmatpush1.bf16.msra.mxu0 %v6294_v57  ;;  %v3020_v57 = vld [vmem:[%s12197_s6 + $0x13f8] sm:$0xff]  ;;  %v3067_v63 = vld [vmem:[%s12197_s6 + $0x1570] sm:$0xff]  ;;  %vm6425_vm13 = vmpackc.low %vm3249_vm5, %vm12276_vm12  ;;  %vm12282_vm5 = vcmask 1039360  }
 0x618   :  { %6729 = vmatpush1.bf16.msra.mxu1 %v6728_v44  ;;  %6297 = vmatprep.subr.bf16.mxu0 %v6296_v2  ;;  %v6310_v44 = vpack.c.bf16 %v3009_v47, %v3005_v50  ;;  %v6744_v2 = vpack.c.bf16 %v3011_v58, %v3007_v38  ;;  %v6746_v23 = vpack.c.bf16 %v3020_v57, %v3016_v0  ;;  %v3042_v50 = vld [vmem:[%s12197_s6 + $0x14a8] sm:$0xff]  ;;  %v3039_v0 = vld [vmem:[%s12197_s6 + $0x1490] sm:$0xff]  ;;  %v3088_v27 = vld [vmem:[%s12197_s6 + $0x1618] sm:$0xff] }
 0x619   :  { %6731 = vmatprep.subr.bf16.mxu1 %v6730_v11  ;;  %v3015_v11 = vld [vmem:[%s12197_s6 + $0x13d0] sm:$0xff] }
 0x61a   :  { %v6748_v53 = vpack.c.bf16 %v3019_v12, %v3015_v11  ;;  %v3043_v57 = vld [vmem:[%s12197_s6 + $0x14b0] sm:$0xff] }
 0x61b   :  { %6299 = vmatpush1.bf16.msra.mxu0 %v6298_v20  ;;  %v3022_v20 = vld [vmem:[%s12197_s6 + $0x1408] sm:$0xff]  ;;  %v6760_v11 = vpack.c.bf16 %v3043_v57, %v3039_v0  ;;  %v3084_v0 = vld [vmem:[%s12197_s6 + $0x15f8] sm:$0xff] }
 0x61c   :  { %6733 = vmatpush1.bf16.msra.mxu1 %v6732_v30  ;;  %6301 = vmatprep.subr.bf16.mxu0 %v6300_v5  ;;  %v3026_v30 = vld [vmem:[%s12197_s6 + $0x1428] sm:$0xff]  ;;  %v3028_v5 = vld [vmem:[%s12197_s6 + $0x1438] sm:$0xff] }
 0x61d   :  { %6735 = vmatprep.subr.bf16.mxu1 %v6734_v36  ;;  %v6314_v36 = vpack.c.bf16 %v3017_v55, %v3013_v35  ;;  %v6316_v18 = vpack.c.bf16 %v3026_v30, %v3022_v20  ;;  %v6750_v9 = vpack.c.bf16 %v3028_v5, %v3024_v41  ;;  %v3052_v35 = vld [vmem:[%s12197_s6 + $0x14f8] sm:$0xff]  ;;  %v6326_v55 = vpack.c.bf16 %v3041_v26, %v3037_v61  ;;  %v3051_v20 = vld [vmem:[%s12197_s6 + $0x14f0] sm:$0xff]  ;;  %v3054_v30 = vld [vmem:[%s12197_s6 + $0x1508] sm:$0xff] }
 0x61e   :  { %v3058_v41 = vld [vmem:[%s12197_s6 + $0x1528] sm:$0xff]  ;;  %v3056_v5 = vld [vmem:[%s12197_s6 + $0x1518] sm:$0xff] }
 0x61f   :  { %6303 = vmatpush1.bf16.msra.mxu0 %v6302_v31  ;;  %v3023_v31 = vld [vmem:[%s12197_s6 + $0x1410] sm:$0xff]  ;;  %v6766_v42 = vpack.c.bf16 %v3060_v19, %v3056_v5  ;;  %v3082_v61 = vld [vmem:[%s12197_s6 + $0x15e8] sm:$0xff]  ;;  %v3080_v26 = vld [vmem:[%s12197_s6 + $0x15d8] sm:$0xff] }
 0x620   :  { %6737 = vmatpush1.bf16.msra.mxu1 %v6736_v52  ;;  %6305 = vmatprep.subr.bf16.mxu0 %v6304_v51  ;;  %v2309_v52 = vmax.f32 %v2239_v15, %v2282_v48  ;;  %v3030_v51 = vld [vmem:[%s12197_s6 + $0x1448] sm:$0xff]  ;;  %v6752_v4 = vpack.c.bf16 %v3027_v37, %v3023_v31  ;;  %v3053_v15 = vld [vmem:[%s12197_s6 + $0x1500] sm:$0xff]  ;;  %v3064_v37 = vld [vmem:[%s12197_s6 + $0x1558] sm:$0xff] }
 0x621   :  { %6739 = vmatprep.subr.bf16.mxu1 %v6738_v21  ;;  %v3036_v21 = vld [vmem:[%s12197_s6 + $0x1478] sm:$0xff]  ;;  %v3066_v31 = vld [vmem:[%s12197_s6 + $0x1568] sm:$0xff]  ;;  %v3089_v5 = vld [vmem:[%s12197_s6 + $0x1620] sm:$0xff] }
 0x622   :  { %v2378_v47 = vmax.f32 %v2309_v52, %v2351_v1  ;;  %v6754_v38 = vpack.c.bf16 %v3036_v21, %v3032_v60  ;;  %v3068_v52 = vld [vmem:[%s12197_s6 + $0x1578] sm:$0xff]  ;;  %v3061_v60 = vld [vmem:[%s12197_s6 + $0x1540] sm:$0xff]  ;;  %v3074_v1 = vld [vmem:[%s12197_s6 + $0x15a8] sm:$0xff] }
 0x623   :  { %6307 = vmatpush1.bf16.msra.mxu0 %v6306_v39  ;;  %v6320_v39 = vpack.c.bf16 %v3034_v29, %v3030_v51  ;;  %v3065_v21 = vld [vmem:[%s12197_s6 + $0x1560] sm:$0xff]  ;;  %v6770_v16 = vpack.c.bf16 %v3068_v52, %v3064_v37  ;;  %v3087_v19 = vld [vmem:[%s12197_s6 + $0x1610] sm:$0xff] }
 0x624   :  { %6741 = vmatpush1.bf16.msra.mxu1 %v6740_v62  ;;  %6309 = vmatprep.subr.bf16.mxu0 %v6308_v22  ;;  %v3035_v62 = vld [vmem:[%s12197_s6 + $0x1470] sm:$0xff]  ;;  %v3038_v22 = vld [vmem:[%s12197_s6 + $0x1488] sm:$0xff]  ;;  %v3097_v37 = vld [vmem:[%s12197_s6 + $0x1660] sm:$0xff] }
 0x625   :  { %6743 = vmatprep.subr.bf16.mxu1 %v6742_v10  ;;  %v6756_v10 = vpack.c.bf16 %v3035_v62, %v3031_v56  ;;  %v6324_v58 = vpack.c.bf16 %v3042_v50, %v3038_v22  ;;  %v3070_v56 = vld [vmem:[%s12197_s6 + $0x1588] sm:$0xff]  ;;  %v3076_v62 = vld [vmem:[%s12197_s6 + $0x15b8] sm:$0xff]  ;;  %v6338_v22 = vpack.c.bf16 %v3065_v21, %v3061_v60  ;;  %v3095_v52 = vld [vmem:[%s12197_s6 + $0x1650] sm:$0xff] }
 0x626   :  { %v3106_v60 = vld [vmem:[%s12197_s6 + $0x16a8] sm:$0xff]  ;;  %v3104_v21 = vld [vmem:[%s12197_s6 + $0x1698] sm:$0xff] }
 0x627   :  { %6311 = vmatpush1.bf16.msra.mxu0 %v6310_v44  ;;  %v3046_v44 = vld [vmem:[%s12197_s6 + $0x14c8] sm:$0xff] }
 0x628   :  { %6745 = vmatpush1.bf16.msra.mxu1 %v6744_v2  ;;  %6313 = vmatprep.subr.bf16.mxu0 %v6312_v45  ;;  %v3050_v2 = vld [vmem:[%s12197_s6 + $0x14e8] sm:$0xff]  ;;  %v3048_v45 = vld [vmem:[%s12197_s6 + $0x14d8] sm:$0xff] }
 0x629   :  { %6747 = vmatprep.subr.bf16.mxu1 %v6746_v23  ;;  %v6328_v14 = vpack.c.bf16 %v3050_v2, %v3046_v44  ;;  %v3047_v23 = vld [vmem:[%s12197_s6 + $0x14d0] sm:$0xff]  ;;  %v6762_v12 = vpack.c.bf16 %v3052_v35, %v3048_v45  ;;  %v3077_v2 = vld [vmem:[%s12197_s6 + $0x15c0] sm:$0xff] }
 0x62a   :  { %v6764_v48 = vpack.c.bf16 %v3051_v20, %v3047_v23  ;;  %v3081_v45 = vld [vmem:[%s12197_s6 + $0x15e0] sm:$0xff]  ;;  %v3079_v35 = vld [vmem:[%s12197_s6 + $0x15d0] sm:$0xff]  ;;  %v3092_v23 = vld [vmem:[%s12197_s6 + $0x1638] sm:$0xff] }
 0x62b   :  { %6315 = vmatpush1.bf16.msra.mxu0 %v6314_v36  ;;  %v6332_v36 = vpack.c.bf16 %v3058_v41, %v3054_v30  ;;  %v3085_v41 = vld [vmem:[%s12197_s6 + $0x1600] sm:$0xff] }
 0x62c   :  { %6749 = vmatpush1.bf16.msra.mxu1 %v6748_v53  ;;  %6317 = vmatprep.subr.bf16.mxu0 %v6316_v18  ;;  %v3057_v53 = vld [vmem:[%s12197_s6 + $0x1520] sm:$0xff]  ;;  %v3055_v18 = vld [vmem:[%s12197_s6 + $0x1510] sm:$0xff] }
 0x62d   :  { %6751 = vmatprep.subr.bf16.mxu1 %v6750_v9  ;;  %v3062_v9 = vld [vmem:[%s12197_s6 + $0x1548] sm:$0xff]  ;;  %v6334_v51 = vpack.c.bf16 %v3057_v53, %v3053_v15  ;;  %v6768_v29 = vpack.c.bf16 %v3059_v24, %v3055_v18  ;;  %v3096_v53 = vld [vmem:[%s12197_s6 + $0x1658] sm:$0xff] }
 0x62e   :  { %3611 = vmatmul.mubr.f32.vlgmr.msra.gmra.mrb[8].mxu0 %v9520_v59  ;;  %v3098_v15 = vld [vmem:[%s12197_s6 + $0x1668] sm:$0xff]  ;;  %v3100_v18 = vld [vmem:[%s12197_s6 + $0x1678] sm:$0xff] }
 0x62f   :  { %4108 = vmatmul.mubr.f32.vlgmr.msra.gmra.mrb[8].mxu1 %v9520_v59  ;;  %6319 = vmatpush1.bf16.msra.mxu0 %v6318_v3  ;;  %v6758_v59 = vpack.c.bf16 %v3044_v46, %v3040_v43  ;;  %v6336_v3 = vpack.c.bf16 %v3066_v31, %v3062_v9  ;;  %v3073_v43 = vld [vmem:[%s12197_s6 + $0x15a0] sm:$0xff]  ;;  %v3071_v46 = vld [vmem:[%s12197_s6 + $0x1590] sm:$0xff] }
 0x630   :  { %3681 = vmatprep.mubr.f32.mxu0 %v2378_v47  ;;  %6753 = vmatpush1.bf16.msra.mxu1 %v6752_v4  ;;  %v3063_v4 = vld [vmem:[%s12197_s6 + $0x1550] sm:$0xff]  ;;  %v3093_v31 = vld [vmem:[%s12197_s6 + $0x1640] sm:$0xff] }
 0x631   :  { %4178 = vmatprep.mubr.f32.mxu1 %v2378_v47  ;;  %6321 = vmatprep.subr.bf16.mxu0 %v6320_v39  ;;  %v3072_v39 = vld [vmem:[%s12197_s6 + $0x1598] sm:$0xff]  ;;  %v6772_v50 = vpack.c.bf16 %v3067_v63, %v3063_v4  ;;  %v6340_v47 = vpack.c.bf16 %v3074_v1, %v3070_v56  ;;  %v3101_v1 = vld [vmem:[%s12197_s6 + $0x1680] sm:$0xff] }
 0x632   :  { %6755 = vmatprep.subr.bf16.mxu1 %v6754_v38  ;;  %v3069_v38 = vld [vmem:[%s12197_s6 + $0x1580] sm:$0xff]  ;;  %v3108_v4 = vld [vmem:[%s12197_s6 + $0x16b8] sm:$0xff] }
 0x633   :  { %6323 = vmatpush1.bf16.msra.mxu0 %v6322_v54  ;;  %v6774_v54 = vpack.c.bf16 %v3076_v62, %v3072_v39  ;;  %v3105_v39 = vld [vmem:[%s12197_s6 + $0x16a0] sm:$0xff]  ;;  %v3103_v62 = vld [vmem:[%s12197_s6 + $0x1690] sm:$0xff] }
 0x634   :  { %6757 = vmatpush1.bf16.msra.mxu1 %v6756_v10  ;;  %6325 = vmatprep.subr.bf16.mxu0 %v6324_v58  ;;  %v3075_v10 = vld [vmem:[%s12197_s6 + $0x15b0] sm:$0xff]  ;;  %v3078_v58 = vld [vmem:[%s12197_s6 + $0x15c8] sm:$0xff] }
 0x635   :  { %6759 = vmatprep.subr.bf16.mxu1 %v6758_v59  ;;  %v6342_v59 = vpack.c.bf16 %v3073_v43, %v3069_v38  ;;  %v6776_v57 = vpack.c.bf16 %v3075_v10, %v3071_v46  ;;  %v6344_v44 = vpack.c.bf16 %v3082_v61, %v3078_v58  ;;  %v3114_v38 = vld [vmem:[%s12197_s6 + $0x16e8] sm:$0xff]  ;;  %v3112_v43 = vld [vmem:[%s12197_s6 + $0x16d8] sm:$0xff]  ;;  %v3109_v61 = vld [vmem:[%s12197_s6 + $0x16c0] sm:$0xff] }
 0x636   :  { %v3116_v46 = vld [vmem:[%s12197_s6 + $0x16f8] sm:$0xff] }
 0x637   :  { %6327 = vmatpush1.bf16.msra.mxu0 %v6326_v55  ;;  %v6778_v55 = vpack.c.bf16 %v3084_v0, %v3080_v26  ;;  %v3113_v26 = vld [vmem:[%s12197_s6 + $0x16e0] sm:$0xff]  ;;  %v3111_v0 = vld [vmem:[%s12197_s6 + $0x16d0] sm:$0xff] }
 0x638   :  { %6761 = vmatpush1.bf16.msra.mxu1 %v6760_v11  ;;  %6329 = vmatprep.subr.bf16.mxu0 %v6328_v14  ;;  %v3083_v11 = vld [vmem:[%s12197_s6 + $0x15f0] sm:$0xff]  ;;  %v3086_v14 = vld [vmem:[%s12197_s6 + $0x1608] sm:$0xff] }
 0x639   :  { %6763 = vmatprep.subr.bf16.mxu1 %v6762_v12  ;;  %v6346_v12 = vpack.c.bf16 %v3081_v45, %v3077_v2  ;;  %v6780_v20 = vpack.c.bf16 %v3083_v11, %v3079_v35  ;;  %v6348_v30 = vpack.c.bf16 %v3090_v34, %v3086_v14  ;;  %v3122_v2 = vld [vmem:[%s12197_s6 + $0x1728] sm:$0xff]  ;;  %v3120_v45 = vld [vmem:[%s12197_s6 + $0x1718] sm:$0xff]  ;;  %v3117_v34 = vld [vmem:[%s12197_s6 + $0x1700] sm:$0xff] }
 0x63a   :  { %v3124_v35 = vld [vmem:[%s12197_s6 + $0x1738] sm:$0xff] }
 0x63b   :  { %6331 = vmatpush1.bf16.msra.mxu0 %v6330_v32  ;;  %v6782_v32 = vpack.c.bf16 %v3092_v23, %v3088_v27  ;;  %v3121_v27 = vld [vmem:[%s12197_s6 + $0x1720] sm:$0xff]  ;;  %v3119_v23 = vld [vmem:[%s12197_s6 + $0x1710] sm:$0xff] }
 0x63c   :  { %6765 = vmatpush1.bf16.msra.mxu1 %v6764_v48  ;;  %6333 = vmatprep.subr.bf16.mxu0 %v6332_v36  ;;  %v3091_v48 = vld [vmem:[%s12197_s6 + $0x1630] sm:$0xff]  ;;  %v3094_v36 = vld [vmem:[%s12197_s6 + $0x1648] sm:$0xff] }
 0x63d   :  { %6767 = vmatprep.subr.bf16.mxu1 %v6766_v42  ;;  %v6350_v42 = vpack.c.bf16 %v3089_v5, %v3085_v41  ;;  %v6784_v24 = vpack.c.bf16 %v3091_v48, %v3087_v19  ;;  %v6352_v9 = vpack.c.bf16 %v3098_v15, %v3094_v36  ;;  %v3130_v41 = vld [vmem:[%s12197_s6 + $0x1768] sm:$0xff]  ;;  %v3128_v5 = vld [vmem:[%s12197_s6 + $0x1758] sm:$0xff]  ;;  %v3125_v15 = vld [vmem:[%s12197_s6 + $0x1740] sm:$0xff] }
 0x63e   :  { %v3132_v19 = vld [vmem:[%s12197_s6 + $0x1778] sm:$0xff] }
 0x63f   :  { %6335 = vmatpush1.bf16.msra.mxu0 %v6334_v51  ;;  %v6786_v51 = vpack.c.bf16 %v3100_v18, %v3096_v53  ;;  %v3129_v53 = vld [vmem:[%s12197_s6 + $0x1760] sm:$0xff]  ;;  %v3127_v18 = vld [vmem:[%s12197_s6 + $0x1750] sm:$0xff] }
 0x640   :  { %6769 = vmatpush1.bf16.msra.mxu1 %v6768_v29  ;;  %6337 = vmatprep.subr.bf16.mxu0 %v6336_v3  ;;  %v3099_v29 = vld [vmem:[%s12197_s6 + $0x1670] sm:$0xff]  ;;  %v3102_v3 = vld [vmem:[%s12197_s6 + $0x1688] sm:$0xff] }
 0x641   :  { %6771 = vmatprep.subr.bf16.mxu1 %v6770_v16  ;;  %v6354_v16 = vpack.c.bf16 %v3097_v37, %v3093_v31  ;;  %v6788_v63 = vpack.c.bf16 %v3099_v29, %v3095_v52  ;;  %v6356_v56 = vpack.c.bf16 %v3106_v60, %v3102_v3  ;;  %v3138_v31 = vld [vmem:[%s12197_s6 + $0x17a8] sm:$0xff]  ;;  %v3136_v37 = vld [vmem:[%s12197_s6 + $0x1798] sm:$0xff]  ;;  %v3133_v60 = vld [vmem:[%s12197_s6 + $0x1780] sm:$0xff] }
 0x642   :  { %v3140_v52 = vld [vmem:[%s12197_s6 + $0x17b8] sm:$0xff] }
 0x643   :  { %6339 = vmatpush1.bf16.msra.mxu0 %v6338_v22  ;;  %v6790_v22 = vpack.c.bf16 %v3108_v4, %v3104_v21  ;;  %v3137_v21 = vld [vmem:[%s12197_s6 + $0x17a0] sm:$0xff]  ;;  %v3135_v4 = vld [vmem:[%s12197_s6 + $0x1790] sm:$0xff] }
 0x644   :  { %6773 = vmatpush1.bf16.msra.mxu1 %v6772_v50  ;;  %6341 = vmatprep.subr.bf16.mxu0 %v6340_v47  ;;  %v3107_v50 = vld [vmem:[%s12197_s6 + $0x16b0] sm:$0xff]  ;;  %v3110_v47 = vld [vmem:[%s12197_s6 + $0x16c8] sm:$0xff] }
 0x645   :  { %6775 = vmatprep.subr.bf16.mxu1 %v6774_v54  ;;  %v6358_v54 = vpack.c.bf16 %v3105_v39, %v3101_v1  ;;  %v6792_v10 = vpack.c.bf16 %v3107_v50, %v3103_v62  ;;  %v6360_v58 = vpack.c.bf16 %v3114_v38, %v3110_v47  ;;  %v3146_v1 = vld [vmem:[%s12197_s6 + $0x17e8] sm:$0xff]  ;;  %v3144_v39 = vld [vmem:[%s12197_s6 + $0x17d8] sm:$0xff]  ;;  %v3141_v38 = vld [vmem:[%s12197_s6 + $0x17c0] sm:$0xff] }
 0x646   :  { %v3148_v62 = vld [vmem:[%s12197_s6 + $0x17f8] sm:$0xff] }
 0x647   :  { %6343 = vmatpush1.bf16.msra.mxu0 %v6342_v59  ;;  %v6794_v59 = vpack.c.bf16 %v3116_v46, %v3112_v43  ;;  %v3145_v43 = vld [vmem:[%s12197_s6 + $0x17e0] sm:$0xff]  ;;  %v3143_v46 = vld [vmem:[%s12197_s6 + $0x17d0] sm:$0xff] }
 0x648   :  { %6777 = vmatpush1.bf16.msra.mxu1 %v6776_v57  ;;  %6345 = vmatprep.subr.bf16.mxu0 %v6344_v44  ;;  %v3115_v57 = vld [vmem:[%s12197_s6 + $0x16f0] sm:$0xff]  ;;  %v3118_v44 = vld [vmem:[%s12197_s6 + $0x1708] sm:$0xff] }
 0x649   :  { %6779 = vmatprep.subr.bf16.mxu1 %v6778_v55  ;;  %v6362_v55 = vpack.c.bf16 %v3113_v26, %v3109_v61  ;;  %v6796_v11 = vpack.c.bf16 %v3115_v57, %v3111_v0  ;;  %v6364_v14 = vpack.c.bf16 %v3122_v2, %v3118_v44  ;;  %v3154_v61 = vld [vmem:[%s12197_s6 + $0x1828] sm:$0xff]  ;;  %v2241_v26 = vmax.f32 %v9176_v6, %v9563_v7  ;;  %v3152_v0 = vld [vmem:[%s12197_s6 + $0x1818] sm:$0xff]  ;;  %v3153_v6 = vld [vmem:[%s12197_s6 + $0x1820] sm:$0xff] }
 0x64a   :  { %v6378_v57 = vpack.c.bf16 %v3145_v43, %v3141_v38  ;;  %v3188_v38 = vld [vmem:[%s12197_s6 + $0x1938] sm:$0xff] }
 0x64b   :  { %6347 = vmatpush1.bf16.msra.mxu0 %v6346_v12  ;;  %v6798_v12 = vpack.c.bf16 %v3124_v35, %v3120_v45  ;;  %v3149_v45 = vld [vmem:[%s12197_s6 + $0x1800] sm:$0xff]  ;;  %v3151_v35 = vld [vmem:[%s12197_s6 + $0x1810] sm:$0xff] }
 0x64c   :  { %6781 = vmatpush1.bf16.msra.mxu1 %v6780_v20  ;;  %6349 = vmatprep.subr.bf16.mxu0 %v6348_v30  ;;  %v3123_v20 = vld [vmem:[%s12197_s6 + $0x1730] sm:$0xff]  ;;  %v3126_v30 = vld [vmem:[%s12197_s6 + $0x1748] sm:$0xff] }
 0x64d   :  { %6783 = vmatprep.subr.bf16.mxu1 %v6782_v32  ;;  %v6366_v32 = vpack.c.bf16 %v3121_v27, %v3117_v34  ;;  %v6800_v48 = vpack.c.bf16 %v3123_v20, %v3119_v23  ;;  %v6368_v36 = vpack.c.bf16 %v3130_v41, %v3126_v30  ;;  %v3162_v34 = vld [vmem:[%s12197_s6 + $0x1868] sm:$0xff]  ;;  %v6382_v27 = vpack.c.bf16 %v3153_v6, %v3149_v45  ;;  %v3160_v23 = vld [vmem:[%s12197_s6 + $0x1858] sm:$0xff]  ;;  %v3157_v20 = vld [vmem:[%s12197_s6 + $0x1840] sm:$0xff] }
 0x64e   :  { %v3161_v30 = vld [vmem:[%s12197_s6 + $0x1860] sm:$0xff]  ;;  %v3159_v41 = vld [vmem:[%s12197_s6 + $0x1850] sm:$0xff] }
 0x64f   :  { %6351 = vmatpush1.bf16.msra.mxu0 %v6350_v42  ;;  %v6802_v42 = vpack.c.bf16 %v3132_v19, %v3128_v5  ;;  %v3163_v19 = vld [vmem:[%s12197_s6 + $0x1870] sm:$0xff] }
 0x650   :  { %6785 = vmatpush1.bf16.msra.mxu1 %v6784_v24  ;;  %6353 = vmatprep.subr.bf16.mxu0 %v6352_v9  ;;  %v3131_v24 = vld [vmem:[%s12197_s6 + $0x1770] sm:$0xff]  ;;  %v3134_v9 = vld [vmem:[%s12197_s6 + $0x1788] sm:$0xff] }
 0x651   :  { %6787 = vmatprep.subr.bf16.mxu1 %v6786_v51  ;;  %v6370_v51 = vpack.c.bf16 %v3129_v53, %v3125_v15  ;;  %v6804_v29 = vpack.c.bf16 %v3131_v24, %v3127_v18  ;;  %v6372_v3 = vpack.c.bf16 %v3138_v31, %v3134_v9  ;;  %v3168_v53 = vld [vmem:[%s12197_s6 + $0x1898] sm:$0xff]  ;;  %v6820_v24 = vpack.c.bf16 %v3163_v19, %v3159_v41  ;;  %v3165_v9 = vld [vmem:[%s12197_s6 + $0x1880] sm:$0xff] }
 0x652   :  { %v3172_v18 = vld [vmem:[%s12197_s6 + $0x18b8] sm:$0xff]  ;;  %v3169_v31 = vld [vmem:[%s12197_s6 + $0x18a0] sm:$0xff] }
 0x653   :  { %6355 = vmatpush1.bf16.msra.mxu0 %v6354_v16  ;;  %v6806_v16 = vpack.c.bf16 %v3140_v52, %v3136_v37  ;;  %v3167_v37 = vld [vmem:[%s12197_s6 + $0x1890] sm:$0xff]  ;;  %v3201_v19 = vld [vmem:[%s12197_s6 + $0x19a0] sm:$0xff] }
 0x654   :  { %6789 = vmatpush1.bf16.msra.mxu1 %v6788_v63  ;;  %6357 = vmatprep.subr.bf16.mxu0 %v6356_v56  ;;  %v3139_v63 = vld [vmem:[%s12197_s6 + $0x17b0] sm:$0xff]  ;;  %v3142_v56 = vld [vmem:[%s12197_s6 + $0x17c8] sm:$0xff] }
 0x655   :  { %6791 = vmatprep.subr.bf16.mxu1 %v6790_v22  ;;  %v6374_v22 = vpack.c.bf16 %v3137_v21, %v3133_v60  ;;  %v6808_v50 = vpack.c.bf16 %v3139_v63, %v3135_v4  ;;  %v6376_v47 = vpack.c.bf16 %v3146_v1, %v3142_v56  ;;  %v3171_v52 = vld [vmem:[%s12197_s6 + $0x18b0] sm:$0xff]  ;;  %v3180_v60 = vld [vmem:[%s12197_s6 + $0x18f8] sm:$0xff]  ;;  %v6390_v21 = vpack.c.bf16 %v3169_v31, %v3165_v9  ;;  %v3173_v63 = vld [vmem:[%s12197_s6 + $0x18c0] sm:$0xff] }
 0x656   :  { %v6824_v4 = vpack.c.bf16 %v3171_v52, %v3167_v37  ;;  %v3177_v56 = vld [vmem:[%s12197_s6 + $0x18e0] sm:$0xff]  ;;  %v3175_v1 = vld [vmem:[%s12197_s6 + $0x18d0] sm:$0xff] }
 0x657   :  { %6359 = vmatpush1.bf16.msra.mxu0 %v6358_v54  ;;  %v6810_v54 = vpack.c.bf16 %v3148_v62, %v3144_v39  ;;  %v3179_v62 = vld [vmem:[%s12197_s6 + $0x18f0] sm:$0xff]  ;;  %v6394_v43 = vpack.c.bf16 %v3177_v56, %v3173_v63  ;;  %v3205_v31 = vld [vmem:[%s12197_s6 + $0x19c0] sm:$0xff] }
 0x658   :  { %6793 = vmatpush1.bf16.msra.mxu1 %v6792_v10  ;;  %6361 = vmatprep.subr.bf16.mxu0 %v6360_v58  ;;  %v3147_v10 = vld [vmem:[%s12197_s6 + $0x17f0] sm:$0xff]  ;;  %v3150_v58 = vld [vmem:[%s12197_s6 + $0x1808] sm:$0xff]  ;;  %v3209_v37 = vld [vmem:[%s12197_s6 + $0x19e0] sm:$0xff] }
 0x659   :  { %6795 = vmatprep.subr.bf16.mxu1 %v6794_v59  ;;  %v3156_v59 = vld [vmem:[%s12197_s6 + $0x1838] sm:$0xff]  ;;  %v6812_v44 = vpack.c.bf16 %v3147_v10, %v3143_v46  ;;  %v6380_v2 = vpack.c.bf16 %v3154_v61, %v3150_v58  ;;  %v6828_v46 = vpack.c.bf16 %v3179_v62, %v3175_v1  ;;  %v3181_v10 = vld [vmem:[%s12197_s6 + $0x1900] sm:$0xff]  ;;  %v3183_v61 = vld [vmem:[%s12197_s6 + $0x1910] sm:$0xff] }
 0x65a   :  { %v6814_v7 = vpack.c.bf16 %v3156_v59, %v3152_v0  ;;  %v3185_v58 = vld [vmem:[%s12197_s6 + $0x1920] sm:$0xff]  ;;  %v3187_v0 = vld [vmem:[%s12197_s6 + $0x1930] sm:$0xff]  ;;  %v3190_v59 = vld [vmem:[%s12197_s6 + $0x1948] sm:$0xff] }
 0x65b   :  { %6363 = vmatpush1.bf16.msra.mxu0 %v6362_v55  ;;  %v3155_v55 = vld [vmem:[%s12197_s6 + $0x1830] sm:$0xff]  ;;  %v6398_v45 = vpack.c.bf16 %v3185_v58, %v3181_v10  ;;  %v6832_v6 = vpack.c.bf16 %v3187_v0, %v3183_v61  ;;  %v3213_v56 = vld [vmem:[%s12197_s6 + $0x1a00] sm:$0xff] }
 0x65c   :  { %6797 = vmatpush1.bf16.msra.mxu1 %v6796_v11  ;;  %6365 = vmatprep.subr.bf16.mxu0 %v6364_v14  ;;  %v2311_v11 = vmax.f32 %v2241_v26, %v9583_v49  ;;  %v3158_v14 = vld [vmem:[%s12197_s6 + $0x1848] sm:$0xff]  ;;  %v6816_v49 = vpack.c.bf16 %v3155_v55, %v3151_v35  ;;  %v3189_v35 = vld [vmem:[%s12197_s6 + $0x1940] sm:$0xff] }
 0x65d   :  { %6799 = vmatprep.subr.bf16.mxu1 %v6798_v12  ;;  %v3164_v12 = vld [vmem:[%s12197_s6 + $0x1878] sm:$0xff]  ;;  %v6384_v5 = vpack.c.bf16 %v3162_v34, %v3158_v14  ;;  %v3193_v55 = vld [vmem:[%s12197_s6 + $0x1960] sm:$0xff]  ;;  %v3195_v34 = vld [vmem:[%s12197_s6 + $0x1970] sm:$0xff] }
 0x65e   :  { %v6818_v15 = vpack.c.bf16 %v3164_v12, %v3160_v23  ;;  %v3202_v23 = vld [vmem:[%s12197_s6 + $0x19a8] sm:$0xff]  ;;  %v3200_v12 = vld [vmem:[%s12197_s6 + $0x1998] sm:$0xff]  ;;  %v3217_v1 = vld [vmem:[%s12197_s6 + $0x1a20] sm:$0xff] }
 0x65f   :  { %6367 = vmatpush1.bf16.msra.mxu0 %v6366_v32  ;;  %v3166_v32 = vld [vmem:[%s12197_s6 + $0x1888] sm:$0xff]  ;;  %v3221_v58 = vld [vmem:[%s12197_s6 + $0x1a40] sm:$0xff] }
 0x660   :  { %6801 = vmatpush1.bf16.msra.mxu1 %v6800_v48  ;;  %6369 = vmatprep.subr.bf16.mxu0 %v6368_v36  ;;  %v3170_v48 = vld [vmem:[%s12197_s6 + $0x18a8] sm:$0xff]  ;;  %v2380_v36 = vmax.f32 %v2311_v11, %v9606_v33  ;;  %v3191_v11 = vld [vmem:[%s12197_s6 + $0x1950] sm:$0xff]  ;;  %v3225_v61 = vld [vmem:[%s12197_s6 + $0x1a60] sm:$0xff] }
 0x661   :  { %6803 = vmatprep.subr.bf16.mxu1 %v6802_v42  ;;  %v6386_v42 = vpack.c.bf16 %v3161_v30, %v3157_v20  ;;  %v6388_v33 = vpack.c.bf16 %v3170_v48, %v3166_v32  ;;  %v6402_v20 = vpack.c.bf16 %v3193_v55, %v3189_v35  ;;  %v6836_v30 = vpack.c.bf16 %v3195_v34, %v3191_v11  ;;  %v3199_v32 = vld [vmem:[%s12197_s6 + $0x1990] sm:$0xff]  ;;  %v3229_v55 = vld [vmem:[%s12197_s6 + $0x1a80] sm:$0xff] }
 0x662   :  { %v3233_v11 = vld [vmem:[%s12197_s6 + $0x1aa0] sm:$0xff] }
 0x663   :  { %6371 = vmatpush1.bf16.msra.mxu0 %v6370_v51  ;;  %v3174_v51 = vld [vmem:[%s12197_s6 + $0x18c8] sm:$0xff] }
 0x664   :  { %6805 = vmatpush1.bf16.msra.mxu1 %v6804_v29  ;;  %6373 = vmatprep.subr.bf16.mxu0 %v6372_v3  ;;  %v3178_v29 = vld [vmem:[%s12197_s6 + $0x18e8] sm:$0xff]  ;;  %v3176_v3 = vld [vmem:[%s12197_s6 + $0x18d8] sm:$0xff] }
 0x665   :  { %6807 = vmatprep.subr.bf16.mxu1 %v6806_v16  ;;  %v6392_v16 = vpack.c.bf16 %v3178_v29, %v3174_v51  ;;  %v6826_v39 = vpack.c.bf16 %v3180_v60, %v3176_v3  ;;  %v3211_v51 = vld [vmem:[%s12197_s6 + $0x19f0] sm:$0xff]  ;;  %v3214_v29 = vld [vmem:[%s12197_s6 + $0x1a08] sm:$0xff]  ;;  %v3216_v60 = vld [vmem:[%s12197_s6 + $0x1a18] sm:$0xff] }
 0x666   :  { %v3218_v3 = vld [vmem:[%s12197_s6 + $0x1a28] sm:$0xff] }
 0x667   :  { %6375 = vmatpush1.bf16.msra.mxu0 %v6374_v22  ;;  %v3182_v22 = vld [vmem:[%s12197_s6 + $0x1908] sm:$0xff]  ;;  %v6412_v63 = vpack.c.bf16 %v3218_v3, %v3214_v29 }
 0x668   :  { %6809 = vmatpush1.bf16.msra.mxu1 %v6808_v50  ;;  %6377 = vmatprep.subr.bf16.mxu0 %v6376_v47  ;;  %v3186_v50 = vld [vmem:[%s12197_s6 + $0x1928] sm:$0xff]  ;;  %v3184_v47 = vld [vmem:[%s12197_s6 + $0x1918] sm:$0xff] }
 0x669   :  { %6811 = vmatprep.subr.bf16.mxu1 %v6810_v54  ;;  %v6396_v54 = vpack.c.bf16 %v3186_v50, %v3182_v22  ;;  %v6830_v26 = vpack.c.bf16 %v3188_v38, %v3184_v47  ;;  %v3219_v22 = vld [vmem:[%s12197_s6 + $0x1a30] sm:$0xff]  ;;  %v3222_v50 = vld [vmem:[%s12197_s6 + $0x1a48] sm:$0xff]  ;;  %v3224_v38 = vld [vmem:[%s12197_s6 + $0x1a58] sm:$0xff] }
 0x66a   :  { %v3226_v47 = vld [vmem:[%s12197_s6 + $0x1a68] sm:$0xff] }
 0x66b   :  { %6379 = vmatpush1.bf16.msra.mxu0 %v6378_v57  ;;  %v3194_v57 = vld [vmem:[%s12197_s6 + $0x1968] sm:$0xff]  ;;  %v6416_v10 = vpack.c.bf16 %v3226_v47, %v3222_v50 }
 0x66c   :  { %6813 = vmatpush1.bf16.msra.mxu1 %v6812_v44  ;;  %6381 = vmatprep.subr.bf16.mxu0 %v6380_v2  ;;  %v3192_v44 = vld [vmem:[%s12197_s6 + $0x1958] sm:$0xff] }
 0x66d   :  { %6815 = vmatprep.subr.bf16.mxu1 %v6814_v7  ;;  %v3196_v2 = vld [vmem:[%s12197_s6 + $0x1978] sm:$0xff]  ;;  %v6400_v7 = vpack.c.bf16 %v3194_v57, %v3190_v59  ;;  %v3227_v59 = vld [vmem:[%s12197_s6 + $0x1a70] sm:$0xff]  ;;  %v3230_v57 = vld [vmem:[%s12197_s6 + $0x1a88] sm:$0xff] }
 0x66e   :  { %3682 = vmatmul.mubr.f32.vlgmr.msra.gmra.mrb[8].mxu0 %v9643_v28  ;;  %v6834_v14 = vpack.c.bf16 %v3196_v2, %v3192_v44  ;;  %v3234_v44 = vld [vmem:[%s12197_s6 + $0x1aa8] sm:$0xff]  ;;  %v3232_v2 = vld [vmem:[%s12197_s6 + $0x1a98] sm:$0xff] }
 0x66f   :  { %4179 = vmatmul.mubr.f32.vlgmr.msra.gmra.mrb[8].mxu1 %v9643_v28  ;;  %6383 = vmatpush1.bf16.msra.mxu0 %v6382_v27  ;;  %v6822_v28 = vpack.c.bf16 %v3172_v18, %v3168_v53  ;;  %v3198_v27 = vld [vmem:[%s12197_s6 + $0x1988] sm:$0xff]  ;;  %v3208_v18 = vld [vmem:[%s12197_s6 + $0x19d8] sm:$0xff]  ;;  %v6420_v35 = vpack.c.bf16 %v3234_v44, %v3230_v57 }
 0x670   :  { %5666 = vmatprep.mubr.msk.f32.mxu0 %vm3245_vm4, %v2380_v36  ;;  %6817 = vmatpush1.bf16.msra.mxu1 %v6816_v49  ;;  %v3204_v49 = vld [vmem:[%s12197_s6 + $0x19b8] sm:$0xff]  ;;  %v6404_v41 = vpack.c.bf16 %v3202_v23, %v3198_v27  ;;  %v3210_v53 = vld [vmem:[%s12197_s6 + $0x19e8] sm:$0xff]  ;;  %v3235_v27 = vld [vmem:[%s12197_s6 + $0x1ab0] sm:$0xff] }
 0x671   :  { %5669 = vmatprep.mubr.msk.f32.mxu1 %vm3245_vm4, %v2380_v36  ;;  %6385 = vmatprep.subr.bf16.mxu0 %v6384_v5  ;;  %v3197_v5 = vld [vmem:[%s12197_s6 + $0x1980] sm:$0xff]  ;;  %v6838_v48 = vpack.c.bf16 %v3204_v49, %v3200_v12  ;;  %v3203_v36 = vld [vmem:[%s12197_s6 + $0x19b0] sm:$0xff]  ;;  %v3238_v23 = vld [vmem:[%s12197_s6 + $0x1ac8] sm:$0xff]  ;;  %vm4363_vm4 = vcmask 285696  }
 0x672   :  { %6819 = vmatprep.subr.bf16.mxu1 %v6818_v15  ;;  %v3206_v15 = vld [vmem:[%s12197_s6 + $0x19c8] sm:$0xff]  ;;  %v3240_v49 = vld [vmem:[%s12197_s6 + $0x1ad8] sm:$0xff] }
 0x673   :  { %6387 = vmatpush1.bf16.msra.mxu0 %v6386_v42  ;;  %v3212_v42 = vld [vmem:[%s12197_s6 + $0x19f8] sm:$0xff]  ;;  %v6408_v9 = vpack.c.bf16 %v3210_v53, %v3206_v15  ;;  %v3242_v12 = vld [vmem:[%s12197_s6 + $0x1ae8] sm:$0x7]  ;;  %v3243_v15 = vld [vmem:[%s12197_s6 + $0x1af0] sm:$0x7] }
 0x674   :  { %6821 = vmatpush1.bf16.msra.mxu1 %v6820_v24  ;;  %6389 = vmatprep.subr.bf16.mxu0 %v6388_v33  ;;  %v6406_v24 = vpack.c.bf16 %v3201_v19, %v3197_v5  ;;  %v6840_v33 = vpack.c.bf16 %v3203_v36, %v3199_v32  ;;  %v6842_v52 = vpack.c.bf16 %v3212_v42, %v3208_v18  ;;  %v3237_v19 = vld [vmem:[%s12197_s6 + $0x1ac0] sm:$0xff]  ;;  %v3239_v36 = vld [vmem:[%s12197_s6 + $0x1ad0] sm:$0xff]  ;;  %v12277_v42 = vmov 0.0|0.0  }
 0x675   :  { %6823 = vmatprep.subr.bf16.mxu1 %v6822_v28  ;;  %v3207_v28 = vld [vmem:[%s12197_s6 + $0x19d0] sm:$0xff]  ;;  %v6424_v5 = vpack.c.bf16 %v3242_v12, %v3238_v23  ;;  %v3241_v32 = vld [vmem:[%s12197_s6 + $0x1ae0] sm:$0x7]  ;;  %v6861_v18 = vpack.c.bf16 %v3243_v15, %v3239_v36 }
 0x676   :  { %v6427_v53 = vpack.c.bf16 %v3241_v32, %v3237_v19 }
 0x677   :  { %6391 = vmatpush1.bf16.msra.mxu0 %v6390_v21  ;;  %v3220_v21 = vld [vmem:[%s12197_s6 + $0x1a38] sm:$0xff] }
 0x678   :  { %6825 = vmatpush1.bf16.msra.mxu1 %v6824_v4  ;;  %6393 = vmatprep.subr.bf16.mxu0 %v6392_v16  ;;  %v6410_v4 = vpack.c.bf16 %v3209_v37, %v3205_v31  ;;  %v6844_v16 = vpack.c.bf16 %v3211_v51, %v3207_v28  ;;  %v6846_v62 = vpack.c.bf16 %v3220_v21, %v3216_v60 }
 0x679   :  { %6827 = vmatprep.subr.bf16.mxu1 %v6826_v39  ;;  %v3215_v39 = vld [vmem:[%s12197_s6 + $0x1a10] sm:$0xff] }
 0x67b   :  { %6395 = vmatpush1.bf16.msra.mxu0 %v6394_v43  ;;  %v3228_v43 = vld [vmem:[%s12197_s6 + $0x1a78] sm:$0xff] }
 0x67c   :  { %6829 = vmatpush1.bf16.msra.mxu1 %v6828_v46  ;;  %6397 = vmatprep.subr.bf16.mxu0 %v6396_v54  ;;  %v6414_v46 = vpack.c.bf16 %v3217_v1, %v3213_v56  ;;  %v6848_v54 = vpack.c.bf16 %v3219_v22, %v3215_v39  ;;  %v6850_v0 = vpack.c.bf16 %v3228_v43, %v3224_v38  ;;  %v4551_v1 = vld [vmem:[%s12199_s8 + $0x8] sm:$0xff]  ;;  %v4550_v39 = vld [vmem:[%s12199_s8] sm:$0xff] }
 0x67d   :  { %6831 = vmatprep.subr.bf16.mxu1 %v6830_v26  ;;  %v3223_v26 = vld [vmem:[%s12197_s6 + $0x1a50] sm:$0xff] }
 0x67f   :  { %6399 = vmatpush1.bf16.msra.mxu0 %v6398_v45  ;;  %v3236_v45 = vld [vmem:[%s12197_s6 + $0x1ab8] sm:$0xff] }
 0x680   :  { %6833 = vmatpush1.bf16.msra.mxu1 %v6832_v6  ;;  %6401 = vmatprep.subr.bf16.mxu0 %v6400_v7  ;;  %v6418_v6 = vpack.c.bf16 %v3225_v61, %v3221_v58  ;;  %v6852_v7 = vpack.c.bf16 %v3227_v59, %v3223_v26  ;;  %v6854_v34 = vpack.c.bf16 %v3236_v45, %v3232_v2 }
 0x681   :  { %6835 = vmatprep.subr.bf16.mxu1 %v6834_v14  ;;  %v3231_v14 = vld [vmem:[%s12197_s6 + $0x1a90] sm:$0xff] }
 0x683   :  { %6403 = vmatpush1.bf16.msra.mxu0 %v6402_v20  ;;  %v3244_v20 = vld [vmem:[%s12197_s6 + $0x1af8] sm:$0x7]  ;;  %s7217_s6 = smov 33  }
 0x684   :  { %6837 = vmatpush1.bf16.msra.mxu1 %v6836_v30  ;;  %6405 = vmatprep.subr.bf16.mxu0 %v6404_v41  ;;  %v6422_v30 = vpack.c.bf16 %v3233_v11, %v3229_v55  ;;  %v6856_v41 = vpack.c.bf16 %v3235_v27, %v3231_v14 }
 0x685   :  { %6839 = vmatprep.subr.bf16.mxu1 %v6838_v48  ;;  %v6858_v48 = vpack.c.bf16 %v3244_v20, %v3240_v49 }
 0x687   :  { %6407 = vmatpush1.bf16.msra.mxu0 %v6406_v24  ;;  %v12278_v24 = vmov 0.0  }
 0x688   :  { %6841 = vmatpush1.bf16.msra.mxu1 %v6840_v33  ;;  %6409 = vmatprep.subr.bf16.mxu0 %v6408_v9 }
 0x689   :  { %6843 = vmatprep.subr.bf16.mxu1 %v6842_v52 }
 0x68b   :  { %6411 = vmatpush1.bf16.msra.mxu0 %v6410_v4 }
 0x68c   :  { %6845 = vmatpush1.bf16.msra.mxu1 %v6844_v16  ;;  %6413 = vmatprep.subr.bf16.mxu0 %v6412_v63 }
 0x68d   :  { %6847 = vmatprep.subr.bf16.mxu1 %v6846_v62  ;;  %v4552_v62 = vld [vmem:[%s12199_s8 + $0x10] sm:$0xff]  ;;  %s7230_s8 = smov [#allocation3]  }
 0x68f   :  { %6415 = vmatpush1.bf16.msra.mxu0 %v6414_v46 }
 0x690   :  { %6849 = vmatpush1.bf16.msra.mxu1 %v6848_v54  ;;  %6417 = vmatprep.subr.bf16.mxu0 %v6416_v10 }
 0x691   :  { %6851 = vmatprep.subr.bf16.mxu1 %v6850_v0 }
 0x693   :  { %6419 = vmatpush1.bf16.msra.mxu0 %v6418_v6 }
 0x694   :  { %6853 = vmatpush1.bf16.msra.mxu1 %v6852_v7  ;;  %6421 = vmatprep.subr.bf16.mxu0 %v6420_v35 }
 0x695   :  { %6855 = vmatprep.subr.bf16.mxu1 %v6854_v34 }
 0x697   :  { %6423 = vmatpush1.bf16.msra.mxu0 %v6422_v30 }
 0x698   :  { %6857 = vmatpush1.bf16.msra.mxu1 %v6856_v41  ;;  %6426 = vmatprep.subr.msk.bf16.mxu0 %vm6425_vm13, %v6424_v5 }
 0x699   :  { %6860 = vmatprep.subr.msk.bf16.mxu1 %vm6425_vm13, %v6858_v48 }
 0x69b   :  { %6429 = vmatpush1.bf16.msk.msra.mxu0 %vm6425_vm13, %v6427_v53 }
 0x69c   :  { %6863 = vmatpush1.bf16.msk.msra.mxu1 %vm6425_vm13, %v6861_v18  ;;  %vm12283_vm13 = vmmov %vm12282_vm5 }
 0x69d   :  { %6890 = vmatprep.subr.bf16.mxu1 %v12277_v42 }
 0x69e   :  { %3753 = vmatmul.mubr.f32.vlgmr.msra.gmra.mrb[8].mxu0 %v9623_v17 }
 0x69f   :  { %4250 = vmatmul.mubr.f32.vlgmr.msra.gmra.mrb[8].mxu1 %v9623_v17  ;;  %4652 = vmatprep.mubr.f32.mxu0 %v12278_v24 }
 0x6a0   :  { %5824 = vmatprep.mubr.msk.f32.mxu1 %vm7216_vm1, %v12278_v24 }
 0x771   :  { %v3754_v33 = vpop.f32.mrb[8].mxu0 }
 0x772   :  { %4256 = vst [vmem:[#allocation2] sm:$0x3f] %v3754_v33  ;;  %v4251_v9 = vpop.f32.mrb[8].mxu1  ;;  %v3756_v31 = vpop.f32.mrb[9].mxu0  ;;  %v4263_v17 = vrot.slane %v3754_v33, 2  ;;  %v4307_v28 = vrot.slane %v3754_v33, 6 }
 0x773   :  { %4394 = vrot.lane.b32.xlu0 %v4251_v9, %s7217_s6  ;;  %4329 = vrot.lane.b32.xlu1 %v4251_v9, %s12279_s5  ;;  %4257 = vst [vmem:[#allocation2 + $0x8] sm:$0x3f] %v3756_v31  ;;  %v4253_v37 = vpop.f32.mrb[9].mxu1  ;;  %4259 = vst.msk [vmem:[#allocation2 + $0x10] sm:$0x3f] %vm4258_vm14, %v4251_v9  ;;  %v4265_v52 = vrot.slane %v4251_v9, 2 }
 0x774   :  { %v4287_v51 = vrot.slane %v4251_v9, 4  ;;  %v4309_v29 = vrot.slane %v4251_v9, 6  ;;  %v4285_v3 = vrot.slane %v3754_v33, 4  ;;  %v4286_v60 = vrot.slane %v3756_v31, 4 }
 0x775   :  { %v4264_v21 = vrot.slane %v3756_v31, 2  ;;  %v4308_v4 = vrot.slane %v3756_v31, 6  ;;  %v4424_v16 = vrot.slane %v4253_v37, 4  ;;  %v4443_v63 = vrot.slane %v4253_v37, 6 }
 0x776   :  { %v4474_v56 = vrot.slane %v4253_v37, 2 }
 0x777   :  { %4461 = vrot.lane.b32.xlu0 %v4251_v9, %s7218_s30  ;;  %4325 = vrot.lane.b32.xlu1 %v3754_v33, %s12279_s5 }
 0x77b   :  { %4390 = vrot.lane.b32.xlu1 %v3754_v33, %s7217_s6  ;;  %4327 = vrot.lane.b32.xlu0 %v3756_v31, %s12279_s5 }
 0x77f   :  { %4392 = vrot.lane.b32.xlu1 %v3756_v31, %s7217_s6  ;;  %4266 = vrot.lane.b32.xlu0 %v4263_v17, %s7204_s29 }
 0x783   :  { %4463 = vrot.lane.b32.xlu1 %v4253_v37, %s7218_s30  ;;  %4310 = vrot.lane.b32.xlu0 %v4307_v28, %s12280_s28 }
 0x787   :  { %4459 = vrot.lane.b32.xlu1 %v3756_v31, %s7218_s30  ;;  %4339 = vrot.lane.b32.xlu0 %v4263_v17, %s7219_s25  ;;  %s7227_s30 = smov 28  }
 0x78b   :  { %4270 = vrot.lane.b32.xlu1 %v4265_v52, %s7204_s29  ;;  %4361 = vrot.lane.b32.xlu0 %v4287_v51, %s7220_s27 }
 0x78f   :  { %4292 = vrot.lane.b32.xlu1 %v4287_v51, %s12281_s3  ;;  %4379 = vrot.lane.b32.xlu0 %v4309_v29, %s7221_s22 }
 0x793   :  { %4288 = vrot.lane.b32.xlu1 %v4285_v3, %s12281_s3  ;;  %4375 = vrot.lane.b32.xlu0 %v4307_v28, %s7221_s22 }
 0x797   :  { %4314 = vrot.lane.b32.xlu1 %v4309_v29, %s12280_s28  ;;  %4409 = vrot.lane.b32.xlu0 %v4265_v52, %s7222_s23 }
 0x79b   :  { %4343 = vrot.lane.b32.xlu1 %v4265_v52, %s7219_s25  ;;  %4405 = vrot.lane.b32.xlu0 %v4263_v17, %s7222_s23 }
 0x79f   :  { %4357 = vrot.lane.b32.xlu1 %v4285_v3, %s7220_s27  ;;  %4446 = vrot.lane.b32.xlu0 %v4309_v29, %s7223_s1 }
 0x7a3   :  { %4427 = vrot.lane.b32.xlu1 %v4287_v51, %s7224_s24  ;;  %4477 = vrot.lane.b32.xlu0 %v4265_v52, %s7225_s2 }
 0x7a7   :  { %4359 = vrot.lane.b32.xlu1 %v4286_v60, %s7220_s27  ;;  %4268 = vrot.lane.b32.xlu0 %v4264_v21, %s7204_s29 }
 0x7ab   :  { %4377 = vrot.lane.b32.xlu1 %v4308_v4, %s7221_s22  ;;  %4290 = vrot.lane.b32.xlu0 %v4286_v60, %s12281_s3  ;;  %s5619_s22 = sshll.u32 %s7230_s8, 4  ;;  %s5620_s22 = int_to_ptr.vmem [resolvable:$true] %s5619_s22 }
 0x7ac   :  { %p7183_p1 = scmp.lt.s32.totalorder %s5620_s22, %s5620_s22 }
 0x7af   :  { %4407 = vrot.lane.b32.xlu1 %v4264_v21, %s7222_s23  ;;  %4312 = vrot.lane.b32.xlu0 %v4308_v4, %s12280_s28  ;;  %s7178_s23 = scalar_lea.vmem %s5620_s22, 16 }
 0x7b0   :  { %p7179_p0 = scmp.ne.s32.totalorder %s5620_s22, %s7178_s23 }
 0x7b3   :  { %4425 = vrot.lane.b32.xlu1 %v4286_v60, %s7224_s24  ;;  %4341 = vrot.lane.b32.xlu0 %v4264_v21, %s7219_s25  ;;  %s7228_s25 = smov 14  }
 0x7b7   :  { %4448 = vrot.lane.b32.xlu1 %v4443_v63, %s7223_s1  ;;  %4429 = vrot.lane.b32.xlu0 %v4424_v16, %s7224_s24 }
 0x7bb   :  { %4479 = vrot.lane.b32.xlu1 %v4474_v56, %s7225_s2  ;;  %4444 = vrot.lane.b32.xlu0 %v4308_v4, %s7223_s1  ;;  %s7182_s1 = scalar_lea.vmem %s5620_s22, 32 }
 0x7bc   :  { %p7184_p2 = scmp.lt.s32.totalorder %s7182_s1, %s7178_s23 }
 0x7be   :  { %p7185_p3 = por %p7184_p2, %p7183_p1 }
 0x7bf   :  { %4495 = vrot.lane.b32.xlu1 %v4287_v51, %s7226_s4  ;;  %4475 = vrot.lane.b32.xlu0 %v4264_v21, %s7225_s2 }
 0x7c0   :  { %p7186_p4 = pnand %p7185_p3, %p7179_p0 }
 0x7c3   :  { %4493 = vrot.lane.b32.xlu1 %v4286_v60, %s7226_s4  ;;  %4497 = vrot.lane.b32.xlu0 %v4424_v16, %s7226_s4 }
 0x7c7   :  { %4560 = vperm.xlu1 %7045, %v4551_v1   ;;  %4555 = vperm.xlu0 %7044, %v4550_v39  }
 0x7cb   :  { %4565 = vperm.xlu0 %7044, %v4552_v62  }
 0x7e5   :  { %v4395_v22 = vpop.permute.xlu0 %4394  ;;  %v4330_v50 = vpop.permute.xlu1 %4329 }
 0x7e6   :  { %4404 = vst.msk [vmem:[#allocation2 + $0x2e0] sm:$0x3f] %vm4258_vm14, %v4395_v22  ;;  %4338 = vst.msk [vmem:[#allocation2 + $0x178] sm:$0x3f] %vm4258_vm14, %v4330_v50 }
 0x7e9   :  { %v4462_v47 = vpop.permute.xlu0 %4461  ;;  %v4326_v38 = vpop.permute.xlu1 %4325 }
 0x7ed   :  { %v4391_v43 = vpop.permute.xlu1 %4390  ;;  %v4328_v46 = vpop.permute.xlu0 %4327 }
 0x7ee   :  { %v4331_v54 = vsel %vm482_vm3, %v4326_v38, %v4328_v46  ;;  %v4332_v10 = vsel %vm482_vm3, %v4328_v46, %v4330_v50  ;;  %vm4279_vm3 = vcmask 130054  }
 0x7ef   :  { %4336 = vst [vmem:[#allocation2 + $0x168] sm:$0x3f] %v4331_v54  ;;  %4337 = vst [vmem:[#allocation2 + $0x170] sm:$0x3f] %v4332_v10 }
 0x7f1   :  { %v4393_v58 = vpop.permute.xlu1 %4392  ;;  %v11693_v61 = vpop.permute.xlu0 %4266 }
 0x7f2   :  { %v4397_v26 = vsel %vm4396_vm15, %v4391_v43, %v4393_v58  ;;  %v4398_v0 = vsel %vm4396_vm15, %v4393_v58, %v4395_v22  ;;  %vm4411_vm15 = vcmask 261120  }
 0x7f3   :  { %4402 = vst [vmem:[#allocation2 + $0x2d0] sm:$0x3f] %v4397_v26  ;;  %4403 = vst [vmem:[#allocation2 + $0x2d8] sm:$0x3f] %v4398_v0 }
 0x7f5   :  { %v4464_v59 = vpop.permute.xlu1 %4463  ;;  %v11695_v57 = vpop.permute.xlu0 %4310 }
 0x7f6   :  { %v4467_v44 = vsel %vm4465_vm6, %v4462_v47, %v4464_v59  ;;  %4473 = vst.msk [vmem:[#allocation2 + $0x448] sm:$0x3f] %vm4258_vm14, %v4464_v59  ;;  %vm4381_vm14 = vcmask 277504  }
 0x7f7   :  { %4472 = vst [vmem:[#allocation2 + $0x440] sm:$0x3f] %v4467_v44 }
 0x7f9   :  { %v4460_v2 = vpop.permute.xlu1 %4459  ;;  %v11698_v45 = vpop.permute.xlu0 %4339 }
 0x7fa   :  { %v4466_v6 = vsel %vm4465_vm6, %v4460_v2, %v4462_v47  ;;  %vm4431_vm6 = vcmask 588800  }
 0x7fb   :  { %4471 = vst [vmem:[#allocation2 + $0x438] sm:$0x3f] %v4466_v6 }
 0x7fd   :  { %v4271_v7 = vpop.permute.xlu1 %4270  ;;  %v4362_v35 = vpop.permute.xlu0 %4361 }
 0x7fe   :  { %4280 = vst.msk [vmem:[#allocation2 + $0x10] sm:$0xc0] %vm4279_vm3, %v4271_v7 }
 0x7ff   :  { %4284 = vst.msk [vmem:[#allocation2 + $0x88] sm:$0xf] %vm4283_vm7, %v4271_v7 }
 0x800   :  { %4371 = vst.msk [vmem:[#allocation2 + $0x1f0] sm:$0xf0] %vm4301_vm8, %v4362_v35 }
 0x801   :  { %4374 = vst.msk [vmem:[#allocation2 + $0x268] sm:$0x3] %vm4305_vm9, %v4362_v35  ;;  %v4293_v55 = vpop.permute.xlu1 %4292  ;;  %v4380_v11 = vpop.permute.xlu0 %4379 }
 0x802   :  { %4302 = vst.msk [vmem:[#allocation2 + $0x88] sm:$0xf0] %vm4301_vm8, %v4293_v55 }
 0x803   :  { %4306 = vst.msk [vmem:[#allocation2 + $0x100] sm:$0x3] %vm4305_vm9, %v4293_v55 }
 0x804   :  { %4389 = vst.msk [vmem:[#allocation2 + $0x268] sm:$0xfc] %vm4323_vm10, %v4380_v11 }
 0x805   :  { %v4289_v14 = vpop.permute.xlu1 %4288  ;;  %v4376_v34 = vpop.permute.xlu0 %4375  ;;  %v4516_v12 = vld [vmem:[#allocation2 + $0x10] sm:$0xff] }
 0x809   :  { %v4315_v27 = vpop.permute.xlu1 %4314  ;;  %v4410_v23 = vpop.permute.xlu0 %4409  ;;  %v4519_v49 = vld [vmem:[#allocation2 + $0x88] sm:$0xff] }
 0x80a   :  { %4324 = vst.msk [vmem:[#allocation2 + $0x100] sm:$0xfc] %vm4323_vm10, %v4315_v27  ;;  %v6891_v20 = vpack.c.bf16 %v4519_v49, %v4516_v12 }
 0x80b   :  { %4419 = vst.msk [vmem:[#allocation2 + $0x2e0] sm:$0xc0] %vm4279_vm3, %v4410_v23  ;;  %v4531_v33 = vld [vmem:[#allocation2 + $0x268] sm:$0xff] }
 0x80c   :  { %4422 = vst.msk [vmem:[#allocation2 + $0x358] sm:$0xf] %vm4283_vm7, %v4410_v23  ;;  %6892 = vmatpush3.bf16.msra.mxu1 %v6891_v20 }
 0x80d   :  { %v4344_v30 = vpop.permute.xlu1 %4343  ;;  %v4406_v41 = vpop.permute.xlu0 %4405  ;;  %6893 = vmatprep.subr.bf16.mxu1 %v12277_v42 }
 0x80e   :  { %4353 = vst.msk [vmem:[#allocation2 + $0x178] sm:$0xc0] %vm4279_vm3, %v4344_v30 }
 0x80f   :  { %4356 = vst.msk [vmem:[#allocation2 + $0x1f0] sm:$0xf] %vm4283_vm7, %v4344_v30 }
 0x811   :  { %v4358_v5 = vpop.permute.xlu1 %4357  ;;  %v11713_v19 = vpop.permute.xlu0 %4446  ;;  %v4522_v36 = vld [vmem:[#allocation2 + $0x100] sm:$0xff] }
 0x815   :  { %v11715_v32 = vpop.permute.xlu1 %4427  ;;  %v11717_v48 = vpop.permute.xlu0 %4477  ;;  %v4525_v15 = vld [vmem:[#allocation2 + $0x178] sm:$0xff] }
 0x816   :  { %v6894_v53 = vpack.c.bf16 %v4525_v15, %v4522_v36  ;;  %v4528_v18 = vld [vmem:[#allocation2 + $0x1f0] sm:$0xff] }
 0x817   :  { %v6897_v37 = vpack.c.bf16 %v4531_v33, %v4528_v18 }
 0x818   :  { %6895 = vmatpush3.bf16.msra.mxu1 %v6894_v53 }
 0x819   :  { %v4360_v9 = vpop.permute.xlu1 %4359  ;;  %v4269_v31 = vpop.permute.xlu0 %4268  ;;  %6896 = vmatprep.subr.bf16.mxu1 %v12277_v42 }
 0x81a   :  { %v4364_v17 = vsel %vm4363_vm4, %v4358_v5, %v4360_v9  ;;  %v4365_v28 = vsel %vm4363_vm4, %v4360_v9, %v4362_v35  ;;  %v4272_v52 = vsel %vm12282_vm5, %v11693_v61, %v4269_v31  ;;  %v4273_v51 = vsel %vm12283_vm13, %v4269_v31, %v4271_v7  ;;  %v4534_v5 = vld [vmem:[#allocation2 + $0x2e0] sm:$0xff] }
 0x81b   :  { %4369 = vst [vmem:[#allocation2 + $0x258] ss:$-116 sps:$4 sm:$0xf3] %v4364_v17   ;;  %4370 = vst [vmem:[#allocation2 + $0x260] ss:$-116 sps:$4 sm:$0xf3] %v4365_v28  }
 0x81c   :  { %4277 = vst [vmem:[#allocation2 + $0x78] ss:$-116 sps:$4 sm:$0xcf] %v4272_v52   ;;  %4278 = vst [vmem:[#allocation2 + $0x80] ss:$-116 sps:$4 sm:$0xcf] %v4273_v51   ;;  %6898 = vmatpush3.bf16.msra.mxu1 %v6897_v37 }
 0x81d   :  { %v4378_v29 = vpop.permute.xlu1 %4377  ;;  %v4291_v3 = vpop.permute.xlu0 %4290  ;;  %6899 = vmatprep.subr.bf16.mxu1 %v12277_v42  ;;  %vm4345_vm4 = vcmask 293888   ;;  %vm4481_vm5 = vcmask 564224  }
 0x81e   :  { %v4382_v60 = vsel %vm4381_vm14, %v4376_v34, %v4378_v29  ;;  %v4383_v21 = vsel %vm4381_vm14, %v4378_v29, %v4380_v11  ;;  %v4294_v4 = vsel %vm326_vm0, %v4289_v14, %v4291_v3  ;;  %v4295_v16 = vsel %vm326_vm0, %v4291_v3, %v4293_v55 }
 0x81f   :  { %4387 = vst [vmem:[#allocation2 + $0x258] sm:$0xfc] %v4382_v60  ;;  %4388 = vst [vmem:[#allocation2 + $0x260] sm:$0xfc] %v4383_v21 }
 0x820   :  { %4299 = vst [vmem:[#allocation2 + $0xf0] ss:$-116 sps:$4 sm:$0xf3] %v4294_v4   ;;  %4300 = vst [vmem:[#allocation2 + $0xf8] ss:$-116 sps:$4 sm:$0xf3] %v4295_v16  }
 0x821   :  { %v4408_v63 = vpop.permute.xlu1 %4407  ;;  %v4313_v56 = vpop.permute.xlu0 %4312 }
 0x822   :  { %v4412_v1 = vsel %vm4411_vm15, %v4406_v41, %v4408_v63  ;;  %v4413_v39 = vsel %vm4411_vm15, %v4408_v63, %v4410_v23  ;;  %v4316_v62 = vsel %vm406_vm2, %v11695_v57, %v4313_v56  ;;  %v4317_v22 = vsel %vm406_vm2, %v4313_v56, %v4315_v27 }
 0x823   :  { %4417 = vst [vmem:[#allocation2 + $0x348] ss:$-116 sps:$4 sm:$0xcf] %v4412_v1   ;;  %4418 = vst [vmem:[#allocation2 + $0x350] ss:$-116 sps:$4 sm:$0xcf] %v4413_v39  }
 0x824   :  { %4321 = vst [vmem:[#allocation2 + $0xf0] sm:$0xfc] %v4316_v62  ;;  %4322 = vst [vmem:[#allocation2 + $0xf8] sm:$0xfc] %v4317_v22  ;;  %v4515_v38 = vld [vmem:[#allocation2 + $0x8] sm:$0xff]  ;;  %v4514_v58 = vld [vmem:[#allocation2] sm:$0xff] }
 0x825   :  { %v4426_v50 = vpop.permute.xlu1 %4425  ;;  %v4342_v47 = vpop.permute.xlu0 %4341  ;;  %vm4450_vm2 = vcmask 580608  }
 0x826   :  { %v4432_v43 = vsel %vm4431_vm6, %v4426_v50, %v11715_v32  ;;  %v4346_v46 = vsel %vm4345_vm4, %v11698_v45, %v4342_v47  ;;  %v4347_v54 = vsel %vm4345_vm4, %v4342_v47, %v4344_v30  ;;  %v4530_v49 = vld [vmem:[#allocation2 + $0x260] sm:$0xff]  ;;  %v4529_v18 = vld [vmem:[#allocation2 + $0x258] sm:$0xff]  ;;  %v5529_v50 = vld [vmem:[%s12210_s19 + $0x8] sm:$0xff] }
 0x827   :  { %v4518_v10 = vld [vmem:[#allocation2 + $0x80] sm:$0xff]  ;;  %v4517_v61 = vld [vmem:[#allocation2 + $0x78] sm:$0xff]  ;;  %4437 = vst [vmem:[#allocation2 + $0x3c0] ss:$-116 sps:$4 sm:$0xf3] %v4432_v43  }
 0x828   :  { %4351 = vst [vmem:[#allocation2 + $0x1e0] ss:$-116 sps:$4 sm:$0xcf] %v4346_v46   ;;  %4352 = vst [vmem:[#allocation2 + $0x1e8] ss:$-116 sps:$4 sm:$0xcf] %v4347_v54   ;;  %v6864_v26 = vpack.c.bf16 %v4518_v10, %v4515_v38  ;;  %v6866_v0 = vpack.c.bf16 %v4517_v61, %v4514_v58 }
 0x829   :  { %v4449_v59 = vpop.permute.xlu1 %4448  ;;  %v4430_v57 = vpop.permute.xlu0 %4429  ;;  %v4511_v61 = vld [vmem:[%s12198_s7] sm:$0xff] }
 0x82a   :  { %6865 = vmatprep.subr.bf16.mxu0 %v6864_v26  ;;  %v4452_v44 = vsel %vm4450_vm2, %v11713_v19, %v4449_v59  ;;  %4458 = vst.msk [vmem:[#allocation2 + $0x3d0] sm:$0xfc] %vm4323_vm10, %v4449_v59  ;;  %v4433_v2 = vsel %vm4431_vm6, %v11715_v32, %v4430_v57  ;;  %v4533_v9 = vld [vmem:[#allocation2 + $0x2d8] sm:$0xff]  ;;  %v4532_v21 = vld [vmem:[#allocation2 + $0x2d0] sm:$0xff]  ;;  %v4512_v26 = vld [vmem:[%s12198_s7 + $0x8] sm:$0xff] }
 0x82b   :  { %4439 = vst.msk [vmem:[#allocation2 + $0x358] sm:$0xf0] %vm4301_vm8, %v4430_v57  ;;  %6867 = vmatpush1.bf16.msra.mxu0 %v6866_v0  ;;  %4457 = vst [vmem:[#allocation2 + $0x3c8] sm:$0xfc] %v4452_v44  ;;  %v4521_v7 = vld [vmem:[#allocation2 + $0xf8] sm:$0xff]  ;;  %v4520_v35 = vld [vmem:[#allocation2 + $0xf0] sm:$0xff] }
 0x82c   :  { %4442 = vst.msk [vmem:[#allocation2 + $0x3d0] sm:$0x3] %vm4305_vm9, %v4430_v57  ;;  %4438 = vst [vmem:[#allocation2 + $0x3c8] ss:$-116 sps:$4 sm:$0xf3] %v4433_v2   ;;  %v4513_v0 = vld [vmem:[%s12198_s7 + $0x10] sm:$0xff] }
 0x82d   :  { %v4480_v45 = vpop.permute.xlu1 %4479  ;;  %v4445_v6 = vpop.permute.xlu0 %4444  ;;  %v4751_v59 = vld [vmem:[%s12202_s11] sm:$0x7]  ;;  %vm12286_vm10 = vmmov %vm12283_vm13 }
 0x82e   :  { %v4483_v55 = vsel %vm4481_vm5, %v11717_v48, %v4480_v45  ;;  %4489 = vst.msk [vmem:[#allocation2 + $0x448] sm:$0xc0] %vm4279_vm3, %v4480_v45  ;;  %v4451_v11 = vsel %vm4450_vm2, %v4445_v6, %v11713_v19  ;;  %vm4499_vm3 = vcmask 556032   ;;  %v4535_v51 = vld [vmem:[#allocation2 + $0x348] sm:$0xff]  ;;  %v11790_v2 = vrot.slane %v4751_v59, %v8447_v13  ;;  %vm12287_vm13 = vmmov %vm12286_vm10 }
 0x82f   :  { %4492 = vst.msk [vmem:[#allocation2 + $0x4c0] sm:$0xf] %vm4283_vm7, %v4480_v45  ;;  %v4524_v14 = vld [vmem:[#allocation2 + $0x170] sm:$0xff]  ;;  %v4523_v34 = vld [vmem:[#allocation2 + $0x168] sm:$0xff]  ;;  %4456 = vst [vmem:[#allocation2 + $0x3c0] sm:$0xfc] %v4451_v11  ;;  %v6878_v4 = vpack.c.bf16 %v4535_v51, %v4532_v21  ;;  %v11793_v45 = vrot.slane %v4751_v59, %v8472_v40 }
 0x830   :  { %v4527_v27 = vld [vmem:[#allocation2 + $0x1e8] sm:$0xff]  ;;  %4488 = vst [vmem:[#allocation2 + $0x4b8] ss:$-116 sps:$4 sm:$0xcf] %v4483_v55   ;;  %v6868_v23 = vpack.c.bf16 %v4524_v14, %v4521_v7  ;;  %v6870_v12 = vpack.c.bf16 %v4523_v34, %v4520_v35  ;;  %v4526_v36 = vld [vmem:[#allocation2 + $0x1e0] sm:$0xff]  ;;  %vm4578_vm7 = vcmask 1041408   ;;  %v11798_v35 = vrot.slane %v4751_v59, %v8453_v25  ;;  %vm12288_vm14 = vmmov %vm12286_vm10 }
 0x831   :  { %v4496_v20 = vpop.permute.xlu1 %4495  ;;  %v4476_v30 = vpop.permute.xlu0 %4475  ;;  %v6872_v41 = vpack.c.bf16 %v4530_v49, %v4527_v27  ;;  %v6874_v33 = vpack.c.bf16 %v4529_v18, %v4526_v36  ;;  %vm12289_vm15 = vmmov %vm12286_vm10  ;;  %vm5219_vm2 = vcmask 621568  }
 0x832   :  { %6869 = vmatprep.subr.bf16.mxu0 %v6868_v23  ;;  %v4537_v32 = vld [vmem:[#allocation2 + $0x358] sm:$0xff]  ;;  %v4482_v15 = vsel %vm4481_vm5, %v4476_v30, %v11717_v48  ;;  %vm12290_vm6 = vmmov %vm12286_vm10  ;;  %vm5378_vm5 = vcmask 617472  }
 0x833   :  { %6871 = vmatpush1.bf16.msra.mxu0 %v6870_v12  ;;  %v6900_v19 = vpack.c.bf16 %v4537_v32, %v4534_v5  ;;  %v4536_v53 = vld [vmem:[#allocation2 + $0x350] sm:$0xff]  ;;  %4487 = vst [vmem:[#allocation2 + $0x4b0] ss:$-116 sps:$4 sm:$0xcf] %v4482_v15   ;;  %v4539_v16 = vld [vmem:[#allocation2 + $0x3c8] sm:$0xff]  ;;  %vm12291_vm4 = vmmov %vm12290_vm6 }
 0x834   :  { %6873 = vmatprep.subr.bf16.mxu0 %v6872_v41  ;;  %v6876_v17 = vpack.c.bf16 %v4536_v53, %v4533_v9  ;;  %v4540_v28 = vld [vmem:[#allocation2 + $0x3d0] sm:$0xff] }
 0x835   :  { %6901 = vmatpush3.bf16.msra.mxu1 %v6900_v19  ;;  %v4494_v31 = vpop.permute.xlu1 %4493  ;;  %v4498_v37 = vpop.permute.xlu0 %4497  ;;  %v4543_v52 = vld [vmem:[#allocation2 + $0x448] sm:$0xff] }
 0x836   :  { %6902 = vmatprep.subr.bf16.mxu1 %v12277_v42  ;;  %v4500_v29 = vsel %vm4499_vm3, %v4494_v31, %v4496_v20  ;;  %v4501_v48 = vsel %vm4499_vm3, %v4496_v20, %v4498_v37  ;;  %4507 = vst.msk [vmem:[#allocation2 + $0x4c0] sm:$0xf0] %vm4301_vm8, %v4498_v37  ;;  %v6903_v3 = vpack.c.bf16 %v4543_v52, %v4540_v28  ;;  %v4538_v56 = vld [vmem:[#allocation2 + $0x3c0] sm:$0xff]  ;;  %vm11752_vm8 = vmpackc.low %vm4578_vm7, %vm12276_vm12  ;;  %vm4778_vm12 = vcmask 130048  }
 0x837   :  { %4510 = vst.msk [vmem:[#allocation2 + $0x538] sm:$0x3] %vm4305_vm9, %v4498_v37  ;;  %6875 = vmatpush1.bf16.msra.mxu0 %v6874_v33  ;;  %v4542_v60 = vld [vmem:[#allocation2 + $0x440] sm:$0xff]  ;;  %4505 = vst [vmem:[#allocation2 + $0x528] ss:$-116 sps:$4 sm:$0xf3] %v4500_v29  }
 0x838   :  { %4506 = vst [vmem:[#allocation2 + $0x530] ss:$-116 sps:$4 sm:$0xf3] %v4501_v48   ;;  %6877 = vmatprep.subr.bf16.mxu0 %v6876_v17  ;;  %v6880_v63 = vpack.c.bf16 %v4542_v60, %v4539_v16  ;;  %vm4568_vm9 = vcmask 736256   ;;  %vm5506_vm3 = vcmask 106496   ;;  %vm5513_vm7 = vcmask 221296  }
 0x839   :  { %6904 = vmatpush3.bf16.msra.mxu1 %v6903_v3 }
 0x83a   :  { %6905 = vmatprep.subr.bf16.mxu1 %v12277_v42  ;;  %v4541_v1 = vld [vmem:[#allocation2 + $0x438] sm:$0xff] }
 0x83b   :  { %6879 = vmatpush1.bf16.msra.mxu0 %v6878_v4  ;;  %v6882_v39 = vpack.c.bf16 %v4541_v1, %v4538_v56 }
 0x83c   :  { %6881 = vmatprep.subr.bf16.mxu0 %v6880_v63 }
 0x83d   :  { %v4546_v62 = vld [vmem:[#allocation2 + $0x4c0] sm:$0xff] }
 0x83e   :  { %v4549_v22 = vld [vmem:[#allocation2 + $0x538] sm:$0x3]  ;;  %v4544_v46 = vld [vmem:[#allocation2 + $0x4b0] sm:$0xff]  ;;  %v4547_v10 = vld [vmem:[#allocation2 + $0x528] sm:$0x3] }
 0x83f   :  { %6883 = vmatpush1.bf16.msra.mxu0 %v6882_v39  ;;  %v6906_v47 = vpack.c.bf16 %v4549_v22, %v4546_v62  ;;  %v4545_v38 = vld [vmem:[#allocation2 + $0x4b8] sm:$0xff]  ;;  %v4548_v43 = vld [vmem:[#allocation2 + $0x530] sm:$0x3]  ;;  %v6887_v58 = vpack.c.bf16 %v4547_v10, %v4544_v46 }
 0x840   :  { %v6884_v54 = vpack.c.bf16 %v4548_v43, %v4545_v38 }
 0x841   :  { %6908 = vmatpush3.bf16.msk.msra.mxu1 %vm11752_vm8, %v6906_v47 }
 0x842   :  { %6886 = vmatprep.subr.msk.bf16.mxu0 %vm11752_vm8, %v6884_v54  ;;  %6941 = vmatprep.subr.bf16.mxu1 %v12277_v42 }
 0x843   :  { %6889 = vmatpush1.bf16.msk.msra.mxu0 %vm11752_vm8, %v6887_v58 }
 0x844   :  { %5825 = vmatmul.mubr.msk.f32.vlgmr.msra.gmra.mrb[10].mxu1 %vm4568_vm9, %v4511_v61 }
 0x845   :  { %5827 = vmatprep.mubr.msk.f32.mxu1 %vm7216_vm1, %v12278_v24 }
 0x846   :  { %5672 = vmatmul.mubr.msk.f32.vlgmr.msra.gmra.mrb[10].mxu0 %vm4568_vm9, %v4511_v61  ;;  %v4556_v57 = vpop.permute.xlu0 %4555  ;;  %v4561_v34 = vpop.permute.xlu1 %4560 }
 0x847   :  { %4658 = vmatprep.mubr.f32.mxu0 %v12278_v24 }
 0x848   :  { %5828 = vmatmul.mubr.msk.f32.gmra.mrb[12].mxu1 %vm4568_vm9, %v4512_v26 }
 0x849   :  { %5830 = vmatprep.mubr.msk.f32.mxu1 %vm7216_vm1, %v12278_v24 }
 0x84a   :  { %5673 = vmatmul.mubr.msk.f32.gmra.mrb[12].mxu0 %vm4568_vm9, %v4512_v26  ;;  %v4566_v5 = vpop.permute.xlu0 %4565 }
 0x84b   :  { %4664 = vmatprep.mubr.f32.mxu0 %v12278_v24 }
 0x84c   :  { %5831 = vmatmul.mubr.msk.f32.gmra.mrb[14].mxu1 %vm4568_vm9, %v4513_v0 }
 0x84d   :  { %5837 = vmatprep.mubr.msk.f32.mxu1 %vm7216_vm1, %v12278_v24 }
 0x84e   :  { %5674 = vmatmul.mubr.msk.f32.gmra.mrb[14].mxu0 %vm4568_vm9, %v4513_v0  ;;  %vm5525_vm9 = vcmask 450896  }
 0x917   :  { %v4737_v44 = vpop.f32.mrb[10].mxu1 }
 0x918   :  { %v11795_v6 = vadd.f32 %v4737_v44, %v4556_v57  ;;  %v5826_v7 = vpop.f32.mrb[11].mxu1 }
 0x919   :  { %v4654_v55 = vpop.f32.mrb[10].mxu0 }
 0x91a   :  { %v11800_v11 = vadd.f32 %v4654_v55, %v4556_v57  ;;  %v4656_v14 = vpop.f32.mrb[11].mxu0  ;;  %v4770_v13 = vmul.f32 %v11793_v45, %v11795_v6 }
 0x91b   :  { %v11802_v27 = vadd.f32 %v4656_v14, %v4556_v57  ;;  %v4742_v23 = vpop.f32.mrb[12].mxu1 }
 0x91c   :  { %v4768_v40 = vmul.f32 %v11790_v2, %v11800_v11  ;;  %v11808_v12 = vadd.f32 %v4742_v23, %v4561_v34  ;;  %v5829_v49 = vpop.f32.mrb[13].mxu1  ;;  %v4779_v33 = vsel %vm4778_vm12, %v4770_v13, 0.0 }
 0x91d   :  { %v4769_v25 = vmul.f32 %v11798_v35, %v11802_v27  ;;  %v4660_v20 = vpop.f32.mrb[12].mxu0 }
 0x91e   :  { %v11812_v30 = vadd.f32 %v4660_v20, %v4561_v34  ;;  %v4662_v41 = vpop.f32.mrb[13].mxu0  ;;  %v4773_v19 = vmul.f32 %v11793_v45, %v11808_v12 }
 0x91f   :  { %v11814_v32 = vadd.f32 %v4662_v41, %v4561_v34  ;;  %v4747_v36 = vpop.f32.mrb[14].mxu1  ;;  %v4777_v15 = vadd.f32 %v4769_v25, %v4768_v40 }
 0x920   :  { %v4771_v53 = vmul.f32 %v11790_v2, %v11812_v30  ;;  %v11820_v18 = vadd.f32 %v4747_v36, %v4566_v5  ;;  %v5832_v9 = vpop.f32.mrb[15].mxu1  ;;  %v4784_v60 = vsel %vm4778_vm12, %v4773_v19, 0.0 }
 0x921   :  { %v4772_v31 = vmul.f32 %v11798_v35, %v11814_v32  ;;  %v4666_v37 = vpop.f32.mrb[14].mxu0  ;;  %v4780_v17 = vadd.f32 %v4779_v33, %v4777_v15 }
 0x922   :  { %v11825_v28 = vadd.f32 %v4666_v37, %v4566_v5  ;;  %v4668_v52 = vpop.f32.mrb[15].mxu0  ;;  %v4776_v48 = vmul.f32 %v11793_v45, %v11820_v18 }
 0x923   :  { %v11827_v51 = vadd.f32 %v4668_v52, %v4566_v5  ;;  %4781 = vadd.xlane.f32.xlu1 %v4780_v17  ;;  %v4783_v29 = vadd.f32 %v4772_v31, %v4771_v53 }
 0x924   :  { %v4774_v3 = vmul.f32 %v11790_v2, %v11825_v28  ;;  %v4789_v63 = vsel %vm4778_vm12, %v4776_v48, 0.0 }
 0x925   :  { %v4775_v21 = vmul.f32 %v11798_v35, %v11827_v51  ;;  %v4785_v4 = vadd.f32 %v4784_v60, %v4783_v29 }
 0x927   :  { %4786 = vadd.xlane.f32.xlu0 %v4785_v4  ;;  %v4788_v16 = vadd.f32 %v4775_v21, %v4774_v3 }
 0x929   :  { %v4790_v56 = vadd.f32 %v4789_v63, %v4788_v16 }
 0x92b   :  { %4791 = vadd.xlane.f32.xlu0 %v4790_v56 }
 0x9b0   :  { %v4782_v1 = vpop.xlane.xlu1 %4781 }
 0x9b1   :  { %v4793_v39 = vmul.f32 0.003968254, %v4782_v1  ;;  %v4841_v1 = vld [vmem:[%s12200_s9] sm:$0xff] }
 0x9b3   :  { %v4796_v62 = vsub.f32 %v11800_v11, %v4793_v39  ;;  %v4797_v22 = vsub.f32 %v11802_v27, %v4793_v39  ;;  %v4798_v47 = vsub.f32 %v11795_v6, %v4793_v39 }
 0x9b4   :  { %v4787_v38 = vpop.xlane.xlu0 %4786 }
 0x9b5   :  { %v11840_v43 = vmul.f32 0.003968254, %v4787_v38  ;;  %v4805_v46 = vmul.f32 %v4796_v62, %v11790_v2  ;;  %v4806_v54 = vmul.f32 %v4797_v22, %v11798_v35  ;;  %v4807_v10 = vmul.f32 %v4798_v47, %v11793_v45  ;;  %v4853_v47 = vld [vmem:[%s12201_s10] sm:$0xff]  ;;  %v4842_v38 = vld [vmem:[%s12200_s9 + $0x8] sm:$0xff] }
 0x9b7   :  { %v4799_v58 = vsub.f32 %v11812_v30, %v11840_v43  ;;  %v4800_v61 = vsub.f32 %v11814_v32, %v11840_v43  ;;  %v4801_v26 = vsub.f32 %v11808_v12, %v11840_v43  ;;  %v4814_v0 = vmul.f32 %v4805_v46, %v4805_v46 }
 0x9b8   :  { %v4792_v59 = vpop.xlane.xlu0 %4791  ;;  %v4815_v57 = vmul.f32 %v4806_v54, %v4806_v54  ;;  %v4816_v44 = vmul.f32 %v4807_v10, %v4807_v10 }
 0x9b9   :  { %v4795_v7 = vmul.f32 0.003968254, %v4792_v59  ;;  %v4808_v55 = vmul.f32 %v4799_v58, %v11790_v2  ;;  %v4809_v14 = vmul.f32 %v4800_v61, %v11798_v35  ;;  %v4810_v34 = vmul.f32 %v4801_v26, %v11793_v45  ;;  %v4843_v61 = vld [vmem:[%s12200_s9 + $0x10] sm:$0xff]  ;;  %v4854_v26 = vld [vmem:[%s12201_s10 + $0x8] sm:$0xff] }
 0x9ba   :  { %v4823_v23 = vadd.f32 %v4815_v57, %v4814_v0  ;;  %v4824_v13 = vsel %vm4778_vm12, %v4816_v44, 0.0 }
 0x9bb   :  { %v4802_v40 = vsub.f32 %v11825_v28, %v4795_v7  ;;  %v4803_v49 = vsub.f32 %v11827_v51, %v4795_v7  ;;  %v4804_v25 = vsub.f32 %v11820_v18, %v4795_v7  ;;  %v4817_v20 = vmul.f32 %v4808_v55, %v4808_v55 }
 0x9bc   :  { %v4825_v41 = vadd.f32 %v4824_v13, %v4823_v23  ;;  %v4818_v5 = vmul.f32 %v4809_v14, %v4809_v14  ;;  %v4819_v36 = vmul.f32 %v4810_v34, %v4810_v34  ;;  %v5028_v34 = vld [vmem:[%s12203_s12 + $0x80] sm:$0xff] }
 0x9bd   :  { %v4811_v15 = vmul.f32 %v4802_v40, %v11790_v2  ;;  %v4812_v19 = vmul.f32 %v4803_v49, %v11798_v35  ;;  %v4813_v53 = vmul.f32 %v4804_v25, %v11793_v45  ;;  %v5012_v23 = vld [vmem:[%s12203_s12] sm:$0xff]  ;;  %v5030_v40 = vld [vmem:[%s12203_s12 + $0x90] sm:$0xff]  ;;  %v5031_v49 = vld [vmem:[%s12203_s12 + $0x98] sm:$0xff] }
 0x9be   :  { %4826 = vadd.xlane.f32.xlu1 %v4825_v41  ;;  %v4828_v33 = vadd.f32 %v4818_v5, %v4817_v20  ;;  %v4829_v9 = vsel %vm4778_vm12, %v4819_v36, 0.0  ;;  %v6913_v20 = vpack.c.bf16 %v5031_v49, %v5030_v40  ;;  %v5014_v41 = vld [vmem:[%s12203_s12 + $0x10] sm:$0xff]  ;;  %v5015_v5 = vld [vmem:[%s12203_s12 + $0x18] sm:$0xff]  ;;  %v5032_v36 = vld [vmem:[%s12203_s12 + $0xa0] sm:$0xff] }
 0x9bf   :  { %v4820_v31 = vmul.f32 %v4811_v15, %v4811_v15  ;;  %v4821_v37 = vmul.f32 %v4812_v19, %v4812_v19  ;;  %v4822_v17 = vmul.f32 %v4813_v53, %v4813_v53  ;;  %v5033_v15 = vld [vmem:[%s12203_s12 + $0xa8] sm:$0xff]  ;;  %v6915_v19 = vpack.c.bf16 %v5015_v5, %v5014_v41 }
 0x9c0   :  { %v4830_v52 = vadd.f32 %v4829_v9, %v4828_v33  ;;  %v6917_v53 = vpack.c.bf16 %v5033_v15, %v5032_v36  ;;  %v5016_v33 = vld [vmem:[%s12203_s12 + $0x20] sm:$0xff]  ;;  %v5017_v9 = vld [vmem:[%s12203_s12 + $0x28] sm:$0xff] }
 0x9c1   :  { %v4833_v29 = vadd.f32 %v4821_v37, %v4820_v31  ;;  %v4834_v48 = vsel %vm4778_vm12, %v4822_v17, 0.0  ;;  %v5034_v31 = vld [vmem:[%s12203_s12 + $0xb0] sm:$0xff]  ;;  %v5035_v37 = vld [vmem:[%s12203_s12 + $0xb8] sm:$0xff]  ;;  %v6919_v17 = vpack.c.bf16 %v5017_v9, %v5016_v33  ;;  %vm5536_vm12 = vcmask 457728  }
 0x9c2   :  { %4831 = vadd.xlane.f32.xlu0 %v4830_v52  ;;  %v6921_v52 = vpack.c.bf16 %v5035_v37, %v5034_v31 }
 0x9c3   :  { %v4835_v3 = vadd.f32 %v4834_v48, %v4833_v29  ;;  %v5018_v29 = vld [vmem:[%s12203_s12 + $0x30] sm:$0xff]  ;;  %v5019_v48 = vld [vmem:[%s12203_s12 + $0x38] sm:$0xff] }
 0x9c5   :  { %4836 = vadd.xlane.f32.xlu1 %v4835_v3  ;;  %v5036_v3 = vld [vmem:[%s12203_s12 + $0xc0] sm:$0xff] }
 0xa4b   :  { %v4827_v60 = vpop.xlane.xlu1 %4826 }
 0xa4c   :  { %v4838_v2 = vmul.f32 0.003968254, %v4827_v60  ;;  %v5037_v60 = vld [vmem:[%s12203_s12 + $0xc8] sm:$0xff] }
 0xa4e   :  { %v4844_v21 = vadd.f32 1e-05, %v4838_v2  ;;  %v6923_v2 = vpack.c.bf16 %v5019_v48, %v5018_v29 }
 0xa4f   :  { %v4832_v35 = vpop.xlane.xlu0 %4831 }
 0xa50   :  { %7169 = vrsqrt.f32 %v4844_v21  ;;  %v4839_v45 = vmul.f32 0.003968254, %v4832_v35  ;;  %v6925_v21 = vpack.c.bf16 %v5037_v60, %v5036_v3  ;;  %v5020_v35 = vld [vmem:[%s12203_s12 + $0x40] sm:$0xff] }
 0xa52   :  { %v4845_v4 = vadd.f32 1e-05, %v4839_v45  ;;  %v4837_v16 = vpop.xlane.xlu1 %4836  ;;  %v5021_v45 = vld [vmem:[%s12203_s12 + $0x48] sm:$0xff] }
 0xa53   :  { %v4840_v63 = vmul.f32 0.003968254, %v4837_v16  ;;  %v5038_v16 = vld [vmem:[%s12203_s12 + $0xd0] sm:$0xff] }
 0xa54   :  { %7171 = vrsqrt.f32 %v4845_v4  ;;  %v6927_v4 = vpack.c.bf16 %v5021_v45, %v5020_v35 }
 0xa55   :  { %v4846_v56 = vadd.f32 1e-05, %v4840_v63  ;;  %v5039_v63 = vld [vmem:[%s12203_s12 + $0xd8] sm:$0xff] }
 0xa57   :  { %7173 = vrsqrt.f32 %v4846_v56  ;;  %v5022_v56 = vld [vmem:[%s12203_s12 + $0x50] sm:$0xff] }
 0xa5a   :  { %v7170_v62 = vpop.eup %7169 }
 0xa5b   :  { %v4850_v22 = vmul.f32 %v7170_v62, %v4841_v1  ;;  %v6929_v1 = vpack.c.bf16 %v5039_v63, %v5038_v16  ;;  %v5023_v62 = vld [vmem:[%s12203_s12 + $0x58] sm:$0xff] }
 0xa5d   :  { %4864 = vperm.xlu0 %7044, %v4850_v22   ;;  %v4856_v46 = vmul.f32 %v4850_v22, %v4793_v39  ;;  %v4855_v39 = vld [vmem:[%s12201_s10 + $0x10] sm:$0xff]  ;;  %v6931_v22 = vpack.c.bf16 %v5023_v62, %v5022_v56 }
 0xa5e   :  { %v7172_v54 = vpop.eup %7171 }
 0xa5f   :  { %v4859_v10 = vsub.f32 %v4853_v47, %v4856_v46  ;;  %v4851_v58 = vmul.f32 %v7172_v54, %v4842_v38  ;;  %v5044_v38 = vld [vmem:[%s12203_s12 + $0x100] sm:$0xff]  ;;  %v5045_v46 = vld [vmem:[%s12203_s12 + $0x108] sm:$0x3f] }
 0xa60   :  { %v5040_v54 = vld [vmem:[%s12203_s12 + $0xe0] sm:$0xff] }
 0xa61   :  { %v7174_v0 = vpop.eup %7173  ;;  %4888 = vperm.xlu1 %7045, %v4859_v10   ;;  %v4857_v59 = vmul.f32 %v4851_v58, %v11840_v43  ;;  %v5029_v43 = vld [vmem:[%s12203_s12 + $0x88] sm:$0xff] }
 0xa62   :  { %v4852_v57 = vmul.f32 %v7174_v0, %v4843_v61  ;;  %v6909_v13 = vpack.c.bf16 %v5029_v43, %v5028_v34  ;;  %v5041_v61 = vld [vmem:[%s12203_s12 + $0xe8] sm:$0xff]  ;;  %v5042_v43 = vld [vmem:[%s12203_s12 + $0xf0] sm:$0xff] }
 0xa63   :  { %v4860_v44 = vsub.f32 %v4854_v26, %v4857_v59  ;;  %v5024_v26 = vld [vmem:[%s12203_s12 + $0x60] sm:$0xff]  ;;  %v5025_v0 = vld [vmem:[%s12203_s12 + $0x68] sm:$0xff] }
 0xa64   :  { %v4858_v55 = vmul.f32 %v4852_v57, %v4795_v7  ;;  %v5013_v7 = vld [vmem:[%s12203_s12 + $0x8] sm:$0xff]  ;;  %6910 = vmatprep.subr.bf16.mxu0 %v6909_v13 }
 0xa65   :  { %4893 = vperm.xlu0 %7044, %v4860_v44   ;;  %4869 = vperm.xlu1 %7045, %v4851_v58   ;;  %v6911_v25 = vpack.c.bf16 %v5013_v7, %v5012_v23  ;;  %v6942_v58 = vpack.c.bf16 %v5045_v46, %v5044_v38  ;;  %v6933_v44 = vpack.c.bf16 %v5041_v61, %v5040_v54  ;;  %v5027_v23 = vld [vmem:[%s12203_s12 + $0x78] sm:$0xff] }
 0xa66   :  { %v4861_v14 = vsub.f32 %v4855_v39, %v4858_v55  ;;  %v6935_v39 = vpack.c.bf16 %v5025_v0, %v5024_v26 }
 0xa67   :  { %6912 = vmatpush3.bf16.msra.mxu0 %v6911_v25  ;;  %6944 = vmatpush3.bf16.msk.msra.mxu1 %vm7831_vm11, %v6942_v58  ;;  %vm5046_vm11 = vcmask 113664  }
 0xa68   :  { %6914 = vmatprep.subr.bf16.mxu0 %v6913_v20  ;;  %6945 = vmatprep.subr.bf16.mxu1 %v12277_v42 }
 0xa69   :  { %4874 = vperm.xlu1 %7045, %v4852_v57   ;;  %4898 = vperm.xlu0 %7044, %v4861_v14  }
 0xa6b   :  { %6916 = vmatpush3.bf16.msra.mxu0 %v6915_v19 }
 0xa6c   :  { %6918 = vmatprep.subr.bf16.mxu0 %v6917_v53 }
 0xa6f   :  { %6920 = vmatpush3.bf16.msra.mxu0 %v6919_v17 }
 0xa70   :  { %6922 = vmatprep.subr.bf16.mxu0 %v6921_v52 }
 0xa73   :  { %6924 = vmatpush3.bf16.msra.mxu0 %v6923_v2 }
 0xa74   :  { %6926 = vmatprep.subr.bf16.mxu0 %v6925_v21 }
 0xa77   :  { %6928 = vmatpush3.bf16.msra.mxu0 %v6927_v4 }
 0xa78   :  { %6930 = vmatprep.subr.bf16.mxu0 %v6929_v1 }
 0xa7b   :  { %6932 = vmatpush3.bf16.msra.mxu0 %v6931_v22 }
 0xa7c   :  { %6934 = vmatprep.subr.bf16.mxu0 %v6933_v44 }
 0xa7f   :  { %6936 = vmatpush3.bf16.msra.mxu0 %v6935_v39 }
 0xadc   :  { %v4865_v47 = vpop.permute.xlu0 %4864 }
 0xadd   :  { %v4877_v10 = vmul.f32 %v4865_v47, %v11800_v11  ;;  %v4878_v59 = vmul.f32 %v4865_v47, %v11802_v27  ;;  %v4879_v57 = vmul.f32 %v4865_v47, %v11795_v6  ;;  %v5043_v6 = vld [vmem:[%s12203_s12 + $0xf8] sm:$0xff]  ;;  %v5026_v27 = vld [vmem:[%s12203_s12 + $0x70] sm:$0xff] }
 0xade   :  { %v6937_v8 = vpack.c.bf16 %v5043_v6, %v5042_v43  ;;  %v6939_v49 = vpack.c.bf16 %v5027_v23, %v5026_v27 }
 0xae0   :  { %v4889_v11 = vpop.permute.xlu1 %4888  ;;  %6938 = vmatprep.subr.bf16.mxu0 %v6937_v8 }
 0xae1   :  { %v11977_v55 = vadd.f32 %v4889_v11, %v4877_v10  ;;  %v11979_v14 = vadd.f32 %v4889_v11, %v4878_v59  ;;  %v4903_v34 = vadd.f32 %v4889_v11, %v4879_v57  ;;  %6940 = vmatpush3.bf16.msra.mxu0 %v6939_v49 }
 0xae2   :  { %6966 = vmatprep.subr.bf16.mxu0 %v12277_v42 }
 0xae3   :  { %v4910_v13 = vmax.f32 %v11977_v55, 0.0  ;;  %v4911_v7 = vmax.f32 %v11979_v14, 0.0  ;;  %v4912_v40 = vmax.f32 %v4903_v34, 0.0 }
 0xae4   :  { %v4870_v25 = vpop.permute.xlu1 %4869  ;;  %v4894_v15 = vpop.permute.xlu0 %4893 }
 0xae5   :  { %v4880_v20 = vmul.f32 %v4870_v25, %v11812_v30  ;;  %v4881_v41 = vmul.f32 %v4870_v25, %v11814_v32  ;;  %v4882_v5 = vmul.f32 %v4870_v25, %v11808_v12  ;;  %4932 = vrot.lane.b32.xlu0 %v4912_v40, %s7204_s29  ;;  %v7136_v36 = vpack.i.bf16 %v4910_v13, %v4911_v7 }
 0xae7   :  { %v12000_v19 = vadd.f32 %v4894_v15, %v4880_v20  ;;  %v12002_v53 = vadd.f32 %v4894_v15, %v4881_v41  ;;  %v4906_v33 = vadd.f32 %v4894_v15, %v4882_v5  ;;  %7137 = vrot.lane.b32.xlu1 %v7136_v36, %s7204_s29 }
 0xae8   :  { %v4875_v9 = vpop.permute.xlu1 %4874  ;;  %v4899_v52 = vpop.permute.xlu0 %4898 }
 0xae9   :  { %v4913_v30 = vmax.f32 %v12000_v19, 0.0  ;;  %v4914_v32 = vmax.f32 %v12002_v53, 0.0  ;;  %v4883_v12 = vmul.f32 %v4875_v9, %v11825_v28  ;;  %4974 = vrot.lane.b32.xlu0 %v4912_v40, %s12281_s3  ;;  %v4884_v31 = vmul.f32 %v4875_v9, %v11827_v51 }
 0xaea   :  { %v4915_v37 = vmax.f32 %v4906_v33, 0.0  ;;  %v4885_v17 = vmul.f32 %v4875_v9, %v11820_v18 }
 0xaeb   :  { %7142 = vrot.lane.b32.xlu1 %v7136_v36, %s12281_s3  ;;  %v12013_v29 = vadd.f32 %v4899_v52, %v4883_v12  ;;  %v12015_v48 = vadd.f32 %v4899_v52, %v4884_v31  ;;  %v7146_v3 = vpack.i.bf16 %v4913_v30, %v4914_v32 }
 0xaec   :  { %v4909_v28 = vadd.f32 %v4899_v52, %v4885_v17 }
 0xaed   :  { %4938 = vrot.lane.b32.xlu0 %v4915_v37, %s7204_s29  ;;  %v4916_v51 = vmax.f32 %v12013_v29, 0.0  ;;  %v4917_v60 = vmax.f32 %v12015_v48, 0.0 }
 0xaee   :  { %v4918_v18 = vmax.f32 %v4909_v28, 0.0 }
 0xaef   :  { %7147 = vrot.lane.b32.xlu1 %v7146_v3, %s7204_s29  ;;  %v7156_v2 = vpack.i.bf16 %v4916_v51, %v4917_v60 }
 0xaf1   :  { %4980 = vrot.lane.b32.xlu0 %v4915_v37, %s12281_s3 }
 0xaf3   :  { %7152 = vrot.lane.b32.xlu1 %v7146_v3, %s12281_s3 }
 0xaf5   :  { %4944 = vrot.lane.b32.xlu0 %v4918_v18, %s7204_s29 }
 0xaf7   :  { %7157 = vrot.lane.b32.xlu1 %v7156_v2, %s7204_s29 }
 0xaf9   :  { %4986 = vrot.lane.b32.xlu0 %v4918_v18, %s12281_s3 }
 0xafb   :  { %7162 = vrot.lane.b32.xlu1 %v7156_v2, %s12281_s3 }
 0xb57   :  { %v4933_v21 = vpop.permute.xlu0 %4932 }
 0xb58   :  { %v4963_v45 = vmax.f32 %v4912_v40, %v4933_v21 }
 0xb59   :  { %v7138_v35 = vpop.permute.xlu1 %7137 }
 0xb5a   :  { %v7140_v4 = vunpack.i.h.bf16 %v7138_v35  ;;  %v7139_v16 = vunpack.i.l.bf16 %v7138_v35 }
 0xb5b   :  { %v4975_v63 = vpop.permute.xlu0 %4974 }
 0xb5c   :  { %v4946_v56 = vsel %vm12286_vm10, %v7140_v4, %v7139_v16  ;;  %v4947_v1 = vsel %vm12287_vm13, %v7139_v16, %v4933_v21  ;;  %v5005_v62 = vmax.f32 %v4963_v45, %v4975_v63 }
 0xb5d   :  { %v7143_v22 = vpop.permute.xlu1 %7142  ;;  %v4961_v46 = vmax.f32 %v4910_v13, %v4946_v56  ;;  %v4962_v10 = vmax.f32 %v4911_v7, %v4947_v1 }
 0xb5e   :  { %v7145_v47 = vunpack.i.h.bf16 %v7143_v22  ;;  %v7144_v38 = vunpack.i.l.bf16 %v7143_v22  ;;  %5838 = vmatmul.mubr.msk.f32.vlgmr.msra.gmra.mrb[16].mxu1 %vm5046_vm11, %v5005_v62 }
 0xb5f   :  { %v4939_v54 = vpop.permute.xlu0 %4938  ;;  %5840 = vmatprep.mubr.msk.f32.mxu1 %vm7216_vm1, %v12278_v24 }
 0xb60   :  { %v4988_v58 = vsel %vm326_vm0, %v7145_v47, %v7144_v38  ;;  %v4989_v61 = vsel %vm326_vm0, %v7144_v38, %v4975_v63  ;;  %v4966_v57 = vmax.f32 %v4915_v37, %v4939_v54 }
 0xb61   :  { %v5003_v26 = vmax.f32 %v4961_v46, %v4988_v58  ;;  %v7148_v0 = vpop.permute.xlu1 %7147  ;;  %v5004_v59 = vmax.f32 %v4962_v10, %v4989_v61  ;;  %v5290_v10 = vld [vmem:[%s12205_s14] sm:$0xf] }
 0xb62   :  { %v7150_v44 = vunpack.i.h.bf16 %v7148_v0  ;;  %v7149_v39 = vunpack.i.l.bf16 %v7148_v0 }
 0xb63   :  { %v4981_v11 = vpop.permute.xlu0 %4980  ;;  %5123 = vmatprep.mubr.f32.mxu0 %v5004_v59 }
 0xb64   :  { %v4948_v55 = vsel %vm12288_vm14, %v7150_v44, %v7149_v39  ;;  %v4949_v14 = vsel %vm12289_vm15, %v7149_v39, %v4939_v54  ;;  %v5008_v34 = vmax.f32 %v4966_v57, %v4981_v11  ;;  %5124 = vmatmul.mubr.f32.vlgmr.msra.gmra.mrb[16].mxu0 %v5003_v26 }
 0xb65   :  { %v7153_v43 = vpop.permute.xlu1 %7152  ;;  %v4965_v23 = vmax.f32 %v4914_v32, %v4949_v14  ;;  %v4964_v13 = vmax.f32 %v4913_v30, %v4948_v55 }
 0xb66   :  { %v7155_v6 = vunpack.i.h.bf16 %v7153_v43  ;;  %v7154_v27 = vunpack.i.l.bf16 %v7153_v43  ;;  %5841 = vmatmul.mubr.msk.f32.gmra.mrb[18].mxu1 %vm5046_vm11, %v5008_v34 }
 0xb67   :  { %v4945_v8 = vpop.permute.xlu0 %4944  ;;  %5843 = vmatprep.mubr.msk.f32.mxu1 %vm7216_vm1, %v12278_v24 }
 0xb68   :  { %v4991_v7 = vsel %vm326_vm0, %v7154_v27, %v4981_v11  ;;  %v4990_v40 = vsel %vm326_vm0, %v7155_v6, %v7154_v27  ;;  %v4969_v41 = vmax.f32 %v4918_v18, %v4945_v8 }
 0xb69   :  { %v7158_v49 = vpop.permute.xlu1 %7157  ;;  %v5007_v25 = vmax.f32 %v4965_v23, %v4991_v7  ;;  %v5006_v20 = vmax.f32 %v4964_v13, %v4990_v40 }
 0xb6a   :  { %v7160_v5 = vunpack.i.h.bf16 %v7158_v49  ;;  %v7159_v36 = vunpack.i.l.bf16 %v7158_v49 }
 0xb6b   :  { %v4987_v15 = vpop.permute.xlu0 %4986  ;;  %5128 = vmatprep.mubr.f32.mxu0 %v5007_v25 }
 0xb6c   :  { %v4950_v53 = vsel %vm12290_vm6, %v7160_v5, %v7159_v36  ;;  %v4951_v19 = vsel %vm12291_vm4, %v7159_v36, %v4945_v8  ;;  %v5011_v33 = vmax.f32 %v4969_v41, %v4987_v15  ;;  %5129 = vmatmul.mubr.f32.gmra.mrb[18].mxu0 %v5006_v20 }
 0xb6d   :  { %v7163_v9 = vpop.permute.xlu1 %7162  ;;  %v4968_v12 = vmax.f32 %v4917_v60, %v4951_v19  ;;  %v4967_v31 = vmax.f32 %v4916_v51, %v4950_v53 }
 0xb6e   :  { %v7165_v30 = vunpack.i.h.bf16 %v7163_v9  ;;  %v7164_v32 = vunpack.i.l.bf16 %v7163_v9  ;;  %5844 = vmatmul.mubr.msk.f32.gmra.mrb[20].mxu1 %vm5046_vm11, %v5011_v33  ;;  %v5274_v9 = vld [vmem:[%s12204_s13] sm:$0xf]  ;;  %vm5611_vm11 = vcmask 24576  }
 0xb6f   :  { %5876 = vmatprep.mubr.msk.f32.mxu1 %vm7216_vm1, %v12278_v24 }
 0xb70   :  { %v4993_v37 = vsel %vm326_vm0, %v7164_v32, %v4987_v15  ;;  %v4992_v17 = vsel %vm326_vm0, %v7165_v30, %v7164_v32  ;;  %vm5296_vm0 = vcmask 982016  }
 0xb71   :  { %v5010_v52 = vmax.f32 %v4968_v12, %v4993_v37  ;;  %v5009_v3 = vmax.f32 %v4967_v31, %v4992_v17  ;;  %v5684_v31 = vld [vmem:[%s12208_s17] ss:$0 sm:$0xff] }
 0xb73   :  { %5133 = vmatprep.mubr.f32.mxu0 %v5010_v52 }
 0xb74   :  { %5134 = vmatmul.mubr.f32.gmra.mrb[20].mxu0 %v5009_v3 }
 0xb75   :  { %5899 = vmatprep.mubr.msk.f32.mxu0 %vm7216_vm1, %v12278_v24 }
 0xc31   :  { %v5205_v28 = vpop.f32.mrb[16].mxu1 }
 0xc32   :  { %v5839_v48 = vpop.f32.mrb[17].mxu1 }
 0xc37   :  { %v5740_v60 = vpop.f32.mrb[16].mxu0 }
 0xc38   :  { %v5741_v18 = vpop.f32.mrb[17].mxu0 }
 0xc39   :  { %v5742_v29 = vadd.f32 %v5741_v18, %v5740_v60  ;;  %v5210_v51 = vpop.f32.mrb[18].mxu1 }
 0xc3a   :  { %v5842_v2 = vpop.f32.mrb[19].mxu1 }
 0xc3b   :  { %v5206_v21 = vadd.f32 %v5742_v29, %v5205_v28 }
 0xc3d   :  { %5220 = vst.msk [vmem:[#allocation2] sm:$0xff] %vm5219_vm2, %v5206_v21  ;;  %5226 = vrot.lane.b32.xlu1 %v5206_v21, %s7204_s29 }
 0xc3f   :  { %v5743_v35 = vpop.f32.mrb[18].mxu0 }
 0xc40   :  { %v5744_v45 = vpop.f32.mrb[19].mxu0 }
 0xc41   :  { %v5745_v4 = vadd.f32 %v5744_v45, %v5743_v35  ;;  %v5215_v16 = vpop.f32.mrb[20].mxu1  ;;  %v5390_v45 = vld [vmem:[%s12206_s15] sm:$0xf] }
 0xc42   :  { %v5845_v63 = vpop.f32.mrb[21].mxu1 }
 0xc43   :  { %v5211_v56 = vadd.f32 %v5745_v4, %v5210_v51  ;;  %v5394_v63 = vld [vmem:[%s12207_s16] sm:$0xf]  ;;  %s7229_s16 = smov 42  }
 0xc44   :  { %v5275_v38 = vld [vmem:[#allocation2] sm:$0xff] }
 0xc45   :  { %5221 = vst.msk [vmem:[#allocation2 + $0x78] sm:$0xff] %vm5219_vm2, %v5211_v56  ;;  %5228 = vrot.lane.b32.xlu0 %v5211_v56, %s7204_s29 }
 0xc47   :  { %v5746_v1 = vpop.f32.mrb[20].mxu0 }
 0xc48   :  { %v5747_v62 = vpop.f32.mrb[21].mxu0 }
 0xc49   :  { %v5748_v22 = vadd.f32 %v5747_v62, %v5746_v1  ;;  %5238 = vrot.lane.b32.xlu0 %v5206_v21, %s12281_s3  ;;  %v5419_v62 = vld [vmem:[%s12209_s18] sm:$0xff] }
 0xc4b   :  { %v5216_v47 = vadd.f32 %v5748_v22, %v5215_v16  ;;  %v5420_v22 = vld [vmem:[%s12209_s18 + $0x8] sm:$0xff] }
 0xc4c   :  { %v5276_v46 = vld [vmem:[#allocation2 + $0x78] sm:$0xff] }
 0xc4d   :  { %5222 = vst.msk [vmem:[#allocation2 + $0xf0] sm:$0xff] %vm5219_vm2, %v5216_v47  ;;  %5242 = vrot.lane.b32.xlu0 %v5216_v47, %s12281_s3  ;;  %5230 = vrot.lane.b32.xlu1 %v5216_v47, %s7204_s29  ;;  %v6946_v54 = vpack.c.bf16 %v5276_v46, %v5275_v38  ;;  %v6967_v38 = vpack.c.bf16 %v5420_v22, %v5419_v62  ;;  %v5422_v46 = vld [vmem:[%s12209_s18 + $0x18] sm:$0xff] }
 0xc4f   :  { %6947 = vmatpush3.bf16.msra.mxu1 %v6946_v54  ;;  %6968 = vmatpush3.bf16.msra.mxu0 %v6967_v38 }
 0xc50   :  { %6948 = vmatprep.subr.bf16.mxu1 %v12277_v42  ;;  %6969 = vmatprep.subr.bf16.mxu0 %v12277_v42 }
 0xc51   :  { %5252 = vrot.lane.b32.xlu0 %v5211_v56, %s12280_s28  ;;  %5240 = vrot.lane.b32.xlu1 %v5211_v56, %s12281_s3 }
 0xc54   :  { %v5277_v26 = vld [vmem:[#allocation2 + $0xf0] sm:$0xff] }
 0xc55   :  { %5262 = vrot.lane.b32.xlu0 %v5206_v21, %s12279_s5  ;;  %5250 = vrot.lane.b32.xlu1 %v5206_v21, %s12280_s28 }
 0xc59   :  { %5266 = vrot.lane.b32.xlu0 %v5216_v47, %s12279_s5  ;;  %5254 = vrot.lane.b32.xlu1 %v5216_v47, %s12280_s28  ;;  %v5421_v47 = vld [vmem:[%s12209_s18 + $0x10] sm:$0xff] }
 0xc5a   :  { %v6970_v54 = vpack.c.bf16 %v5422_v46, %v5421_v47 }
 0xc5c   :  { %6971 = vmatpush3.bf16.msra.mxu0 %v6970_v54 }
 0xc5d   :  { %5264 = vrot.lane.b32.xlu1 %v5211_v56, %s12279_s5  ;;  %6972 = vmatprep.subr.bf16.mxu0 %v12277_v42 }
 0xc61   :  { %5293 = vperm.xlu1 %7045, %v5290_v10   ;;  %v5423_v10 = vld [vmem:[%s12209_s18 + $0x20] sm:$0xff] }
 0xcaf   :  { %v5227_v58 = vpop.permute.xlu1 %5226 }
 0xcb0   :  { %5235 = vst.msk [vmem:[#allocation2 + $0x168] sm:$0xff] %vm5219_vm2, %v5227_v58  ;;  %v5424_v58 = vld [vmem:[%s12209_s18 + $0x28] sm:$0xff] }
 0xcb7   :  { %v5229_v61 = vpop.permute.xlu0 %5228  ;;  %v5278_v0 = vld [vmem:[#allocation2 + $0x168] sm:$0xff] }
 0xcb8   :  { %5236 = vst.msk [vmem:[#allocation2 + $0x1e0] sm:$0xff] %vm5219_vm2, %v5229_v61  ;;  %v6949_v59 = vpack.c.bf16 %v5278_v0, %v5277_v26  ;;  %v6973_v61 = vpack.c.bf16 %v5424_v58, %v5423_v10  ;;  %v5425_v26 = vld [vmem:[%s12209_s18 + $0x30] sm:$0xff]  ;;  %v5426_v0 = vld [vmem:[%s12209_s18 + $0x38] sm:$0xff] }
 0xcba   :  { %6950 = vmatpush3.bf16.msra.mxu1 %v6949_v59  ;;  %6974 = vmatpush3.bf16.msra.mxu0 %v6973_v61  ;;  %v6976_v59 = vpack.c.bf16 %v5426_v0, %v5425_v26 }
 0xcbb   :  { %v5239_v57 = vpop.permute.xlu0 %5238  ;;  %6951 = vmatprep.subr.bf16.mxu1 %v12277_v42  ;;  %6975 = vmatprep.subr.bf16.mxu0 %v12277_v42 }
 0xcbc   :  { %5247 = vst.msk [vmem:[#allocation2 + $0x2d0] sm:$0xff] %vm5219_vm2, %v5239_v57  ;;  %v5427_v57 = vld [vmem:[%s12209_s18 + $0x40] sm:$0xff] }
 0xcbe   :  { %6977 = vmatpush3.bf16.msra.mxu0 %v6976_v59 }
 0xcbf   :  { %v5243_v44 = vpop.permute.xlu0 %5242  ;;  %v5231_v39 = vpop.permute.xlu1 %5230  ;;  %v5279_v43 = vld [vmem:[#allocation2 + $0x1e0] sm:$0xff]  ;;  %6978 = vmatprep.subr.bf16.mxu0 %v12277_v42 }
 0xcc0   :  { %5249 = vst.msk [vmem:[#allocation2 + $0x3c0] sm:$0xff] %vm5219_vm2, %v5243_v44  ;;  %5237 = vst.msk [vmem:[#allocation2 + $0x258] sm:$0xff] %vm5219_vm2, %v5231_v39  ;;  %v5428_v44 = vld [vmem:[%s12209_s18 + $0x48] sm:$0x3] }
 0xcc1   :  { %v6979_v39 = vpack.c.bf16 %v5428_v44, %v5427_v57 }
 0xcc3   :  { %v5253_v11 = vpop.permute.xlu0 %5252  ;;  %v5241_v55 = vpop.permute.xlu1 %5240  ;;  %v5281_v13 = vld [vmem:[#allocation2 + $0x2d0] sm:$0xff]  ;;  %6981 = vmatpush3.bf16.msk.msra.mxu0 %vm11752_vm8, %v6979_v39  ;;  %vm5519_vm8 = vcmask 336096  }
 0xcc4   :  { %5260 = vst.msk [vmem:[#allocation2 + $0x4b0] sm:$0xff] %vm5219_vm2, %v5253_v11  ;;  %5248 = vst.msk [vmem:[#allocation2 + $0x348] sm:$0xff] %vm5219_vm2, %v5241_v55 }
 0xcc7   :  { %v5263_v14 = vpop.permute.xlu0 %5262  ;;  %v5251_v34 = vpop.permute.xlu1 %5250  ;;  %v5280_v6 = vld [vmem:[#allocation2 + $0x258] sm:$0xff]  ;;  %v5283_v25 = vld [vmem:[#allocation2 + $0x3c0] sm:$0xff] }
 0xcc8   :  { %5271 = vst.msk [vmem:[#allocation2 + $0x5a0] sm:$0xff] %vm5219_vm2, %v5263_v14  ;;  %5259 = vst.msk [vmem:[#allocation2 + $0x438] sm:$0xff] %vm5219_vm2, %v5251_v34  ;;  %v6952_v27 = vpack.c.bf16 %v5280_v6, %v5279_v43 }
 0xcca   :  { %6953 = vmatpush3.bf16.msra.mxu1 %v6952_v27 }
 0xccb   :  { %v5267_v8 = vpop.permute.xlu0 %5266  ;;  %v5255_v23 = vpop.permute.xlu1 %5254  ;;  %6954 = vmatprep.subr.bf16.mxu1 %v12277_v42  ;;  %v5282_v7 = vld [vmem:[#allocation2 + $0x348] sm:$0xff]  ;;  %v5285_v5 = vld [vmem:[#allocation2 + $0x4b0] sm:$0xff] }
 0xccc   :  { %5273 = vst.msk [vmem:[#allocation2 + $0x690] sm:$0xff] %vm5219_vm2, %v5267_v8  ;;  %5261 = vst.msk [vmem:[#allocation2 + $0x528] sm:$0xff] %vm5219_vm2, %v5255_v23  ;;  %v6955_v40 = vpack.c.bf16 %v5282_v7, %v5281_v13  ;;  %v5528_v13 = vld [vmem:[%s12210_s19] sm:$0xff] }
 0xccd   :  { %v6983_v7 = vpack.c.bf16 %v5529_v50, %v5528_v13 }
 0xcce   :  { %6956 = vmatpush3.bf16.msra.mxu1 %v6955_v40  ;;  %v5530_v40 = vld [vmem:[%s12210_s19 + $0x10] sm:$0xff] }
 0xccf   :  { %v5265_v49 = vpop.permute.xlu1 %5264  ;;  %6957 = vmatprep.subr.bf16.mxu1 %v12277_v42  ;;  %v5284_v20 = vld [vmem:[#allocation2 + $0x438] sm:$0xff]  ;;  %v5287_v53 = vld [vmem:[#allocation2 + $0x5a0] sm:$0xff] }
 0xcd0   :  { %5272 = vst.msk [vmem:[#allocation2 + $0x618] sm:$0xff] %vm5219_vm2, %v5265_v49  ;;  %v6958_v41 = vpack.c.bf16 %v5284_v20, %v5283_v25  ;;  %v5531_v49 = vld [vmem:[%s12210_s19 + $0x18] sm:$0xff]  ;;  %v5532_v20 = vld [vmem:[%s12210_s19 + $0x20] sm:$0xff] }
 0xcd1   :  { %v6986_v25 = vpack.c.bf16 %v5531_v49, %v5530_v40 }
 0xcd2   :  { %6959 = vmatpush3.bf16.msra.mxu1 %v6958_v41  ;;  %v5533_v41 = vld [vmem:[%s12210_s19 + $0x28] sm:$0xff] }
 0xcd3   :  { %6960 = vmatprep.subr.bf16.mxu1 %v12277_v42  ;;  %v5286_v36 = vld [vmem:[#allocation2 + $0x528] sm:$0xff]  ;;  %v5289_v30 = vld [vmem:[#allocation2 + $0x690] sm:$0xff] }
 0xcd4   :  { %v6961_v15 = vpack.c.bf16 %v5286_v36, %v5285_v5  ;;  %v6989_v5 = vpack.c.bf16 %v5533_v41, %v5532_v20  ;;  %v5534_v36 = vld [vmem:[%s12210_s19 + $0x30] sm:$0xff] }
 0xcd6   :  { %6962 = vmatpush3.bf16.msra.mxu1 %v6961_v15 }
 0xcd7   :  { %6963 = vmatprep.subr.bf16.mxu1 %v12277_v42  ;;  %v5288_v19 = vld [vmem:[#allocation2 + $0x618] sm:$0xff] }
 0xcd8   :  { %v6964_v33 = vpack.c.bf16 %v5288_v19, %v5287_v53 }
 0xcda   :  { %6965 = vmatpush3.bf16.msra.mxu1 %v6964_v33 }
 0xcdb   :  { %5874 = vmatprep.subr.mxu1 %v12278_v24 }
 0xcde   :  { %5875 = vmatpush3.msra.mxu1 %v5289_v30 }
 0xcdf   :  { %5877 = vmatmul.mubr.msk.f32.vlgmr.msra.gmra.mrb[22].mxu1 %vm5296_vm0, %v5274_v9  ;;  %6982 = vmatprep.subr.bf16.mxu1 %v12277_v42 }
 0xce0   :  { %5916 = vmatprep.mubr.msk.f32.mxu1 %vm7216_vm1, %v12278_v24  ;;  %v5294_v32 = vpop.permute.xlu1 %5293  ;;  %vm5429_vm1 = vcmask 605184   ;;  %6984 = vmatpush3.bf16.msra.mxu1 %v6983_v7 }
 0xce1   :  { %6985 = vmatprep.subr.bf16.mxu1 %v12277_v42 }
 0xce4   :  { %6987 = vmatpush3.bf16.msra.mxu1 %v6986_v25 }
 0xce5   :  { %6988 = vmatprep.subr.bf16.mxu1 %v12277_v42 }
 0xce8   :  { %6990 = vmatpush3.bf16.msra.mxu1 %v6989_v5 }
 0xce9   :  { %5914 = vmatprep.subr.mxu1 %v12278_v24 }
 0xcec   :  { %5915 = vmatpush3.msra.mxu1 %v5534_v36 }
 0xdb2   :  { %v5366_v12 = vpop.f32.mrb[22].mxu1 }
 0xdb3   :  { %v5367_v37 = vadd.f32 %v5366_v12, %v5294_v32  ;;  %v5878_v17 = vpop.f32.mrb[23].mxu1  ;;  %v5535_v12 = vld [vmem:[%s12211_s20] sm:$0x1] }
 0xdb5   :  { %v5377_v52 = vmul.f32 %v5684_v31, %v5367_v37 }
 0xdb7   :  { %v5379_v3 = vsel %vm5378_vm5, %v5377_v52, 0.0 }
 0xdb8   :  { %5380 = vadd.xlane.f32.xlu0 %v5379_v3 }
 0xe45   :  { %v5381_v28 = vpop.xlane.xlu0 %5380 }
 0xe46   :  { %v5382_v48 = vmul.f32 0.015625, %v5381_v28 }
 0xe48   :  { %v5383_v60 = vsub.f32 %v5367_v37, %v5382_v48 }
 0xe4a   :  { %v5384_v18 = vmul.f32 %v5684_v31, %v5383_v60 }
 0xe4c   :  { %v5385_v29 = vmul.f32 %v5384_v18, %v5384_v18 }
 0xe4e   :  { %v5386_v51 = vsel %vm5378_vm5, %v5385_v29, 0.0 }
 0xe4f   :  { %5387 = vadd.xlane.f32.xlu1 %v5386_v51 }
 0xedc   :  { %v5388_v2 = vpop.xlane.xlu1 %5387 }
 0xedd   :  { %v5389_v21 = vmul.f32 0.015625, %v5388_v2 }
 0xedf   :  { %v5391_v35 = vadd.f32 1e-05, %v5389_v21 }
 0xee1   :  { %7175 = vrsqrt.f32 %v5391_v35 }
 0xeeb   :  { %v7176_v4 = vpop.eup %7175 }
 0xeec   :  { %v5393_v16 = vmul.f32 %v7176_v4, %v5390_v45 }
 0xeee   :  { %5399 = vperm.xlu0 %7044, %v5393_v16   ;;  %v5395_v56 = vmul.f32 %v5393_v16, %v5382_v48 }
 0xef0   :  { %v5396_v1 = vsub.f32 %v5394_v63, %v5395_v56 }
 0xef2   :  { %5405 = vperm.xlu1 %7045, %v5396_v1  }
 0xf6d   :  { %v5400_v11 = vpop.permute.xlu0 %5399 }
 0xf6e   :  { %v5402_v55 = vmul.f32 %v5400_v11, %v5367_v37 }
 0xf71   :  { %v5406_v14 = vpop.permute.xlu1 %5405 }
 0xf72   :  { %v5408_v34 = vadd.f32 %v5406_v14, %v5402_v55 }
 0xf74   :  { %v5409_v43 = vmax.f32 %v5408_v34, 0.0 }
 0xf76   :  { %5415 = vrot.lane.b32.xlu1 %v5409_v43, %s12281_s3  ;;  %5411 = vrot.lane.b32.xlu0 %v5409_v43, %s7204_s29 }
 0xfe8   :  { %v5412_v6 = vpop.permute.xlu0 %5411  ;;  %v5416_v8 = vpop.permute.xlu1 %5415 }
 0xfe9   :  { %v5414_v27 = vmax.f32 %v5409_v43, %v5412_v6 }
 0xfeb   :  { %v5418_v23 = vmax.f32 %v5414_v27, %v5416_v8 }
 0xfed   :  { %5900 = vmatmul.mubr.msk.f32.vlgmr.msra.gmra.mrb[22].mxu0 %vm5429_vm1, %v5418_v23 }
0x10c0   :  { %v5502_v15 = vpop.f32.mrb[22].mxu0 }
0x10c1   :  { %5507 = vst.msk [vmem:[#allocation2] sm:$0x1] %vm5506_vm3, %v5502_v15  ;;  %v5509_v42 = vrot.slane %v5502_v15, 1  ;;  %v5515_v53 = vrot.slane %v5502_v15, 2  ;;  %v5901_v19 = vpop.f32.mrb[23].mxu0  ;;  %v5521_v33 = vrot.slane %v5502_v15, 3 }
0x10c3   :  { %5516 = vrot.lane.b32.xlu1 %v5515_v53, %s7227_s30  ;;  %5510 = vrot.lane.b32.xlu0 %v5509_v42, %s7228_s25 }
0x10c7   :  { %5522 = vrot.lane.b32.xlu0 %v5521_v33, %s7229_s16 }
0x1135   :  { %v5517_v24 = vpop.permute.xlu1 %5516  ;;  %v5511_v9 = vpop.permute.xlu0 %5510 }
0x1136   :  { %5514 = vst.msk [vmem:[#allocation2] sm:$0x1] %vm5513_vm7, %v5511_v9 }
0x1137   :  { %5520 = vst.msk [vmem:[#allocation2] sm:$0x1] %vm5519_vm8, %v5517_v24 }
0x1139   :  { %v5523_v30 = vpop.permute.xlu0 %5522 }
0x113a   :  { %5526 = vst.msk [vmem:[#allocation2] sm:$0x1] %vm5525_vm9, %v5523_v30 }
0x1141   :  { %v5527_v32 = vld [vmem:[#allocation2] ss:$0 sm:$0xff] }
0x1142   :  { %5917 = vmatmul.mubr.msk.f32.vlgmr.msra.gmra.mrb[24].mxu1 %vm5536_vm12, %v5527_v32 }
0x1215   :  { %v5606_v31 = vpop.f32.mrb[24].mxu1 }
0x1216   :  { %v5607_v37 = vadd.f32 %v5606_v31, %v5535_v12  ;;  %v5918_v17 = vpop.f32.mrb[25].mxu1 }
0x1218   :  { %v5610_v52 = vmax.f32 %v5607_v37, 0.0 }
0x121a   :  { %5612 = vst.msk [vmem:[#allocation3] sm:$0x1] %vm5611_vm11, %v5610_v52 }
0x121b   :  { %7189 = shalt.err (!%p7186_p4)
}
0x121c   :  { %s7190_s20 = scalar_lea.hbm %s12212_s21, 16 }
0x121d   :  { %p7191_p5 = scmp.ne.s32.totalorder %s12212_s21, %s7190_s20  ;;  %p7194_p6 = scmp.lt.u32.totalorder %s7190_s20, %s12212_s21 }
0x121f   :  { %p7196_p7 = pnand %p7194_p6, %p7191_p5 }
0x1221   :  { %7199 = shalt.err (!%p7196_p7)
}
0x1222   :  { %5622 = dma.vmem_to_hbm [thread:$0]  %s5620_s22, 16, %s12212_s21, [#allocation4]  }
0x1223   :  { %7200 = dma.done.wait [#allocation4], 16  }
0x1224   :  { %7201 = vsyncadd [#allocation4], 4294967280 }
0x1225   :  { %5626 = vsyncpa [#allocation4], 1 }

</bundles_post_ra>
